<compile_context>
chip_gen: v7x
topology: tpu7x:2x2x1
jax: 0.10.0
libtpu: 0.0.40
codegen_flags: <defaults>
</compile_context>

<pallas_src>
import jax
import jax.numpy as jnp
from jax.experimental import pallas as pl
from jax.experimental.pallas import tpu as pltpu

# ----------------------------------------------------------------------------
# Model configuration (matches the PyTorch module defaults; spatial size must
# be 84x84 because the module freezes conv_output_size from an 84x84 probe).
# ----------------------------------------------------------------------------
CONV_LAYERS = [[32, 8, 4], [64, 4, 2], [64, 3, 1]]   # (out_c, kernel, stride)
INPUT_CHANNELS = 4
OUTPUT_DIM = 512
INPUT_HW = 84

H1, H2, H3 = 20, 9, 7          # conv1/2/3 output spatial sizes for 84x84 input
C1, C2, C3 = 32, 64, 64        # conv out channels
CONV_OUTPUT_SIZE = C3 * H3 * H3                     # 3136

# Flattened-spatial row counts used by the conv kernels.
S2D4_HW = INPUT_HW // 4        # 21   (space-to-depth(4) grid of the input)
S2D4_ROWS = S2D4_HW * S2D4_HW  # 441
S2D4_ROWS_PAD = 464            # >= 441 + max shift (22), multiple of 8
CONV1_OUT_ROWS = S2D4_ROWS     # 441  (rows with p==20 or q==20 are don't-care)

S2D2_HW = H1 // 2              # 10   (space-to-depth(2) grid of conv1 output)
S2D2_ROWS = S2D2_HW * S2D2_HW  # 100
S2D2_ROWS_PAD = 112            # >= 100 + max shift (11), multiple of 8
CONV3_OUT_ROWS = H3 * S2D2_HW  # 70   (cols 7..9 of the 10-wide grid don't-care)

NEG_SLOPE = 0.01               # torch.nn.LeakyReLU default
VMEM_LIMIT = 32 * 1024 * 1024  # explicit scoped-VMEM budget (v5e/v6e/v7x safe)


def _leaky(x):
    return jnp.where(x >= 0, x, NEG_SLOPE * x)


def _round_up(x, m):
    return ((x + m - 1) // m) * m


def _conv_compiler_params():
    return pltpu.CompilerParams(dimension_semantics=("parallel",),
                                vmem_limit_bytes=VMEM_LIMIT)


# ----------------------------------------------------------------------------
# Kernel 1: conv1 (8x8 / stride 4) as 4 shifted matmuls on the s2d(4) input
# ----------------------------------------------------------------------------
def _conv1_kernel(x_ref, w_ref, b_ref, o_ref):
    # x_ref: (1, 464, 64) flattened 21x21 s2d(4) grid (+ zero pad rows)
    # w_ref: (4, 64, 32)  row index k = dh*2 + dw
    # o_ref: (1, 441, 32) flattened 21x21 output grid (p==20 / q==20 discarded)
    acc = jnp.zeros((CONV1_OUT_ROWS, C1), jnp.float32)
    for k, (dh, dw) in enumerate(((0, 0), (0, 1), (1, 0), (1, 1))):
        off = dh * S2D4_HW + dw
        acc = acc + jnp.dot(x_ref[0, off:off + CONV1_OUT_ROWS, :], w_ref[k],
                            preferred_element_type=jnp.float32)
    acc = _leaky(acc + b_ref[...])
    o_ref[0] = acc.astype(o_ref.dtype)


def conv1_call(x_flat, w, b):
    B = x_flat.shape[0]
    return pl.pallas_call(
        _conv1_kernel,
        out_shape=jax.ShapeDtypeStruct((B, CONV1_OUT_ROWS, C1), jnp.bfloat16),
        grid=(B,),
        in_specs=[
            pl.BlockSpec((1, S2D4_ROWS_PAD, 16 * INPUT_CHANNELS), lambda b: (b, 0, 0)),
            pl.BlockSpec((4, 16 * INPUT_CHANNELS, C1), lambda b: (0, 0, 0)),
            pl.BlockSpec((1, C1), lambda b: (0, 0)),
        ],
        out_specs=pl.BlockSpec((1, CONV1_OUT_ROWS, C1), lambda b: (b, 0, 0)),
        compiler_params=_conv_compiler_params(),
    )(x_flat, w, b)


# ----------------------------------------------------------------------------
# Kernel 2: conv2 (4x4/s2) + conv3 (3x3/s1) fused; intermediate stays in VMEM
# ----------------------------------------------------------------------------
def _conv23_kernel(x_ref, w2_ref, b2_ref, w3_ref, b3_ref, o_ref, h2_ref):
    # x_ref : (1, 112, 128) flattened 10x10 s2d(2) view of conv1 output (+ pad)
    # w2_ref: (4, 128, 64)  k = dh*2 + dw      w3_ref: (9, 64, 64)  k = kh*3 + kw
    # h2_ref: (100, 64) VMEM scratch (10-wide grid of conv2 output)
    # o_ref : (1, 70, 64)   7x10 grid of conv3 output (cols 7..9 don't-care)
    acc2 = jnp.zeros((S2D2_ROWS, C2), jnp.float32)
    for k, (dh, dw) in enumerate(((0, 0), (0, 1), (1, 0), (1, 1))):
        off = dh * S2D2_HW + dw
        acc2 = acc2 + jnp.dot(x_ref[0, off:off + S2D2_ROWS, :], w2_ref[k],
                              preferred_element_type=jnp.float32)
    h2_ref[...] = _leaky(acc2 + b2_ref[...]).astype(jnp.bfloat16)

    acc3 = jnp.zeros((CONV3_OUT_ROWS, C3), jnp.float32)
    for kh in range(3):
        for kw in range(3):
            off = kh * S2D2_HW + kw
            acc3 = acc3 + jnp.dot(h2_ref[off:off + CONV3_OUT_ROWS, :],
                                  w3_ref[kh * 3 + kw],
                                  preferred_element_type=jnp.float32)
    o_ref[0] = _leaky(acc3 + b3_ref[...]).astype(o_ref.dtype)


def conv23_call(x_flat, w2, b2, w3, b3):
    B = x_flat.shape[0]
    return pl.pallas_call(
        _conv23_kernel,
        out_shape=jax.ShapeDtypeStruct((B, CONV3_OUT_ROWS, C3), jnp.bfloat16),
        grid=(B,),
        in_specs=[
            pl.BlockSpec((1, S2D2_ROWS_PAD, 4 * C1), lambda b: (b, 0, 0)),
            pl.BlockSpec((4, 4 * C1, C2), lambda b: (0, 0, 0)),
            pl.BlockSpec((1, C2), lambda b: (0, 0)),
            pl.BlockSpec((9, C2, C3), lambda b: (0, 0, 0)),
            pl.BlockSpec((1, C3), lambda b: (0, 0)),
        ],
        out_specs=pl.BlockSpec((1, CONV3_OUT_ROWS, C3), lambda b: (b, 0, 0)),
        scratch_shapes=[pltpu.VMEM((S2D2_ROWS, C2), jnp.bfloat16)],
        compiler_params=_conv_compiler_params(),
    )(x_flat, w2, b2, w3, b3)


# ----------------------------------------------------------------------------
# Kernel 3: fused FC stack  out = relu(relu(x@w0+b0)@w1+b1)@w2 + b2
# ----------------------------------------------------------------------------
def _fused_fc_kernel(x_ref, w0_ref, b0_ref, w1_ref, b1_ref, w2_ref, b2_ref, o_ref):
    h = jnp.dot(x_ref[...], w0_ref[...], preferred_element_type=jnp.float32)
    h = jnp.maximum(h + b0_ref[...], 0.0).astype(jnp.bfloat16)
    h = jnp.dot(h, w1_ref[...], preferred_element_type=jnp.float32)
    h = jnp.maximum(h + b1_ref[...], 0.0).astype(jnp.bfloat16)
    h = jnp.dot(h, w2_ref[...], preferred_element_type=jnp.float32)
    o_ref[...] = (h + b2_ref[...]).astype(o_ref.dtype)


def fused_fc(x, w0, b0, w1, b1, w2, b2):
    M, K0 = x.shape
    N0, N1, N2 = w0.shape[1], w1.shape[1], w2.shape[1]
    # Small batch: one tile so the resident bf16 fc weights are DMA'd once
    # (splitting across v7x's two TCs would duplicate the dominant weight
    # traffic).  Larger batch: two balanced row tiles so both TCs get work.
    if M <= 16:
        tm = M
    else:
        tm = min(256, _round_up(pl.cdiv(M, 2), 8))
    grid_m = pl.cdiv(M, tm)
    return pl.pallas_call(
        _fused_fc_kernel,
        out_shape=jax.ShapeDtypeStruct((M, N2), jnp.float32),
        grid=(grid_m,),
        in_specs=[
            pl.BlockSpec((tm, K0), lambda i: (i, 0)),   # streamed activation tiles
            pl.BlockSpec((K0, N0), lambda i: (0, 0)),   # resident weights / biases
            pl.BlockSpec((1, N0), lambda i: (0, 0)),
            pl.BlockSpec((N0, N1), lambda i: (0, 0)),
            pl.BlockSpec((1, N1), lambda i: (0, 0)),
            pl.BlockSpec((N1, N2), lambda i: (0, 0)),
            pl.BlockSpec((1, N2), lambda i: (0, 0)),
        ],
        out_specs=pl.BlockSpec((tm, N2), lambda i: (i, 0)),
        compiler_params=pltpu.CompilerParams(
            dimension_semantics=("parallel",), vmem_limit_bytes=VMEM_LIMIT),
    )(x, w0, b0, w1, b1, w2, b2)


# ----------------------------------------------------------------------------
# Parameters: PyTorch layout at init, packed once into the kernel layouts
# ----------------------------------------------------------------------------
def init_params(key):
    """Parameters in PyTorch layout: Conv2d (out,in,kh,kw), Linear (out,in)."""
    params = {}
    in_c = INPUT_CHANNELS
    for li, (out_c, k, _s) in enumerate(CONV_LAYERS):
        key, kw_, kb = jax.random.split(key, 3)
        scale = 1.0 / jnp.sqrt(in_c * k * k)
        params[f"conv{li}_w"] = jax.random.normal(kw_, (out_c, in_c, k, k), jnp.float32) * scale
        params[f"conv{li}_b"] = jax.random.normal(kb, (out_c,), jnp.float32) * scale
        in_c = out_c
    fc_dims = [(CONV_OUTPUT_SIZE, 512), (512, 512), (512, OUTPUT_DIM)]
    for li, (d_in, d_out) in enumerate(fc_dims):
        key, kw_, kb = jax.random.split(key, 3)
        scale = 1.0 / jnp.sqrt(d_in)
        params[f"fc{li}_w"] = jax.random.normal(kw_, (d_out, d_in), jnp.float32) * scale
        params[f"fc{li}_b"] = jax.random.normal(kb, (d_out,), jnp.float32) * scale
    return params


def pack_params(params):
    """One-time repack of PyTorch-layout params into the kernel layouts."""
    packed = {}
    # conv1: (32,4,8,8) -> (4, 64, 32); kh = 4*dh + a, kw = 4*dw + b,
    # input slot = a*16 + b*4 + cin (matches the s2d(4) channel packing).
    w = params["conv0_w"].reshape(C1, INPUT_CHANNELS, 2, 4, 2, 4)   # [o,cin,dh,a,dw,b]
    w = jnp.transpose(w, (2, 4, 3, 5, 1, 0))                        # [dh,dw,a,b,cin,o]
    packed["conv0_w"] = w.reshape(4, 16 * INPUT_CHANNELS, C1).astype(jnp.bfloat16)
    packed["conv0_b"] = params["conv0_b"].reshape(1, C1).astype(jnp.float32)
    # conv2: (64,32,4,4) -> (4, 128, 64); kh = 2*dh + a, kw = 2*dw + b,
    # input slot = a*64 + b*32 + c1 (matches the s2d(2) packing of conv1 output).
    w = params["conv1_w"].reshape(C2, C1, 2, 2, 2, 2)               # [o,c1,dh,a,dw,b]
    w = jnp.transpose(w, (2, 4, 3, 5, 1, 0))                        # [dh,dw,a,b,c1,o]
    packed["conv1_w"] = w.reshape(4, 4 * C1, C2).astype(jnp.bfloat16)
    packed["conv1_b"] = params["conv1_b"].reshape(1, C2).astype(jnp.float32)
    # conv3: (64,64,3,3) -> (9, 64, 64), row index kh*3 + kw.
    w = jnp.transpose(params["conv2_w"], (2, 3, 1, 0))              # [kh,kw,c2,o]
    packed["conv2_w"] = w.reshape(9, C2, C3).astype(jnp.bfloat16)
    packed["conv2_b"] = params["conv2_b"].reshape(1, C3).astype(jnp.float32)
    # fc0: permuted to consume the (h, w, c)-ordered flatten of the NHWC conv
    # output (torch flattens NCHW); stored as (in, out).
    d0 = params["fc0_w"].shape[0]
    w0 = params["fc0_w"].reshape(d0, C3, H3, H3)                    # [o, c, h, w]
    w0 = jnp.transpose(w0, (2, 3, 1, 0)).reshape(CONV_OUTPUT_SIZE, d0)
    packed["fc0_w"] = w0.astype(jnp.bfloat16)
    packed["fc0_b"] = params["fc0_b"].reshape(1, -1).astype(jnp.float32)
    for li in (1, 2):
        packed[f"fc{li}_w"] = params[f"fc{li}_w"].T.astype(jnp.bfloat16)
        packed[f"fc{li}_b"] = params[f"fc{li}_b"].reshape(1, -1).astype(jnp.float32)
    return packed


# ----------------------------------------------------------------------------
# Forward pass (semantics == RNDNetwork.forward on NCHW input)
# ----------------------------------------------------------------------------
def rnd_forward(packed, x_nchw):
    B = x_nchw.shape[0]
    x = jnp.transpose(x_nchw.astype(jnp.bfloat16), (0, 2, 3, 1))             # NHWC
    # space-to-depth(4): pure layout op, NO im2col duplication -> (B, 441, 64)
    x = x.reshape(B, S2D4_HW, 4, S2D4_HW, 4, INPUT_CHANNELS)
    x = x.transpose(0, 1, 3, 2, 4, 5).reshape(B, S2D4_ROWS, 16 * INPUT_CHANNELS)
    x = jnp.pad(x, ((0, 0), (0, S2D4_ROWS_PAD - S2D4_ROWS), (0, 0)))

    h1 = conv1_call(x, packed["conv0_w"], packed["conv0_b"])                 # (B, 441, 32)

    # keep the valid 20x20 grid, space-to-depth(2), flatten spatial, pad rows
    h1 = h1.reshape(B, S2D4_HW, S2D4_HW, C1)[:, :H1, :H1, :]
    h1 = h1.reshape(B, S2D2_HW, 2, S2D2_HW, 2, C1)
    h1 = h1.transpose(0, 1, 3, 2, 4, 5).reshape(B, S2D2_ROWS, 4 * C1)
    h1 = jnp.pad(h1, ((0, 0), (0, S2D2_ROWS_PAD - S2D2_ROWS), (0, 0)))

    h3 = conv23_call(h1, packed["conv1_w"], packed["conv1_b"],
                     packed["conv2_w"], packed["conv2_b"])                   # (B, 70, 64)

    # keep the valid 7x7 grid and flatten in (h, w, c) order (fc0_w was
    # permuted at pack time to match torch's NCHW flatten).
    feat = h3.reshape(B, H3, S2D2_HW, C3)[:, :, :H3, :].reshape(B, CONV_OUTPUT_SIZE)

    return fused_fc(feat, packed["fc0_w"], packed["fc0_b"],
                    packed["fc1_w"], packed["fc1_b"],
                    packed["fc2_w"], packed["fc2_b"])


# ----------------------------------------------------------------------------
# Pure-JAX f32 reference (mirrors the PyTorch module exactly)
# ----------------------------------------------------------------------------
def rnd_reference(params, x_nchw):
    x = x_nchw.astype(jnp.float32)
    for li, (_out_c, _k, s) in enumerate(CONV_LAYERS):
        x = jax.lax.conv_general_dilated(
            x, params[f"conv{li}_w"], window_strides=(s, s), padding="VALID",
            dimension_numbers=("NCHW", "OIHW", "NCHW"))
        x = x + params[f"conv{li}_b"][None, :, None, None]
        x = jnp.where(x >= 0, x, NEG_SLOPE * x)
    x = x.reshape(x.shape[0], -1)
    x = jnp.maximum(x @ params["fc0_w"].T + params["fc0_b"], 0.0)
    x = jnp.maximum(x @ params["fc1_w"].T + params["fc1_b"], 0.0)
    return x @ params["fc2_w"].T + params["fc2_b"]


if __name__ == "__main__":
    key = jax.random.PRNGKey(0)
    key, kx = jax.random.split(key)
    params = init_params(key)
    packed = pack_params(params)     # one-time weight repack, outside the hot path

    # Spatial size must be 84x84: the module freezes conv_output_size from a
    # 1x4x84x84 probe in __init__, so fc0 only accepts that flatten size.
    x = jax.random.normal(kx, (2, INPUT_CHANNELS, INPUT_HW, INPUT_HW), jnp.float32)

    out = jax.block_until_ready(jax.jit(rnd_forward)(packed, x))

    assert out.shape == (2, OUTPUT_DIM), out.shape
    assert out.dtype == jnp.float32
    assert bool(jnp.all(jnp.isfinite(out)))

    # Sanity check vs. the f32 reference (kernel uses bf16 MXU inputs with
    # f32 accumulation, so a few-percent tolerance is expected).
    ref = rnd_reference(params, x)
    abs_err = jnp.abs(out - ref)
    max_rel = float(jnp.max(abs_err) / (jnp.max(jnp.abs(ref)) + 1e-6))
    mean_rel = float(jnp.mean(abs_err) / (jnp.mean(jnp.abs(ref)) + 1e-6))
    assert max_rel < 0.1, f"kernel/reference mismatch: max_rel={max_rel:.4f}"
    assert mean_rel < 0.05, f"kernel/reference mismatch: mean_rel={mean_rel:.4f}"

    print("KERNEL_OK")
</pallas_src>

<mosaic_0001>
module attributes {stable_mosaic.version = 11 : i64} {
  func.func @_conv1_kernel(%arg0: i32, %arg1: memref<1x464x64xbf16, #tpu.memory_space<vmem>>, %arg2: memref<4x64x32xbf16, #tpu.memory_space<vmem>>, %arg3: memref<1x32xf32, #tpu.memory_space<vmem>>, %arg4: memref<1x441x32xbf16, #tpu.memory_space<vmem>>) attributes {dimension_semantics = [#tpu.dimension_semantics<parallel>], iteration_bounds = array<i64: 2>, scalar_prefetch = 0 : i64, scratch_operands = 0 : i64, tpu.core_type = #tpu.core_type<tc>, window_params = [{transform_indices = @transform_0, window_bounds = array<i64: 1, 464, 64>}, {pipeline_mode = #tpu.pipeline_mode<synchronous>, transform_indices = @transform_1, window_bounds = array<i64: 4, 64, 32>}, {pipeline_mode = #tpu.pipeline_mode<synchronous>, transform_indices = @transform_2, window_bounds = array<i64: 1, 32>}, {transform_indices = @transform_3, window_bounds = array<i64: 1, 441, 32>}]} {
    %cst = arith.constant 0.000000e+00 : f32
    %0 = vector.broadcast %cst : f32 to vector<441x32xf32>
    %c0 = arith.constant 0 : index
    %c0_0 = arith.constant 0 : index
    %c0_1 = arith.constant 0 : index
    %1 = vector.load %arg1[%c0, %c0_0, %c0_1] : memref<1x464x64xbf16, #tpu.memory_space<vmem>>, vector<1x441x64xbf16>
    %2 = vector.shape_cast %1 : vector<1x441x64xbf16> to vector<441x64xbf16>
    %c0_2 = arith.constant 0 : index
    %c0_3 = arith.constant 0 : index
    %c0_4 = arith.constant 0 : index
    %3 = vector.load %arg2[%c0_2, %c0_3, %c0_4] : memref<4x64x32xbf16, #tpu.memory_space<vmem>>, vector<1x64x32xbf16>
    %4 = vector.shape_cast %3 : vector<1x64x32xbf16> to vector<64x32xbf16>
    %cst_5 = arith.constant dense<0.000000e+00> : vector<441x32xf32>
    %5 = tpu.matmul %2, %4, %cst_5 {dimension_numbers = #tpu.dot_dimension_numbers<[1], [0], [0], [1], [0, 0, 1, 1], [], []>} : vector<441x64xbf16>, vector<64x32xbf16>, vector<441x32xf32> -> vector<441x32xf32>
    %6 = arith.addf %0, %5 : vector<441x32xf32>
    %c0_6 = arith.constant 0 : index
    %c1 = arith.constant 1 : index
    %c0_7 = arith.constant 0 : index
    %7 = vector.load %arg1[%c0_6, %c1, %c0_7] : memref<1x464x64xbf16, #tpu.memory_space<vmem>>, vector<1x441x64xbf16>
    %8 = vector.shape_cast %7 : vector<1x441x64xbf16> to vector<441x64xbf16>
    %c1_8 = arith.constant 1 : index
    %c0_9 = arith.constant 0 : index
    %c0_10 = arith.constant 0 : index
    %9 = vector.load %arg2[%c1_8, %c0_9, %c0_10] : memref<4x64x32xbf16, #tpu.memory_space<vmem>>, vector<1x64x32xbf16>
    %10 = vector.shape_cast %9 : vector<1x64x32xbf16> to vector<64x32xbf16>
    %cst_11 = arith.constant dense<0.000000e+00> : vector<441x32xf32>
    %11 = tpu.matmul %8, %10, %cst_11 {dimension_numbers = #tpu.dot_dimension_numbers<[1], [0], [0], [1], [0, 0, 1, 1], [], []>} : vector<441x64xbf16>, vector<64x32xbf16>, vector<441x32xf32> -> vector<441x32xf32>
    %12 = arith.addf %6, %11 : vector<441x32xf32>
    %c0_12 = arith.constant 0 : index
    %c21 = arith.constant 21 : index
    %c0_13 = arith.constant 0 : index
    %13 = vector.load %arg1[%c0_12, %c21, %c0_13] : memref<1x464x64xbf16, #tpu.memory_space<vmem>>, vector<1x441x64xbf16>
    %14 = vector.shape_cast %13 : vector<1x441x64xbf16> to vector<441x64xbf16>
    %c2 = arith.constant 2 : index
    %c0_14 = arith.constant 0 : index
    %c0_15 = arith.constant 0 : index
    %15 = vector.load %arg2[%c2, %c0_14, %c0_15] : memref<4x64x32xbf16, #tpu.memory_space<vmem>>, vector<1x64x32xbf16>
    %16 = vector.shape_cast %15 : vector<1x64x32xbf16> to vector<64x32xbf16>
    %cst_16 = arith.constant dense<0.000000e+00> : vector<441x32xf32>
    %17 = tpu.matmul %14, %16, %cst_16 {dimension_numbers = #tpu.dot_dimension_numbers<[1], [0], [0], [1], [0, 0, 1, 1], [], []>} : vector<441x64xbf16>, vector<64x32xbf16>, vector<441x32xf32> -> vector<441x32xf32>
    %18 = arith.addf %12, %17 : vector<441x32xf32>
    %c0_17 = arith.constant 0 : index
    %c22 = arith.constant 22 : index
    %c0_18 = arith.constant 0 : index
    %19 = vector.load %arg1[%c0_17, %c22, %c0_18] : memref<1x464x64xbf16, #tpu.memory_space<vmem>>, vector<1x441x64xbf16>
    %20 = vector.shape_cast %19 : vector<1x441x64xbf16> to vector<441x64xbf16>
    %c3 = arith.constant 3 : index
    %c0_19 = arith.constant 0 : index
    %c0_20 = arith.constant 0 : index
    %21 = vector.load %arg2[%c3, %c0_19, %c0_20] : memref<4x64x32xbf16, #tpu.memory_space<vmem>>, vector<1x64x32xbf16>
    %22 = vector.shape_cast %21 : vector<1x64x32xbf16> to vector<64x32xbf16>
    %cst_21 = arith.constant dense<0.000000e+00> : vector<441x32xf32>
    %23 = tpu.matmul %20, %22, %cst_21 {dimension_numbers = #tpu.dot_dimension_numbers<[1], [0], [0], [1], [0, 0, 1, 1], [], []>} : vector<441x64xbf16>, vector<64x32xbf16>, vector<441x32xf32> -> vector<441x32xf32>
    %24 = arith.addf %18, %23 : vector<441x32xf32>
    %c0_22 = arith.constant 0 : index
    %c0_23 = arith.constant 0 : index
    %25 = vector.load %arg3[%c0_22, %c0_23] : memref<1x32xf32, #tpu.memory_space<vmem>>, vector<1x32xf32>
    %26 = vector.broadcast %25 : vector<1x32xf32> to vector<441x32xf32>
    %27 = arith.addf %24, %26 : vector<441x32xf32>
    %cst_24 = arith.constant 0.000000e+00 : f32
    %28 = vector.broadcast %cst_24 : f32 to vector<441x32xf32>
    %29 = arith.cmpf oge, %27, %28 : vector<441x32xf32>
    %cst_25 = arith.constant 0.00999999977 : f32
    %30 = vector.broadcast %cst_25 : f32 to vector<441x32xf32>
    %31 = arith.mulf %30, %27 : vector<441x32xf32>
    %32 = arith.select %29, %27, %31 : vector<441x32xi1>, vector<441x32xf32>
    %33 = arith.truncf %32 : vector<441x32xf32> to vector<441x32xbf16>
    %c0_26 = arith.constant 0 : index
    %c0_27 = arith.constant 0 : index
    %c0_28 = arith.constant 0 : index
    %34 = vector.load %arg4[%c0_26, %c0_27, %c0_28] : memref<1x441x32xbf16, #tpu.memory_space<vmem>>, vector<1x441x32xbf16>
    %35 = vector.shape_cast %34 : vector<1x441x32xbf16> to vector<441x32xbf16>
    %36 = vector.shape_cast %33 : vector<441x32xbf16> to vector<1x441x32xbf16>
    tpu.vector_store %arg4[%c0_26, %c0_27, %c0_28], %36 {strides = array<i32>} : memref<1x441x32xbf16, #tpu.memory_space<vmem>>, vector<1x441x32xbf16>,
    return
  }
  func.func @transform_0(%arg0: i32) -> (i32, i32, i32) {
    %c0_i32 = arith.constant 0 : i32
    %c0_i32_0 = arith.constant 0 : i32
    %c0_i32_1 = arith.constant 0 : i32
    return %arg0, %c0_i32, %c0_i32_0 : i32, i32, i32
  }
  func.func @transform_1(%arg0: i32) -> (i32, i32, i32) {
    %c0_i32 = arith.constant 0 : i32
    %c0_i32_0 = arith.constant 0 : i32
    %c0_i32_1 = arith.constant 0 : i32
    %c0_i32_2 = arith.constant 0 : i32
    return %c0_i32, %c0_i32_0, %c0_i32_1 : i32, i32, i32
  }
  func.func @transform_2(%arg0: i32) -> (i32, i32) {
    %c0_i32 = arith.constant 0 : i32
    %c0_i32_0 = arith.constant 0 : i32
    %c0_i32_1 = arith.constant 0 : i32
    return %c0_i32, %c0_i32_0 : i32, i32
  }
  func.func @transform_3(%arg0: i32) -> (i32, i32, i32) {
    %c0_i32 = arith.constant 0 : i32
    %c0_i32_0 = arith.constant 0 : i32
    %c0_i32_1 = arith.constant 0 : i32
    return %arg0, %c0_i32, %c0_i32_0 : i32, i32, i32
  }
}

module attributes {stable_mosaic.version = 11 : i64} {
  func.func @_conv23_kernel(%arg0: i32, %arg1: memref<1x112x128xbf16, #tpu.memory_space<vmem>>, %arg2: memref<4x128x64xbf16, #tpu.memory_space<vmem>>, %arg3: memref<1x64xf32, #tpu.memory_space<vmem>>, %arg4: memref<9x64x64xbf16, #tpu.memory_space<vmem>>, %arg5: memref<1x64xf32, #tpu.memory_space<vmem>>, %arg6: memref<1x70x64xbf16, #tpu.memory_space<vmem>>, %arg7: memref<100x64xbf16, #tpu.memory_space<vmem>>) attributes {dimension_semantics = [#tpu.dimension_semantics<parallel>], iteration_bounds = array<i64: 2>, scalar_prefetch = 0 : i64, scratch_operands = 1 : i64, tpu.core_type = #tpu.core_type<tc>, window_params = [{transform_indices = @transform_0, window_bounds = array<i64: 1, 112, 128>}, {pipeline_mode = #tpu.pipeline_mode<synchronous>, transform_indices = @transform_1, window_bounds = array<i64: 4, 128, 64>}, {pipeline_mode = #tpu.pipeline_mode<synchronous>, transform_indices = @transform_2, window_bounds = array<i64: 1, 64>}, {pipeline_mode = #tpu.pipeline_mode<synchronous>, transform_indices = @transform_3, window_bounds = array<i64: 9, 64, 64>}, {pipeline_mode = #tpu.pipeline_mode<synchronous>, transform_indices = @transform_4, window_bounds = array<i64: 1, 64>}, {transform_indices = @transform_5, window_bounds = array<i64: 1, 70, 64>}]} {
    %cst = arith.constant 0.000000e+00 : f32
    %0 = vector.broadcast %cst : f32 to vector<100x64xf32>
    %c0 = arith.constant 0 : index
    %c0_0 = arith.constant 0 : index
    %c0_1 = arith.constant 0 : index
    %1 = vector.load %arg1[%c0, %c0_0, %c0_1] : memref<1x112x128xbf16, #tpu.memory_space<vmem>>, vector<1x100x128xbf16>
    %2 = vector.shape_cast %1 : vector<1x100x128xbf16> to vector<100x128xbf16>
    %c0_2 = arith.constant 0 : index
    %c0_3 = arith.constant 0 : index
    %c0_4 = arith.constant 0 : index
    %3 = vector.load %arg2[%c0_2, %c0_3, %c0_4] : memref<4x128x64xbf16, #tpu.memory_space<vmem>>, vector<1x128x64xbf16>
    %4 = vector.shape_cast %3 : vector<1x128x64xbf16> to vector<128x64xbf16>
    %cst_5 = arith.constant dense<0.000000e+00> : vector<100x64xf32>
    %5 = tpu.matmul %2, %4, %cst_5 {dimension_numbers = #tpu.dot_dimension_numbers<[1], [0], [0], [1], [0, 0, 1, 1], [], []>} : vector<100x128xbf16>, vector<128x64xbf16>, vector<100x64xf32> -> vector<100x64xf32>
    %6 = arith.addf %0, %5 : vector<100x64xf32>
    %c0_6 = arith.constant 0 : index
    %c1 = arith.constant 1 : index
    %c0_7 = arith.constant 0 : index
    %7 = vector.load %arg1[%c0_6, %c1, %c0_7] : memref<1x112x128xbf16, #tpu.memory_space<vmem>>, vector<1x100x128xbf16>
    %8 = vector.shape_cast %7 : vector<1x100x128xbf16> to vector<100x128xbf16>
    %c1_8 = arith.constant 1 : index
    %c0_9 = arith.constant 0 : index
    %c0_10 = arith.constant 0 : index
    %9 = vector.load %arg2[%c1_8, %c0_9, %c0_10] : memref<4x128x64xbf16, #tpu.memory_space<vmem>>, vector<1x128x64xbf16>
    %10 = vector.shape_cast %9 : vector<1x128x64xbf16> to vector<128x64xbf16>
    %cst_11 = arith.constant dense<0.000000e+00> : vector<100x64xf32>
    %11 = tpu.matmul %8, %10, %cst_11 {dimension_numbers = #tpu.dot_dimension_numbers<[1], [0], [0], [1], [0, 0, 1, 1], [], []>} : vector<100x128xbf16>, vector<128x64xbf16>, vector<100x64xf32> -> vector<100x64xf32>
    %12 = arith.addf %6, %11 : vector<100x64xf32>
    %c0_12 = arith.constant 0 : index
    %c10 = arith.constant 10 : index
    %c0_13 = arith.constant 0 : index
    %13 = vector.load %arg1[%c0_12, %c10, %c0_13] : memref<1x112x128xbf16, #tpu.memory_space<vmem>>, vector<1x100x128xbf16>
    %14 = vector.shape_cast %13 : vector<1x100x128xbf16> to vector<100x128xbf16>
    %c2 = arith.constant 2 : index
    %c0_14 = arith.constant 0 : index
    %c0_15 = arith.constant 0 : index
    %15 = vector.load %arg2[%c2, %c0_14, %c0_15] : memref<4x128x64xbf16, #tpu.memory_space<vmem>>, vector<1x128x64xbf16>
    %16 = vector.shape_cast %15 : vector<1x128x64xbf16> to vector<128x64xbf16>
    %cst_16 = arith.constant dense<0.000000e+00> : vector<100x64xf32>
    %17 = tpu.matmul %14, %16, %cst_16 {dimension_numbers = #tpu.dot_dimension_numbers<[1], [0], [0], [1], [0, 0, 1, 1], [], []>} : vector<100x128xbf16>, vector<128x64xbf16>, vector<100x64xf32> -> vector<100x64xf32>
    %18 = arith.addf %12, %17 : vector<100x64xf32>
    %c0_17 = arith.constant 0 : index
    %c11 = arith.constant 11 : index
    %c0_18 = arith.constant 0 : index
    %19 = vector.load %arg1[%c0_17, %c11, %c0_18] : memref<1x112x128xbf16, #tpu.memory_space<vmem>>, vector<1x100x128xbf16>
    %20 = vector.shape_cast %19 : vector<1x100x128xbf16> to vector<100x128xbf16>
    %c3 = arith.constant 3 : index
    %c0_19 = arith.constant 0 : index
    %c0_20 = arith.constant 0 : index
    %21 = vector.load %arg2[%c3, %c0_19, %c0_20] : memref<4x128x64xbf16, #tpu.memory_space<vmem>>, vector<1x128x64xbf16>
    %22 = vector.shape_cast %21 : vector<1x128x64xbf16> to vector<128x64xbf16>
    %cst_21 = arith.constant dense<0.000000e+00> : vector<100x64xf32>
    %23 = tpu.matmul %20, %22, %cst_21 {dimension_numbers = #tpu.dot_dimension_numbers<[1], [0], [0], [1], [0, 0, 1, 1], [], []>} : vector<100x128xbf16>, vector<128x64xbf16>, vector<100x64xf32> -> vector<100x64xf32>
    %24 = arith.addf %18, %23 : vector<100x64xf32>
    %c0_22 = arith.constant 0 : index
    %c0_23 = arith.constant 0 : index
    %25 = vector.load %arg3[%c0_22, %c0_23] : memref<1x64xf32, #tpu.memory_space<vmem>>, vector<1x64xf32>
    %26 = vector.broadcast %25 : vector<1x64xf32> to vector<100x64xf32>
    %27 = arith.addf %24, %26 : vector<100x64xf32>
    %cst_24 = arith.constant 0.000000e+00 : f32
    %28 = vector.broadcast %cst_24 : f32 to vector<100x64xf32>
    %29 = arith.cmpf oge, %27, %28 : vector<100x64xf32>
    %cst_25 = arith.constant 0.00999999977 : f32
    %30 = vector.broadcast %cst_25 : f32 to vector<100x64xf32>
    %31 = arith.mulf %30, %27 : vector<100x64xf32>
    %32 = arith.select %29, %27, %31 : vector<100x64xi1>, vector<100x64xf32>
    %33 = arith.truncf %32 : vector<100x64xf32> to vector<100x64xbf16>
    %c0_26 = arith.constant 0 : index
    %c0_27 = arith.constant 0 : index
    %34 = vector.load %arg7[%c0_26, %c0_27] : memref<100x64xbf16, #tpu.memory_space<vmem>>, vector<100x64xbf16>
    tpu.vector_store %arg7[%c0_26, %c0_27], %33 {strides = array<i32>} : memref<100x64xbf16, #tpu.memory_space<vmem>>, vector<100x64xbf16>,
    %cst_28 = arith.constant 0.000000e+00 : f32
    %35 = vector.broadcast %cst_28 : f32 to vector<70x64xf32>
    %c0_29 = arith.constant 0 : index
    %c0_30 = arith.constant 0 : index
    %36 = vector.load %arg7[%c0_29, %c0_30] : memref<100x64xbf16, #tpu.memory_space<vmem>>, vector<70x64xbf16>
    %c0_31 = arith.constant 0 : index
    %c0_32 = arith.constant 0 : index
    %c0_33 = arith.constant 0 : index
    %37 = vector.load %arg4[%c0_31, %c0_32, %c0_33] : memref<9x64x64xbf16, #tpu.memory_space<vmem>>, vector<1x64x64xbf16>
    %38 = vector.shape_cast %37 : vector<1x64x64xbf16> to vector<64x64xbf16>
    %cst_34 = arith.constant dense<0.000000e+00> : vector<70x64xf32>
    %39 = tpu.matmul %36, %38, %cst_34 {dimension_numbers = #tpu.dot_dimension_numbers<[1], [0], [0], [1], [0, 0, 1, 1], [], []>} : vector<70x64xbf16>, vector<64x64xbf16>, vector<70x64xf32> -> vector<70x64xf32>
    %40 = arith.addf %35, %39 : vector<70x64xf32>
    %c1_35 = arith.constant 1 : index
    %c0_36 = arith.constant 0 : index
    %41 = vector.load %arg7[%c1_35, %c0_36] : memref<100x64xbf16, #tpu.memory_space<vmem>>, vector<70x64xbf16>
    %c1_37 = arith.constant 1 : index
    %c0_38 = arith.constant 0 : index
    %c0_39 = arith.constant 0 : index
    %42 = vector.load %arg4[%c1_37, %c0_38, %c0_39] : memref<9x64x64xbf16, #tpu.memory_space<vmem>>, vector<1x64x64xbf16>
    %43 = vector.shape_cast %42 : vector<1x64x64xbf16> to vector<64x64xbf16>
    %cst_40 = arith.constant dense<0.000000e+00> : vector<70x64xf32>
    %44 = tpu.matmul %41, %43, %cst_40 {dimension_numbers = #tpu.dot_dimension_numbers<[1], [0], [0], [1], [0, 0, 1, 1], [], []>} : vector<70x64xbf16>, vector<64x64xbf16>, vector<70x64xf32> -> vector<70x64xf32>
    %45 = arith.addf %40, %44 : vector<70x64xf32>
    %c2_41 = arith.constant 2 : index
    %c0_42 = arith.constant 0 : index
    %46 = vector.load %arg7[%c2_41, %c0_42] : memref<100x64xbf16, #tpu.memory_space<vmem>>, vector<70x64xbf16>
    %c2_43 = arith.constant 2 : index
    %c0_44 = arith.constant 0 : index
    %c0_45 = arith.constant 0 : index
    %47 = vector.load %arg4[%c2_43, %c0_44, %c0_45] : memref<9x64x64xbf16, #tpu.memory_space<vmem>>, vector<1x64x64xbf16>
    %48 = vector.shape_cast %47 : vector<1x64x64xbf16> to vector<64x64xbf16>
    %cst_46 = arith.constant dense<0.000000e+00> : vector<70x64xf32>
    %49 = tpu.matmul %46, %48, %cst_46 {dimension_numbers = #tpu.dot_dimension_numbers<[1], [0], [0], [1], [0, 0, 1, 1], [], []>} : vector<70x64xbf16>, vector<64x64xbf16>, vector<70x64xf32> -> vector<70x64xf32>
    %50 = arith.addf %45, %49 : vector<70x64xf32>
    %c10_47 = arith.constant 10 : index
    %c0_48 = arith.constant 0 : index
    %51 = vector.load %arg7[%c10_47, %c0_48] : memref<100x64xbf16, #tpu.memory_space<vmem>>, vector<70x64xbf16>
    %c3_49 = arith.constant 3 : index
    %c0_50 = arith.constant 0 : index
    %c0_51 = arith.constant 0 : index
    %52 = vector.load %arg4[%c3_49, %c0_50, %c0_51] : memref<9x64x64xbf16, #tpu.memory_space<vmem>>, vector<1x64x64xbf16>
    %53 = vector.shape_cast %52 : vector<1x64x64xbf16> to vector<64x64xbf16>
    %cst_52 = arith.constant dense<0.000000e+00> : vector<70x64xf32>
    %54 = tpu.matmul %51, %53, %cst_52 {dimension_numbers = #tpu.dot_dimension_numbers<[1], [0], [0], [1], [0, 0, 1, 1], [], []>} : vector<70x64xbf16>, vector<64x64xbf16>, vector<70x64xf32> -> vector<70x64xf32>
    %55 = arith.addf %50, %54 : vector<70x64xf32>
    %c11_53 = arith.constant 11 : index
    %c0_54 = arith.constant 0 : index
    %56 = vector.load %arg7[%c11_53, %c0_54] : memref<100x64xbf16, #tpu.memory_space<vmem>>, vector<70x64xbf16>
    %c4 = arith.constant 4 : index
    %c0_55 = arith.constant 0 : index
    %c0_56 = arith.constant 0 : index
    %57 = vector.load %arg4[%c4, %c0_55, %c0_56] : memref<9x64x64xbf16, #tpu.memory_space<vmem>>, vector<1x64x64xbf16>
    %58 = vector.shape_cast %57 : vector<1x64x64xbf16> to vector<64x64xbf16>
    %cst_57 = arith.constant dense<0.000000e+00> : vector<70x64xf32>
    %59 = tpu.matmul %56, %58, %cst_57 {dimension_numbers = #tpu.dot_dimension_numbers<[1], [0], [0], [1], [0, 0, 1, 1], [], []>} : vector<70x64xbf16>, vector<64x64xbf16>, vector<70x64xf32> -> vector<70x64xf32>
    %60 = arith.addf %55, %59 : vector<70x64xf32>
    %c12 = arith.constant 12 : index
    %c0_58 = arith.constant 0 : index
    %61 = vector.load %arg7[%c12, %c0_58] : memref<100x64xbf16, #tpu.memory_space<vmem>>, vector<70x64xbf16>
    %c5 = arith.constant 5 : index
    %c0_59 = arith.constant 0 : index
    %c0_60 = arith.constant 0 : index
    %62 = vector.load %arg4[%c5, %c0_59, %c0_60] : memref<9x64x64xbf16, #tpu.memory_space<vmem>>, vector<1x64x64xbf16>
    %63 = vector.shape_cast %62 : vector<1x64x64xbf16> to vector<64x64xbf16>
    %cst_61 = arith.constant dense<0.000000e+00> : vector<70x64xf32>
    %64 = tpu.matmul %61, %63, %cst_61 {dimension_numbers = #tpu.dot_dimension_numbers<[1], [0], [0], [1], [0, 0, 1, 1], [], []>} : vector<70x64xbf16>, vector<64x64xbf16>, vector<70x64xf32> -> vector<70x64xf32>
    %65 = arith.addf %60, %64 : vector<70x64xf32>
    %c20 = arith.constant 20 : index
    %c0_62 = arith.constant 0 : index
    %66 = vector.load %arg7[%c20, %c0_62] : memref<100x64xbf16, #tpu.memory_space<vmem>>, vector<70x64xbf16>
    %c6 = arith.constant 6 : index
    %c0_63 = arith.constant 0 : index
    %c0_64 = arith.constant 0 : index
    %67 = vector.load %arg4[%c6, %c0_63, %c0_64] : memref<9x64x64xbf16, #tpu.memory_space<vmem>>, vector<1x64x64xbf16>
    %68 = vector.shape_cast %67 : vector<1x64x64xbf16> to vector<64x64xbf16>
    %cst_65 = arith.constant dense<0.000000e+00> : vector<70x64xf32>
    %69 = tpu.matmul %66, %68, %cst_65 {dimension_numbers = #tpu.dot_dimension_numbers<[1], [0], [0], [1], [0, 0, 1, 1], [], []>} : vector<70x64xbf16>, vector<64x64xbf16>, vector<70x64xf32> -> vector<70x64xf32>
    %70 = arith.addf %65, %69 : vector<70x64xf32>
    %c21 = arith.constant 21 : index
    %c0_66 = arith.constant 0 : index
    %71 = vector.load %arg7[%c21, %c0_66] : memref<100x64xbf16, #tpu.memory_space<vmem>>, vector<70x64xbf16>
    %c7 = arith.constant 7 : index
    %c0_67 = arith.constant 0 : index
    %c0_68 = arith.constant 0 : index
    %72 = vector.load %arg4[%c7, %c0_67, %c0_68] : memref<9x64x64xbf16, #tpu.memory_space<vmem>>, vector<1x64x64xbf16>
    %73 = vector.shape_cast %72 : vector<1x64x64xbf16> to vector<64x64xbf16>
    %cst_69 = arith.constant dense<0.000000e+00> : vector<70x64xf32>
    %74 = tpu.matmul %71, %73, %cst_69 {dimension_numbers = #tpu.dot_dimension_numbers<[1], [0], [0], [1], [0, 0, 1, 1], [], []>} : vector<70x64xbf16>, vector<64x64xbf16>, vector<70x64xf32> -> vector<70x64xf32>
    %75 = arith.addf %70, %74 : vector<70x64xf32>
    %c22 = arith.constant 22 : index
    %c0_70 = arith.constant 0 : index
    %76 = vector.load %arg7[%c22, %c0_70] : memref<100x64xbf16, #tpu.memory_space<vmem>>, vector<70x64xbf16>
    %c8 = arith.constant 8 : index
    %c0_71 = arith.constant 0 : index
    %c0_72 = arith.constant 0 : index
    %77 = vector.load %arg4[%c8, %c0_71, %c0_72] : memref<9x64x64xbf16, #tpu.memory_space<vmem>>, vector<1x64x64xbf16>
    %78 = vector.shape_cast %77 : vector<1x64x64xbf16> to vector<64x64xbf16>
    %cst_73 = arith.constant dense<0.000000e+00> : vector<70x64xf32>
    %79 = tpu.matmul %76, %78, %cst_73 {dimension_numbers = #tpu.dot_dimension_numbers<[1], [0], [0], [1], [0, 0, 1, 1], [], []>} : vector<70x64xbf16>, vector<64x64xbf16>, vector<70x64xf32> -> vector<70x64xf32>
    %80 = arith.addf %75, %79 : vector<70x64xf32>
    %c0_74 = arith.constant 0 : index
    %c0_75 = arith.constant 0 : index
    %81 = vector.load %arg5[%c0_74, %c0_75] : memref<1x64xf32, #tpu.memory_space<vmem>>, vector<1x64xf32>
    %82 = vector.broadcast %81 : vector<1x64xf32> to vector<70x64xf32>
    %83 = arith.addf %80, %82 : vector<70x64xf32>
    %cst_76 = arith.constant 0.000000e+00 : f32
    %84 = vector.broadcast %cst_76 : f32 to vector<70x64xf32>
    %85 = arith.cmpf oge, %83, %84 : vector<70x64xf32>
    %cst_77 = arith.constant 0.00999999977 : f32
    %86 = vector.broadcast %cst_77 : f32 to vector<70x64xf32>
    %87 = arith.mulf %86, %83 : vector<70x64xf32>
    %88 = arith.select %85, %83, %87 : vector<70x64xi1>, vector<70x64xf32>
    %89 = arith.truncf %88 : vector<70x64xf32> to vector<70x64xbf16>
    %c0_78 = arith.constant 0 : index
    %c0_79 = arith.constant 0 : index
    %c0_80 = arith.constant 0 : index
    %90 = vector.load %arg6[%c0_78, %c0_79, %c0_80] : memref<1x70x64xbf16, #tpu.memory_space<vmem>>, vector<1x70x64xbf16>
    %91 = vector.shape_cast %90 : vector<1x70x64xbf16> to vector<70x64xbf16>
    %92 = vector.shape_cast %89 : vector<70x64xbf16> to vector<1x70x64xbf16>
    tpu.vector_store %arg6[%c0_78, %c0_79, %c0_80], %92 {strides = array<i32>} : memref<1x70x64xbf16, #tpu.memory_space<vmem>>, vector<1x70x64xbf16>,
    return
  }
  func.func @transform_0(%arg0: i32) -> (i32, i32, i32) {
    %c0_i32 = arith.constant 0 : i32
    %c0_i32_0 = arith.constant 0 : i32
    %c0_i32_1 = arith.constant 0 : i32
    return %arg0, %c0_i32, %c0_i32_0 : i32, i32, i32
  }
  func.func @transform_1(%arg0: i32) -> (i32, i32, i32) {
    %c0_i32 = arith.constant 0 : i32
    %c0_i32_0 = arith.constant 0 : i32
    %c0_i32_1 = arith.constant 0 : i32
    %c0_i32_2 = arith.constant 0 : i32
    return %c0_i32, %c0_i32_0, %c0_i32_1 : i32, i32, i32
  }
  func.func @transform_2(%arg0: i32) -> (i32, i32) {
    %c0_i32 = arith.constant 0 : i32
    %c0_i32_0 = arith.constant 0 : i32
    %c0_i32_1 = arith.constant 0 : i32
    return %c0_i32, %c0_i32_0 : i32, i32
  }
  func.func @transform_3(%arg0: i32) -> (i32, i32, i32) {
    %c0_i32 = arith.constant 0 : i32
    %c0_i32_0 = arith.constant 0 : i32
    %c0_i32_1 = arith.constant 0 : i32
    %c0_i32_2 = arith.constant 0 : i32
    return %c0_i32, %c0_i32_0, %c0_i32_1 : i32, i32, i32
  }
  func.func @transform_4(%arg0: i32) -> (i32, i32) {
    %c0_i32 = arith.constant 0 : i32
    %c0_i32_0 = arith.constant 0 : i32
    %c0_i32_1 = arith.constant 0 : i32
    return %c0_i32, %c0_i32_0 : i32, i32
  }
  func.func @transform_5(%arg0: i32) -> (i32, i32, i32) {
    %c0_i32 = arith.constant 0 : i32
    %c0_i32_0 = arith.constant 0 : i32
    %c0_i32_1 = arith.constant 0 : i32
    return %arg0, %c0_i32, %c0_i32_0 : i32, i32, i32
  }
}

module attributes {stable_mosaic.version = 11 : i64} {
  func.func @_fused_fc_kernel(%arg0: i32, %arg1: memref<2x3136xbf16, #tpu.memory_space<vmem>>, %arg2: memref<3136x512xbf16, #tpu.memory_space<vmem>>, %arg3: memref<1x512xf32, #tpu.memory_space<vmem>>, %arg4: memref<512x512xbf16, #tpu.memory_space<vmem>>, %arg5: memref<1x512xf32, #tpu.memory_space<vmem>>, %arg6: memref<512x512xbf16, #tpu.memory_space<vmem>>, %arg7: memref<1x512xf32, #tpu.memory_space<vmem>>, %arg8: memref<2x512xf32, #tpu.memory_space<vmem>>) attributes {dimension_semantics = [#tpu.dimension_semantics<parallel>], iteration_bounds = array<i64: 1>, scalar_prefetch = 0 : i64, scratch_operands = 0 : i64, tpu.core_type = #tpu.core_type<tc>, window_params = [{transform_indices = @transform_0, window_bounds = array<i64: 2, 3136>}, {pipeline_mode = #tpu.pipeline_mode<synchronous>, transform_indices = @transform_1, window_bounds = array<i64: 3136, 512>}, {pipeline_mode = #tpu.pipeline_mode<synchronous>, transform_indices = @transform_2, window_bounds = array<i64: 1, 512>}, {pipeline_mode = #tpu.pipeline_mode<synchronous>, transform_indices = @transform_3, window_bounds = array<i64: 512, 512>}, {pipeline_mode = #tpu.pipeline_mode<synchronous>, transform_indices = @transform_4, window_bounds = array<i64: 1, 512>}, {pipeline_mode = #tpu.pipeline_mode<synchronous>, transform_indices = @transform_5, window_bounds = array<i64: 512, 512>}, {pipeline_mode = #tpu.pipeline_mode<synchronous>, transform_indices = @transform_6, window_bounds = array<i64: 1, 512>}, {transform_indices = @transform_7, window_bounds = array<i64: 2, 512>}]} {
    %c0 = arith.constant 0 : index
    %c0_0 = arith.constant 0 : index
    %0 = vector.load %arg1[%c0, %c0_0] : memref<2x3136xbf16, #tpu.memory_space<vmem>>, vector<2x3136xbf16>
    %c0_1 = arith.constant 0 : index
    %c0_2 = arith.constant 0 : index
    %1 = vector.load %arg2[%c0_1, %c0_2] : memref<3136x512xbf16, #tpu.memory_space<vmem>>, vector<3136x512xbf16>
    %cst = arith.constant dense<0.000000e+00> : vector<2x512xf32>
    %2 = tpu.matmul %0, %1, %cst {dimension_numbers = #tpu.dot_dimension_numbers<[1], [0], [0], [1], [0, 0, 1, 1], [], []>} : vector<2x3136xbf16>, vector<3136x512xbf16>, vector<2x512xf32> -> vector<2x512xf32>
    %c0_3 = arith.constant 0 : index
    %c0_4 = arith.constant 0 : index
    %3 = vector.load %arg3[%c0_3, %c0_4] : memref<1x512xf32, #tpu.memory_space<vmem>>, vector<1x512xf32>
    %4 = vector.broadcast %3 : vector<1x512xf32> to vector<2x512xf32>
    %5 = arith.addf %2, %4 : vector<2x512xf32>
    %cst_5 = arith.constant 0.000000e+00 : f32
    %6 = vector.broadcast %cst_5 : f32 to vector<2x512xf32>
    %7 = arith.maximumf %5, %6 : vector<2x512xf32>
    %8 = arith.truncf %7 : vector<2x512xf32> to vector<2x512xbf16>
    %c0_6 = arith.constant 0 : index
    %c0_7 = arith.constant 0 : index
    %9 = vector.load %arg4[%c0_6, %c0_7] : memref<512x512xbf16, #tpu.memory_space<vmem>>, vector<512x512xbf16>
    %cst_8 = arith.constant dense<0.000000e+00> : vector<2x512xf32>
    %10 = tpu.matmul %8, %9, %cst_8 {dimension_numbers = #tpu.dot_dimension_numbers<[1], [0], [0], [1], [0, 0, 1, 1], [], []>} : vector<2x512xbf16>, vector<512x512xbf16>, vector<2x512xf32> -> vector<2x512xf32>
    %c0_9 = arith.constant 0 : index
    %c0_10 = arith.constant 0 : index
    %11 = vector.load %arg5[%c0_9, %c0_10] : memref<1x512xf32, #tpu.memory_space<vmem>>, vector<1x512xf32>
    %12 = vector.broadcast %11 : vector<1x512xf32> to vector<2x512xf32>
    %13 = arith.addf %10, %12 : vector<2x512xf32>
    %cst_11 = arith.constant 0.000000e+00 : f32
    %14 = vector.broadcast %cst_11 : f32 to vector<2x512xf32>
    %15 = arith.maximumf %13, %14 : vector<2x512xf32>
    %16 = arith.truncf %15 : vector<2x512xf32> to vector<2x512xbf16>
    %c0_12 = arith.constant 0 : index
    %c0_13 = arith.constant 0 : index
    %17 = vector.load %arg6[%c0_12, %c0_13] : memref<512x512xbf16, #tpu.memory_space<vmem>>, vector<512x512xbf16>
    %cst_14 = arith.constant dense<0.000000e+00> : vector<2x512xf32>
    %18 = tpu.matmul %16, %17, %cst_14 {dimension_numbers = #tpu.dot_dimension_numbers<[1], [0], [0], [1], [0, 0, 1, 1], [], []>} : vector<2x512xbf16>, vector<512x512xbf16>, vector<2x512xf32> -> vector<2x512xf32>
    %c0_15 = arith.constant 0 : index
    %c0_16 = arith.constant 0 : index
    %19 = vector.load %arg7[%c0_15, %c0_16] : memref<1x512xf32, #tpu.memory_space<vmem>>, vector<1x512xf32>
    %20 = vector.broadcast %19 : vector<1x512xf32> to vector<2x512xf32>
    %21 = arith.addf %18, %20 : vector<2x512xf32>
    %c0_17 = arith.constant 0 : index
    %c0_18 = arith.constant 0 : index
    %22 = vector.load %arg8[%c0_17, %c0_18] : memref<2x512xf32, #tpu.memory_space<vmem>>, vector<2x512xf32>
    tpu.vector_store %arg8[%c0_17, %c0_18], %21 {strides = array<i32>} : memref<2x512xf32, #tpu.memory_space<vmem>>, vector<2x512xf32>,
    return
  }
  func.func @transform_0(%arg0: i32) -> (i32, i32) {
    %c0_i32 = arith.constant 0 : i32
    %c0_i32_0 = arith.constant 0 : i32
    return %arg0, %c0_i32 : i32, i32
  }
  func.func @transform_1(%arg0: i32) -> (i32, i32) {
    %c0_i32 = arith.constant 0 : i32
    %c0_i32_0 = arith.constant 0 : i32
    %c0_i32_1 = arith.constant 0 : i32
    return %c0_i32, %c0_i32_0 : i32, i32
  }
  func.func @transform_2(%arg0: i32) -> (i32, i32) {
    %c0_i32 = arith.constant 0 : i32
    %c0_i32_0 = arith.constant 0 : i32
    %c0_i32_1 = arith.constant 0 : i32
    return %c0_i32, %c0_i32_0 : i32, i32
  }
  func.func @transform_3(%arg0: i32) -> (i32, i32) {
    %c0_i32 = arith.constant 0 : i32
    %c0_i32_0 = arith.constant 0 : i32
    %c0_i32_1 = arith.constant 0 : i32
    return %c0_i32, %c0_i32_0 : i32, i32
  }
  func.func @transform_4(%arg0: i32) -> (i32, i32) {
    %c0_i32 = arith.constant 0 : i32
    %c0_i32_0 = arith.constant 0 : i32
    %c0_i32_1 = arith.constant 0 : i32
    return %c0_i32, %c0_i32_0 : i32, i32
  }
  func.func @transform_5(%arg0: i32) -> (i32, i32) {
    %c0_i32 = arith.constant 0 : i32
    %c0_i32_0 = arith.constant 0 : i32
    %c0_i32_1 = arith.constant 0 : i32
    return %c0_i32, %c0_i32_0 : i32, i32
  }
  func.func @transform_6(%arg0: i32) -> (i32, i32) {
    %c0_i32 = arith.constant 0 : i32
    %c0_i32_0 = arith.constant 0 : i32
    %c0_i32_1 = arith.constant 0 : i32
    return %c0_i32, %c0_i32_0 : i32, i32
  }
  func.func @transform_7(%arg0: i32) -> (i32, i32) {
    %c0_i32 = arith.constant 0 : i32
    %c0_i32_0 = arith.constant 0 : i32
    return %arg0, %c0_i32 : i32, i32
  }
}

</mosaic_0001>

<bundles_post_ra>
// kernel: rnd_forward.3
= control target key start
LH: loop header
LB: loop body
LE: loop exit
PB: predicated region body
PF: predicated region fallthrough
CT: control target
= control target key end

     0   :  { %s4267_s12 = smov 0   ;;  %s5055_s0 = inlined_call_operand.vmem [shape: bf16[2,464,64], index: 0, kind: input, shape index: {}]   ;;  %s5056_s1 = inlined_call_operand.vmem [shape: bf16[4,64,32], index: 1, kind: input, shape index: {}]   ;;  %s5057_s2 = inlined_call_operand.vmem [shape: f32[1,32], index: 2, kind: input, shape index: {}]   ;;  %s5058_s3 = inlined_call_operand.vmem [shape: bf16[2,441,32], index: 3, kind: output, shape index: {}]  }
   0x1 LB: > { %s3256_s13 = sadd.s32 4294967295, %s4245_s12   ;;  %p3260_p0 = scmp.ge.s32.totalorder %s4245_s12, 1  ;;  %s4245_s12 = sphi %s4267_s12, %s13_s12  }
   0x2   : > { %p137_p1 = scmp.lt.s32.totalorder %s4245_s12, 3 }
   0x4   : > { %p138_p2 = pnand %p3260_p0, %p137_p1 }
   0x6   : > { %141 = sbr.rel (%p138_p2) target bundleno = 473 (0x1d9), region = 32 }
   0xd   : > { %v4150_v0 = vld [vmem:[%s5056_s1 + $0x20] sm:$0xff]   ;;  %p161_p3 = scmp.lt.s32.totalorder %s3256_s13, 1  ;;  %v4152_v2 = vld [vmem:[%s5056_s1 + $0x28] sm:$0xff]   ;;  %v4154_v4 = vld [vmem:[%s5056_s1 + $0x30] sm:$0xff]   ;;  %vm633_vm0 = vcmask 523264   ;;  %vm2207_vm3 = vcmask 1044480  }
   0xe   : > { %v4151_v1 = vld [vmem:[%s5056_s1 + $0x40] sm:$0xff]   ;;  %3716 = vmatprep.subr.bf16.mxu1 %v4150_v0  ;;  %v4153_v3 = vld [vmem:[%s5056_s1 + $0x48] sm:$0xff]   ;;  %v4155_v5 = vld [vmem:[%s5056_s1 + $0x50] sm:$0xff]   ;;  %vm385_vm1 = vsmask.f32 7424  ;;  %vm3139_vm6 = vcmask 257024  }
   0xf   : > { %s5090_s13 = smov (!%p161_p3, %s3256_s13), 1  ;;  %3844 = vmatprep.subr.bf16.mxu0 %v4151_v1  ;;  %3717 = vmatpush3.bf16.msra.mxu1 %v4150_v0  ;;  %v4156_v6 = vld [vmem:[%s5056_s1 + $0x38] sm:$0xff]   ;;  %vm1517_vm2 = vsmask.f32 5376  ;;  %v4163_v28 = vld [vmem:[%s5056_s1] sm:$0xff]  }
  0x10   : > { %3845 = vmatpush3.bf16.msra.mxu0 %v4151_v1  ;;  %3718 = vmatprep.subr.bf16.mxu1 %v4152_v2  ;;  %s4140_s24 = smul.u32 232, %s5090_s13  ;;  %v4157_v7 = vld [vmem:[%s5056_s1 + $0x58] sm:$0xff]   ;;  %v4165_v34 = vld [vmem:[%s5056_s1 + $0x60] sm:$0xff]  }
  0x11   : > { %3846 = vmatprep.subr.bf16.mxu0 %v4153_v3  ;;  %s4141_s27 = smul.u32 224, %s5090_s13 }
  0x12   : > { %s4302_s4 = scalar_lea.vmem %s5055_s0, %s4140_s24 }
  0x13   : > { %3719 = vmatpush3.bf16.msra.mxu1 %v4152_v2  ;;  %v4158_v8 = vld [vmem:[%s4302_s4] sm:$0xff]   ;;  %v4159_v9 = vld [vmem:[%s4302_s4 + $0x8] sm:$0xff]   ;;  %v4161_v17 = vld [vmem:[%s4302_s4 + $0x10] sm:$0xff]   ;;  %s4886_s29 = scalar_lea.vmem %s5058_s3, %s4141_s27 }
  0x14   : > { %3847 = vmatpush3.bf16.msra.mxu0 %v4153_v3  ;;  %3720 = vmatprep.subr.bf16.mxu1 %v4154_v4  ;;  %v1312_v10 = vld [vmem:[%s4302_s4 + $0x8] sm:$0xc]  ;;  %v1313_v11 = vld [vmem:[%s4302_s4 + $0xc] sm:$0xf]  ;;  %v387_v12 = vshrl.u32 %v4158_v8, 16  ;;  %v389_v13 = vshll.u32 %v4158_v8, 16 }
  0x15   : > { %3848 = vmatprep.subr.bf16.mxu0 %v4155_v5  ;;  %v394_v14 = vshll.u32 %v4159_v9, 16  ;;  %v398_v15 = vshrl.u32 %v4159_v9, 16  ;;  %v3371_v16 = vcombine.low %v1312_v10, %v1313_v11  ;;  %v4162_v18 = vld [vmem:[%s4302_s4 + $0x10] sm:$0xff]   ;;  %v1527_v23 = vshrl.u32 %v4161_v17, 16  ;;  %v4164_v33 = vld [vmem:[%s4302_s4 + $0x18] sm:$0xff]   ;;  %v4167_v48 = vld [vmem:[%s4302_s4 + $0x20] sm:$0xff]  }
  0x16   : > { %v391_v19 = vrot.slane %v389_v13, 1  ;;  %v1530_v24 = vshll.u32 %v4161_v17, 16  ;;  %v402_v27 = vshll.u32 %v4162_v18, 16  ;;  %v4166_v37 = vld [vmem:[%s4302_s4 + $0x18] sm:$0xff]   ;;  %v1536_v40 = vshrl.u32 %v4164_v33, 16  ;;  %v4168_v49 = vld [vmem:[%s4302_s4 + $0x20] sm:$0xff]  }
  0x17   : > { %3721 = vmatpush3.bf16.msra.mxu1 %v4154_v4  ;;  %v396_v20 = vrot.slane %v394_v14, 1  ;;  %v1519_v21 = vshrl.u32 %v3371_v16, 16  ;;  %v1522_v22 = vshll.u32 %v3371_v16, 16  ;;  %v1529_v31 = vrot.slane %v1527_v23, 2  ;;  %v4169_v57 = vld [vmem:[%s4302_s4 + $0x28] sm:$0xff]   ;;  %v4171_v2 = vld [vmem:[%s4302_s4 + $0x30] sm:$0xff]  }
  0x18   : > { %3849 = vmatpush3.bf16.msra.mxu0 %v4155_v5  ;;  %3722 = vmatprep.subr.bf16.mxu1 %v4156_v6  ;;  %v392_v25 = vor.u32 %v391_v19, %v387_v12  ;;  %v1532_v32 = vrot.slane %v1530_v24, 3  ;;  %v404_v36 = vrot.slane %v402_v27, 1  ;;  %v1539_v41 = vshll.u32 %v4164_v33, 16  ;;  %v4170_v60 = vld [vmem:[%s4302_s4 + $0x28] sm:$0xff]   ;;  %v4173_v11 = vld [vmem:[%s4302_s4 + $0x38] sm:$0xff]  }
  0x19   : > { %3850 = vmatprep.subr.bf16.mxu0 %v4157_v7  ;;  %v400_v26 = vor.u32 %v398_v15, %v396_v20  ;;  %v1521_v29 = vrot.slane %v1519_v21, 2  ;;  %v1524_v30 = vrot.slane %v1522_v22, 3  ;;  %v406_v43 = vshrl.u32 %v4162_v18, 16 }
  0x1a   : > { %v397_v35 = vsel %vm385_vm1, %v392_v25, %v396_v20  ;;  %v1533_v39 = vor.u32 %v1532_v32, %v1529_v31  ;;  %v410_v44 = vshll.u32 %v4166_v37, 16  ;;  %v1538_v46 = vrot.slane %v1536_v40, 2  ;;  %v4174_v20 = vld [vmem:[%s4302_s4 + $0x38] sm:$0xff]  }
  0x1b   : > { %3723 = vmatpush3.bf16.msra.mxu1 %v4156_v6  ;;  %3724 = vmatprep.mubr.msk.bf16.mxu1 %vm633_vm0, %v397_v35  ;;  %v1525_v38 = vor.u32 %v1524_v30, %v1521_v29  ;;  %v405_v42 = vsel %vm385_vm1, %v400_v26, %v404_v36  ;;  %v1541_v47 = vrot.slane %v1539_v41, 3  ;;  %v408_v50 = vor.u32 %v406_v43, %v404_v36  ;;  %v4172_v6 = vld [vmem:[%s4302_s4 + $0x30] sm:$0xff]   ;;  %v4346_v29 = vld [vmem:[%s4302_s4 + $0x40] sm:$0xff]  }
  0x1c   : > { %3851 = vmatpush3.bf16.msra.mxu0 %v4157_v7  ;;  %3780 = vmatprep.subr.bf16.mxu1 %v4163_v28  ;;  %v412_v51 = vrot.slane %v410_v44, 1  ;;  %v414_v52 = vshrl.u32 %v4166_v37, 16  ;;  %v1545_v54 = vshrl.u32 %v4167_v48, 16  ;;  %v1548_v55 = vshll.u32 %v4167_v48, 16  ;;  %v4178_v44 = vld [vmem:[%s5056_s1 + $0x8] sm:$0xff]  }
  0x1d   : > { %3908 = vmatprep.subr.bf16.mxu0 %v4165_v34  ;;  %v1534_v45 = vsel %vm1517_vm2, %v1525_v38, %v1533_v39  ;;  %v1542_v53 = vor.u32 %v1541_v47, %v1538_v46  ;;  %v418_v56 = vshll.u32 %v4168_v49, 16  ;;  %v422_v61 = vshrl.u32 %v4168_v49, 16  ;;  %v4352_v38 = vld [vmem:[%s4302_s4 + $0x40] sm:$0xff]   ;;  %v4179_v49 = vld [vmem:[%s5056_s1 + $0x68] sm:$0xff]  }
  0x1e   : > { %3725 = vmatmul.mubr.msk.bf16.vlgmr.msra.gmra.mrb[0].mxu1 %vm633_vm0, %v405_v42  ;;  %3852 = vmatprep.mubr.msk.bf16.mxu0 %vm633_vm0, %v1534_v45  ;;  %v413_v58 = vsel %vm385_vm1, %v408_v50, %v412_v51  ;;  %v416_v59 = vor.u32 %v414_v52, %v412_v51  ;;  %v1547_v63 = vrot.slane %v1545_v54, 2  ;;  %v1550_v0 = vrot.slane %v1548_v55, 3 }
  0x1f   : > { %3781 = vmatpush3.bf16.msra.mxu1 %v4163_v28  ;;  %v1543_v62 = vsel %vm1517_vm2, %v1533_v39, %v1542_v53  ;;  %3728 = vmatprep.mubr.msk.bf16.mxu1 %vm633_vm0, %v413_v58  ;;  %v420_v1 = vrot.slane %v418_v56, 1  ;;  %v1554_v3 = vshrl.u32 %v4169_v57, 16  ;;  %v1557_v4 = vshll.u32 %v4169_v57, 16  ;;  %v4355_v39 = vld [vmem:[%s4302_s4 + $0x48] sm:$0xff]  }
  0x20   : > { %3853 = vmatmul.mubr.msk.bf16.vlgmr.msra.gmra.mrb[0].mxu0 %vm633_vm0, %v1543_v62  ;;  %v426_v5 = vshll.u32 %v4170_v60, 16  ;;  %v1551_v7 = vor.u32 %v1550_v0, %v1547_v63  ;;  %v1563_v10 = vshrl.u32 %v4171_v2, 16  ;;  %v1566_v15 = vshll.u32 %v4171_v2, 16  ;;  %3782 = vmatprep.subr.bf16.mxu1 %v4178_v44  ;;  %v4374_v58 = vld [vmem:[%s4302_s4 + $0x48] sm:$0xff]   ;;  %v4384_v0 = vld [vmem:[%s4302_s4 + $0x50] sm:$0xff]  }
  0x21   : > { %3909 = vmatpush3.bf16.msra.mxu0 %v4165_v34  ;;  %v421_v8 = vsel %vm385_vm1, %v416_v59, %v420_v1  ;;  %v424_v9 = vor.u32 %v422_v61, %v420_v1  ;;  %v1556_v12 = vrot.slane %v1554_v3, 2  ;;  %v1559_v13 = vrot.slane %v1557_v4, 3  ;;  %v4379_v61 = vld [vmem:[%s4302_s4 + $0x50] sm:$0xff]  }
  0x22   : > { %v428_v14 = vrot.slane %v426_v5, 1  ;;  %v1552_v16 = vsel %vm1517_vm2, %v1542_v53, %v1551_v7  ;;  %v1565_v17 = vrot.slane %v1563_v10, 2  ;;  %v430_v18 = vshrl.u32 %v4170_v60, 16  ;;  %3910 = vmatprep.subr.bf16.mxu0 %v4179_v49  ;;  %v4390_v5 = vld [vmem:[%s4302_s4 + $0x58] sm:$0xff]  }
  0x23   : > { %v434_v19 = vshll.u32 %v4172_v6, 16  ;;  %3856 = vmatprep.mubr.msk.bf16.mxu0 %vm633_vm0, %v1552_v16  ;;  %v1560_v21 = vor.u32 %v1559_v13, %v1556_v12  ;;  %v1568_v23 = vrot.slane %v1566_v15, 3  ;;  %v1572_v24 = vshrl.u32 %v4173_v11, 16  ;;  %3783 = vmatpush3.bf16.msra.mxu1 %v4178_v44  ;;  %v4400_v16 = vld [vmem:[%s4302_s4 + $0x58] sm:$0xff]  }
  0x24   : > { %v429_v22 = vsel %vm385_vm1, %v424_v9, %v428_v14  ;;  %v432_v25 = vor.u32 %v430_v18, %v428_v14  ;;  %v1575_v27 = vshll.u32 %v4173_v11, 16  ;;  %v438_v28 = vshrl.u32 %v4172_v6, 16  ;;  %v4404_v18 = vld [vmem:[%s4302_s4 + $0x60] sm:$0xff]  }
  0x25   : > { %v436_v26 = vrot.slane %v434_v19, 1  ;;  %v1561_v30 = vsel %vm1517_vm2, %v1551_v7, %v1560_v21  ;;  %v1569_v31 = vor.u32 %v1568_v23, %v1565_v17  ;;  %v1574_v32 = vrot.slane %v1572_v24, 2  ;;  %3911 = vmatpush3.bf16.msra.mxu0 %v4179_v49  ;;  %v4433_v49 = vld [vmem:[%s4302_s4 + $0x70] sm:$0xff]  }
  0x26   : > { %3729 = vmatmul.mubr.msk.bf16.gmra.mrb[4].mxu1 %vm633_vm0, %v421_v8  ;;  %v442_v33 = vshll.u32 %v4174_v20, 16  ;;  %v1577_v35 = vrot.slane %v1575_v27, 3  ;;  %v1581_v37 = vshrl.u32 %v4346_v29, 16  ;;  %v1584_v42 = vshll.u32 %v4346_v29, 16 }
  0x27   : > { %3732 = vmatprep.mubr.msk.bf16.mxu1 %vm633_vm0, %v429_v22  ;;  %v437_v34 = vsel %vm385_vm1, %v432_v25, %v436_v26  ;;  %v440_v36 = vor.u32 %v438_v28, %v436_v26  ;;  %v1570_v40 = vsel %vm1517_vm2, %v1560_v21, %v1569_v31  ;;  %v446_v43 = vshrl.u32 %v4174_v20, 16  ;;  %v4411_v25 = vld [vmem:[%s4302_s4 + $0x60] sm:$0xff]   ;;  %v4414_v26 = vld [vmem:[%s4302_s4 + $0x68] sm:$0xff]  }
  0x28   : > { %3857 = vmatmul.mubr.msk.bf16.gmra.mrb[4].mxu0 %vm633_vm0, %v1561_v30  ;;  %v444_v41 = vrot.slane %v442_v33, 1  ;;  %v1578_v45 = vor.u32 %v1577_v35, %v1574_v32  ;;  %v1583_v46 = vrot.slane %v1581_v37, 2  ;;  %v450_v47 = vshll.u32 %v4352_v38, 16 }
  0x29   : > { %3860 = vmatprep.mubr.msk.bf16.mxu0 %vm633_vm0, %v1570_v40  ;;  %v1590_v48 = vshrl.u32 %v4355_v39, 16  ;;  %v1586_v51 = vrot.slane %v1584_v42, 3  ;;  %v1593_v52 = vshll.u32 %v4355_v39, 16  ;;  %v454_v60 = vshrl.u32 %v4352_v38, 16  ;;  %v4423_v40 = vld [vmem:[%s4302_s4 + $0x68] sm:$0xff]  }
  0x2a   : > { %v445_v50 = vsel %vm385_vm1, %v440_v36, %v444_v41  ;;  %v452_v53 = vrot.slane %v450_v47, 1  ;;  %v448_v56 = vor.u32 %v446_v43, %v444_v41  ;;  %v1579_v59 = vsel %vm1517_vm2, %v1569_v31, %v1578_v45 }
  0x2b   : > { %v1592_v54 = vrot.slane %v1590_v48, 2  ;;  %v1587_v55 = vor.u32 %v1586_v51, %v1583_v46  ;;  %v1595_v57 = vrot.slane %v1593_v52, 3  ;;  %v458_v63 = vshll.u32 %v4374_v58, 16  ;;  %v4439_v52 = vld [vmem:[%s4302_s4 + $0x78] sm:$0xff]  }
  0x2c   : > { %v456_v1 = vor.u32 %v454_v60, %v452_v53  ;;  %v1599_v2 = vshrl.u32 %v4379_v61, 16  ;;  %v1602_v3 = vshll.u32 %v4379_v61, 16  ;;  %v462_v4 = vshrl.u32 %v4374_v58, 16 }
  0x2d   : > { %v1588_v62 = vsel %vm1517_vm2, %v1578_v45, %v1587_v55  ;;  %v453_v6 = vsel %vm385_vm1, %v448_v56, %v452_v53  ;;  %v1596_v7 = vor.u32 %v1595_v57, %v1592_v54  ;;  %v460_v8 = vrot.slane %v458_v63, 1 }
  0x2e   : > { %3733 = vmatmul.mubr.msk.bf16.gmra.mrb[8].mxu1 %vm633_vm0, %v437_v34  ;;  %v466_v9 = vshll.u32 %v4384_v0, 16  ;;  %v1601_v10 = vrot.slane %v1599_v2, 2  ;;  %v1604_v11 = vrot.slane %v1602_v3, 3  ;;  %v1608_v12 = vshrl.u32 %v4390_v5, 16 }
  0x2f   : > { %3736 = vmatprep.mubr.msk.bf16.mxu1 %vm633_vm0, %v445_v50  ;;  %v1611_v13 = vshll.u32 %v4390_v5, 16  ;;  %v461_v14 = vsel %vm385_vm1, %v456_v1, %v460_v8  ;;  %v470_v17 = vshrl.u32 %v4384_v0, 16  ;;  %v464_v22 = vor.u32 %v462_v4, %v460_v8  ;;  %v4436_v50 = vld [vmem:[%s4302_s4 + $0x70] sm:$0xff]   ;;  %v4449_v1 = vld [vmem:[%s4302_s4 + $0x78] sm:$0xff]  }
  0x30   : > { %3861 = vmatmul.mubr.msk.bf16.gmra.mrb[8].mxu0 %vm633_vm0, %v1579_v59  ;;  %v468_v15 = vrot.slane %v466_v9, 1  ;;  %v1605_v19 = vor.u32 %v1604_v11, %v1601_v10  ;;  %v1610_v20 = vrot.slane %v1608_v12, 2  ;;  %v474_v23 = vshll.u32 %v4400_v16, 16  ;;  %5069 = vst [vmem:[#allocation2_spill] sm:$0xff] %v4449_v1 }
  0x31   : > { %3864 = vmatprep.mubr.msk.bf16.mxu0 %vm633_vm0, %v1588_v62  ;;  %v1613_v21 = vrot.slane %v1611_v13, 3  ;;  %v1617_v24 = vshrl.u32 %v4404_v18, 16  ;;  %v1597_v27 = vsel %vm1517_vm2, %v1587_v55, %v1596_v7  ;;  %v1620_v31 = vshll.u32 %v4404_v18, 16  ;;  %v4195_v13 = vld [vmem:[%s5056_s1 + $0x10] sm:$0xff]  }
  0x32   : > { %v1606_v28 = vsel %vm1517_vm2, %v1596_v7, %v1605_v19  ;;  %v472_v30 = vor.u32 %v470_v17, %v468_v15  ;;  %v476_v32 = vrot.slane %v474_v23, 1  ;;  %v482_v34 = vshll.u32 %v4411_v25, 16  ;;  %v4454_v7 = vld [vmem:[%s4302_s4 + $0x80] sm:$0xff]   ;;  %3784 = vmatprep.subr.bf16.mxu1 %v4195_v13 }
  0x33   : > { %v1619_v33 = vrot.slane %v1617_v24, 2  ;;  %v1626_v35 = vshrl.u32 %v4414_v26, 16  ;;  %v1622_v36 = vrot.slane %v1620_v31, 3  ;;  %v1629_v37 = vshll.u32 %v4414_v26, 16  ;;  %3785 = vmatpush3.bf16.msra.mxu1 %v4195_v13 }
  0x34   : > { %v469_v41 = vsel %vm385_vm1, %v464_v22, %v468_v15  ;;  %v1614_v42 = vor.u32 %v1613_v21, %v1610_v20  ;;  %v478_v43 = vshrl.u32 %v4400_v16, 16  ;;  %v486_v44 = vshrl.u32 %v4411_v25, 16  ;;  %v4472_v22 = vld [vmem:[%s4302_s4 + $0x88] sm:$0xff]  }
  0x35   : > { %v477_v45 = vsel %vm385_vm1, %v472_v30, %v476_v32  ;;  %v1623_v46 = vor.u32 %v1622_v36, %v1619_v33  ;;  %v484_v47 = vrot.slane %v482_v34, 1  ;;  %v490_v48 = vshll.u32 %v4423_v40, 16 }
  0x36   : > { %3737 = vmatmul.mubr.msk.bf16.gmra.mrb[12].mxu1 %vm633_vm0, %v453_v6  ;;  %v1628_v51 = vrot.slane %v1626_v35, 2  ;;  %v1631_v53 = vrot.slane %v1629_v37, 3  ;;  %v1635_v54 = vshrl.u32 %v4433_v49, 16  ;;  %v480_v55 = vor.u32 %v478_v43, %v476_v32  ;;  %v4488_v43 = vld [vmem:[%s4302_s4 + $0x90] sm:$0xff]  }
  0x37   : > { %3740 = vmatprep.mubr.msk.bf16.mxu1 %vm633_vm0, %v461_v14  ;;  %v1638_v56 = vshll.u32 %v4433_v49, 16  ;;  %v494_v57 = vshrl.u32 %v4423_v40, 16  ;;  %v1615_v59 = vsel %vm1517_vm2, %v1605_v19, %v1614_v42  ;;  %v1624_v60 = vsel %vm1517_vm2, %v1614_v42, %v1623_v46  ;;  %v4469_v19 = vld [vmem:[%s4302_s4 + $0x80] sm:$0xff]  }
  0x38   : > { %3865 = vmatmul.mubr.msk.bf16.gmra.mrb[12].mxu0 %vm633_vm0, %v1597_v27  ;;  %v488_v62 = vor.u32 %v486_v44, %v484_v47  ;;  %v492_v63 = vrot.slane %v490_v48, 1  ;;  %v1637_v2 = vrot.slane %v1635_v54, 2  ;;  %v498_v4 = vshll.u32 %v4436_v50, 16  ;;  %5070 = vst [vmem:[#allocation3_spill] sm:$0xff] %v4469_v19  ;;  %v4197_v27 = vld [vmem:[%s5056_s1 + $0x70] sm:$0xff]  }
  0x39   : > { %3868 = vmatprep.mubr.msk.bf16.mxu0 %vm633_vm0, %v1606_v28  ;;  %v1640_v3 = vrot.slane %v1638_v56, 3  ;;  %v1644_v6 = vshrl.u32 %v4439_v52, 16  ;;  %v1632_v8 = vor.u32 %v1631_v53, %v1628_v51  ;;  %v1647_v9 = vshll.u32 %v4439_v52, 16  ;;  %v4480_v28 = vld [vmem:[%s4302_s4 + $0x88] sm:$0xff]   ;;  %3912 = vmatprep.subr.bf16.mxu0 %v4197_v27  ;;  %v4496_v48 = vld [vmem:[%s4302_s4 + $0x90] sm:$0xff]  }
  0x3a   : > { %v502_v10 = vshrl.u32 %v4436_v50, 16  ;;  %v485_v11 = vsel %vm385_vm1, %v480_v55, %v484_v47  ;;  %v506_v12 = vshll.u32 %v4449_v1, 16  ;;  %v493_v14 = vsel %vm385_vm1, %v488_v62, %v492_v63  ;;  %5071 = vst [vmem:[#allocation4_spill] sm:$0xff] %v4480_v28  ;;  %3913 = vmatpush3.bf16.msra.mxu0 %v4197_v27  ;;  %5072 = vst [vmem:[#allocation5_spill] sm:$0xff] %v4496_v48  ;;  %v4501_v55 = vld [vmem:[%s4302_s4 + $0x98] sm:$0xff]  }
  0x3b   : > { %v1653_v15 = vshrl.u32 %v4454_v7, 16  ;;  %v1656_v17 = vshll.u32 %v4454_v7, 16  ;;  %v1641_v20 = vor.u32 %v1640_v3, %v1637_v2  ;;  %v500_v21 = vrot.slane %v498_v4, 1  ;;  %v4507_v3 = vld [vmem:[%s4302_s4 + $0x98] sm:$0xff]  }
  0x3c   : > { %v1633_v23 = vsel %vm1517_vm2, %v1623_v46, %v1632_v8  ;;  %v1646_v24 = vrot.slane %v1644_v6, 2  ;;  %v496_v30 = vor.u32 %v494_v57, %v492_v63  ;;  %v1649_v31 = vrot.slane %v1647_v9, 3  ;;  %5073 = vst [vmem:[#allocation6_spill] sm:$0xff] %v4507_v3 }
  0x3d   : > { %v504_v32 = vor.u32 %v502_v10, %v500_v21  ;;  %v508_v33 = vrot.slane %v506_v12, 1  ;;  %v1655_v34 = vrot.slane %v1653_v15, 2  ;;  %v1658_v35 = vrot.slane %v1656_v17, 3  ;;  %v4522_v17 = vld [vmem:[%s4302_s4 + $0xa8] sm:$0xff]  }
  0x3e   : > { %3741 = vmatmul.mubr.msk.bf16.gmra.mrb[16].mxu1 %vm633_vm0, %v469_v41  ;;  %v510_v36 = vshrl.u32 %v4449_v1, 16  ;;  %v514_v37 = vshll.u32 %v4469_v19, 16  ;;  %v1642_v41 = vsel %vm1517_vm2, %v1632_v8, %v1641_v20  ;;  %v1662_v42 = vshrl.u32 %v4472_v22, 16  ;;  %v4512_v8 = vld [vmem:[%s4302_s4 + $0xa0] sm:$0xff]  }
  0x3f   : > { %3744 = vmatprep.mubr.msk.bf16.mxu1 %vm633_vm0, %v477_v45  ;;  %v1665_v44 = vshll.u32 %v4472_v22, 16  ;;  %v522_v45 = vshll.u32 %v4480_v28, 16  ;;  %v501_v46 = vsel %vm385_vm1, %v496_v30, %v500_v21  ;;  %v518_v47 = vshrl.u32 %v4469_v19, 16 }
  0x40   : > { %3869 = vmatmul.mubr.msk.bf16.gmra.mrb[16].mxu0 %vm633_vm0, %v1615_v59  ;;  %v1650_v51 = vor.u32 %v1649_v31, %v1646_v24  ;;  %v509_v53 = vsel %vm385_vm1, %v504_v32, %v508_v33  ;;  %v516_v54 = vrot.slane %v514_v37, 1  ;;  %v1659_v56 = vor.u32 %v1658_v35, %v1655_v34 }
  0x41   : > { %3872 = vmatprep.mubr.msk.bf16.mxu0 %vm633_vm0, %v1624_v60  ;;  %v1671_v57 = vshrl.u32 %v4488_v43, 16  ;;  %v1674_v59 = vshll.u32 %v4488_v43, 16  ;;  %v512_v60 = vor.u32 %v510_v36, %v508_v33  ;;  %v1664_v62 = vrot.slane %v1662_v42, 2  ;;  %v4537_v42 = vld [vmem:[%s4302_s4 + $0xa8] sm:$0xff]  }
  0x42   : > { %v1667_v63 = vrot.slane %v1665_v44, 3  ;;  %v524_v2 = vrot.slane %v522_v45, 1  ;;  %v520_v4 = vor.u32 %v518_v47, %v516_v54  ;;  %v530_v6 = vshll.u32 %v4496_v48, 16  ;;  %5075 = vst [vmem:[#allocation8_spill] sm:$0xff] %v4537_v42  ;;  %v4210_v47 = vld [vmem:[%s5056_s1 + $0x18] sm:$0xff]  }
  0x43   : > { %v1651_v9 = vsel %vm1517_vm2, %v1641_v20, %v1650_v51  ;;  %v1680_v10 = vshrl.u32 %v4501_v55, 16  ;;  %v1660_v12 = vsel %vm1517_vm2, %v1650_v51, %v1659_v56  ;;  %v1673_v13 = vrot.slane %v1671_v57, 2  ;;  %v4548_v57 = vld [vmem:[%s4302_s4 + $0xb0] sm:$0xff]   ;;  %3786 = vmatprep.subr.bf16.mxu1 %v4210_v47 }
  0x44   : > { %v526_v15 = vshrl.u32 %v4480_v28, 16  ;;  %v517_v21 = vsel %vm385_vm1, %v512_v60, %v516_v54  ;;  %v1683_v24 = vshll.u32 %v4501_v55, 16  ;;  %v538_v20 = vshll.u32 %v4507_v3, 16  ;;  %5076 = vst [vmem:[#allocation9_spill] sm:$0xff] %v4548_v57  ;;  %3787 = vmatpush3.bf16.msra.mxu1 %v4210_v47 }
  0x45   : > { %v525_v27 = vsel %vm385_vm1, %v520_v4, %v524_v2  ;;  %v532_v30 = vrot.slane %v530_v6, 1  ;;  %v1689_v31 = vshrl.u32 %v4512_v8, 16  ;;  %v1692_v32 = vshll.u32 %v4512_v8, 16 }
  0x46   : > { %3745 = vmatmul.mubr.msk.bf16.gmra.mrb[20].mxu1 %vm633_vm0, %v485_v11  ;;  %v4517_v11 = vld [vmem:[%s4302_s4 + $0xa0] sm:$0xff]   ;;  %v1682_v33 = vrot.slane %v1680_v10, 2  ;;  %v534_v34 = vshrl.u32 %v4496_v48, 16  ;;  %v542_v35 = vshrl.u32 %v4507_v3, 16  ;;  %v1685_v44 = vrot.slane %v1683_v24, 3  ;;  %v4211_v10 = vld [vmem:[%s5056_s1 + $0x78] sm:$0xff]  }
  0x47   : > { %3748 = vmatprep.mubr.msk.bf16.mxu1 %vm633_vm0, %v493_v14  ;;  %5074 = vst [vmem:[#allocation7_spill] sm:$0xff] %v4517_v11  ;;  %v1676_v14 = vrot.slane %v1674_v59, 3  ;;  %v546_v36 = vshll.u32 %v4517_v11, 16  ;;  %v540_v45 = vrot.slane %v538_v20, 1  ;;  %v528_v51 = vor.u32 %v526_v15, %v524_v2  ;;  %3914 = vmatprep.subr.bf16.mxu0 %v4211_v10 }
  0x48   : > { %3873 = vmatmul.mubr.msk.bf16.gmra.mrb[20].mxu0 %vm633_vm0, %v1633_v23  ;;  %v1668_v23 = vor.u32 %v1667_v63, %v1664_v62  ;;  %v1694_v54 = vrot.slane %v1692_v32, 3  ;;  %v536_v60 = vor.u32 %v534_v34, %v532_v30  ;;  %v1701_v63 = vshll.u32 %v4522_v17, 16 }
  0x49   : > { %3876 = vmatprep.mubr.msk.bf16.mxu0 %vm633_vm0, %v1642_v41  ;;  %v1677_v37 = vor.u32 %v1676_v14, %v1673_v13  ;;  %v1698_v41 = vshrl.u32 %v4522_v17, 16  ;;  %v548_v62 = vrot.slane %v546_v36, 1  ;;  %v554_v2 = vshll.u32 %v4537_v42, 16  ;;  %3915 = vmatpush3.bf16.msra.mxu0 %v4211_v10  ;;  %v4578_v36 = vld [vmem:[%s4302_s4 + $0xc8] sm:$0xff]  }
  0x4a   : > { %v1669_v59 = vsel %vm1517_vm2, %v1659_v56, %v1668_v23  ;;  %v533_v13 = vsel %vm385_vm1, %v528_v51, %v532_v30  ;;  %v1686_v14 = vor.u32 %v1685_v44, %v1682_v33  ;;  %v544_v15 = vor.u32 %v542_v35, %v540_v45  ;;  %v4584_v51 = vld [vmem:[%s4302_s4 + $0xd0] sm:$0xff]  }
  0x4b   : > { %v1678_v4 = vsel %vm1517_vm2, %v1668_v23, %v1677_v37  ;;  %v1700_v6 = vrot.slane %v1698_v41, 2  ;;  %v4566_v23 = vld [vmem:[%s4302_s4 + $0xb8] sm:$0xff]   ;;  %v541_v24 = vsel %vm385_vm1, %v536_v60, %v540_v45  ;;  %v556_v32 = vrot.slane %v554_v2, 1 }
  0x4c   : > { %5077 = vst [vmem:[#allocation10_spill] sm:$0xff] %v4566_v23  ;;  %v562_v30 = vshll.u32 %v4548_v57, 16  ;;  %v1687_v41 = vsel %vm1517_vm2, %v1677_v37, %v1686_v14  ;;  %v549_v44 = vsel %vm385_vm1, %v544_v15, %v548_v62  ;;  %v1734_v10 = vshrl.u32 %v4578_v36, 16 }
  0x4e   : > { %3749 = vmatmul.mubr.msk.bf16.gmra.mrb[24].mxu1 %vm633_vm0, %v501_v46  ;;  %v4541_v46 = vld [vmem:[%s4302_s4 + $0xb0] sm:$0xff]   ;;  %v564_v37 = vrot.slane %v562_v30, 1 }
  0x4f   : > { %3752 = vmatprep.mubr.msk.bf16.mxu1 %vm633_vm0, %v509_v53  ;;  %v1691_v53 = vrot.slane %v1689_v31, 2  ;;  %v1707_v56 = vshrl.u32 %v4541_v46, 16  ;;  %v4571_v31 = vld [vmem:[%s4302_s4 + $0xc0] sm:$0xff]  }
  0x50   : > { %3877 = vmatmul.mubr.msk.bf16.gmra.mrb[24].mxu0 %vm633_vm0, %v1651_v9  ;;  %v550_v9 = vshrl.u32 %v4517_v11, 16  ;;  %v1725_v60 = vshrl.u32 %v4571_v31, 16  ;;  %v1728_v2 = vshll.u32 %v4571_v31, 16 }
  0x51   : > { %3880 = vmatprep.mubr.msk.bf16.mxu0 %vm633_vm0, %v1660_v12  ;;  %v4560_v12 = vld [vmem:[%s4302_s4 + $0xb8] sm:$0xff]   ;;  %v1695_v20 = vor.u32 %v1694_v54, %v1691_v53  ;;  %v1709_v33 = vrot.slane %v1707_v56, 2  ;;  %v558_v54 = vshrl.u32 %v4537_v42, 16  ;;  %v4611_v42 = vld [vmem:[%s4302_s4 + $0xd0] sm:$0xff]  }
  0x52   : > { %v1716_v34 = vshrl.u32 %v4560_v12, 16  ;;  %v1719_v35 = vshll.u32 %v4560_v12, 16  ;;  %v552_v45 = vor.u32 %v550_v9, %v548_v62  ;;  %v4596_v62 = vld [vmem:[%s4302_s4 + $0xc8] sm:$0xff]   ;;  %v1727_v30 = vrot.slane %v1725_v60, 2 }
  0x53   : > { %v1696_v53 = vsel %vm1517_vm2, %v1686_v14, %v1695_v20  ;;  %v1737_v14 = vshll.u32 %v4578_v36, 16  ;;  %v560_v60 = vor.u32 %v558_v54, %v556_v32 }
  0x54   : > { %v1718_v9 = vrot.slane %v1716_v34, 2  ;;  %v1721_v56 = vrot.slane %v1719_v35, 3  ;;  %v557_v15 = vsel %vm385_vm1, %v552_v45, %v556_v32  ;;  %v574_v34 = vshrl.u32 %v4566_v23, 16 }
  0x56   : > { %3753 = vmatmul.mubr.msk.bf16.gmra.mrb[28].mxu1 %vm633_vm0, %v517_v21  ;;  %v1710_v21 = vshll.u32 %v4541_v46, 16 }
  0x57   : > { %3756 = vmatprep.mubr.msk.bf16.mxu1 %vm633_vm0, %v525_v27  ;;  %v1703_v27 = vrot.slane %v1701_v63, 3  ;;  %v4591_v63 = vld [vmem:[%s4302_s4 + $0xc0] sm:$0xff]  }
  0x58   : > { %3881 = vmatmul.mubr.msk.bf16.gmra.mrb[28].mxu0 %vm633_vm0, %v1669_v59  ;;  %v1712_v47 = vrot.slane %v1710_v21, 3  ;;  %v570_v59 = vshll.u32 %v4566_v23, 16  ;;  %5078 = vst [vmem:[#allocation11_spill] sm:$0xff] %v4591_v63  ;;  %v1743_v21 = vshrl.u32 %v4584_v51, 16  ;;  %v578_v35 = vshll.u32 %v4591_v63, 16 }
  0x59   : > { %3884 = vmatprep.mubr.msk.bf16.mxu0 %vm633_vm0, %v1678_v4  ;;  %v1704_v4 = vor.u32 %v1703_v27, %v1700_v6  ;;  %v582_v45 = vshrl.u32 %v4591_v63, 16 }
  0x5a   : > { %v1713_v6 = vor.u32 %v1712_v47, %v1709_v33  ;;  %v572_v27 = vrot.slane %v570_v59, 1  ;;  %v586_v33 = vshll.u32 %v4596_v62, 16  ;;  %v1739_v47 = vrot.slane %v1737_v14, 3  ;;  %v1367_v59 = vld [vmem:[%s4302_s4 + $0xe4] sm:$0x7] }
  0x5b   : > { %v1745_v23 = vrot.slane %v1743_v21, 2  ;;  %v580_v48 = vrot.slane %v578_v35, 1  ;;  %v1722_v14 = vor.u32 %v1721_v56, %v1718_v9  ;;  %v594_v21 = vshll.u32 %v4611_v42, 16 }
  0x5c   : > { %v1714_v63 = vsel %vm1517_vm2, %v1704_v4, %v1713_v6  ;;  %v576_v19 = vor.u32 %v574_v34, %v572_v27  ;;  %v588_v54 = vrot.slane %v586_v33, 1 }
  0x5d   : > { %v584_v32 = vor.u32 %v582_v45, %v580_v48  ;;  %v1723_v34 = vsel %vm1517_vm2, %v1713_v6, %v1722_v14 }
  0x5e   : > { %3757 = vmatmul.mubr.msk.bf16.gmra.mrb[32].mxu1 %vm633_vm0, %v533_v13  ;;  %v566_v13 = vshrl.u32 %v4548_v57, 16  ;;  %v1736_v57 = vrot.slane %v1734_v10, 2  ;;  %v1705_v10 = vsel %vm1517_vm2, %v1695_v20, %v1704_v4  ;;  %v565_v20 = vsel %vm385_vm1, %v560_v60, %v564_v37 }
  0x5f   : > { %3760 = vmatprep.mubr.msk.bf16.mxu1 %vm633_vm0, %v541_v24  ;;  %v1746_v24 = vshll.u32 %v4584_v51, 16  ;;  %v2229_v60 = vrot.slane %v4404_v18, 3 }
  0x60   : > { %3885 = vmatmul.mubr.msk.bf16.gmra.mrb[32].mxu0 %vm633_vm0, %v1687_v41  ;;  %v1730_v41 = vrot.slane %v1728_v2, 3  ;;  %v4619_v2 = vld [vmem:[%s4302_s4 + $0xd8] sm:$0xff]   ;;  %v568_v3 = vor.u32 %v566_v13, %v564_v37  ;;  %v590_v13 = vshrl.u32 %v4596_v62, 16  ;;  %v581_v37 = vsel %vm385_vm1, %v576_v19, %v580_v48 }
  0x61   : > { %3888 = vmatprep.mubr.msk.bf16.mxu0 %vm633_vm0, %v1696_v53  ;;  %v4614_v53 = vld [vmem:[%s4302_s4 + $0xe0] sm:$0xf]  ;;  %v1748_v11 = vrot.slane %v1746_v24, 3  ;;  %v1752_v9 = vshrl.u32 %v4619_v2, 16  ;;  %v598_v24 = vshrl.u32 %v4611_v42, 16  ;;  %v2225_v19 = vrot.slane %v4379_v61, 3 }
  0x62   : > { %v1731_v28 = vor.u32 %v1730_v41, %v1727_v30  ;;  %v4627_v1 = vcombine.low %v4614_v53, %v1367_v59  ;;  %v573_v56 = vsel %vm385_vm1, %v568_v3, %v572_v27  ;;  %v589_v3 = vsel %vm385_vm1, %v584_v32, %v588_v54  ;;  %v5082_v61 = vld [vmem:[#allocation5_spill] sm:$0xff] }
  0x63   : > { %v4632_v4 = vor.u32 %v1748_v11, %v1745_v23  ;;  %v596_v27 = vrot.slane %v594_v21, 1  ;;  %v592_v6 = vor.u32 %v590_v13, %v588_v54  ;;  %v1754_v41 = vrot.slane %v1752_v9, 2 }
  0x64   : > { %v1761_v11 = vshrl.u32 %v4627_v1, 16  ;;  %v1732_v23 = vsel %vm1517_vm2, %v1722_v14, %v1731_v28  ;;  %v2235_v32 = vrot.slane %v4439_v52, 3  ;;  %v2237_v54 = vrot.slane %v4454_v7, 3 }
  0x65   : > { %v600_v45 = vor.u32 %v598_v24, %v596_v27  ;;  %v2243_v21 = vrot.slane %v4501_v55, 3  ;;  %v2247_v13 = vrot.slane %v4522_v17, 3  ;;  %v2253_v55 = vrot.slane %v4571_v31, 3  ;;  %v2191_v24 = vld [vmem:[%s4302_s4 + $0xe4] sm:$0xf] }
  0x66   : > { %3761 = vmatmul.mubr.msk.bf16.gmra.mrb[36].mxu1 %vm633_vm0, %v549_v44  ;;  %v4624_v44 = vld [vmem:[%s4302_s4 + $0xd8] sm:$0x1f]   ;;  %v1763_v59 = vrot.slane %v1761_v11, 2  ;;  %v4681_v7 = vsel %vm2207_vm3, %v2235_v32, %v2237_v54  ;;  %v2255_v17 = vrot.slane %v4578_v36, 3  ;;  %v2259_v31 = vrot.slane %v4619_v2, 3 }
  0x67   : > { %3764 = vmatprep.mubr.msk.bf16.mxu1 %vm633_vm0, %v557_v15  ;;  %v1740_v15 = vor.u32 %v1739_v47, %v1736_v57  ;;  %v1755_v57 = vshll.u32 %v4619_v2, 16  ;;  %v602_v30 = vshll.u32 %v4624_v44, 16  ;;  %v2227_v47 = vrot.slane %v4390_v5, 3 }
  0x68   : > { %3889 = vmatmul.mubr.msk.bf16.gmra.mrb[36].mxu0 %vm633_vm0, %v1705_v10  ;;  %v2231_v10 = vrot.slane %v4414_v26, 3  ;;  %v2239_v26 = vrot.slane %v4472_v22, 3 }
  0x69   : > { %3892 = vmatprep.mubr.msk.bf16.mxu0 %vm633_vm0, %v1714_v63  ;;  %v1741_v63 = vsel %vm1517_vm2, %v1731_v28, %v1740_v15  ;;  %v1750_v35 = vsel %vm1517_vm2, %v1740_v15, %v4632_v4  ;;  %v1757_v48 = vrot.slane %v1755_v57, 3  ;;  %v604_v33 = vrot.slane %v602_v30, 1 }
  0x6a   : > { %v1764_v28 = vshll.u32 %v4627_v1, 16  ;;  %v4659_v14 = vsel %vm2207_vm3, %v2225_v19, %v2227_v47  ;;  %v2233_v15 = vrot.slane %v4433_v49, 3  ;;  %v4666_v5 = vsel %vm2207_vm3, %v2227_v47, %v2229_v60 }
  0x6b   : > { %v4669_v18 = vsel %vm2207_vm3, %v2229_v60, %v2231_v10  ;;  %v2241_v1 = vrot.slane %v4488_v43, 3  ;;  %v2245_v43 = vrot.slane %v4512_v8, 3  ;;  %v2251_v57 = vrot.slane %v4560_v12, 3 }
  0x6c   : > { %v4675_v49 = vsel %vm2207_vm3, %v2231_v10, %v2233_v15  ;;  %v4678_v52 = vsel %vm2207_vm3, %v2233_v15, %v2235_v32  ;;  %v1766_v11 = vrot.slane %v1764_v28, 3  ;;  %v597_v47 = vsel %vm385_vm1, %v592_v6, %v596_v27  ;;  %v2190_v15 = vld [vmem:[%s4302_s4 + $0x8] sm:$0x8]  ;;  %v4224_v6 = vld [vmem:[%s4302_s4 + $0xc] sm:$0xf] }
  0x6d   : > { %v4688_v22 = vsel %vm2207_vm3, %v2239_v26, %v2241_v1  ;;  %v4694_v9 = vsel %vm2207_vm3, %v2241_v1, %v2243_v21  ;;  %v4702_v30 = vsel %vm2207_vm3, %v2243_v21, %v2245_v43  ;;  %v4705_v8 = vsel %vm2207_vm3, %v2245_v43, %v2247_v13  ;;  %v4228_v1 = vld [vmem:[%s4302_s4 + $0x20] sm:$0xff]   ;;  %v4229_v43 = vld [vmem:[%s4302_s4 + $0x8] sm:$0xff]  }
  0x6e   : > { %3765 = vmatmul.mubr.msk.bf16.gmra.mrb[40].mxu1 %vm633_vm0, %v565_v20  ;;  %v4685_v20 = vsel %vm2207_vm3, %v2237_v54, %v2239_v26  ;;  %v4716_v12 = vsel %vm2207_vm3, %v2251_v57, %v2253_v55  ;;  %v1758_v2 = vor.u32 %v1757_v48, %v1754_v41  ;;  %v605_v28 = vsel %vm385_vm1, %v600_v45, %v604_v33  ;;  %v4226_v54 = vld [vmem:[%s4302_s4] sm:$0xff]  }
  0x6f   : > { %3768 = vmatprep.mubr.msk.bf16.mxu1 %vm633_vm0, %v573_v56  ;;  %v2249_v56 = vrot.slane %v4541_v46, 3  ;;  %v1767_v10 = vor.u32 %v1766_v11, %v1763_v59  ;;  %v3439_v41 = vcombine.low %v2190_v15, %v4224_v6  ;;  %v4225_v59 = vld [vmem:[%s4302_s4 + $0x10] sm:$0xff]   ;;  %v2213_v21 = vrot.slane %v4228_v1, 3  ;;  %v4234_v11 = vld [vmem:[%s4302_s4 + $0x20] sm:$0xff]  }
  0x70   : > { %3893 = vmatmul.mubr.msk.bf16.gmra.mrb[40].mxu0 %vm633_vm0, %v1723_v34  ;;  %v2257_v34 = vrot.slane %v4584_v51, 3  ;;  %v3440_v51 = vcombine.low %v4614_v53, %v2191_v24  ;;  %v1759_v27 = vsel %vm1517_vm2, %v4632_v4, %v1758_v2  ;;  %v2209_v32 = vrot.slane %v4225_v59, 3  ;;  %v4237_v15 = vld [vmem:[%s4302_s4 + $0x30] sm:$0xff]  }
  0x71   : > { %3896 = vmatprep.mubr.msk.bf16.mxu0 %vm633_vm0, %v1732_v23  ;;  %v4713_v46 = vsel %vm2207_vm3, %v2249_v56, %v2251_v57  ;;  %v4720_v23 = vsel %vm2207_vm3, %v2253_v55, %v2255_v17  ;;  %v2208_v45 = vrot.slane %v3439_v41, 3  ;;  %v4231_v55 = vld [vmem:[%s4302_s4 + $0x28] sm:$0xff]   ;;  %v2223_v6 = vrot.slane %v4355_v39, 3  ;;  %v4238_v41 = vld [vmem:[%s4302_s4 + $0x38] sm:$0xff]  }
  0x72   : > { %v4723_v36 = vsel %vm2207_vm3, %v2255_v17, %v2257_v34  ;;  %v4731_v60 = vrot.slane %v3440_v51, 3  ;;  %v2215_v24 = vrot.slane %v4231_v55, 3  ;;  %v4232_v17 = vld [vmem:[%s4302_s4 + $0x30] sm:$0xff]   ;;  %v5080_v39 = vld [vmem:[#allocation3_spill] sm:$0xff] }
  0x73   : > { %v2210_v4 = vsel %vm2207_vm3, %v2208_v45, %v2209_v32 }
  0x74   : > { %v4737_v53 = vsel %vm2207_vm3, %v2259_v31, %v4731_v60  ;;  %v2216_v51 = vsel %vm2207_vm3, %v2213_v21, %v2215_v24 }
  0x76   : > { %3769 = vmatmul.mubr.msk.bf16.gmra.mrb[44].mxu1 %vm633_vm0, %v581_v37  ;;  %v4710_v37 = vsel %vm2207_vm3, %v2247_v13, %v2249_v56  ;;  %v4230_v13 = vld [vmem:[%s4302_s4 + $0x10] sm:$0xff]  }
  0x77   : > { %3772 = vmatprep.mubr.msk.bf16.mxu1 %vm633_vm0, %v589_v3  ;;  %v4727_v3 = vsel %vm2207_vm3, %v2257_v34, %v2259_v31  ;;  %v2217_v34 = vrot.slane %v4232_v17, 3  ;;  %v4233_v31 = vld [vmem:[%s4302_s4 + $0x18] sm:$0xff]  }
  0x78   : > { %3897 = vmatmul.mubr.msk.bf16.gmra.mrb[44].mxu0 %vm633_vm0, %v1741_v63  ;;  %v606_v63 = vshrl.u32 %v4624_v44, 16 }
  0x79   : > { %3900 = vmatprep.mubr.msk.bf16.mxu0 %vm633_vm0, %v1750_v35  ;;  %v1768_v35 = vsel %vm1517_vm2, %v1758_v2, %v1767_v10  ;;  %v4235_v2 = vld [vmem:[%s4302_s4 + $0x38] sm:$0xff]  }
  0x7a   : > { %v608_v48 = vor.u32 %v606_v63, %v604_v33  ;;  %v4227_v33 = vld [vmem:[%s4302_s4 + $0x18] sm:$0xff]   ;;  %v4236_v63 = vld [vmem:[%s4302_s4 + $0x28] sm:$0xff]  }
  0x7b   : > { %v2211_v26 = vrot.slane %v4227_v33, 3 }
  0x7d   : > { %v2212_v56 = vsel %vm2207_vm3, %v2209_v32, %v2211_v26  ;;  %v2214_v57 = vsel %vm2207_vm3, %v2211_v26, %v2213_v21 }
  0x7e   : > { %3773 = vmatmul.mubr.msk.bf16.gmra.mrb[48].mxu1 %vm633_vm0, %v597_v47  ;;  %v2218_v47 = vsel %vm2207_vm3, %v2215_v24, %v2217_v34 }
  0x7f   : > { %3776 = vmatprep.mubr.msk.bf16.mxu1 %vm633_vm0, %v605_v28  ;;  %v2219_v28 = vrot.slane %v4235_v2, 3 }
  0x80   : > { %3901 = vmatmul.mubr.msk.bf16.gmra.mrb[48].mxu0 %vm633_vm0, %v1759_v27 }
  0x81   : > { %3904 = vmatprep.mubr.msk.bf16.mxu0 %vm633_vm0, %v1768_v35  ;;  %v2220_v27 = vsel %vm2207_vm3, %v2217_v34, %v2219_v28 }
  0x86   : > { %3777 = vmatmul.mubr.msk.bf16.gmra.mrb[52].mxu1 %vm633_vm0, %v608_v48  ;;  %v2226_v48 = vsel %vm2207_vm3, %v2223_v6, %v2225_v19  ;;  %v5088_v19 = vld [vmem:[#allocation11_spill] sm:$0xff] }
  0x87   : > { %3788 = vmatprep.mubr.msk.bf16.mxu1 %vm633_vm0, %v4226_v54 }
  0x88   : > { %3905 = vmatmul.mubr.msk.bf16.gmra.mrb[52].mxu0 %vm633_vm0, %v1767_v10  ;;  %v2221_v10 = vrot.slane %v4346_v29, 3 }
  0x89   : > { %3916 = vmatprep.mubr.msk.bf16.mxu0 %vm633_vm0, %v2210_v4 }
  0x8a   : > { %v2222_v35 = vsel %vm2207_vm3, %v2219_v28, %v2221_v10  ;;  %v2224_v29 = vsel %vm2207_vm3, %v2221_v10, %v2223_v6 }
  0x8e   : > { %3789 = vmatmul.mubr.msk.bf16.vlgmr.msra.gmra.mrb[0].mxu1 %vm633_vm0, %v4229_v43 }
  0x8f   : > { %3792 = vmatprep.mubr.msk.bf16.mxu1 %vm633_vm0, %v4230_v13 }
  0x90   : > { %3917 = vmatmul.mubr.msk.bf16.vlgmr.msra.gmra.mrb[0].mxu0 %vm633_vm0, %v2212_v56 }
  0x91   : > { %3920 = vmatprep.mubr.msk.bf16.mxu0 %vm633_vm0, %v2214_v57 }
  0x96   : > { %3793 = vmatmul.mubr.msk.bf16.gmra.mrb[4].mxu1 %vm633_vm0, %v4233_v31 }
  0x97   : > { %3796 = vmatprep.mubr.msk.bf16.mxu1 %vm633_vm0, %v4234_v11 }
  0x98   : > { %3921 = vmatmul.mubr.msk.bf16.gmra.mrb[4].mxu0 %vm633_vm0, %v2216_v51 }
  0x99   : > { %3924 = vmatprep.mubr.msk.bf16.mxu0 %vm633_vm0, %v2218_v47 }
  0x9e   : > { %3797 = vmatmul.mubr.msk.bf16.gmra.mrb[8].mxu1 %vm633_vm0, %v4236_v63 }
  0x9f   : > { %3800 = vmatprep.mubr.msk.bf16.mxu1 %vm633_vm0, %v4237_v15 }
  0xa0   : > { %3925 = vmatmul.mubr.msk.bf16.gmra.mrb[8].mxu0 %vm633_vm0, %v2220_v27 }
  0xa1   : > { %3928 = vmatprep.mubr.msk.bf16.mxu0 %vm633_vm0, %v2222_v35 }
  0xa6   : > { %3801 = vmatmul.mubr.msk.bf16.gmra.mrb[12].mxu1 %vm633_vm0, %v4238_v41 }
  0xa7   : > { %3804 = vmatprep.mubr.msk.bf16.mxu1 %vm633_vm0, %v4352_v38  ;;  %v5079_v38 = vld [vmem:[#allocation2_spill] sm:$0xff] }
  0xa8   : > { %3929 = vmatmul.mubr.msk.bf16.gmra.mrb[12].mxu0 %vm633_vm0, %v2224_v29 }
  0xa9   : > { %3932 = vmatprep.mubr.msk.bf16.mxu0 %vm633_vm0, %v2226_v48 }
  0xae   : > { %3805 = vmatmul.mubr.msk.bf16.gmra.mrb[16].mxu1 %vm633_vm0, %v4374_v58  ;;  %v5081_v58 = vld [vmem:[#allocation4_spill] sm:$0xff] }
  0xaf   : > { %3808 = vmatprep.mubr.msk.bf16.mxu1 %vm633_vm0, %v4384_v0  ;;  %v5083_v0 = vld [vmem:[#allocation6_spill] sm:$0xff] }
  0xb0   : > { %3933 = vmatmul.mubr.msk.bf16.gmra.mrb[16].mxu0 %vm633_vm0, %v4659_v14 }
  0xb1   : > { %3936 = vmatprep.mubr.msk.bf16.mxu0 %vm633_vm0, %v4666_v5 }
  0xb6   : > { %3809 = vmatmul.mubr.msk.bf16.gmra.mrb[20].mxu1 %vm633_vm0, %v4400_v16  ;;  %v5084_v16 = vld [vmem:[#allocation7_spill] sm:$0xff] }
  0xb7   : > { %3812 = vmatprep.mubr.msk.bf16.mxu1 %vm633_vm0, %v4411_v25  ;;  %v5085_v25 = vld [vmem:[#allocation8_spill] sm:$0xff] }
  0xb8   : > { %3937 = vmatmul.mubr.msk.bf16.gmra.mrb[20].mxu0 %vm633_vm0, %v4669_v18 }
  0xb9   : > { %3940 = vmatprep.mubr.msk.bf16.mxu0 %vm633_vm0, %v4675_v49 }
  0xbe   : > { %3813 = vmatmul.mubr.msk.bf16.gmra.mrb[24].mxu1 %vm633_vm0, %v4423_v40  ;;  %v5086_v40 = vld [vmem:[#allocation9_spill] sm:$0xff] }
  0xbf   : > { %3816 = vmatprep.mubr.msk.bf16.mxu1 %vm633_vm0, %v4436_v50  ;;  %v5087_v50 = vld [vmem:[#allocation10_spill] sm:$0xff] }
  0xc0   : > { %3941 = vmatmul.mubr.msk.bf16.gmra.mrb[24].mxu0 %vm633_vm0, %v4678_v52 }
  0xc1   : > { %3944 = vmatprep.mubr.msk.bf16.mxu0 %vm633_vm0, %v4681_v7 }
  0xc6   : > { %3817 = vmatmul.mubr.msk.bf16.gmra.mrb[28].mxu1 %vm633_vm0, %v5079_v38 }
  0xc7   : > { %3820 = vmatprep.mubr.msk.bf16.mxu1 %vm633_vm0, %v5080_v39 }
  0xc8   : > { %3945 = vmatmul.mubr.msk.bf16.gmra.mrb[28].mxu0 %vm633_vm0, %v4685_v20 }
  0xc9   : > { %3948 = vmatprep.mubr.msk.bf16.mxu0 %vm633_vm0, %v4688_v22 }
  0xce   : > { %3821 = vmatmul.mubr.msk.bf16.gmra.mrb[32].mxu1 %vm633_vm0, %v5081_v58 }
  0xcf   : > { %3824 = vmatprep.mubr.msk.bf16.mxu1 %vm633_vm0, %v5082_v61 }
  0xd0   : > { %3949 = vmatmul.mubr.msk.bf16.gmra.mrb[32].mxu0 %vm633_vm0, %v4694_v9 }
  0xd1   : > { %3952 = vmatprep.mubr.msk.bf16.mxu0 %vm633_vm0, %v4702_v30 }
  0xd6   : > { %3825 = vmatmul.mubr.msk.bf16.gmra.mrb[36].mxu1 %vm633_vm0, %v5083_v0 }
  0xd7   : > { %3828 = vmatprep.mubr.msk.bf16.mxu1 %vm633_vm0, %v5084_v16 }
  0xd8   : > { %3953 = vmatmul.mubr.msk.bf16.gmra.mrb[36].mxu0 %vm633_vm0, %v4705_v8 }
  0xd9   : > { %3956 = vmatprep.mubr.msk.bf16.mxu0 %vm633_vm0, %v4710_v37 }
  0xde   : > { %3829 = vmatmul.mubr.msk.bf16.gmra.mrb[40].mxu1 %vm633_vm0, %v5085_v25 }
  0xdf   : > { %3832 = vmatprep.mubr.msk.bf16.mxu1 %vm633_vm0, %v5086_v40 }
  0xe0   : > { %3957 = vmatmul.mubr.msk.bf16.gmra.mrb[40].mxu0 %vm633_vm0, %v4713_v46 }
  0xe1   : > { %3960 = vmatprep.mubr.msk.bf16.mxu0 %vm633_vm0, %v4716_v12 }
  0xe6   : > { %3833 = vmatmul.mubr.msk.bf16.gmra.mrb[44].mxu1 %vm633_vm0, %v5087_v50 }
  0xe7   : > { %3836 = vmatprep.mubr.msk.bf16.mxu1 %vm633_vm0, %v5088_v19 }
  0xe8   : > { %3961 = vmatmul.mubr.msk.bf16.gmra.mrb[44].mxu0 %vm633_vm0, %v4720_v23 }
  0xe9   : > { %3964 = vmatprep.mubr.msk.bf16.mxu0 %vm633_vm0, %v4723_v36 }
  0xee   : > { %3837 = vmatmul.mubr.msk.bf16.gmra.mrb[48].mxu1 %vm633_vm0, %v4596_v62 }
  0xef   : > { %3840 = vmatprep.mubr.msk.bf16.mxu1 %vm633_vm0, %v4611_v42  ;;  %v4876_v42 = vld [vmem:[%s5057_s2] ss:$0 sm:$0xff] }
  0xf0   : > { %3965 = vmatmul.mubr.msk.bf16.gmra.mrb[48].mxu0 %vm633_vm0, %v4727_v3 }
  0xf1   : > { %3968 = vmatprep.mubr.msk.bf16.mxu0 %vm633_vm0, %v4737_v53 }
  0xf6   : > { %3841 = vmatmul.mubr.msk.bf16.gmra.mrb[52].mxu1 %vm633_vm0, %v4624_v44 }
  0xf8   : > { %3969 = vmatmul.mubr.msk.bf16.gmra.mrb[52].mxu0 %vm633_vm0, %v4731_v60 }
 0x161   : > { %v3790_v14 = vpop.f32.mrb[0].mxu1 }
 0x162   : > { %v1089_v5 = vpop.f32.mrb[1].mxu1 }
 0x163   : > { %v3791_v18 = vpop.f32.mrb[2].mxu1  ;;  %v3918_v49 = vpop.f32.mrb[0].mxu0 }
 0x164   : > { %v1092_v62 = vpop.f32.mrb[3].mxu1  ;;  %v3972_v52 = vadd.f32 %v3918_v49, %v3790_v14  ;;  %v2405_v7 = vpop.f32.mrb[1].mxu0 }
 0x165   : > { %v3973_v20 = vadd.f32 %v2405_v7, %v1089_v5  ;;  %v3919_v22 = vpop.f32.mrb[2].mxu0 }
 0x166   : > { %v2693_v44 = vadd.f32 %v3972_v52, %v4876_v42  ;;  %v3974_v9 = vadd.f32 %v3919_v22, %v3791_v18  ;;  %v2408_v30 = vpop.f32.mrb[3].mxu0 }
 0x167   : > { %v2691_v37 = vadd.f32 %v3973_v20, %v4876_v42  ;;  %v3975_v46 = vadd.f32 %v2408_v30, %v1092_v62 }
 0x168   : > { %vm2749_vm4 = vcmp.ge.f32.partialorder %v2693_v44, 0.0  ;;  %v2805_v23 = vmul.f32 0.01, %v2693_v44  ;;  %v2694_v36 = vadd.f32 %v3974_v9, %v4876_v42 }
 0x169   : > { %v3794_v8 = vpop.f32.mrb[4].mxu1  ;;  %vm2747_vm5 = vcmp.ge.f32.partialorder %v2691_v37, 0.0  ;;  %v2803_v60 = vmul.f32 0.01, %v2691_v37  ;;  %v2692_v53 = vadd.f32 %v3975_v46, %v4876_v42 }
 0x16a   : > { %v1105_v12 = vpop.f32.mrb[5].mxu1  ;;  %v2861_v59 = vsel %vm2749_vm4, %v2693_v44, %v2805_v23  ;;  %vm2750_vm7 = vcmp.ge.f32.partialorder %v2694_v36, 0.0  ;;  %v2806_v32 = vmul.f32 0.01, %v2694_v36 }
 0x16b   : > { %v3795_v3 = vpop.f32.mrb[6].mxu1  ;;  %v3534_v54 = vpack.c.bf16 %v2861_v59, %v2861_v59  ;;  %v2859_v4 = vsel %vm2747_vm5, %v2691_v37, %v2803_v60  ;;  %vm2748_vm8 = vcmp.ge.f32.partialorder %v2692_v53, 0.0  ;;  %v2804_v33 = vmul.f32 0.01, %v2692_v53  ;;  %v3922_v26 = vpop.f32.mrb[4].mxu0 }
 0x16c   : > { %v1108_v45 = vpop.f32.mrb[7].mxu1  ;;  %v3532_v1 = vpack.c.bf16 %v2859_v4, %v2859_v4  ;;  %v2862_v21 = vsel %vm2750_vm7, %v2694_v36, %v2806_v32  ;;  %v3976_v43 = vadd.f32 %v3922_v26, %v3794_v8  ;;  %v2421_v13 = vpop.f32.mrb[5].mxu0 }
 0x16d   : > { %3142 = vst.msk [vmem:[%s4886_s29 + $0x8] sm:$0xf] %vm3139_vm6, %v3534_v54  ;;  %v3535_v56 = vpack.c.bf16 %v2862_v21, %v2862_v21  ;;  %v2860_v57 = vsel %vm2748_vm8, %v2692_v53, %v2804_v33  ;;  %v3977_v55 = vadd.f32 %v2421_v13, %v1105_v12  ;;  %v3923_v24 = vpop.f32.mrb[6].mxu0 }
 0x16e   : > { %3140 = vst.msk [vmem:[%s4886_s29] sm:$0xf] %vm3139_vm6, %v3532_v1  ;;  %v3533_v17 = vpack.c.bf16 %v2860_v57, %v2860_v57  ;;  %v2697_v34 = vadd.f32 %v3976_v43, %v4876_v42  ;;  %v3978_v31 = vadd.f32 %v3923_v24, %v3795_v3  ;;  %v2424_v11 = vpop.f32.mrb[7].mxu0 }
 0x16f   : > { %3143 = vst.msk [vmem:[%s4886_s29 + $0xc] sm:$0xf] %vm3139_vm6, %v3535_v56  ;;  %v2695_v47 = vadd.f32 %v3977_v55, %v4876_v42  ;;  %v3979_v2 = vadd.f32 %v2424_v11, %v1108_v45 }
 0x170   : > { %3141 = vst.msk [vmem:[%s4886_s29 + $0x4] sm:$0xf] %vm3139_vm6, %v3533_v17  ;;  %vm2753_vm9 = vcmp.ge.f32.partialorder %v2697_v34, 0.0  ;;  %v2809_v10 = vmul.f32 0.01, %v2697_v34  ;;  %v2698_v63 = vadd.f32 %v3978_v31, %v4876_v42 }
 0x171   : > { %v3798_v51 = vpop.f32.mrb[8].mxu1  ;;  %vm2751_vm10 = vcmp.ge.f32.partialorder %v2695_v47, 0.0  ;;  %v2807_v27 = vmul.f32 0.01, %v2695_v47  ;;  %v2696_v35 = vadd.f32 %v3979_v2, %v4876_v42 }
 0x172   : > { %v1121_v28 = vpop.f32.mrb[9].mxu1  ;;  %v2865_v41 = vsel %vm2753_vm9, %v2697_v34, %v2809_v10  ;;  %vm2754_vm11 = vcmp.ge.f32.partialorder %v2698_v63, 0.0  ;;  %v2810_v29 = vmul.f32 0.01, %v2698_v63 }
 0x173   : > { %v3799_v15 = vpop.f32.mrb[10].mxu1  ;;  %v3538_v48 = vpack.c.bf16 %v2865_v41, %v2865_v41  ;;  %v2863_v38 = vsel %vm2751_vm10, %v2695_v47, %v2807_v27  ;;  %vm2752_vm12 = vcmp.ge.f32.partialorder %v2696_v35, 0.0  ;;  %v2808_v39 = vmul.f32 0.01, %v2696_v35  ;;  %v3926_v58 = vpop.f32.mrb[8].mxu0 }
 0x174   : > { %v1124_v6 = vpop.f32.mrb[11].mxu1  ;;  %v3536_v61 = vpack.c.bf16 %v2863_v38, %v2863_v38  ;;  %v2866_v0 = vsel %vm2754_vm11, %v2698_v63, %v2810_v29  ;;  %v3980_v16 = vadd.f32 %v3926_v58, %v3798_v51  ;;  %v2437_v25 = vpop.f32.mrb[9].mxu0 }
 0x175   : > { %3146 = vst.msk [vmem:[%s4886_s29 + $0x18] sm:$0xf] %vm3139_vm6, %v3538_v48  ;;  %v3539_v40 = vpack.c.bf16 %v2866_v0, %v2866_v0  ;;  %v2864_v50 = vsel %vm2752_vm12, %v2696_v35, %v2808_v39  ;;  %v3981_v19 = vadd.f32 %v2437_v25, %v1121_v28  ;;  %v3927_v14 = vpop.f32.mrb[10].mxu0 }
 0x176   : > { %3144 = vst.msk [vmem:[%s4886_s29 + $0x10] sm:$0xf] %vm3139_vm6, %v3536_v61  ;;  %v3537_v5 = vpack.c.bf16 %v2864_v50, %v2864_v50  ;;  %v2701_v18 = vadd.f32 %v3980_v16, %v4876_v42  ;;  %v3982_v62 = vadd.f32 %v3927_v14, %v3799_v15  ;;  %v2440_v49 = vpop.f32.mrb[11].mxu0 }
 0x177   : > { %3147 = vst.msk [vmem:[%s4886_s29 + $0x1c] sm:$0xf] %vm3139_vm6, %v3539_v40  ;;  %v2699_v7 = vadd.f32 %v3981_v19, %v4876_v42  ;;  %v3983_v20 = vadd.f32 %v2440_v49, %v1124_v6 }
 0x178   : > { %3145 = vst.msk [vmem:[%s4886_s29 + $0x14] sm:$0xf] %vm3139_vm6, %v3537_v5  ;;  %vm2757_vm13 = vcmp.ge.f32.partialorder %v2701_v18, 0.0  ;;  %v2813_v44 = vmul.f32 0.01, %v2701_v18  ;;  %v2702_v9 = vadd.f32 %v3982_v62, %v4876_v42 }
 0x179   : > { %v3802_v52 = vpop.f32.mrb[12].mxu1  ;;  %vm2755_vm14 = vcmp.ge.f32.partialorder %v2699_v7, 0.0  ;;  %v2811_v8 = vmul.f32 0.01, %v2699_v7  ;;  %v2700_v37 = vadd.f32 %v3983_v20, %v4876_v42 }
 0x17a   : > { %v1137_v22 = vpop.f32.mrb[13].mxu1  ;;  %v2869_v12 = vsel %vm2757_vm13, %v2701_v18, %v2813_v44  ;;  %vm2758_vm15 = vcmp.ge.f32.partialorder %v2702_v9, 0.0  ;;  %v2814_v23 = vmul.f32 0.01, %v2702_v9 }
 0x17b   : > { %v3803_v30 = vpop.f32.mrb[14].mxu1  ;;  %v3542_v36 = vpack.c.bf16 %v2869_v12, %v2869_v12  ;;  %v2867_v3 = vsel %vm2755_vm14, %v2699_v7, %v2811_v8  ;;  %vm2756_vm0 = vcmp.ge.f32.partialorder %v2700_v37, 0.0  ;;  %v2812_v60 = vmul.f32 0.01, %v2700_v37  ;;  %v3930_v53 = vpop.f32.mrb[12].mxu0 }
 0x17c   : > { %v1140_v46 = vpop.f32.mrb[15].mxu1  ;;  %v3540_v45 = vpack.c.bf16 %v2867_v3, %v2867_v3  ;;  %v2870_v59 = vsel %vm2758_vm15, %v2702_v9, %v2814_v23  ;;  %v3984_v32 = vadd.f32 %v3930_v53, %v3802_v52  ;;  %v2453_v54 = vpop.f32.mrb[13].mxu0 }
 0x17d   : > { %3150 = vst.msk [vmem:[%s4886_s29 + $0x28] sm:$0xf] %vm3139_vm6, %v3542_v36  ;;  %v3543_v4 = vpack.c.bf16 %v2870_v59, %v2870_v59  ;;  %v2868_v33 = vsel %vm2756_vm0, %v2700_v37, %v2812_v60  ;;  %v3985_v26 = vadd.f32 %v2453_v54, %v1137_v22  ;;  %v3931_v1 = vpop.f32.mrb[14].mxu0 }
 0x17e   : > { %3148 = vst.msk [vmem:[%s4886_s29 + $0x20] sm:$0xf] %vm3139_vm6, %v3540_v45  ;;  %v3541_v21 = vpack.c.bf16 %v2868_v33, %v2868_v33  ;;  %v2705_v43 = vadd.f32 %v3984_v32, %v4876_v42  ;;  %v3986_v13 = vadd.f32 %v3931_v1, %v3803_v30  ;;  %v2456_v56 = vpop.f32.mrb[15].mxu0 }
 0x17f   : > { %3151 = vst.msk [vmem:[%s4886_s29 + $0x2c] sm:$0xf] %vm3139_vm6, %v3543_v4  ;;  %v2703_v55 = vadd.f32 %v3985_v26, %v4876_v42  ;;  %v3987_v24 = vadd.f32 %v2456_v56, %v1140_v46 }
 0x180   : > { %3149 = vst.msk [vmem:[%s4886_s29 + $0x24] sm:$0xf] %vm3139_vm6, %v3541_v21  ;;  %vm2761_vm1 = vcmp.ge.f32.partialorder %v2705_v43, 0.0  ;;  %v2817_v34 = vmul.f32 0.01, %v2705_v43  ;;  %v2706_v31 = vadd.f32 %v3986_v13, %v4876_v42 }
 0x181   : > { %v3806_v57 = vpop.f32.mrb[16].mxu1  ;;  %vm2759_vm2 = vcmp.ge.f32.partialorder %v2703_v55, 0.0  ;;  %v2815_v51 = vmul.f32 0.01, %v2703_v55  ;;  %v2704_v47 = vadd.f32 %v3987_v24, %v4876_v42 }
 0x182   : > { %v1153_v17 = vpop.f32.mrb[17].mxu1  ;;  %v2873_v28 = vsel %vm2761_vm1, %v2705_v43, %v2817_v34  ;;  %vm2762_vm3 = vcmp.ge.f32.partialorder %v2706_v31, 0.0  ;;  %v2818_v10 = vmul.f32 0.01, %v2706_v31 }
 0x183   : > { %v3807_v11 = vpop.f32.mrb[18].mxu1  ;;  %v3546_v63 = vpack.c.bf16 %v2873_v28, %v2873_v28  ;;  %v2871_v15 = vsel %vm2759_vm2, %v2703_v55, %v2815_v51  ;;  %vm2760_vm4 = vcmp.ge.f32.partialorder %v2704_v47, 0.0  ;;  %v2816_v27 = vmul.f32 0.01, %v2704_v47  ;;  %v3934_v35 = vpop.f32.mrb[16].mxu0 }
 0x184   : > { %v1156_v2 = vpop.f32.mrb[19].mxu1  ;;  %v3544_v6 = vpack.c.bf16 %v2871_v15, %v2871_v15  ;;  %v2874_v41 = vsel %vm2762_vm3, %v2706_v31, %v2818_v10  ;;  %v3988_v29 = vadd.f32 %v3934_v35, %v3806_v57  ;;  %v2469_v48 = vpop.f32.mrb[17].mxu0 }
 0x185   : > { %3154 = vst.msk [vmem:[%s4886_s29 + $0x38] sm:$0xf] %vm3139_vm6, %v3546_v63  ;;  %v3547_v38 = vpack.c.bf16 %v2874_v41, %v2874_v41  ;;  %v2872_v39 = vsel %vm2760_vm4, %v2704_v47, %v2816_v27  ;;  %v3989_v58 = vadd.f32 %v2469_v48, %v1153_v17  ;;  %v3935_v61 = vpop.f32.mrb[18].mxu0 }
 0x186   : > { %3152 = vst.msk [vmem:[%s4886_s29 + $0x30] sm:$0xf] %vm3139_vm6, %v3544_v6  ;;  %v3545_v0 = vpack.c.bf16 %v2872_v39, %v2872_v39  ;;  %v2709_v16 = vadd.f32 %v3988_v29, %v4876_v42  ;;  %v3990_v25 = vadd.f32 %v3935_v61, %v3807_v11  ;;  %v2472_v40 = vpop.f32.mrb[19].mxu0 }
 0x187   : > { %3155 = vst.msk [vmem:[%s4886_s29 + $0x3c] sm:$0xf] %vm3139_vm6, %v3547_v38  ;;  %v2707_v19 = vadd.f32 %v3989_v58, %v4876_v42  ;;  %v3991_v14 = vadd.f32 %v2472_v40, %v1156_v2 }
 0x188   : > { %3153 = vst.msk [vmem:[%s4886_s29 + $0x34] sm:$0xf] %vm3139_vm6, %v3545_v0  ;;  %vm2765_vm5 = vcmp.ge.f32.partialorder %v2709_v16, 0.0  ;;  %v2821_v18 = vmul.f32 0.01, %v2709_v16  ;;  %v2710_v62 = vadd.f32 %v3990_v25, %v4876_v42 }
 0x189   : > { %v3810_v50 = vpop.f32.mrb[20].mxu1  ;;  %vm2763_vm7 = vcmp.ge.f32.partialorder %v2707_v19, 0.0  ;;  %v2819_v52 = vmul.f32 0.01, %v2707_v19  ;;  %v2708_v7 = vadd.f32 %v3991_v14, %v4876_v42 }
 0x18a   : > { %v1169_v5 = vpop.f32.mrb[21].mxu1  ;;  %v2877_v22 = vsel %vm2765_vm5, %v2709_v16, %v2821_v18  ;;  %vm2766_vm8 = vcmp.ge.f32.partialorder %v2710_v62, 0.0  ;;  %v2822_v44 = vmul.f32 0.01, %v2710_v62 }
 0x18b   : > { %v3811_v49 = vpop.f32.mrb[22].mxu1  ;;  %v3550_v9 = vpack.c.bf16 %v2877_v22, %v2877_v22  ;;  %v2875_v30 = vsel %vm2763_vm7, %v2707_v19, %v2819_v52  ;;  %vm2764_vm9 = vcmp.ge.f32.partialorder %v2708_v7, 0.0  ;;  %v2820_v8 = vmul.f32 0.01, %v2708_v7  ;;  %v3938_v37 = vpop.f32.mrb[20].mxu0 }
 0x18c   : > { %v1172_v20 = vpop.f32.mrb[23].mxu1  ;;  %v3548_v46 = vpack.c.bf16 %v2875_v30, %v2875_v30  ;;  %v2878_v12 = vsel %vm2766_vm8, %v2710_v62, %v2822_v44  ;;  %v3992_v23 = vadd.f32 %v3938_v37, %v3810_v50  ;;  %v2485_v36 = vpop.f32.mrb[21].mxu0 }
 0x18d   : > { %3158 = vst.msk [vmem:[%s4886_s29 + $0x48] sm:$0xf] %vm3139_vm6, %v3550_v9  ;;  %v3551_v3 = vpack.c.bf16 %v2878_v12, %v2878_v12  ;;  %v2876_v60 = vsel %vm2764_vm9, %v2708_v7, %v2820_v8  ;;  %v3993_v53 = vadd.f32 %v2485_v36, %v1169_v5  ;;  %v3939_v45 = vpop.f32.mrb[22].mxu0 }
 0x18e   : > { %3156 = vst.msk [vmem:[%s4886_s29 + $0x40] sm:$0xf] %vm3139_vm6, %v3548_v46  ;;  %v3549_v59 = vpack.c.bf16 %v2876_v60, %v2876_v60  ;;  %v2713_v32 = vadd.f32 %v3992_v23, %v4876_v42  ;;  %v3994_v54 = vadd.f32 %v3939_v45, %v3811_v49  ;;  %v2488_v4 = vpop.f32.mrb[23].mxu0 }
 0x18f   : > { %3159 = vst.msk [vmem:[%s4886_s29 + $0x4c] sm:$0xf] %vm3139_vm6, %v3551_v3  ;;  %v2711_v26 = vadd.f32 %v3993_v53, %v4876_v42  ;;  %v3995_v1 = vadd.f32 %v2488_v4, %v1172_v20 }
 0x190   : > { %3157 = vst.msk [vmem:[%s4886_s29 + $0x44] sm:$0xf] %vm3139_vm6, %v3549_v59  ;;  %vm2769_vm10 = vcmp.ge.f32.partialorder %v2713_v32, 0.0  ;;  %v2825_v43 = vmul.f32 0.01, %v2713_v32  ;;  %v2714_v13 = vadd.f32 %v3994_v54, %v4876_v42 }
 0x191   : > { %v3814_v33 = vpop.f32.mrb[24].mxu1  ;;  %vm2767_vm11 = vcmp.ge.f32.partialorder %v2711_v26, 0.0  ;;  %v2823_v57 = vmul.f32 0.01, %v2711_v26  ;;  %v2712_v55 = vadd.f32 %v3995_v1, %v4876_v42 }
 0x192   : > { %v1185_v21 = vpop.f32.mrb[25].mxu1  ;;  %v2881_v17 = vsel %vm2769_vm10, %v2713_v32, %v2825_v43  ;;  %vm2770_vm12 = vcmp.ge.f32.partialorder %v2714_v13, 0.0  ;;  %v2826_v34 = vmul.f32 0.01, %v2714_v13 }
 0x193   : > { %v3815_v56 = vpop.f32.mrb[26].mxu1  ;;  %v3554_v31 = vpack.c.bf16 %v2881_v17, %v2881_v17  ;;  %v2879_v11 = vsel %vm2767_vm11, %v2711_v26, %v2823_v57  ;;  %vm2768_vm13 = vcmp.ge.f32.partialorder %v2712_v55, 0.0  ;;  %v2824_v51 = vmul.f32 0.01, %v2712_v55  ;;  %v3942_v47 = vpop.f32.mrb[24].mxu0 }
 0x194   : > { %v1188_v24 = vpop.f32.mrb[27].mxu1  ;;  %v3552_v2 = vpack.c.bf16 %v2879_v11, %v2879_v11  ;;  %v2882_v28 = vsel %vm2770_vm12, %v2714_v13, %v2826_v34  ;;  %v3996_v10 = vadd.f32 %v3942_v47, %v3814_v33  ;;  %v2501_v63 = vpop.f32.mrb[25].mxu0 }
 0x195   : > { %3162 = vst.msk [vmem:[%s4886_s29 + $0x58] sm:$0xf] %vm3139_vm6, %v3554_v31  ;;  %v3555_v15 = vpack.c.bf16 %v2882_v28, %v2882_v28  ;;  %v2880_v27 = vsel %vm2768_vm13, %v2712_v55, %v2824_v51  ;;  %v3997_v35 = vadd.f32 %v2501_v63, %v1185_v21  ;;  %v3943_v6 = vpop.f32.mrb[26].mxu0 }
 0x196   : > { %3160 = vst.msk [vmem:[%s4886_s29 + $0x50] sm:$0xf] %vm3139_vm6, %v3552_v2  ;;  %v3553_v41 = vpack.c.bf16 %v2880_v27, %v2880_v27  ;;  %v2717_v29 = vadd.f32 %v3996_v10, %v4876_v42  ;;  %v3998_v48 = vadd.f32 %v3943_v6, %v3815_v56  ;;  %v2504_v38 = vpop.f32.mrb[27].mxu0 }
 0x197   : > { %3163 = vst.msk [vmem:[%s4886_s29 + $0x5c] sm:$0xf] %vm3139_vm6, %v3555_v15  ;;  %v2715_v58 = vadd.f32 %v3997_v35, %v4876_v42  ;;  %v3999_v61 = vadd.f32 %v2504_v38, %v1188_v24 }
 0x198   : > { %3161 = vst.msk [vmem:[%s4886_s29 + $0x54] sm:$0xf] %vm3139_vm6, %v3553_v41  ;;  %vm2773_vm14 = vcmp.ge.f32.partialorder %v2717_v29, 0.0  ;;  %v2829_v16 = vmul.f32 0.01, %v2717_v29  ;;  %v2718_v25 = vadd.f32 %v3998_v48, %v4876_v42 }
 0x199   : > { %v3818_v39 = vpop.f32.mrb[28].mxu1  ;;  %vm2771_vm15 = vcmp.ge.f32.partialorder %v2715_v58, 0.0  ;;  %v2827_v50 = vmul.f32 0.01, %v2715_v58  ;;  %v2716_v19 = vadd.f32 %v3999_v61, %v4876_v42 }
 0x19a   : > { %v1201_v0 = vpop.f32.mrb[29].mxu1  ;;  %v2885_v5 = vsel %vm2773_vm14, %v2717_v29, %v2829_v16  ;;  %vm2774_vm0 = vcmp.ge.f32.partialorder %v2718_v25, 0.0  ;;  %v2830_v18 = vmul.f32 0.01, %v2718_v25 }
 0x19b   : > { %v3819_v40 = vpop.f32.mrb[30].mxu1  ;;  %v3558_v62 = vpack.c.bf16 %v2885_v5, %v2885_v5  ;;  %v2883_v49 = vsel %vm2771_vm15, %v2715_v58, %v2827_v50  ;;  %vm2772_vm1 = vcmp.ge.f32.partialorder %v2716_v19, 0.0  ;;  %v2828_v52 = vmul.f32 0.01, %v2716_v19  ;;  %v3946_v7 = vpop.f32.mrb[28].mxu0 }
 0x19c   : > { %v1204_v14 = vpop.f32.mrb[31].mxu1  ;;  %v3556_v20 = vpack.c.bf16 %v2883_v49, %v2883_v49  ;;  %v2886_v22 = vsel %vm2774_vm0, %v2718_v25, %v2830_v18  ;;  %v4000_v44 = vadd.f32 %v3946_v7, %v3818_v39  ;;  %v2517_v9 = vpop.f32.mrb[29].mxu0 }
 0x19d   : > { %3166 = vst.msk [vmem:[%s4886_s29 + $0x68] sm:$0xf] %vm3139_vm6, %v3558_v62  ;;  %v3559_v30 = vpack.c.bf16 %v2886_v22, %v2886_v22  ;;  %v2884_v8 = vsel %vm2772_vm1, %v2716_v19, %v2828_v52  ;;  %v4001_v37 = vadd.f32 %v2517_v9, %v1201_v0  ;;  %v3947_v46 = vpop.f32.mrb[30].mxu0 }
 0x19e   : > { %3164 = vst.msk [vmem:[%s4886_s29 + $0x60] sm:$0xf] %vm3139_vm6, %v3556_v20  ;;  %v3557_v12 = vpack.c.bf16 %v2884_v8, %v2884_v8  ;;  %v2721_v23 = vadd.f32 %v4000_v44, %v4876_v42  ;;  %v4002_v36 = vadd.f32 %v3947_v46, %v3819_v40  ;;  %v2520_v3 = vpop.f32.mrb[31].mxu0 }
 0x19f   : > { %3167 = vst.msk [vmem:[%s4886_s29 + $0x6c] sm:$0xf] %vm3139_vm6, %v3559_v30  ;;  %v2719_v53 = vadd.f32 %v4001_v37, %v4876_v42  ;;  %v4003_v45 = vadd.f32 %v2520_v3, %v1204_v14 }
 0x1a0   : > { %3165 = vst.msk [vmem:[%s4886_s29 + $0x64] sm:$0xf] %vm3139_vm6, %v3557_v12  ;;  %vm2777_vm2 = vcmp.ge.f32.partialorder %v2721_v23, 0.0  ;;  %v2833_v32 = vmul.f32 0.01, %v2721_v23  ;;  %v2722_v54 = vadd.f32 %v4002_v36, %v4876_v42 }
 0x1a1   : > { %v3822_v60 = vpop.f32.mrb[32].mxu1  ;;  %vm2775_vm3 = vcmp.ge.f32.partialorder %v2719_v53, 0.0  ;;  %v2831_v33 = vmul.f32 0.01, %v2719_v53  ;;  %v2720_v26 = vadd.f32 %v4003_v45, %v4876_v42 }
 0x1a2   : > { %v1217_v59 = vpop.f32.mrb[33].mxu1  ;;  %v2889_v21 = vsel %vm2777_vm2, %v2721_v23, %v2833_v32  ;;  %vm2778_vm4 = vcmp.ge.f32.partialorder %v2722_v54, 0.0  ;;  %v2834_v43 = vmul.f32 0.01, %v2722_v54 }
 0x1a3   : > { %v3823_v4 = vpop.f32.mrb[34].mxu1  ;;  %v3562_v13 = vpack.c.bf16 %v2889_v21, %v2889_v21  ;;  %v2887_v56 = vsel %vm2775_vm3, %v2719_v53, %v2831_v33  ;;  %vm2776_vm5 = vcmp.ge.f32.partialorder %v2720_v26, 0.0  ;;  %v2832_v57 = vmul.f32 0.01, %v2720_v26  ;;  %v3950_v55 = vpop.f32.mrb[32].mxu0 }
 0x1a4   : > { %v1220_v1 = vpop.f32.mrb[35].mxu1  ;;  %v3560_v24 = vpack.c.bf16 %v2887_v56, %v2887_v56  ;;  %v2890_v17 = vsel %vm2778_vm4, %v2722_v54, %v2834_v43  ;;  %v4004_v34 = vadd.f32 %v3950_v55, %v3822_v60  ;;  %v2533_v31 = vpop.f32.mrb[33].mxu0 }
 0x1a5   : > { %3170 = vst.msk [vmem:[%s4886_s29 + $0x78] sm:$0xf] %vm3139_vm6, %v3562_v13  ;;  %v3563_v11 = vpack.c.bf16 %v2890_v17, %v2890_v17  ;;  %v2888_v51 = vsel %vm2776_vm5, %v2720_v26, %v2832_v57  ;;  %v4005_v47 = vadd.f32 %v2533_v31, %v1217_v59  ;;  %v3951_v2 = vpop.f32.mrb[34].mxu0 }
 0x1a6   : > { %3168 = vst.msk [vmem:[%s4886_s29 + $0x70] sm:$0xf] %vm3139_vm6, %v3560_v24  ;;  %v3561_v28 = vpack.c.bf16 %v2888_v51, %v2888_v51  ;;  %v2725_v10 = vadd.f32 %v4004_v34, %v4876_v42  ;;  %v4006_v63 = vadd.f32 %v3951_v2, %v3823_v4  ;;  %v2536_v15 = vpop.f32.mrb[35].mxu0 }
 0x1a7   : > { %3171 = vst.msk [vmem:[%s4886_s29 + $0x7c] sm:$0xf] %vm3139_vm6, %v3563_v11  ;;  %v2723_v35 = vadd.f32 %v4005_v47, %v4876_v42  ;;  %v4007_v6 = vadd.f32 %v2536_v15, %v1220_v1 }
 0x1a8   : > { %3169 = vst.msk [vmem:[%s4886_s29 + $0x74] sm:$0xf] %vm3139_vm6, %v3561_v28  ;;  %vm2781_vm7 = vcmp.ge.f32.partialorder %v2725_v10, 0.0  ;;  %v2837_v29 = vmul.f32 0.01, %v2725_v10  ;;  %v2726_v48 = vadd.f32 %v4006_v63, %v4876_v42 }
 0x1a9   : > { %v3826_v27 = vpop.f32.mrb[36].mxu1  ;;  %vm2779_vm8 = vcmp.ge.f32.partialorder %v2723_v35, 0.0  ;;  %v2835_v39 = vmul.f32 0.01, %v2723_v35  ;;  %v2724_v58 = vadd.f32 %v4007_v6, %v4876_v42 }
 0x1aa   : > { %v1233_v41 = vpop.f32.mrb[37].mxu1  ;;  %v2893_v0 = vsel %vm2781_vm7, %v2725_v10, %v2837_v29  ;;  %vm2782_vm9 = vcmp.ge.f32.partialorder %v2726_v48, 0.0  ;;  %v2838_v16 = vmul.f32 0.01, %v2726_v48 }
 0x1ab   : > { %v3827_v38 = vpop.f32.mrb[38].mxu1  ;;  %v3566_v25 = vpack.c.bf16 %v2893_v0, %v2893_v0  ;;  %v2891_v40 = vsel %vm2779_vm8, %v2723_v35, %v2835_v39  ;;  %vm2780_vm10 = vcmp.ge.f32.partialorder %v2724_v58, 0.0  ;;  %v2836_v50 = vmul.f32 0.01, %v2724_v58  ;;  %v3954_v19 = vpop.f32.mrb[36].mxu0 }
 0x1ac   : > { %v1236_v61 = vpop.f32.mrb[39].mxu1  ;;  %v3564_v14 = vpack.c.bf16 %v2891_v40, %v2891_v40  ;;  %v2894_v5 = vsel %vm2782_vm9, %v2726_v48, %v2838_v16  ;;  %v4008_v18 = vadd.f32 %v3954_v19, %v3826_v27  ;;  %v2549_v62 = vpop.f32.mrb[37].mxu0 }
 0x1ad   : > { %3174 = vst.msk [vmem:[%s4886_s29 + $0x88] sm:$0xf] %vm3139_vm6, %v3566_v25  ;;  %v3567_v49 = vpack.c.bf16 %v2894_v5, %v2894_v5  ;;  %v2892_v52 = vsel %vm2780_vm10, %v2724_v58, %v2836_v50  ;;  %v4009_v7 = vadd.f32 %v2549_v62, %v1233_v41  ;;  %v3955_v20 = vpop.f32.mrb[38].mxu0 }
 0x1ae   : > { %3172 = vst.msk [vmem:[%s4886_s29 + $0x80] sm:$0xf] %vm3139_vm6, %v3564_v14  ;;  %v3565_v22 = vpack.c.bf16 %v2892_v52, %v2892_v52  ;;  %v2729_v44 = vadd.f32 %v4008_v18, %v4876_v42  ;;  %v4010_v9 = vadd.f32 %v3955_v20, %v3827_v38  ;;  %v2552_v30 = vpop.f32.mrb[39].mxu0 }
 0x1af   : > { %3175 = vst.msk [vmem:[%s4886_s29 + $0x8c] sm:$0xf] %vm3139_vm6, %v3567_v49  ;;  %v2727_v37 = vadd.f32 %v4009_v7, %v4876_v42  ;;  %v4011_v46 = vadd.f32 %v2552_v30, %v1236_v61 }
 0x1b0   : > { %3173 = vst.msk [vmem:[%s4886_s29 + $0x84] sm:$0xf] %vm3139_vm6, %v3565_v22  ;;  %vm2785_vm11 = vcmp.ge.f32.partialorder %v2729_v44, 0.0  ;;  %v2841_v23 = vmul.f32 0.01, %v2729_v44  ;;  %v2730_v36 = vadd.f32 %v4010_v9, %v4876_v42 }
 0x1b1   : > { %v3830_v8 = vpop.f32.mrb[40].mxu1  ;;  %vm2783_vm12 = vcmp.ge.f32.partialorder %v2727_v37, 0.0  ;;  %v2839_v60 = vmul.f32 0.01, %v2727_v37  ;;  %v2728_v53 = vadd.f32 %v4011_v46, %v4876_v42 }
 0x1b2   : > { %v1249_v12 = vpop.f32.mrb[41].mxu1  ;;  %v2897_v59 = vsel %vm2785_vm11, %v2729_v44, %v2841_v23  ;;  %vm2786_vm13 = vcmp.ge.f32.partialorder %v2730_v36, 0.0  ;;  %v2842_v32 = vmul.f32 0.01, %v2730_v36 }
 0x1b3   : > { %v3831_v3 = vpop.f32.mrb[42].mxu1  ;;  %v3570_v54 = vpack.c.bf16 %v2897_v59, %v2897_v59  ;;  %v2895_v4 = vsel %vm2783_vm12, %v2727_v37, %v2839_v60  ;;  %vm2784_vm14 = vcmp.ge.f32.partialorder %v2728_v53, 0.0  ;;  %v2840_v33 = vmul.f32 0.01, %v2728_v53  ;;  %v3958_v26 = vpop.f32.mrb[40].mxu0 }
 0x1b4   : > { %v1252_v45 = vpop.f32.mrb[43].mxu1  ;;  %v3568_v1 = vpack.c.bf16 %v2895_v4, %v2895_v4  ;;  %v2898_v21 = vsel %vm2786_vm13, %v2730_v36, %v2842_v32  ;;  %v4012_v43 = vadd.f32 %v3958_v26, %v3830_v8  ;;  %v2565_v13 = vpop.f32.mrb[41].mxu0  ;;  %vm3195_vm13 = vcmask 253952  }
 0x1b5   : > { %3178 = vst.msk [vmem:[%s4886_s29 + $0x98] sm:$0xf] %vm3139_vm6, %v3570_v54  ;;  %v3571_v56 = vpack.c.bf16 %v2898_v21, %v2898_v21  ;;  %v2896_v57 = vsel %vm2784_vm14, %v2728_v53, %v2840_v33  ;;  %v4013_v55 = vadd.f32 %v2565_v13, %v1249_v12  ;;  %v3959_v24 = vpop.f32.mrb[42].mxu0 }
 0x1b6   : > { %3176 = vst.msk [vmem:[%s4886_s29 + $0x90] sm:$0xf] %vm3139_vm6, %v3568_v1  ;;  %v3569_v17 = vpack.c.bf16 %v2896_v57, %v2896_v57  ;;  %v2733_v34 = vadd.f32 %v4012_v43, %v4876_v42  ;;  %v4014_v31 = vadd.f32 %v3959_v24, %v3831_v3  ;;  %v2568_v11 = vpop.f32.mrb[43].mxu0 }
 0x1b7   : > { %3179 = vst.msk [vmem:[%s4886_s29 + $0x9c] sm:$0xf] %vm3139_vm6, %v3571_v56  ;;  %v2731_v47 = vadd.f32 %v4013_v55, %v4876_v42  ;;  %v4015_v2 = vadd.f32 %v2568_v11, %v1252_v45 }
 0x1b8   : > { %3177 = vst.msk [vmem:[%s4886_s29 + $0x94] sm:$0xf] %vm3139_vm6, %v3569_v17  ;;  %vm2789_vm15 = vcmp.ge.f32.partialorder %v2733_v34, 0.0  ;;  %v2845_v10 = vmul.f32 0.01, %v2733_v34  ;;  %v2734_v63 = vadd.f32 %v4014_v31, %v4876_v42 }
 0x1b9   : > { %v3834_v51 = vpop.f32.mrb[44].mxu1  ;;  %vm2787_vm0 = vcmp.ge.f32.partialorder %v2731_v47, 0.0  ;;  %v2843_v27 = vmul.f32 0.01, %v2731_v47  ;;  %v2732_v35 = vadd.f32 %v4015_v2, %v4876_v42 }
 0x1ba   : > { %v1265_v28 = vpop.f32.mrb[45].mxu1  ;;  %v2901_v41 = vsel %vm2789_vm15, %v2733_v34, %v2845_v10  ;;  %vm2790_vm1 = vcmp.ge.f32.partialorder %v2734_v63, 0.0  ;;  %v2846_v29 = vmul.f32 0.01, %v2734_v63  ;;  %vm3196_vm15 = vsmask.f32 256 }
 0x1bb   : > { %v3835_v15 = vpop.f32.mrb[46].mxu1  ;;  %v3574_v48 = vpack.c.bf16 %v2901_v41, %v2901_v41  ;;  %v2899_v38 = vsel %vm2787_vm0, %v2731_v47, %v2843_v27  ;;  %vm2788_vm2 = vcmp.ge.f32.partialorder %v2732_v35, 0.0  ;;  %v2844_v39 = vmul.f32 0.01, %v2732_v35  ;;  %v3962_v58 = vpop.f32.mrb[44].mxu0 }
 0x1bc   : > { %v1268_v6 = vpop.f32.mrb[47].mxu1  ;;  %v3572_v61 = vpack.c.bf16 %v2899_v38, %v2899_v38  ;;  %v2902_v0 = vsel %vm2790_vm1, %v2734_v63, %v2846_v29  ;;  %v4016_v16 = vadd.f32 %v3962_v58, %v3834_v51  ;;  %v2581_v25 = vpop.f32.mrb[45].mxu0 }
 0x1bd   : > { %3182 = vst.msk [vmem:[%s4886_s29 + $0xa8] sm:$0xf] %vm3139_vm6, %v3574_v48  ;;  %v3575_v40 = vpack.c.bf16 %v2902_v0, %v2902_v0  ;;  %v2900_v50 = vsel %vm2788_vm2, %v2732_v35, %v2844_v39  ;;  %v4017_v19 = vadd.f32 %v2581_v25, %v1265_v28  ;;  %v3963_v14 = vpop.f32.mrb[46].mxu0  ;;  %vm3197_vm2 = vmand %vm3195_vm13, %vm3196_vm15 }
 0x1be   : > { %3180 = vst.msk [vmem:[%s4886_s29 + $0xa0] sm:$0xf] %vm3139_vm6, %v3572_v61  ;;  %v3573_v5 = vpack.c.bf16 %v2900_v50, %v2900_v50  ;;  %v2737_v18 = vadd.f32 %v4016_v16, %v4876_v42  ;;  %v4018_v62 = vadd.f32 %v3963_v14, %v3835_v15  ;;  %v2584_v49 = vpop.f32.mrb[47].mxu0 }
 0x1bf   : > { %3183 = vst.msk [vmem:[%s4886_s29 + $0xac] sm:$0xf] %vm3139_vm6, %v3575_v40  ;;  %v2735_v7 = vadd.f32 %v4017_v19, %v4876_v42  ;;  %v4019_v20 = vadd.f32 %v2584_v49, %v1268_v6 }
 0x1c0   : > { %3181 = vst.msk [vmem:[%s4886_s29 + $0xa4] sm:$0xf] %vm3139_vm6, %v3573_v5  ;;  %vm2793_vm3 = vcmp.ge.f32.partialorder %v2737_v18, 0.0  ;;  %v2849_v44 = vmul.f32 0.01, %v2737_v18  ;;  %v2738_v9 = vadd.f32 %v4018_v62, %v4876_v42 }
 0x1c1   : > { %v3838_v52 = vpop.f32.mrb[48].mxu1  ;;  %vm2791_vm4 = vcmp.ge.f32.partialorder %v2735_v7, 0.0  ;;  %v2847_v8 = vmul.f32 0.01, %v2735_v7  ;;  %v2736_v37 = vadd.f32 %v4019_v20, %v4876_v42 }
 0x1c2   : > { %v1281_v22 = vpop.f32.mrb[49].mxu1  ;;  %v2905_v12 = vsel %vm2793_vm3, %v2737_v18, %v2849_v44  ;;  %vm2794_vm5 = vcmp.ge.f32.partialorder %v2738_v9, 0.0  ;;  %v2850_v23 = vmul.f32 0.01, %v2738_v9 }
 0x1c3   : > { %v3839_v30 = vpop.f32.mrb[50].mxu1  ;;  %v3578_v36 = vpack.c.bf16 %v2905_v12, %v2905_v12  ;;  %v2903_v3 = vsel %vm2791_vm4, %v2735_v7, %v2847_v8  ;;  %vm2792_vm7 = vcmp.ge.f32.partialorder %v2736_v37, 0.0  ;;  %v2848_v60 = vmul.f32 0.01, %v2736_v37  ;;  %v3966_v53 = vpop.f32.mrb[48].mxu0 }
 0x1c4   : > { %v1284_v46 = vpop.f32.mrb[51].mxu1  ;;  %v3576_v45 = vpack.c.bf16 %v2903_v3, %v2903_v3  ;;  %v2906_v59 = vsel %vm2794_vm5, %v2738_v9, %v2850_v23  ;;  %v4020_v32 = vadd.f32 %v3966_v53, %v3838_v52  ;;  %v2597_v54 = vpop.f32.mrb[49].mxu0 }
 0x1c5   : > { %3186 = vst.msk [vmem:[%s4886_s29 + $0xb8] sm:$0xf] %vm3139_vm6, %v3578_v36  ;;  %v3579_v4 = vpack.c.bf16 %v2906_v59, %v2906_v59  ;;  %v2904_v33 = vsel %vm2792_vm7, %v2736_v37, %v2848_v60  ;;  %v4021_v26 = vadd.f32 %v2597_v54, %v1281_v22  ;;  %v3967_v1 = vpop.f32.mrb[50].mxu0 }
 0x1c6   : > { %3184 = vst.msk [vmem:[%s4886_s29 + $0xb0] sm:$0xf] %vm3139_vm6, %v3576_v45  ;;  %v3577_v21 = vpack.c.bf16 %v2904_v33, %v2904_v33  ;;  %v2741_v43 = vadd.f32 %v4020_v32, %v4876_v42  ;;  %v4022_v13 = vadd.f32 %v3967_v1, %v3839_v30  ;;  %v2600_v56 = vpop.f32.mrb[51].mxu0  ;;  %v3198_v30 = vld [vmem:[%s4886_s29 + $0xdc] sm:$0x1] }
 0x1c7   : > { %3187 = vst.msk [vmem:[%s4886_s29 + $0xbc] sm:$0xf] %vm3139_vm6, %v3579_v4  ;;  %v2739_v55 = vadd.f32 %v4021_v26, %v4876_v42  ;;  %v4023_v24 = vadd.f32 %v2600_v56, %v1284_v46 }
 0x1c8   : > { %3185 = vst.msk [vmem:[%s4886_s29 + $0xb4] sm:$0xf] %vm3139_vm6, %v3577_v21  ;;  %vm2797_vm8 = vcmp.ge.f32.partialorder %v2741_v43, 0.0  ;;  %v2853_v34 = vmul.f32 0.01, %v2741_v43  ;;  %v2742_v31 = vadd.f32 %v4022_v13, %v4876_v42 }
 0x1c9   : > { %v3842_v57 = vpop.f32.mrb[52].mxu1  ;;  %vm2795_vm9 = vcmp.ge.f32.partialorder %v2739_v55, 0.0  ;;  %v2851_v51 = vmul.f32 0.01, %v2739_v55  ;;  %v2740_v47 = vadd.f32 %v4023_v24, %v4876_v42 }
 0x1ca   : > { %v1297_v17 = vpop.f32.mrb[53].mxu1  ;;  %v2909_v28 = vsel %vm2797_vm8, %v2741_v43, %v2853_v34  ;;  %vm2798_vm10 = vcmp.ge.f32.partialorder %v2742_v31, 0.0  ;;  %v2854_v10 = vmul.f32 0.01, %v2742_v31 }
 0x1cb   : > { %v3843_v11 = vpop.f32.mrb[54].mxu1  ;;  %v3582_v63 = vpack.c.bf16 %v2909_v28, %v2909_v28  ;;  %v2907_v15 = vsel %vm2795_vm9, %v2739_v55, %v2851_v51  ;;  %vm2796_vm11 = vcmp.ge.f32.partialorder %v2740_v47, 0.0  ;;  %v2852_v27 = vmul.f32 0.01, %v2740_v47  ;;  %v3970_v35 = vpop.f32.mrb[52].mxu0 }
 0x1cc   : > { %v1300_v2 = vpop.f32.mrb[55].mxu1  ;;  %v3580_v6 = vpack.c.bf16 %v2907_v15, %v2907_v15  ;;  %v2910_v41 = vsel %vm2798_vm10, %v2742_v31, %v2854_v10  ;;  %v4024_v29 = vadd.f32 %v3970_v35, %v3842_v57  ;;  %v2613_v48 = vpop.f32.mrb[53].mxu0 }
 0x1cd   : > { %3190 = vst.msk [vmem:[%s4886_s29 + $0xc8] sm:$0xf] %vm3139_vm6, %v3582_v63  ;;  %v3583_v38 = vpack.c.bf16 %v2910_v41, %v2910_v41  ;;  %v2908_v39 = vsel %vm2796_vm11, %v2740_v47, %v2852_v27  ;;  %v4025_v58 = vadd.f32 %v2613_v48, %v1297_v17  ;;  %v3971_v61 = vpop.f32.mrb[54].mxu0 }
 0x1ce   : > { %3188 = vst.msk [vmem:[%s4886_s29 + $0xc0] sm:$0xf] %vm3139_vm6, %v3580_v6  ;;  %v3581_v0 = vpack.c.bf16 %v2908_v39, %v2908_v39  ;;  %v2745_v16 = vadd.f32 %v4024_v29, %v4876_v42  ;;  %v4026_v25 = vadd.f32 %v3971_v61, %v3843_v11  ;;  %v2616_v40 = vpop.f32.mrb[55].mxu0 }
 0x1cf   : > { %3191 = vst.msk [vmem:[%s4886_s29 + $0xcc] sm:$0xf] %vm3139_vm6, %v3583_v38  ;;  %v2743_v50 = vadd.f32 %v4025_v58, %v4876_v42  ;;  %v4027_v19 = vadd.f32 %v2616_v40, %v1300_v2 }
 0x1d0   : > { %3189 = vst.msk [vmem:[%s4886_s29 + $0xc4] sm:$0xf] %vm3139_vm6, %v3581_v0  ;;  %vm2801_vm12 = vcmp.ge.f32.partialorder %v2745_v16, 0.0  ;;  %v2857_v14 = vmul.f32 0.01, %v2745_v16  ;;  %v2746_v5 = vadd.f32 %v4026_v25, %v4876_v42 }
 0x1d1   : > { %vm2799_vm14 = vcmp.ge.f32.partialorder %v2743_v50, 0.0  ;;  %v2855_v18 = vmul.f32 0.01, %v2743_v50  ;;  %v2744_v62 = vadd.f32 %v4027_v19, %v4876_v42 }
 0x1d2   : > { %v2913_v49 = vsel %vm2801_vm12, %v2745_v16, %v2857_v14  ;;  %vm2802_vm0 = vcmp.ge.f32.partialorder %v2746_v5, 0.0  ;;  %v2858_v52 = vmul.f32 0.01, %v2746_v5 }
 0x1d3   : > { %v3586_v7 = vpack.c.bf16 %v2913_v49, %v2913_v49  ;;  %v2911_v20 = vsel %vm2799_vm14, %v2743_v50, %v2855_v18  ;;  %vm2800_vm1 = vcmp.ge.f32.partialorder %v2744_v62, 0.0  ;;  %v2856_v22 = vmul.f32 0.01, %v2744_v62 }
 0x1d4   : > { %v3584_v44 = vpack.c.bf16 %v2911_v20, %v2911_v20  ;;  %v2914_v9 = vsel %vm2802_vm0, %v2746_v5, %v2858_v52 }
 0x1d5   : > { %3194 = vst.msk [vmem:[%s4886_s29 + $0xd8] sm:$0xf] %vm3139_vm6, %v3586_v7  ;;  %v3587_v8 = vpack.c.bf16 %v2914_v9, %v2914_v9  ;;  %v2912_v37 = vsel %vm2800_vm1, %v2744_v62, %v2856_v22 }
 0x1d6   : > { %3192 = vst.msk [vmem:[%s4886_s29 + $0xd0] sm:$0xf] %vm3139_vm6, %v3584_v44  ;;  %v3585_v42 = vpack.c.bf16 %v2912_v37, %v2912_v37 }
 0x1d7   : > { %v3199_v46 = vsel %vm3197_vm2, %v3587_v8, %v3198_v30 }
 0x1d8   : > { %3200 = vst [vmem:[%s4886_s29 + $0xdc] sm:$0x1] %v3199_v46  ;;  %3193 = vst.msk [vmem:[%s4886_s29 + $0xd4] sm:$0xf] %vm3139_vm6, %v3585_v42 }
 0x1d9 PF: > { %s13_s12 = sadd.s32 1, %s4245_s12  }
 0x1da   : > { %p10_p4 = scmp.ge.s32.totalorder %s13_s12, 4  }
 0x1dc   :  { %12 = sbr.rel (!%p10_p4) target bundleno = 1 (0x1), region = 65 }

// kernel: rnd_forward.4
= control target key start
LH: loop header
LB: loop body
LE: loop exit
PB: predicated region body
PF: predicated region fallthrough
CT: control target
= control target key end

     0   :  { %s3922_s18 = smov 0   ;;  %s4731_s0 = inlined_call_operand.vmem [shape: bf16[2,112,128], index: 0, kind: input, shape index: {}]   ;;  %s4732_s1 = inlined_call_operand.vmem [shape: bf16[4,128,64], index: 1, kind: input, shape index: {}]   ;;  %s4733_s2 = inlined_call_operand.vmem [shape: f32[1,64], index: 2, kind: input, shape index: {}]   ;;  %s4734_s3 = inlined_call_operand.vmem [shape: bf16[9,64,64], index: 3, kind: input, shape index: {}]   ;;  %s4735_s4 = inlined_call_operand.vmem [shape: f32[1,64], index: 4, kind: input, shape index: {}]   ;;  %s4736_s5 = inlined_call_operand.vmem [shape: bf16[2,70,64], index: 5, kind: output, shape index: {}]  }
   0x1 LB: > { %s2864_s19 = sadd.s32 4294967295, %s3888_s18   ;;  %p2868_p0 = scmp.ge.s32.totalorder %s3888_s18, 1  ;;  %s3888_s18 = sphi %s3922_s18, %s15_s18  }
   0x2   : > { %p187_p1 = scmp.lt.s32.totalorder %s3888_s18, 3 }
   0x4   : > { %p188_p2 = pnand %p2868_p0, %p187_p1 }
   0x5   : > { %v3774_v0 = vld [vmem:[%s4732_s1 + $0x40] sm:$0xff] (!%p188_p2)   ;;  %v3890_v1 = vmov (!%p188_p2), 0.0   ;;  %v3776_v3 = vld [vmem:[%s4732_s1 + $0x48] sm:$0xff] (!%p188_p2)   ;;  %vm3891_vm0 = vmmov (!%p188_p2), 0   ;;  %p215_p3 = scmp.lt.s32.totalorder (!%p188_p2), %s2864_s19, 1  ;;  %v3778_v5 = vld [vmem:[%s4732_s1 + $0x50] sm:$0xff] (!%p188_p2)  }
   0x6   : > { %191 = sbr.rel (%p188_p2) target bundleno = 756 (0x2f4), region = 40  ;;  %3326 = vmatprep.subr.bf16.mxu0 (!%p188_p2), %v3890_v1  ;;  %3370 = vmatprep.subr.bf16.mxu1 (!%p188_p2), %v3890_v1  ;;  %v3775_v2 = vld [vmem:[%s4732_s1] sm:$0xff] (!%p188_p2)   ;;  %v3777_v4 = vld [vmem:[%s4732_s1 + $0x8] sm:$0xff] (!%p188_p2)   ;;  %v3779_v6 = vld [vmem:[%s4732_s1 + $0x10] sm:$0xff] (!%p188_p2)   ;;  %vm306_vm1 = vsmask.f32 (!%p188_p2), 7424 }
   0x7   : > { %3327 = vmatpush3.bf16.msra.mxu0 (!%p188_p2), %v3774_v0  ;;  %3342 = vmatprep.mubr.msk.bf16.mxu0 (!%p188_p2), %vm3891_vm0, %v3890_v1  ;;  %v3780_v7 = vld [vmem:[%s4732_s1 + $0x58] sm:$0xff] (!%p188_p2)   ;;  %v3782_v9 = vld [vmem:[%s4732_s1 + $0x60] sm:$0xff] (!%p188_p2)   ;;  %v3784_v11 = vld [vmem:[%s4732_s1 + $0x68] sm:$0xff] (!%p188_p2)   ;;  %vm714_vm2 = vcmask (!%p188_p2), 1046528   ;;  %vm905_vm3 = vsmask.f32 (!%p188_p2), 6400 }
   0x8   : > { %3371 = vmatpush3.bf16.msra.mxu1 (!%p188_p2), %v3775_v2  ;;  %3328 = vmatprep.subr.bf16.mxu0 (!%p188_p2), %v3890_v1  ;;  %v3781_v8 = vld [vmem:[%s4732_s1 + $0x18] sm:$0xff] (!%p188_p2)   ;;  %v3783_v10 = vld [vmem:[%s4732_s1 + $0x20] sm:$0xff] (!%p188_p2)   ;;  %v3785_v14 = vld [vmem:[%s4732_s1 + $0x28] sm:$0xff] (!%p188_p2)   ;;  %vm1236_vm5 = vcmask (!%p188_p2), 519168   ;;  %vm1364_vm13 = vcmask (!%p188_p2), 523264  }
   0x9   : > { %3372 = vmatprep.subr.bf16.mxu1 (!%p188_p2), %v3890_v1  ;;  %3386 = vmatprep.mubr.msk.bf16.mxu1 (!%p188_p2), %vm3891_vm0, %v3890_v1  ;;  %v3786_v16 = vld [vmem:[%s4732_s1 + $0x70] sm:$0xff] (!%p188_p2)   ;;  %v3788_v21 = vld [vmem:[%s4732_s1 + $0x78] sm:$0xff] (!%p188_p2)   ;;  %v3792_v26 = vld [vmem:[%s4732_s1 + $0x80] sm:$0xff] (!%p188_p2)  }
   0xa   : > { %v3787_v20 = vld [vmem:[%s4732_s1 + $0x30] sm:$0xff] (!%p188_p2)   ;;  %v3789_v22 = vld [vmem:[%s4732_s1 + $0x38] sm:$0xff] (!%p188_p2)   ;;  %v3793_v30 = vld [vmem:[%s4732_s1 + $0xc0] sm:$0xff] (!%p188_p2)  }
   0xb   : > { %3329 = vmatpush3.bf16.msra.mxu0 (!%p188_p2), %v3776_v3  ;;  %v3795_v31 = vld [vmem:[%s4732_s1 + $0x88] sm:$0xff] (!%p188_p2)   ;;  %v3797_v37 = vld [vmem:[%s4732_s1 + $0x90] sm:$0xff] (!%p188_p2)   ;;  %v3800_v44 = vld [vmem:[%s4732_s1 + $0x98] sm:$0xff] (!%p188_p2)  }
   0xc   : > { %3373 = vmatpush3.bf16.msra.mxu1 (!%p188_p2), %v3777_v4  ;;  %3330 = vmatprep.subr.bf16.mxu0 (!%p188_p2), %v3890_v1  ;;  %v3796_v35 = vld [vmem:[%s4732_s1 + $0xc8] sm:$0xff] (!%p188_p2)   ;;  %v3799_v40 = vld [vmem:[%s4732_s1 + $0xd0] sm:$0xff] (!%p188_p2)   ;;  %v3802_v45 = vld [vmem:[%s4732_s1 + $0xd8] sm:$0xff] (!%p188_p2)  }
   0xd   : > { %s4738_s19 = smov (!%p215_p3, %s2864_s19), 1  ;;  %3374 = vmatprep.subr.bf16.mxu1 %v3890_v1  ;;  %v3803_v51 = vld [vmem:[%s4732_s1 + $0xa0] sm:$0xff]   ;;  %v3806_v58 = vld [vmem:[%s4732_s1 + $0xa8] sm:$0xff]   ;;  %v3809_v2 = vld [vmem:[%s4732_s1 + $0xb0] sm:$0xff]  }
   0xe   : > { %s3762_s9 = smul.u32 56, %s4738_s19  ;;  %v3804_v52 = vld [vmem:[%s4732_s1 + $0xe0] sm:$0xff]   ;;  %v3807_v61 = vld [vmem:[%s4732_s1 + $0xe8] sm:$0xff]  }
   0xf   : > { %3331 = vmatpush3.bf16.msra.mxu0 %v3778_v5  ;;  %v3810_v5 = vld [vmem:[%s4732_s1 + $0xf0] sm:$0xff]   ;;  %s3763_s27 = smul.u32 36, %s4738_s19 }
  0x10   : > { %3375 = vmatpush3.bf16.msra.mxu1 %v3779_v6  ;;  %3332 = vmatprep.subr.bf16.mxu0 %v3890_v1  ;;  %s3975_s16 = scalar_lea.vmem %s4731_s0, %s3762_s9 }
  0x11   : > { %3376 = vmatprep.subr.bf16.mxu1 %v3890_v1  ;;  %v3790_v12 = vld [vmem:[%s3975_s16] sm:$0xff]   ;;  %v3791_v13 = vld [vmem:[%s3975_s16 + $0x8] sm:$0xff]   ;;  %v3794_v25 = vld [vmem:[%s3975_s16 + $0x10] sm:$0xff]   ;;  %s4693_s30 = scalar_lea.vmem %s4736_s5, %s3763_s27 }
  0x12   : > { %v310_v15 = vshll.u32 %v3790_v12, 16  ;;  %v308_v17 = vshrl.u32 %v3790_v12, 16  ;;  %v315_v19 = vshll.u32 %v3791_v13, 16  ;;  %v319_v28 = vshrl.u32 %v3791_v13, 16  ;;  %v4022_v34 = vld [vmem:[%s3975_s16 + $0x18] sm:$0xff]   ;;  %v4046_v43 = vld [vmem:[%s3975_s16 + $0x20] sm:$0xff]  }
  0x13   : > { %3333 = vmatpush3.bf16.msra.mxu0 %v3780_v7  ;;  %v323_v29 = vshll.u32 %v3794_v25, 16  ;;  %v327_v38 = vshrl.u32 %v3794_v25, 16  ;;  %v331_v39 = vshll.u32 %v4022_v34, 16  ;;  %v4059_v46 = vld [vmem:[%s3975_s16 + $0x28] sm:$0xff]   ;;  %v335_v49 = vshrl.u32 %v4022_v34, 16 }
  0x14   : > { %3377 = vmatpush3.bf16.msra.mxu1 %v3781_v8  ;;  %3334 = vmatprep.subr.bf16.mxu0 %v3890_v1  ;;  %v312_v18 = vrot.slane %v310_v15, 1  ;;  %v317_v24 = vrot.slane %v315_v19, 1  ;;  %v4062_v47 = vld [vmem:[%s3975_s16 + $0x30] ss:$0 sps:$4 sm:$0x77]   ;;  %v339_v50 = vshll.u32 %v4046_v43, 16 }
  0x15   : > { %3378 = vmatprep.subr.bf16.mxu1 %v3890_v1  ;;  %v325_v33 = vrot.slane %v323_v29, 1  ;;  %v333_v42 = vrot.slane %v331_v39, 1  ;;  %v347_v53 = vshll.u32 %v4059_v46, 16  ;;  %v355_v54 = vshll.u32 %v4062_v47, 16  ;;  %v4080_v57 = vld [vmem:[%s3975_s16 + $0xc] sm:$0xff]  }
  0x16   : > { %v313_v23 = vor.u32 %v312_v18, %v308_v17  ;;  %v321_v32 = vor.u32 %v319_v28, %v317_v24  ;;  %v341_v56 = vrot.slane %v339_v50, 1  ;;  %v4088_v59 = vld [vmem:[%s3975_s16 + $0x4] sm:$0xfe]   ;;  %v343_v60 = vshrl.u32 %v4046_v43, 16 }
  0x17   : > { %3335 = vmatpush3.bf16.msra.mxu0 %v3782_v9  ;;  %v329_v41 = vor.u32 %v327_v38, %v325_v33  ;;  %v337_v55 = vor.u32 %v335_v49, %v333_v42  ;;  %v351_v62 = vshrl.u32 %v4059_v46, 16  ;;  %v349_v63 = vrot.slane %v347_v53, 1  ;;  %v3811_v17 = vld [vmem:[%s3975_s16 + $0x30] ss:$0 sps:$4 sm:$0x33]  }
  0x18   : > { %3379 = vmatpush3.bf16.msra.mxu1 %v3783_v10  ;;  %3336 = vmatprep.subr.bf16.mxu0 %v3890_v1  ;;  %v318_v27 = vsel %vm306_vm1, %v313_v23, %v317_v24  ;;  %v326_v36 = vsel %vm306_vm1, %v321_v32, %v325_v33  ;;  %v357_v0 = vrot.slane %v355_v54, 1  ;;  %v359_v3 = vshrl.u32 %v4062_v47, 16  ;;  %v3812_v10 = vld [vmem:[%s4732_s1 + $0xb8] sm:$0xff]  }
  0x19   : > { %3380 = vmatprep.subr.bf16.mxu1 %v3890_v1  ;;  %v334_v48 = vsel %vm306_vm1, %v329_v41, %v333_v42  ;;  %v342_v4 = vsel %vm306_vm1, %v337_v55, %v341_v56  ;;  %v915_v6 = vshrl.u32 %v4080_v57, 16  ;;  %v918_v7 = vshll.u32 %v4080_v57, 16  ;;  %v3817_v33 = vld [vmem:[%s3975_s16 + $0x1c] sm:$0xff]   ;;  %v3818_v42 = vld [vmem:[%s3975_s16 + $0x24] sm:$0xff]  }
  0x1a   : > { %v907_v8 = vshrl.u32 %v4088_v59, 16  ;;  %v910_v9 = vshll.u32 %v4088_v59, 16  ;;  %v715_v23 = vrot.slane %v4088_v59, 1  ;;  %v716_v24 = vrot.slane %v4080_v57, 1 }
  0x1b   : > { %3337 = vmatpush3.bf16.msra.mxu0 %v3784_v11  ;;  %v345_v11 = vor.u32 %v343_v60, %v341_v56  ;;  %v3821_v60 = vld [vmem:[%s3975_s16 + $0x34] ss:$0 sps:$4 sm:$0xff]  }
  0x1c   : > { %3381 = vmatpush3.bf16.msra.mxu1 %v3785_v14  ;;  %3338 = vmatprep.subr.bf16.mxu0 %v3890_v1  ;;  %v353_v14 = vor.u32 %v351_v62, %v349_v63  ;;  %v909_v18 = vrot.slane %v907_v8, 1  ;;  %v912_v19 = vrot.slane %v910_v9, 2  ;;  %v717_v29 = vsel %vm714_vm2, %v715_v23, %v716_v24 }
  0x1d   : > { %3382 = vmatprep.subr.bf16.mxu1 %v3890_v1 }
  0x1e   : > { %v358_v15 = vsel %vm306_vm1, %v353_v14, %v357_v0  ;;  %v3825_v14 = vld [vmem:[%s4734_s3 + $0x38] sm:$0xff]  }
  0x1f   : > { %3339 = vmatpush3.bf16.msra.mxu0 %v3786_v16  ;;  %v361_v16 = vor.u32 %v359_v3, %v357_v0  ;;  %v963_v0 = vshll.u32 %v3821_v60, 16  ;;  %v3820_v3 = vld [vmem:[%s3975_s16 + $0x34] ss:$0 sps:$4 sm:$0x77]  }
  0x20   : > { %3383 = vmatpush3.bf16.msra.mxu1 %v3787_v20  ;;  %3340 = vmatprep.subr.bf16.mxu0 %v3890_v1  ;;  %v917_v20 = vrot.slane %v915_v6, 1 }
  0x21   : > { %3384 = vmatprep.subr.bf16.mxu1 %v3890_v1  ;;  %v965_v6 = vrot.slane %v963_v0, 2 }
  0x23   : > { %3341 = vmatpush3.bf16.msra.mxu0 %v3788_v21  ;;  %v920_v21 = vrot.slane %v918_v7, 2  ;;  %v726_v7 = vrot.slane %v3820_v3, 1 }
  0x24   : > { %3385 = vmatpush3.bf16.msra.mxu1 %v3789_v22  ;;  %3414 = vmatprep.subr.bf16.mxu0 %v3890_v1  ;;  %v3816_v22 = vld [vmem:[%s3975_s16 + $0x14] sm:$0xff]  }
  0x25   : > { %3458 = vmatprep.subr.bf16.mxu1 %v3890_v1  ;;  %v927_v28 = vshll.u32 %v3816_v22, 16 }
  0x26   : > { %3343 = vmatmul.mubr.bf16.vlgmr.msra.gmra.mrb[0].mxu0 %v318_v27  ;;  %v924_v27 = vshrl.u32 %v3816_v22, 16 }
  0x27   : > { %3387 = vmatmul.mubr.bf16.vlgmr.msra.gmra.mrb[0].mxu1 %v3790_v12  ;;  %3415 = vmatpush3.bf16.msra.mxu0 %v3792_v26  ;;  %v3813_v12 = vld [vmem:[%s4732_s1 + $0xf8] sm:$0xff]   ;;  %v921_v26 = vor.u32 %v920_v21, %v917_v20  ;;  %v929_v32 = vrot.slane %v927_v28, 2 }
  0x28   : > { %3459 = vmatpush3.bf16.msra.mxu1 %v3793_v30  ;;  %3346 = vmatprep.mubr.msk.bf16.mxu0 %vm3891_vm0, %v3890_v1 }
  0x29   : > { %3390 = vmatprep.mubr.msk.bf16.mxu1 %vm3891_vm0, %v3890_v1  ;;  %3416 = vmatprep.subr.bf16.mxu0 %v3890_v1 }
  0x2a   : > { %3460 = vmatprep.subr.bf16.mxu1 %v3890_v1 }
  0x2b   : > { %3417 = vmatpush3.bf16.msra.mxu0 %v3795_v31  ;;  %v926_v31 = vrot.slane %v924_v27, 1 }
  0x2c   : > { %3461 = vmatpush3.bf16.msra.mxu1 %v3796_v35  ;;  %3418 = vmatprep.subr.bf16.mxu0 %v3890_v1 }
  0x2d   : > { %3462 = vmatprep.subr.bf16.mxu1 %v3890_v1  ;;  %v930_v35 = vor.u32 %v929_v32, %v926_v31 }
  0x2e   : > { %3347 = vmatmul.mubr.bf16.gmra.mrb[4].mxu0 %v326_v36  ;;  %v933_v36 = vshrl.u32 %v3817_v33, 16 }
  0x2f   : > { %3391 = vmatmul.mubr.bf16.gmra.mrb[4].mxu1 %v3791_v13  ;;  %3350 = vmatprep.mubr.msk.bf16.mxu0 %vm3891_vm0, %v3890_v1  ;;  %v350_v13 = vsel %vm306_vm1, %v345_v11, %v349_v63  ;;  %v931_v39 = vsel %vm905_vm3, %v921_v26, %v930_v35  ;;  %v960_v63 = vshrl.u32 %v3821_v60, 16  ;;  %v3822_v11 = vld [vmem:[%s4734_s3 + $0x20] sm:$0xff]  }
  0x30   : > { %3394 = vmatprep.mubr.msk.bf16.mxu1 %vm3891_vm0, %v3890_v1  ;;  %3419 = vmatpush3.bf16.msra.mxu0 %v3797_v37  ;;  %v936_v37 = vshll.u32 %v3817_v33, 16 }
  0x31   : > { %3463 = vmatpush3.bf16.msra.mxu1 %v3799_v40  ;;  %3420 = vmatprep.subr.bf16.mxu0 %v3890_v1  ;;  %v935_v40 = vrot.slane %v933_v36, 1 }
  0x32   : > { %3464 = vmatprep.subr.bf16.mxu1 %v3890_v1  ;;  %v938_v41 = vrot.slane %v936_v37, 2 }
  0x34   : > { %3421 = vmatpush3.bf16.msra.mxu0 %v3800_v44  ;;  %v939_v44 = vor.u32 %v938_v41, %v935_v40 }
  0x35   : > { %3465 = vmatpush3.bf16.msra.mxu1 %v3802_v45  ;;  %3422 = vmatprep.subr.bf16.mxu0 %v3890_v1  ;;  %v942_v45 = vshrl.u32 %v3818_v42, 16 }
  0x36   : > { %3351 = vmatmul.mubr.bf16.gmra.mrb[8].mxu0 %v334_v48  ;;  %3466 = vmatprep.subr.bf16.mxu1 %v3890_v1  ;;  %v940_v48 = vsel %vm905_vm3, %v930_v35, %v939_v44 }
  0x37   : > { %3395 = vmatmul.mubr.bf16.gmra.mrb[8].mxu1 %v3794_v25  ;;  %3354 = vmatprep.mubr.msk.bf16.mxu0 %vm3891_vm0, %v3890_v1  ;;  %v913_v25 = vor.u32 %v912_v19, %v909_v18  ;;  %v944_v49 = vrot.slane %v942_v45, 1 }
  0x38   : > { %3398 = vmatprep.mubr.msk.bf16.mxu1 %vm3891_vm0, %v3890_v1  ;;  %3423 = vmatpush3.bf16.msra.mxu0 %v3803_v51  ;;  %v3819_v51 = vld [vmem:[%s3975_s16 + $0x2c] sm:$0xff]  }
  0x39   : > { %3467 = vmatpush3.bf16.msra.mxu1 %v3804_v52  ;;  %3424 = vmatprep.subr.bf16.mxu0 %v3890_v1  ;;  %v922_v30 = vsel %vm905_vm3, %v913_v25, %v921_v26  ;;  %v722_v52 = vrot.slane %v3818_v42, 1  ;;  %v951_v54 = vshrl.u32 %v3819_v51, 16  ;;  %v954_v55 = vshll.u32 %v3819_v51, 16 }
  0x3a   : > { %3468 = vmatprep.subr.bf16.mxu1 %v3890_v1 }
  0x3b   : > { %v956_v59 = vrot.slane %v954_v55, 2 }
  0x3c   : > { %3425 = vmatpush3.bf16.msra.mxu0 %v3806_v58  ;;  %v953_v58 = vrot.slane %v951_v54, 1 }
  0x3d   : > { %3469 = vmatpush3.bf16.msra.mxu1 %v3807_v61  ;;  %3426 = vmatprep.subr.bf16.mxu0 %v3890_v1  ;;  %v724_v61 = vrot.slane %v3819_v51, 1 }
  0x3e   : > { %3355 = vmatmul.mubr.bf16.gmra.mrb[12].mxu0 %v342_v4  ;;  %3470 = vmatprep.subr.bf16.mxu1 %v3890_v1  ;;  %v957_v62 = vor.u32 %v956_v59, %v953_v58 }
  0x3f   : > { %3399 = vmatmul.mubr.bf16.gmra.mrb[12].mxu1 %v4022_v34  ;;  %3358 = vmatprep.mubr.msk.bf16.mxu0 %vm3891_vm0, %v3890_v1  ;;  %v718_v34 = vrot.slane %v3816_v22, 1  ;;  %v727_v9 = vsel %vm714_vm2, %v724_v61, %v726_v7 }
  0x40   : > { %3402 = vmatprep.mubr.msk.bf16.mxu1 %vm3891_vm0, %v3890_v1  ;;  %3427 = vmatpush3.bf16.msra.mxu0 %v3809_v2  ;;  %v725_v2 = vsel %vm714_vm2, %v722_v52, %v724_v61 }
  0x41   : > { %3471 = vmatpush3.bf16.msra.mxu1 %v3810_v5  ;;  %3428 = vmatprep.subr.bf16.mxu0 %v3890_v1  ;;  %v719_v38 = vsel %vm714_vm2, %v716_v24, %v718_v34  ;;  %v962_v5 = vrot.slane %v960_v63, 1 }
  0x42   : > { %3472 = vmatprep.subr.bf16.mxu1 %v3890_v1 }
  0x43   : > { %v966_v8 = vor.u32 %v965_v6, %v962_v5 }
  0x44   : > { %3429 = vmatpush3.bf16.msra.mxu0 %v3812_v10 }
  0x45   : > { %3473 = vmatpush3.bf16.msra.mxu1 %v3813_v12  ;;  %3502 = vmatprep.subr.bf16.mxu0 %v3890_v1  ;;  %v967_v10 = vsel %vm905_vm3, %v957_v62, %v966_v8  ;;  %v3823_v12 = vld [vmem:[%s4734_s3 + $0x28] sm:$0xff]  }
  0x46   : > { %3359 = vmatmul.mubr.bf16.gmra.mrb[16].mxu0 %v350_v13  ;;  %3754 = vmatprep.subr.bf16.mxu1 %v3890_v1  ;;  %v3824_v13 = vld [vmem:[%s4734_s3 + $0x30] sm:$0xff]  }
  0x47   : > { %3403 = vmatmul.mubr.bf16.gmra.mrb[16].mxu1 %v4046_v43  ;;  %3362 = vmatprep.mubr.msk.bf16.mxu0 %vm3891_vm0, %v3890_v1  ;;  %v720_v43 = vrot.slane %v3817_v33, 1 }
  0x48   : > { %3406 = vmatprep.mubr.msk.bf16.mxu1 %vm3891_vm0, %v3890_v1 }
  0x49   : > { %v721_v47 = vsel %vm714_vm2, %v718_v34, %v720_v43  ;;  %v723_v56 = vsel %vm714_vm2, %v720_v43, %v722_v52 }
  0x4e   : > { %3363 = vmatmul.mubr.bf16.gmra.mrb[20].mxu0 %v358_v15 }
  0x4f   : > { %3407 = vmatmul.mubr.bf16.gmra.mrb[20].mxu1 %v4059_v46  ;;  %3366 = vmatprep.mubr.msk.bf16.mxu0 %vm3891_vm0, %v3890_v1  ;;  %v945_v46 = vshll.u32 %v3818_v42, 16 }
  0x50   : > { %3410 = vmatprep.mubr.msk.bf16.mxu1 %vm3891_vm0, %v3890_v1 }
  0x51   : > { %v947_v50 = vrot.slane %v945_v46, 2 }
  0x53   : > { %v948_v53 = vor.u32 %v947_v50, %v944_v49 }
  0x55   : > { %v949_v57 = vsel %vm905_vm3, %v939_v44, %v948_v53  ;;  %v958_v4 = vsel %vm905_vm3, %v948_v53, %v957_v62 }
  0x56   : > { %3367 = vmatmul.mubr.bf16.gmra.mrb[24].mxu0 %v361_v16 }
  0x57   : > { %3411 = vmatmul.mubr.bf16.gmra.mrb[24].mxu1 %v3811_v17  ;;  %3430 = vmatprep.mubr.msk.bf16.mxu0 %vm3891_vm0, %v3890_v1 }
  0x58   : > { %3474 = vmatprep.mubr.msk.bf16.mxu1 %vm3891_vm0, %v3890_v1 }
  0x5e   : > { %3431 = vmatmul.mubr.bf16.vlgmr.msra.gmra.mrb[28].mxu0 %v717_v29 }
  0x5f   : > { %3475 = vmatmul.mubr.bf16.vlgmr.msra.gmra.mrb[28].mxu1 %v922_v30  ;;  %3434 = vmatprep.mubr.msk.bf16.mxu0 %vm3891_vm0, %v3890_v1 }
  0x60   : > { %3478 = vmatprep.mubr.msk.bf16.mxu1 %vm3891_vm0, %v3890_v1  ;;  %3758 = vmatpush3.bf16.msra.mxu1 %v3822_v11 }
  0x61   : > { %3503 = vmatpush3.bf16.msra.mxu0 %v3822_v11  ;;  %3755 = vmatprep.subr.bf16.mxu1 %v3890_v1 }
  0x62   : > { %3504 = vmatprep.subr.bf16.mxu0 %v3890_v1 }
  0x64   : > { %3759 = vmatpush3.bf16.msra.mxu1 %v3823_v12 }
  0x65   : > { %3505 = vmatpush3.bf16.msra.mxu0 %v3823_v12  ;;  %3756 = vmatprep.subr.bf16.mxu1 %v3890_v1 }
  0x66   : > { %3435 = vmatmul.mubr.bf16.gmra.mrb[32].mxu0 %v719_v38  ;;  %3506 = vmatprep.subr.bf16.mxu0 %v3890_v1 }
  0x67   : > { %3479 = vmatmul.mubr.bf16.gmra.mrb[32].mxu1 %v931_v39  ;;  %3438 = vmatprep.mubr.msk.bf16.mxu0 %vm3891_vm0, %v3890_v1 }
  0x68   : > { %3482 = vmatprep.mubr.msk.bf16.mxu1 %vm3891_vm0, %v3890_v1  ;;  %3760 = vmatpush3.bf16.msra.mxu1 %v3824_v13 }
  0x69   : > { %3507 = vmatpush3.bf16.msra.mxu0 %v3824_v13  ;;  %3757 = vmatprep.subr.bf16.mxu1 %v3890_v1 }
  0x6a   : > { %3508 = vmatprep.subr.bf16.mxu0 %v3890_v1 }
  0x6c   : > { %3761 = vmatpush3.bf16.msra.mxu1 %v3825_v14 }
  0x6d   : > { %3509 = vmatpush3.bf16.msra.mxu0 %v3825_v14  ;;  %3530 = vmatprep.subr.bf16.mxu1 %v3890_v1 }
  0x6e   : > { %3439 = vmatmul.mubr.bf16.gmra.mrb[36].mxu0 %v721_v47  ;;  %3558 = vmatprep.subr.bf16.mxu0 %v3890_v1 }
  0x6f   : > { %3483 = vmatmul.mubr.bf16.gmra.mrb[36].mxu1 %v940_v48  ;;  %3442 = vmatprep.mubr.msk.bf16.mxu0 %vm3891_vm0, %v3890_v1 }
  0x70   : > { %3486 = vmatprep.mubr.msk.bf16.mxu1 %vm3891_vm0, %v3890_v1 }
  0x76   : > { %3443 = vmatmul.mubr.bf16.gmra.mrb[40].mxu0 %v723_v56 }
  0x77   : > { %3487 = vmatmul.mubr.bf16.gmra.mrb[40].mxu1 %v949_v57  ;;  %3446 = vmatprep.mubr.msk.bf16.mxu0 %vm3891_vm0, %v3890_v1 }
  0x78   : > { %3490 = vmatprep.mubr.msk.bf16.mxu1 %vm3891_vm0, %v3890_v1 }
  0x7e   : > { %3447 = vmatmul.mubr.bf16.gmra.mrb[44].mxu0 %v725_v2 }
  0x7f   : > { %3491 = vmatmul.mubr.bf16.gmra.mrb[44].mxu1 %v958_v4  ;;  %3450 = vmatprep.mubr.msk.bf16.mxu0 %vm3891_vm0, %v3890_v1 }
  0x80   : > { %3494 = vmatprep.mubr.msk.bf16.mxu1 %vm3891_vm0, %v3890_v1 }
  0x86   : > { %3451 = vmatmul.mubr.bf16.gmra.mrb[48].mxu0 %v727_v9 }
  0x87   : > { %3495 = vmatmul.mubr.bf16.gmra.mrb[48].mxu1 %v967_v10  ;;  %3454 = vmatprep.mubr.msk.bf16.mxu0 %vm3891_vm0, %v3890_v1 }
  0x88   : > { %3498 = vmatprep.mubr.msk.bf16.mxu1 %vm3891_vm0, %v3890_v1 }
  0x8e   : > { %3455 = vmatmul.mubr.bf16.gmra.mrb[52].mxu0 %v726_v7 }
  0x8f   : > { %3499 = vmatmul.mubr.bf16.gmra.mrb[52].mxu1 %v966_v8  ;;  %3510 = vmatprep.mubr.msk.bf16.mxu0 %vm3891_vm0, %v3890_v1 }
  0x90   : > { %3518 = vmatprep.mubr.msk.bf16.mxu1 %vm3891_vm0, %v3890_v1 }
  0xf9   : > { %v451_v15 = vpop.f32.mrb[0].mxu0 }
  0xfa   : > { %v597_v16 = vpop.f32.mrb[0].mxu1  ;;  %v3344_v17 = vpop.f32.mrb[1].mxu0 }
  0xfb   : > { %v4211_v18 = vadd.f32 %v597_v16, %v451_v15  ;;  %v3388_v19 = vpop.f32.mrb[1].mxu1  ;;  %v454_v20 = vpop.f32.mrb[2].mxu0 }
  0xfc   : > { %v600_v21 = vpop.f32.mrb[2].mxu1  ;;  %v3345_v22 = vpop.f32.mrb[3].mxu0 }
  0xfd   : > { %v4213_v23 = vadd.f32 %v600_v21, %v454_v20  ;;  %v3389_v24 = vpop.f32.mrb[3].mxu1 }
 0x101   : > { %v459_v25 = vpop.f32.mrb[4].mxu0 }
 0x102   : > { %v605_v26 = vpop.f32.mrb[4].mxu1  ;;  %v3348_v27 = vpop.f32.mrb[5].mxu0 }
 0x103   : > { %v4215_v28 = vadd.f32 %v605_v26, %v459_v25  ;;  %v3392_v29 = vpop.f32.mrb[5].mxu1  ;;  %v462_v30 = vpop.f32.mrb[6].mxu0  ;;  %v4239_v26 = vld [vmem:[%s4733_s2] ss:$0 sm:$0xff] }
 0x104   : > { %v608_v31 = vpop.f32.mrb[6].mxu1  ;;  %v3349_v32 = vpop.f32.mrb[7].mxu0 }
 0x105   : > { %v4217_v33 = vadd.f32 %v608_v31, %v462_v30  ;;  %v3393_v34 = vpop.f32.mrb[7].mxu1 }
 0x109   : > { %v467_v35 = vpop.f32.mrb[8].mxu0 }
 0x10a   : > { %v613_v36 = vpop.f32.mrb[8].mxu1  ;;  %v3352_v37 = vpop.f32.mrb[9].mxu0 }
 0x10b   : > { %v4219_v38 = vadd.f32 %v613_v36, %v467_v35  ;;  %v3396_v39 = vpop.f32.mrb[9].mxu1  ;;  %v470_v40 = vpop.f32.mrb[10].mxu0 }
 0x10c   : > { %v616_v41 = vpop.f32.mrb[10].mxu1  ;;  %v3353_v42 = vpop.f32.mrb[11].mxu0 }
 0x10d   : > { %v4221_v43 = vadd.f32 %v616_v41, %v470_v40  ;;  %v3397_v44 = vpop.f32.mrb[11].mxu1 }
 0x111   : > { %v475_v45 = vpop.f32.mrb[12].mxu0 }
 0x112   : > { %v621_v46 = vpop.f32.mrb[12].mxu1  ;;  %v3356_v47 = vpop.f32.mrb[13].mxu0 }
 0x113   : > { %v4223_v48 = vadd.f32 %v621_v46, %v475_v45  ;;  %v3400_v49 = vpop.f32.mrb[13].mxu1  ;;  %v478_v50 = vpop.f32.mrb[14].mxu0 }
 0x114   : > { %v624_v51 = vpop.f32.mrb[14].mxu1  ;;  %v3357_v52 = vpop.f32.mrb[15].mxu0 }
 0x115   : > { %v4225_v53 = vadd.f32 %v624_v51, %v478_v50  ;;  %v3401_v54 = vpop.f32.mrb[15].mxu1 }
 0x119   : > { %v483_v55 = vpop.f32.mrb[16].mxu0 }
 0x11a   : > { %v629_v56 = vpop.f32.mrb[16].mxu1  ;;  %v3360_v57 = vpop.f32.mrb[17].mxu0 }
 0x11b   : > { %v4227_v58 = vadd.f32 %v629_v56, %v483_v55  ;;  %v3404_v59 = vpop.f32.mrb[17].mxu1  ;;  %v486_v60 = vpop.f32.mrb[18].mxu0 }
 0x11c   : > { %v632_v61 = vpop.f32.mrb[18].mxu1  ;;  %v3361_v62 = vpop.f32.mrb[19].mxu0 }
 0x11d   : > { %v4229_v63 = vadd.f32 %v632_v61, %v486_v60  ;;  %v3405_v0 = vpop.f32.mrb[19].mxu1 }
 0x121   : > { %v491_v2 = vpop.f32.mrb[20].mxu0 }
 0x122   : > { %v637_v3 = vpop.f32.mrb[20].mxu1  ;;  %v3364_v4 = vpop.f32.mrb[21].mxu0 }
 0x123   : > { %v4231_v5 = vadd.f32 %v637_v3, %v491_v2  ;;  %v3408_v6 = vpop.f32.mrb[21].mxu1  ;;  %v494_v7 = vpop.f32.mrb[22].mxu0 }
 0x124   : > { %v640_v8 = vpop.f32.mrb[22].mxu1  ;;  %v3365_v9 = vpop.f32.mrb[23].mxu0 }
 0x125   : > { %v4233_v10 = vadd.f32 %v640_v8, %v494_v7  ;;  %v3409_v11 = vpop.f32.mrb[23].mxu1 }
 0x129   : > { %v499_v12 = vpop.f32.mrb[24].mxu0 }
 0x12a   : > { %v645_v13 = vpop.f32.mrb[24].mxu1  ;;  %v3368_v14 = vpop.f32.mrb[25].mxu0 }
 0x12b   : > { %v3412_v15 = vpop.f32.mrb[25].mxu1  ;;  %v502_v16 = vpop.f32.mrb[26].mxu0 }
 0x12c   : > { %v648_v17 = vpop.f32.mrb[26].mxu1  ;;  %v3369_v19 = vpop.f32.mrb[27].mxu0 }
 0x12d   : > { %v3413_v20 = vpop.f32.mrb[27].mxu1 }
 0x131   : > { %v817_v21 = vpop.f32.mrb[28].mxu0 }
 0x132   : > { %v871_v22 = vadd.f32 %v817_v21, %v4211_v18  ;;  %v1057_v24 = vpop.f32.mrb[28].mxu1  ;;  %v3432_v25 = vpop.f32.mrb[29].mxu0 }
 0x133   : > { %v3476_v27 = vpop.f32.mrb[29].mxu1  ;;  %v820_v29 = vpop.f32.mrb[30].mxu0 }
 0x134   : > { %v1111_v30 = vadd.f32 %v1057_v24, %v871_v22  ;;  %v872_v31 = vadd.f32 %v820_v29, %v4213_v23  ;;  %v1060_v32 = vpop.f32.mrb[30].mxu1  ;;  %v3433_v34 = vpop.f32.mrb[31].mxu0 }
 0x135   : > { %v3477_v35 = vpop.f32.mrb[31].mxu1 }
 0x136   : > { %v1131_v36 = vadd.f32 %v4239_v26, %v1111_v30  ;;  %v1112_v37 = vadd.f32 %v1060_v32, %v872_v31 }
 0x138   : > { %vm1144_vm4 = vcmp.ge.f32.partialorder %v1131_v36, 0.0  ;;  %v1157_v18 = vmul.f32 0.01, %v1131_v36  ;;  %v1132_v39 = vadd.f32 %v4239_v26, %v1112_v37 }
 0x139   : > { %v825_v40 = vpop.f32.mrb[32].mxu0 }
 0x13a   : > { %v1170_v41 = vsel %vm1144_vm4, %v1131_v36, %v1157_v18  ;;  %vm1145_vm6 = vcmp.ge.f32.partialorder %v1132_v39, 0.0  ;;  %v1158_v42 = vmul.f32 0.01, %v1132_v39  ;;  %v873_v44 = vadd.f32 %v825_v40, %v4215_v28  ;;  %v1065_v45 = vpop.f32.mrb[32].mxu1  ;;  %v3436_v46 = vpop.f32.mrb[33].mxu0 }
 0x13b   : > { %v3163_v23 = vpack.c.bf16 %v1170_v41, %v1170_v41  ;;  %v3480_v47 = vpop.f32.mrb[33].mxu1  ;;  %v828_v49 = vpop.f32.mrb[34].mxu0 }
 0x13c   : > { %v1171_v50 = vsel %vm1145_vm6, %v1132_v39, %v1158_v42  ;;  %v1113_v51 = vadd.f32 %v1065_v45, %v873_v44  ;;  %v874_v52 = vadd.f32 %v828_v49, %v4217_v33  ;;  %v1068_v54 = vpop.f32.mrb[34].mxu1  ;;  %v3437_v55 = vpop.f32.mrb[35].mxu0 }
 0x13d   : > { %1237 = vst.msk [vmem:[#allocation2] sm:$0xf] %vm1236_vm5, %v3163_v23  ;;  %v3164_v56 = vpack.c.bf16 %v1171_v50, %v1171_v50  ;;  %v3481_v57 = vpop.f32.mrb[35].mxu1 }
 0x13e   : > { %v1133_v59 = vadd.f32 %v4239_v26, %v1113_v51  ;;  %v1114_v60 = vadd.f32 %v1068_v54, %v874_v52 }
 0x13f   : > { %1238 = vst.msk [vmem:[#allocation2 + $0x4] sm:$0xf] %vm1236_vm5, %v3164_v56 }
 0x140   : > { %vm1146_vm7 = vcmp.ge.f32.partialorder %v1133_v59, 0.0  ;;  %v1159_v28 = vmul.f32 0.01, %v1133_v59  ;;  %v1134_v61 = vadd.f32 %v4239_v26, %v1114_v60 }
 0x141   : > { %v833_v62 = vpop.f32.mrb[36].mxu0 }
 0x142   : > { %v1172_v0 = vsel %vm1146_vm7, %v1133_v59, %v1159_v28  ;;  %vm1147_vm8 = vcmp.ge.f32.partialorder %v1134_v61, 0.0  ;;  %v1160_v2 = vmul.f32 0.01, %v1134_v61  ;;  %v875_v33 = vadd.f32 %v833_v62, %v4219_v38  ;;  %v1073_v3 = vpop.f32.mrb[36].mxu1  ;;  %v3440_v4 = vpop.f32.mrb[37].mxu0 }
 0x143   : > { %v3165_v6 = vpack.c.bf16 %v1172_v0, %v1172_v0  ;;  %v3484_v7 = vpop.f32.mrb[37].mxu1  ;;  %v836_v8 = vpop.f32.mrb[38].mxu0  ;;  %v3828_v0 = vld [vmem:[%s4734_s3 + $0x40] sm:$0xff]   ;;  %vm2095_vm7 = vcmask 1045504  }
 0x144   : > { %v1173_v9 = vsel %vm1147_vm8, %v1134_v61, %v1160_v2  ;;  %v1115_v11 = vadd.f32 %v1073_v3, %v875_v33  ;;  %v876_v12 = vadd.f32 %v836_v8, %v4221_v43  ;;  %v1076_v13 = vpop.f32.mrb[38].mxu1  ;;  %v3441_v14 = vpop.f32.mrb[39].mxu0  ;;  %v1251_v20 = vld [vmem:[#allocation2] sm:$0xf] }
 0x145   : > { %1239 = vst.msk [vmem:[#allocation2 + $0x8] sm:$0xf] %vm1236_vm5, %v3165_v6  ;;  %v3166_v15 = vpack.c.bf16 %v1173_v9, %v1173_v9  ;;  %v3485_v16 = vpop.f32.mrb[39].mxu1 }
 0x146   : > { %v1135_v17 = vadd.f32 %v4239_v26, %v1115_v11  ;;  %v1116_v19 = vadd.f32 %v1076_v13, %v876_v12  ;;  %v4254_v38 = vld [vmem:[#allocation2 + $0x4] sm:$0xf] }
 0x147   : > { %1240 = vst.msk [vmem:[#allocation2 + $0xc] sm:$0xf] %vm1236_vm5, %v3166_v15  ;;  %v4258_v21 = vcombine.low %v1251_v20, %v4254_v38 }
 0x148   : > { %vm1148_vm9 = vcmp.ge.f32.partialorder %v1135_v17, 0.0  ;;  %v1161_v22 = vmul.f32 0.01, %v1135_v17  ;;  %v1136_v43 = vadd.f32 %v4239_v26, %v1116_v19 }
 0x149   : > { %v841_v24 = vpop.f32.mrb[40].mxu0  ;;  %v1304_v36 = vshll.u32 %v4258_v21, 16  ;;  %v1302_v51 = vshrl.u32 %v4258_v21, 16 }
 0x14a   : > { %v1174_v25 = vsel %vm1148_vm9, %v1135_v17, %v1161_v22  ;;  %vm1149_vm10 = vcmp.ge.f32.partialorder %v1136_v43, 0.0  ;;  %v1162_v27 = vmul.f32 0.01, %v1136_v43  ;;  %v877_v29 = vadd.f32 %v841_v24, %v4223_v48  ;;  %v1081_v30 = vpop.f32.mrb[40].mxu1  ;;  %v3444_v31 = vpop.f32.mrb[41].mxu0 }
 0x14b   : > { %v3167_v32 = vpack.c.bf16 %v1174_v25, %v1174_v25  ;;  %v3488_v34 = vpop.f32.mrb[41].mxu1  ;;  %v844_v35 = vpop.f32.mrb[42].mxu0  ;;  %v1306_v23 = vrot.slane %v1304_v36, 1 }
 0x14c   : > { %v1175_v37 = vsel %vm1149_vm10, %v1136_v43, %v1162_v27  ;;  %v1117_v18 = vadd.f32 %v1081_v30, %v877_v29  ;;  %v878_v39 = vadd.f32 %v844_v35, %v4225_v53  ;;  %v1084_v40 = vpop.f32.mrb[42].mxu1  ;;  %v3445_v41 = vpop.f32.mrb[43].mxu0 }
 0x14d   : > { %1241 = vst.msk [vmem:[#allocation2 + $0x10] sm:$0xf] %vm1236_vm5, %v3167_v32  ;;  %v3168_v42 = vpack.c.bf16 %v1175_v37, %v1175_v37  ;;  %v3489_v44 = vpop.f32.mrb[43].mxu1  ;;  %v1307_v61 = vor.u32 %v1306_v23, %v1302_v51  ;;  %v3831_v32 = vld [vmem:[%s4734_s3 + $0x50] sm:$0xff]   ;;  %v1562_v41 = vld [vmem:[#allocation2] sm:$0xe] }
 0x14e   : > { %v1137_v45 = vadd.f32 %v4239_v26, %v1117_v18  ;;  %v1118_v48 = vadd.f32 %v1084_v40, %v878_v39  ;;  %v4266_v46 = vld [vmem:[#allocation2 + $0x8] sm:$0xff]  }
 0x14f   : > { %1242 = vst.msk [vmem:[#allocation2 + $0x14] sm:$0xf] %vm1236_vm5, %v3168_v42  ;;  %v1309_v53 = vshll.u32 %v4266_v46, 16  ;;  %v1313_v17 = vshrl.u32 %v4266_v46, 16  ;;  %v1576_v51 = vrot.slane %v4266_v46, 1 }
 0x150   : > { %vm1150_vm11 = vcmp.ge.f32.partialorder %v1137_v45, 0.0  ;;  %v1163_v47 = vmul.f32 0.01, %v1137_v45  ;;  %v1138_v49 = vadd.f32 %v4239_v26, %v1118_v48  ;;  %v3021_v48 = vcombine.low %v1562_v41, %v4254_v38 }
 0x151   : > { %v849_v50 = vpop.f32.mrb[44].mxu0  ;;  %v1311_v62 = vrot.slane %v1309_v53, 1 }
 0x152   : > { %v1176_v52 = vsel %vm1150_vm11, %v1137_v45, %v1163_v47  ;;  %vm1151_vm12 = vcmp.ge.f32.partialorder %v1138_v49, 0.0  ;;  %v1164_v54 = vmul.f32 0.01, %v1138_v49  ;;  %v879_v55 = vadd.f32 %v849_v50, %v4227_v58  ;;  %v3448_v56 = vpop.f32.mrb[45].mxu0  ;;  %v1089_v57 = vpop.f32.mrb[44].mxu1 }
 0x153   : > { %v3169_v59 = vpack.c.bf16 %v1176_v52, %v1176_v52  ;;  %v852_v60 = vpop.f32.mrb[46].mxu0  ;;  %v3492_v28 = vpop.f32.mrb[45].mxu1  ;;  %v1312_v8 = vsel %vm306_vm1, %v1307_v61, %v1311_v62  ;;  %v1315_v30 = vor.u32 %v1313_v17, %v1311_v62 }
 0x154   : > { %v1177_v2 = vsel %vm1151_vm12, %v1138_v49, %v1164_v54  ;;  %v880_v33 = vadd.f32 %v852_v60, %v4229_v63  ;;  %v1119_v3 = vadd.f32 %v1089_v57, %v879_v55  ;;  %v3449_v4 = vpop.f32.mrb[47].mxu0  ;;  %v1092_v6 = vpop.f32.mrb[46].mxu1  ;;  %3511 = vmatmul.mubr.msk.bf16.vlgmr.msra.gmra.mrb[56].mxu0 %vm1364_vm13, %v1312_v8  ;;  %v3829_v63 = vld [vmem:[%s4734_s3 + $0x48] sm:$0xff]  }
 0x155   : > { %1243 = vst.msk [vmem:[#allocation2 + $0x18] sm:$0xf] %vm1236_vm5, %v3169_v59  ;;  %v3170_v58 = vpack.c.bf16 %v1177_v2, %v1177_v2  ;;  %v3493_v7 = vpop.f32.mrb[47].mxu1  ;;  %3559 = vmatpush3.bf16.msra.mxu0 %v3828_v0  ;;  %3514 = vmatprep.mubr.msk.bf16.mxu0 %vm3891_vm0, %v3890_v1  ;;  %v1575_v59 = vrot.slane %v3021_v48, 1  ;;  %v4329_v4 = vld [vmem:[#allocation2 + $0x8] sm:$0xf] }
 0x156   : > { %v1139_v9 = vadd.f32 %v4239_v26, %v1119_v3  ;;  %v1120_v11 = vadd.f32 %v1092_v6, %v880_v33  ;;  %v4281_v12 = vld [vmem:[#allocation2 + $0x10] sm:$0xff]   ;;  %3560 = vmatprep.subr.bf16.mxu0 %v3890_v1  ;;  %v3840_v3 = vld [vmem:[%s4734_s3 + $0x80] sm:$0xff]   ;;  %v3835_v6 = vld [vmem:[%s4734_s3 + $0x8] sm:$0xff]  }
 0x157   : > { %1244 = vst.msk [vmem:[#allocation2 + $0x1c] sm:$0xf] %vm1236_vm5, %v3170_v58  ;;  %v1317_v15 = vshll.u32 %v4281_v12, 16  ;;  %v1321_v53 = vshrl.u32 %v4281_v12, 16  ;;  %v1577_v33 = vsel %vm714_vm2, %v1575_v59, %v1576_v51  ;;  %v2082_v7 = vld [vmem:[#allocation2 + $0x4] sm:$0xc] }
 0x158   : > { %vm1152_vm14 = vcmp.ge.f32.partialorder %v1139_v9, 0.0  ;;  %v1165_v13 = vmul.f32 0.01, %v1139_v9  ;;  %v1140_v14 = vadd.f32 %v4239_v26, %v1120_v11  ;;  %v1578_v8 = vrot.slane %v4281_v12, 1  ;;  %v4347_v11 = vld [vmem:[#allocation2 + $0xc] sm:$0xff]  }
 0x159   : > { %v857_v16 = vpop.f32.mrb[48].mxu0  ;;  %3561 = vmatpush3.bf16.msra.mxu0 %v3829_v63  ;;  %v1319_v31 = vrot.slane %v1317_v15, 1  ;;  %v3083_v63 = vcombine.low %v2082_v7, %v4329_v4 }
 0x15a   : > { %v1178_v19 = vsel %vm1152_vm14, %v1139_v9, %v1165_v13  ;;  %vm1153_vm15 = vcmp.ge.f32.partialorder %v1140_v14, 0.0  ;;  %v1166_v20 = vmul.f32 0.01, %v1140_v14  ;;  %v881_v22 = vadd.f32 %v857_v16, %v4231_v5  ;;  %v3452_v43 = vpop.f32.mrb[49].mxu0  ;;  %v1097_v24 = vpop.f32.mrb[48].mxu1  ;;  %3562 = vmatprep.subr.bf16.mxu0 %v3890_v1  ;;  %v3841_v9 = vld [vmem:[%s4734_s3 + $0x88] sm:$0xff]  }
 0x15b   : > { %v3171_v25 = vpack.c.bf16 %v1178_v19, %v1178_v19  ;;  %v860_v27 = vpop.f32.mrb[50].mxu0  ;;  %v3496_v29 = vpop.f32.mrb[49].mxu1  ;;  %v1320_v39 = vsel %vm306_vm1, %v1315_v30, %v1319_v31  ;;  %v1323_v57 = vor.u32 %v1321_v53, %v1319_v31  ;;  %v1579_v30 = vsel %vm714_vm2, %v1576_v51, %v1578_v8  ;;  %v1874_v53 = vld [vmem:[#allocation2 + $0x4] sm:$0xe] }
 0x15c   : > { %v1179_v34 = vsel %vm1153_vm15, %v1140_v14, %v1166_v20  ;;  %v882_v35 = vadd.f32 %v860_v27, %v4233_v10  ;;  %v1121_v36 = vadd.f32 %v1097_v24, %v881_v22  ;;  %v1100_v37 = vpop.f32.mrb[50].mxu1  ;;  %v3453_v5 = vpop.f32.mrb[51].mxu0  ;;  %3515 = vmatmul.mubr.msk.bf16.gmra.mrb[60].mxu0 %vm1364_vm13, %v1320_v39  ;;  %v3832_v10 = vld [vmem:[%s4734_s3 + $0x58] sm:$0xff]   ;;  %v3837_v20 = vld [vmem:[%s4734_s3 + $0x10] sm:$0xff]   ;;  %v2097_v27 = vrot.slane %v4347_v11, 2 }
 0x15d   : > { %1245 = vst.msk [vmem:[#allocation2 + $0x20] sm:$0xf] %vm1236_vm5, %v3171_v25  ;;  %v3172_v18 = vpack.c.bf16 %v1179_v34, %v1179_v34  ;;  %v3497_v40 = vpop.f32.mrb[51].mxu1  ;;  %3563 = vmatpush3.bf16.msra.mxu0 %v3831_v32  ;;  %3566 = vmatprep.mubr.msk.bf16.mxu0 %vm3891_vm0, %v3890_v1  ;;  %v4351_v15 = vld [vmem:[#allocation2 + $0x14] sm:$0xff]   ;;  %v2096_v25 = vrot.slane %v3083_v63, 2  ;;  %v3061_v51 = vcombine.low %v1874_v53, %v4329_v4  ;;  %v3857_v4 = vld [vmem:[%s4734_s3 + $0xc8] sm:$0xff]  }
 0x15e   : > { %v1141_v42 = vadd.f32 %v4239_v26, %v1121_v36  ;;  %v1122_v44 = vadd.f32 %v1100_v37, %v882_v35  ;;  %v4303_v45 = vld [vmem:[#allocation2 + $0x18] sm:$0xff]   ;;  %3564 = vmatprep.subr.bf16.mxu0 %v3890_v1  ;;  %v2099_v31 = vrot.slane %v4351_v15, 2  ;;  %v3842_v35 = vld [vmem:[%s4734_s3 + $0x90] sm:$0xff]   ;;  %vm2807_vm15 = vcmask 518144  }
 0x15f   : > { %1246 = vst.msk [vmem:[#allocation2 + $0x24] sm:$0xf] %vm1236_vm5, %v3172_v18  ;;  %v1325_v49 = vshll.u32 %v4303_v45, 16  ;;  %v1329_v13 = vshrl.u32 %v4303_v45, 16  ;;  %v4373_v36 = vsel %vm2095_vm7, %v2096_v25, %v2097_v27  ;;  %v3838_v37 = vld [vmem:[%s4734_s3 + $0x18] sm:$0xff]   ;;  %v1580_v40 = vrot.slane %v4303_v45, 1 }
 0x160   : > { %vm1154_vm4 = vcmp.ge.f32.partialorder %v1141_v42, 0.0  ;;  %v1167_v23 = vmul.f32 0.01, %v1141_v42  ;;  %v1142_v47 = vadd.f32 %v4239_v26, %v1122_v44  ;;  %v3834_v26 = vld [vmem:[%s4734_s3] sm:$0xff]   ;;  %v4381_v5 = vsel %vm2095_vm7, %v2097_v27, %v2099_v31  ;;  %v3861_v63 = vld [vmem:[%s4734_s3 + $0xd8] sm:$0xff]  }
 0x161   : > { %v865_v50 = vpop.f32.mrb[52].mxu0  ;;  %3565 = vmatpush3.bf16.msra.mxu0 %v3832_v10  ;;  %v1327_v38 = vrot.slane %v1325_v49, 1  ;;  %v3844_v10 = vld [vmem:[%s4734_s3 + $0x98] sm:$0xff]   ;;  %v1581_v48 = vsel %vm714_vm2, %v1578_v8, %v1580_v40 }
 0x162   : > { %v1180_v52 = vsel %vm1154_vm4, %v1141_v42, %v1167_v23  ;;  %vm1155_vm6 = vcmp.ge.f32.partialorder %v1142_v47, 0.0  ;;  %v1168_v54 = vmul.f32 0.01, %v1142_v47  ;;  %v1105_v55 = vpop.f32.mrb[52].mxu1  ;;  %v3456_v60 = vpop.f32.mrb[53].mxu0  ;;  %3614 = vmatprep.subr.bf16.mxu0 %v3890_v1  ;;  %v3843_v50 = vld [vmem:[%s4734_s3 + $0x68] sm:$0xff]  }
 0x163   : > { %v3173_v56 = vpack.c.bf16 %v1180_v52, %v1180_v52  ;;  %v3500_v28 = vpop.f32.mrb[53].mxu1  ;;  %v1328_v2 = vsel %vm306_vm1, %v1323_v57, %v1327_v38  ;;  %v868_v17 = vpop.f32.mrb[54].mxu0  ;;  %v1331_v19 = vor.u32 %v1329_v13, %v1327_v38  ;;  %v1930_v52 = vshll.u32 %v4347_v11, 16  ;;  %v3849_v60 = vld [vmem:[%s4734_s3 + $0x78] sm:$0xff]  }
 0x164   : > { %v1181_v61 = vsel %vm1155_vm6, %v1142_v47, %v1168_v54  ;;  %v4320_v62 = vld [vmem:[#allocation2 + $0x20] ss:$0 sps:$4 sm:$0xff]   ;;  %3519 = vmatmul.mubr.msk.bf16.vlgmr.msra.gmra.mrb[56].mxu1 %vm1364_vm13, %v1328_v2  ;;  %3567 = vmatmul.mubr.msk.bf16.vlgmr.msra.gmra.mrb[64].mxu0 %vm1364_vm13, %v1577_v33  ;;  %v3457_v22 = vpop.f32.mrb[55].mxu0  ;;  %v1108_v43 = vpop.f32.mrb[54].mxu1  ;;  %v1919_v54 = vshrl.u32 %v3061_v51, 16  ;;  %v1922_v55 = vshll.u32 %v3061_v51, 16 }
 0x165   : > { %1247 = vst.msk [vmem:[#allocation2 + $0x28] sm:$0xf] %vm1236_vm5, %v3173_v56  ;;  %v3174_v0 = vpack.c.bf16 %v1181_v61, %v1181_v61  ;;  %v1333_v58 = vshll.u32 %v4320_v62, 16  ;;  %3531 = vmatpush3.bf16.msra.mxu1 %v3834_v26  ;;  %3522 = vmatprep.mubr.msk.bf16.mxu1 %vm3891_vm0, %v3890_v1  ;;  %v4353_v16 = vld [vmem:[#allocation2 + $0x1c] sm:$0xff]   ;;  %v3501_v34 = vpop.f32.mrb[55].mxu1  ;;  %v1337_v41 = vshrl.u32 %v4320_v62, 16 }
 0x166   : > { %3532 = vmatprep.subr.bf16.mxu1 %v3890_v1  ;;  %3570 = vmatprep.mubr.msk.bf16.mxu0 %vm3891_vm0, %v3890_v1  ;;  %v2101_v32 = vrot.slane %v4353_v16, 2  ;;  %v1582_v23 = vrot.slane %v4320_v62, 1  ;;  %v3839_v47 = vld [vmem:[%s4734_s3 + $0x60] sm:$0xff]   ;;  %v3847_v56 = vld [vmem:[%s4734_s3 + $0x70] sm:$0xff]   ;;  %v1932_v38 = vrot.slane %v1930_v52, 2  ;;  %v1921_v59 = vrot.slane %v1919_v54, 1 }
 0x167   : > { %1248 = vst.msk [vmem:[#allocation2 + $0x2c] sm:$0xf] %vm1236_vm5, %v3174_v0  ;;  %v1335_v14 = vrot.slane %v1333_v58, 1  ;;  %3615 = vmatpush3.bf16.msra.mxu0 %v3840_v3  ;;  %v1924_v26 = vrot.slane %v1922_v55, 2  ;;  %v1936_v61 = vshrl.u32 %v4351_v15, 16  ;;  %v3856_v0 = vld [vmem:[%s4734_s3 + $0xc0] sm:$0xff]  }
 0x168   : > { %3616 = vmatprep.subr.bf16.mxu0 %v3890_v1  ;;  %v4387_v18 = vsel %vm2095_vm7, %v2099_v31, %v2101_v32  ;;  %v1583_v49 = vsel %vm714_vm2, %v1580_v40, %v1582_v23  ;;  %v1945_v58 = vshrl.u32 %v4353_v16, 16  ;;  %v1948_v7 = vshll.u32 %v4353_v16, 16  ;;  %v3853_v17 = vld [vmem:[#allocation2 + $0xc] sm:$0xff]   ;;  %v3852_v22 = vld [vmem:[#allocation2 + $0x4] sm:$0xfe]   ;;  %v4535_v55 = vld [vmem:[#allocation2 + $0x18] sm:$0xff]  }
 0x169   : > { %3533 = vmatpush3.bf16.msra.mxu1 %v3835_v6  ;;  %v1336_v29 = vsel %vm306_vm1, %v1331_v19, %v1335_v14  ;;  %v1339_v44 = vor.u32 %v1337_v41, %v1335_v14  ;;  %v1925_v62 = vor.u32 %v1924_v26, %v1921_v59  ;;  %v1938_v33 = vrot.slane %v1936_v61, 1  ;;  %v3860_v34 = vld [vmem:[%s4734_s3 + $0xa8] sm:$0xff]   ;;  %v3865_v40 = vld [vmem:[%s4734_s3 + $0xb0] sm:$0xff]   ;;  %v3874_v51 = vld [vmem:[%s4734_s3 + $0x100] sm:$0xff]  }
 0x16a   : > { %3534 = vmatprep.subr.bf16.mxu1 %v3890_v1  ;;  %v1746_v43 = vrot.slane %v3853_v17, 1  ;;  %v1745_v27 = vrot.slane %v3852_v22, 1  ;;  %v3866_v54 = vld [vmem:[#allocation2 + $0x24] ss:$0 sps:$4 sm:$0xff]   ;;  %v3876_v59 = vld [vmem:[%s4734_s3 + $0x110] sm:$0xff]   ;;  %v3878_v61 = vld [vmem:[%s4734_s3 + $0x118] sm:$0xff]  }
 0x16b   : > { %3617 = vmatpush3.bf16.msra.mxu0 %v3841_v9  ;;  %v1947_v9 = vrot.slane %v1945_v58, 1  ;;  %v3877_v58 = vld [vmem:[%s4734_s3 + $0xe8] sm:$0xff]   ;;  %vm2589_vm1 = vcmask 1044480  }
 0x16c   : > { %v4360_v24 = vld [vmem:[#allocation2 + $0x24] sm:$0x1f]   ;;  %3523 = vmatmul.mubr.msk.bf16.gmra.mrb[60].mxu1 %vm1364_vm13, %v1336_v29  ;;  %3571 = vmatmul.mubr.msk.bf16.gmra.mrb[68].mxu0 %vm1364_vm13, %v1579_v30  ;;  %v1747_v30 = vsel %vm714_vm2, %v1745_v27, %v1746_v43 }
 0x16d   : > { %3535 = vmatpush3.bf16.msra.mxu1 %v3837_v20  ;;  %3526 = vmatprep.mubr.msk.bf16.mxu1 %vm3891_vm0, %v3890_v1  ;;  %v2103_v39 = vrot.slane %v4360_v24, 2  ;;  %v1954_v14 = vshrl.u32 %v4360_v24, 16  ;;  %v3855_v29 = vld [vmem:[%s4734_s3 + $0xa0] sm:$0xff]  }
 0x16e   : > { %3574 = vmatprep.mubr.msk.bf16.mxu0 %vm3891_vm0, %v3890_v1  ;;  %3536 = vmatprep.subr.bf16.mxu1 %v3890_v1 }
 0x16f   : > { %3618 = vmatprep.subr.bf16.mxu0 %v3890_v1  ;;  %v4396_v42 = vsel %vm2095_vm7, %v2101_v32, %v2103_v39  ;;  %v1956_v19 = vrot.slane %v1954_v14, 1  ;;  %v3858_v32 = vld [vmem:[#allocation2 + $0x14] sm:$0xff]  }
 0x170   : > { %3619 = vmatpush3.bf16.msra.mxu0 %v3842_v35  ;;  %v1748_v35 = vrot.slane %v3858_v32, 1 }
 0x171   : > { %3537 = vmatpush3.bf16.msra.mxu1 %v3838_v37  ;;  %3620 = vmatprep.subr.bf16.mxu0 %v3890_v1  ;;  %v4506_v37 = vld [vmem:[#allocation2 + $0xc] sm:$0xf] }
 0x172   : > { %3586 = vmatprep.subr.bf16.mxu1 %v3890_v1  ;;  %v1749_v41 = vsel %vm714_vm2, %v1746_v43, %v1748_v35 }
 0x174   : > { %3527 = vmatmul.mubr.msk.bf16.gmra.mrb[64].mxu1 %vm1364_vm13, %v1339_v44  ;;  %3575 = vmatmul.mubr.msk.bf16.gmra.mrb[72].mxu0 %vm1364_vm13, %v1581_v48  ;;  %v3862_v44 = vld [vmem:[#allocation2 + $0x1c] sm:$0xff]   ;;  %v2225_v48 = vld [vmem:[#allocation2 + $0x8] sm:$0xc] }
 0x175   : > { %3538 = vmatprep.mubr.msk.bf16.mxu1 %vm3891_vm0, %v3890_v1  ;;  %3578 = vmatprep.mubr.msk.bf16.mxu0 %vm3891_vm0, %v3890_v1 }
 0x176   : > { %3621 = vmatpush3.bf16.msra.mxu0 %v3844_v10  ;;  %v4513_v10 = vld [vmem:[#allocation2 + $0x10] sm:$0xff]  }
 0x177   : > { %3670 = vmatprep.subr.bf16.mxu0 %v3890_v1  ;;  %v2270_v53 = vrot.slane %v4513_v10, 2  ;;  %v2421_v14 = vshrl.u32 %v4513_v10, 16 }
 0x17c   : > { %3539 = vmatmul.mubr.msk.bf16.vlgmr.msra.gmra.mrb[68].mxu1 %vm1364_vm13, %v4258_v21  ;;  %3579 = vmatmul.mubr.msk.bf16.gmra.mrb[76].mxu0 %vm1364_vm13, %v1583_v49  ;;  %v1927_v21 = vshrl.u32 %v4347_v11, 16  ;;  %v1950_v11 = vrot.slane %v1948_v7, 2  ;;  %v1750_v49 = vrot.slane %v3862_v44, 1  ;;  %v2576_v7 = vld [vmem:[#allocation2 + $0x8] sm:$0x8] }
 0x17d   : > { %3587 = vmatpush3.bf16.msra.mxu1 %v3839_v47  ;;  %3542 = vmatprep.mubr.msk.bf16.mxu1 %vm3891_vm0, %v3890_v1  ;;  %v3868_v47 = vld [vmem:[%s4734_s3 + $0xb8] sm:$0xff]  }
 0x17e   : > { %3582 = vmatprep.mubr.msk.bf16.mxu0 %vm3891_vm0, %v3890_v1  ;;  %3588 = vmatprep.subr.bf16.mxu1 %v3890_v1  ;;  %v1929_v57 = vrot.slane %v1927_v21, 1  ;;  %v1951_v13 = vor.u32 %v1950_v11, %v1947_v9  ;;  %v1751_v21 = vsel %vm714_vm2, %v1748_v35, %v1750_v49  ;;  %v2591_v9 = vrot.slane %v4513_v10, 3 }
 0x180   : > { %v1933_v28 = vor.u32 %v1932_v38, %v1929_v57  ;;  %v1752_v57 = vrot.slane %v3866_v54, 1  ;;  %v2272_v38 = vrot.slane %v4535_v55, 2 }
 0x181   : > { %3589 = vmatpush3.bf16.msra.mxu1 %v3843_v50 }
 0x182   : > { %3590 = vmatprep.subr.bf16.mxu1 %v3890_v1  ;;  %v1934_v2 = vsel %vm905_vm3, %v1925_v62, %v1933_v28  ;;  %v1753_v26 = vsel %vm714_vm2, %v1750_v49, %v1752_v57  ;;  %v2234_v62 = vld [vmem:[#allocation2 + $0x2c] sm:$0x1]  ;;  %vm2411_vm2 = vsmask.f32 5376 }
 0x184   : > { %3543 = vmatmul.mubr.msk.bf16.gmra.mrb[72].mxu1 %vm1364_vm13, %v4266_v46  ;;  %3583 = vmatmul.mubr.msk.bf16.gmra.mrb[80].mxu0 %vm1364_vm13, %v1582_v23  ;;  %v1939_v46 = vshll.u32 %v4351_v15, 16  ;;  %v1957_v15 = vshll.u32 %v4360_v24, 16  ;;  %v4522_v23 = vcombine.low %v2225_v48, %v4506_v37 }
 0x185   : > { %3546 = vmatprep.mubr.msk.bf16.mxu1 %vm3891_vm0, %v3890_v1  ;;  %3622 = vmatprep.mubr.msk.bf16.mxu0 %vm3891_vm0, %v3890_v1 }
 0x186   : > { %3591 = vmatpush3.bf16.msra.mxu1 %v3847_v56  ;;  %v1941_v3 = vrot.slane %v1939_v46, 2  ;;  %v1959_v20 = vrot.slane %v1957_v15, 2  ;;  %v2269_v50 = vrot.slane %v4522_v23, 2  ;;  %v3875_v56 = vld [vmem:[%s4734_s3 + $0x108] sm:$0xff]   ;;  %v2424_v15 = vshll.u32 %v4513_v10, 16 }
 0x187   : > { %3592 = vmatprep.subr.bf16.mxu1 %v3890_v1  ;;  %v2416_v17 = vshll.u32 %v4522_v23, 16 }
 0x188   : > { %v1942_v6 = vor.u32 %v1941_v3, %v1938_v33  ;;  %v1960_v25 = vor.u32 %v1959_v20, %v1956_v19  ;;  %v2271_v52 = vsel %vm2095_vm7, %v2269_v50, %v2270_v53  ;;  %v2423_v20 = vrot.slane %v2421_v14, 2 }
 0x189   : > { %v2426_v22 = vrot.slane %v2424_v15, 3 }
 0x18a   : > { %3593 = vmatpush3.bf16.msra.mxu1 %v3849_v60  ;;  %v1943_v8 = vsel %vm905_vm3, %v1933_v28, %v1942_v6  ;;  %v1952_v16 = vsel %vm905_vm3, %v1942_v6, %v1951_v13  ;;  %v1961_v31 = vsel %vm905_vm3, %v1951_v13, %v1960_v25  ;;  %v2273_v60 = vsel %vm2095_vm7, %v2270_v53, %v2272_v38  ;;  %v4554_v28 = vld [vmem:[#allocation2 + $0x20] sm:$0xff]  }
 0x18b   : > { %3642 = vmatprep.subr.bf16.mxu1 %v3890_v1  ;;  %v2274_v46 = vrot.slane %v4554_v28, 2  ;;  %v2427_v27 = vor.u32 %v2426_v22, %v2423_v20 }
 0x18c   : > { %3547 = vmatmul.mubr.msk.bf16.gmra.mrb[76].mxu1 %vm1364_vm13, %v4281_v12  ;;  %3623 = vmatmul.mubr.msk.bf16.vlgmr.msra.gmra.mrb[84].mxu0 %vm1364_vm13, %v1934_v2  ;;  %v3859_v12 = vld [vmem:[%s4734_s3 + $0xd0] sm:$0xff]  }
 0x18d   : > { %3550 = vmatprep.mubr.msk.bf16.mxu1 %vm3891_vm0, %v3890_v1  ;;  %3626 = vmatprep.mubr.msk.bf16.mxu0 %vm3891_vm0, %v3890_v1  ;;  %v2275_v2 = vsel %vm2095_vm7, %v2272_v38, %v2274_v46 }
 0x18e   : > { %3671 = vmatpush3.bf16.msra.mxu0 %v3856_v0  ;;  %v2233_v0 = vld [vmem:[#allocation2 + $0x28] sm:$0xf] }
 0x18f   : > { %3672 = vmatprep.subr.bf16.mxu0 %v3890_v1  ;;  %v3105_v33 = vcombine.low %v2233_v0, %v2234_v62 }
 0x191   : > { %v2276_v3 = vrot.slane %v3105_v33, 2 }
 0x192   : > { %3673 = vmatpush3.bf16.msra.mxu0 %v3857_v4  ;;  %v3873_v4 = vld [vmem:[%s4734_s3 + $0xe0] sm:$0xff]  }
 0x193   : > { %3674 = vmatprep.subr.bf16.mxu0 %v3890_v1  ;;  %v2277_v6 = vsel %vm2095_vm7, %v2274_v46, %v2276_v3 }
 0x194   : > { %3551 = vmatmul.mubr.msk.bf16.gmra.mrb[80].mxu1 %vm1364_vm13, %v4303_v45  ;;  %3627 = vmatmul.mubr.msk.bf16.gmra.mrb[88].mxu0 %vm1364_vm13, %v1943_v8  ;;  %v3850_v45 = vld [vmem:[#allocation2 + $0x20] ss:$0 sps:$4 sm:$0x77]   ;;  %v3881_v8 = vld [vmem:[%s4734_s3 + $0xf8] sm:$0xff]  }
 0x195   : > { %3554 = vmatprep.mubr.msk.bf16.mxu1 %vm3891_vm0, %v3890_v1  ;;  %3630 = vmatprep.mubr.msk.bf16.mxu0 %vm3891_vm0, %v3890_v1 }
 0x196   : > { %3675 = vmatpush3.bf16.msra.mxu0 %v3859_v12  ;;  %v3141_v12 = vcombine.low %v2576_v7, %v4506_v37 }
 0x197   : > { %3676 = vmatprep.subr.bf16.mxu0 %v3890_v1 }
 0x19a   : > { %3677 = vmatpush3.bf16.msra.mxu0 %v3861_v63  ;;  %v2593_v63 = vrot.slane %v4535_v55, 3 }
 0x19b   : > { %3726 = vmatprep.subr.bf16.mxu0 %v3890_v1 }
 0x19c   : > { %3555 = vmatmul.mubr.msk.bf16.gmra.mrb[84].mxu1 %vm1364_vm13, %v3850_v45  ;;  %3631 = vmatmul.mubr.msk.bf16.gmra.mrb[92].mxu0 %vm1364_vm13, %v1952_v16  ;;  %v2594_v13 = vsel %vm2589_vm1, %v2591_v9, %v2593_v63  ;;  %v2398_v45 = vld [vmem:[#allocation2 + $0x2c] sm:$0x3]  ;;  %v2413_v16 = vshrl.u32 %v4522_v23, 16 }
 0x19d   : > { %3594 = vmatprep.mubr.msk.bf16.mxu1 %vm3891_vm0, %v3890_v1  ;;  %3634 = vmatprep.mubr.msk.bf16.mxu0 %vm3891_vm0, %v3890_v1 }
 0x19e   : > { %v2415_v43 = vrot.slane %v2413_v16, 2 }
 0x1a4   : > { %3595 = vmatmul.mubr.msk.bf16.vlgmr.msra.gmra.mrb[88].mxu1 %vm1364_vm13, %v1747_v30  ;;  %3635 = vmatmul.mubr.msk.bf16.gmra.mrb[96].mxu0 %vm1364_vm13, %v1961_v31  ;;  %v2430_v30 = vshrl.u32 %v4535_v55, 16  ;;  %v2433_v31 = vshll.u32 %v4535_v55, 16 }
 0x1a5   : > { %3643 = vmatpush3.bf16.msra.mxu1 %v3855_v29  ;;  %3598 = vmatprep.mubr.msk.bf16.mxu1 %vm3891_vm0, %v3890_v1 }
 0x1a6   : > { %3638 = vmatprep.mubr.msk.bf16.mxu0 %vm3891_vm0, %v3890_v1  ;;  %3644 = vmatprep.subr.bf16.mxu1 %v3890_v1  ;;  %v2435_v35 = vrot.slane %v2433_v31, 3 }
 0x1a9   : > { %3645 = vmatpush3.bf16.msra.mxu1 %v3860_v34  ;;  %v2432_v34 = vrot.slane %v2430_v30, 2 }
 0x1aa   : > { %3646 = vmatprep.subr.bf16.mxu1 %v3890_v1 }
 0x1ab   : > { %v2436_v37 = vor.u32 %v2435_v35, %v2432_v34 }
 0x1ac   : > { %3599 = vmatmul.mubr.msk.bf16.gmra.mrb[92].mxu1 %vm1364_vm13, %v1749_v41  ;;  %3639 = vmatmul.mubr.msk.bf16.gmra.mrb[100].mxu0 %vm1364_vm13, %v1960_v25  ;;  %v2418_v25 = vrot.slane %v2416_v17, 3  ;;  %v2442_v41 = vshll.u32 %v4554_v28, 16 }
 0x1ad   : > { %3602 = vmatprep.mubr.msk.bf16.mxu1 %vm3891_vm0, %v3890_v1  ;;  %3678 = vmatprep.mubr.msk.bf16.mxu0 %vm3891_vm0, %v3890_v1  ;;  %v2437_v44 = vsel %vm2411_vm2, %v2427_v27, %v2436_v37 }
 0x1ae   : > { %3647 = vmatpush3.bf16.msra.mxu1 %v3865_v40  ;;  %v2419_v24 = vor.u32 %v2418_v25, %v2415_v43  ;;  %v2439_v40 = vshrl.u32 %v4554_v28, 16  ;;  %v2444_v48 = vrot.slane %v2442_v41, 3 }
 0x1af   : > { %3648 = vmatprep.subr.bf16.mxu1 %v3890_v1 }
 0x1b0   : > { %v2441_v10 = vrot.slane %v2439_v40, 2 }
 0x1b2   : > { %3649 = vmatpush3.bf16.msra.mxu1 %v3868_v47  ;;  %v2445_v23 = vor.u32 %v2444_v48, %v2441_v10 }
 0x1b3   : > { %3698 = vmatprep.subr.bf16.mxu1 %v3890_v1 }
 0x1b4   : > { %3603 = vmatmul.mubr.msk.bf16.gmra.mrb[96].mxu1 %vm1364_vm13, %v1751_v21  ;;  %3679 = vmatmul.mubr.msk.bf16.vlgmr.msra.gmra.mrb[104].mxu0 %vm1364_vm13, %v2271_v52  ;;  %v2446_v53 = vsel %vm2411_vm2, %v2436_v37, %v2445_v23 }
 0x1b5   : > { %3606 = vmatprep.mubr.msk.bf16.mxu1 %vm3891_vm0, %v3890_v1  ;;  %3682 = vmatprep.mubr.msk.bf16.mxu0 %vm3891_vm0, %v3890_v1 }
 0x1b6   : > { %3727 = vmatpush3.bf16.msra.mxu0 %v3874_v51 }
 0x1b7   : > { %3728 = vmatprep.subr.bf16.mxu0 %v3890_v1 }
 0x1ba   : > { %3729 = vmatpush3.bf16.msra.mxu0 %v3875_v56 }
 0x1bb   : > { %3730 = vmatprep.subr.bf16.mxu0 %v3890_v1 }
 0x1bc   : > { %3607 = vmatmul.mubr.msk.bf16.gmra.mrb[100].mxu1 %vm1364_vm13, %v1753_v26  ;;  %3683 = vmatmul.mubr.msk.bf16.gmra.mrb[108].mxu0 %vm1364_vm13, %v2273_v60 }
 0x1bd   : > { %3610 = vmatprep.mubr.msk.bf16.mxu1 %vm3891_vm0, %v3890_v1  ;;  %3686 = vmatprep.mubr.msk.bf16.mxu0 %vm3891_vm0, %v3890_v1 }
 0x1be   : > { %3731 = vmatpush3.bf16.msra.mxu0 %v3876_v59 }
 0x1bf   : > { %3732 = vmatprep.subr.bf16.mxu0 %v3890_v1 }
 0x1c2   : > { %3733 = vmatpush3.bf16.msra.mxu0 %v3878_v61 }
 0x1c4   : > { %3611 = vmatmul.mubr.msk.bf16.gmra.mrb[104].mxu1 %vm1364_vm13, %v1752_v57  ;;  %3687 = vmatmul.mubr.msk.bf16.gmra.mrb[112].mxu0 %vm1364_vm13, %v2275_v2 }
 0x1c5   : > { %3650 = vmatprep.mubr.msk.bf16.mxu1 %vm3891_vm0, %v3890_v1  ;;  %3690 = vmatprep.mubr.msk.bf16.mxu0 %vm3891_vm0, %v3890_v1 }
 0x1cc   : > { %3651 = vmatmul.mubr.msk.bf16.vlgmr.msra.gmra.mrb[108].mxu1 %vm1364_vm13, %v4373_v36  ;;  %3691 = vmatmul.mubr.msk.bf16.gmra.mrb[116].mxu0 %vm1364_vm13, %v2277_v6  ;;  %v3880_v36 = vld [vmem:[%s4734_s3 + $0xf0] sm:$0xff]  }
 0x1cd   : > { %3699 = vmatpush3.bf16.msra.mxu1 %v3873_v4  ;;  %3654 = vmatprep.mubr.msk.bf16.mxu1 %vm3891_vm0, %v3890_v1 }
 0x1ce   : > { %3694 = vmatprep.mubr.msk.bf16.mxu0 %vm3891_vm0, %v3890_v1  ;;  %3700 = vmatprep.subr.bf16.mxu1 %v3890_v1 }
 0x1d1   : > { %3701 = vmatpush3.bf16.msra.mxu1 %v3877_v58 }
 0x1d2   : > { %3702 = vmatprep.subr.bf16.mxu1 %v3890_v1 }
 0x1d4   : > { %3655 = vmatmul.mubr.msk.bf16.gmra.mrb[112].mxu1 %vm1364_vm13, %v4381_v5  ;;  %3695 = vmatmul.mubr.msk.bf16.gmra.mrb[120].mxu0 %vm1364_vm13, %v2276_v3  ;;  %v2590_v5 = vrot.slane %v3141_v12, 3 }
 0x1d5   : > { %3658 = vmatprep.mubr.msk.bf16.mxu1 %vm3891_vm0, %v3890_v1  ;;  %3734 = vmatprep.mubr.msk.bf16.mxu0 %vm3891_vm0, %v3890_v1 }
 0x1d6   : > { %3703 = vmatpush3.bf16.msra.mxu1 %v3880_v36  ;;  %v2592_v11 = vsel %vm2589_vm1, %v2590_v5, %v2591_v9 }
 0x1d7   : > { %3704 = vmatprep.subr.bf16.mxu1 %v3890_v1 }
 0x1da   : > { %3705 = vmatpush3.bf16.msra.mxu1 %v3881_v8 }
 0x1dc   : > { %3659 = vmatmul.mubr.msk.bf16.gmra.mrb[116].mxu1 %vm1364_vm13, %v4387_v18  ;;  %3735 = vmatmul.mubr.msk.bf16.vlgmr.msra.gmra.mrb[124].mxu0 %vm1364_vm13, %v2592_v11  ;;  %v2595_v18 = vrot.slane %v4554_v28, 3 }
 0x1dd   : > { %3662 = vmatprep.mubr.msk.bf16.mxu1 %vm3891_vm0, %v3890_v1  ;;  %3738 = vmatprep.mubr.msk.bf16.mxu0 %vm3891_vm0, %v3890_v1 }
 0x1de   : > { %v2596_v19 = vsel %vm2589_vm1, %v2593_v63, %v2595_v18 }
 0x1e4   : > { %3663 = vmatmul.mubr.msk.bf16.gmra.mrb[120].mxu1 %vm1364_vm13, %v4396_v42  ;;  %3739 = vmatmul.mubr.msk.bf16.gmra.mrb[128].mxu0 %vm1364_vm13, %v2594_v13  ;;  %v3123_v42 = vcombine.low %v2233_v0, %v2398_v45 }
 0x1e5   : > { %3666 = vmatprep.mubr.msk.bf16.mxu1 %vm3891_vm0, %v3890_v1  ;;  %3742 = vmatprep.mubr.msk.bf16.mxu0 %vm3891_vm0, %v3890_v1 }
 0x1e6   : > { %v2597_v29 = vrot.slane %v3123_v42, 3  ;;  %v2448_v47 = vshrl.u32 %v3123_v42, 16  ;;  %v2451_v49 = vshll.u32 %v3123_v42, 16 }
 0x1e8   : > { %v2598_v32 = vsel %vm2589_vm1, %v2595_v18, %v2597_v29  ;;  %v2450_v50 = vrot.slane %v2448_v47, 2  ;;  %v2453_v51 = vrot.slane %v2451_v49, 3 }
 0x1ea   : > { %v2454_v21 = vor.u32 %v2453_v51, %v2450_v50 }
 0x1ec   : > { %3667 = vmatmul.mubr.msk.bf16.gmra.mrb[124].mxu1 %vm1364_vm13, %v2103_v39  ;;  %3743 = vmatmul.mubr.msk.bf16.gmra.mrb[132].mxu0 %vm1364_vm13, %v2596_v19  ;;  %v2428_v39 = vsel %vm2411_vm2, %v2419_v24, %v2427_v27  ;;  %v2455_v52 = vsel %vm2411_vm2, %v2445_v23, %v2454_v21 }
 0x1ed   : > { %3706 = vmatprep.mubr.msk.bf16.mxu1 %vm3891_vm0, %v3890_v1  ;;  %3746 = vmatprep.mubr.msk.bf16.mxu0 %vm3891_vm0, %v3890_v1 }
 0x1f4   : > { %3707 = vmatmul.mubr.msk.bf16.vlgmr.msra.gmra.mrb[128].mxu1 %vm1364_vm13, %v2428_v39  ;;  %3747 = vmatmul.mubr.msk.bf16.gmra.mrb[136].mxu0 %vm1364_vm13, %v2598_v32 }
 0x1f5   : > { %3710 = vmatprep.mubr.msk.bf16.mxu1 %vm3891_vm0, %v3890_v1  ;;  %3750 = vmatprep.mubr.msk.bf16.mxu0 %vm3891_vm0, %v3890_v1 }
 0x1fc   : > { %3711 = vmatmul.mubr.msk.bf16.gmra.mrb[132].mxu1 %vm1364_vm13, %v2437_v44  ;;  %3751 = vmatmul.mubr.msk.bf16.gmra.mrb[140].mxu0 %vm1364_vm13, %v2597_v29 }
 0x1fd   : > { %3714 = vmatprep.mubr.msk.bf16.mxu1 %vm3891_vm0, %v3890_v1 }
 0x204   : > { %3715 = vmatmul.mubr.msk.bf16.gmra.mrb[136].mxu1 %vm1364_vm13, %v2446_v53 }
 0x205   : > { %3718 = vmatprep.mubr.msk.bf16.mxu1 %vm3891_vm0, %v3890_v1 }
 0x20c   : > { %3719 = vmatmul.mubr.msk.bf16.gmra.mrb[140].mxu1 %vm1364_vm13, %v2455_v52 }
 0x20d   : > { %3722 = vmatprep.mubr.msk.bf16.mxu1 %vm3891_vm0, %v3890_v1 }
 0x214   : > { %3723 = vmatmul.mubr.msk.bf16.gmra.mrb[144].mxu1 %vm1364_vm13, %v2454_v21 }
 0x227   : > { %v1414_v54 = vpop.f32.mrb[56].mxu0 }
 0x228   : > { %v3512_v55 = vpop.f32.mrb[57].mxu0 }
 0x229   : > { %v1417_v56 = vpop.f32.mrb[58].mxu0 }
 0x22a   : > { %v3513_v57 = vpop.f32.mrb[59].mxu0 }
 0x22f   : > { %v1422_v38 = vpop.f32.mrb[60].mxu0 }
 0x230   : > { %v3516_v59 = vpop.f32.mrb[61].mxu0 }
 0x231   : > { %v1425_v26 = vpop.f32.mrb[62].mxu0 }
 0x232   : > { %v3517_v60 = vpop.f32.mrb[63].mxu0 }
 0x237   : > { %v1430_v28 = vpop.f32.mrb[56].mxu1  ;;  %v1657_v61 = vpop.f32.mrb[64].mxu0 }
 0x238   : > { %v3520_v46 = vpop.f32.mrb[57].mxu1  ;;  %v3568_v62 = vpop.f32.mrb[65].mxu0 }
 0x239   : > { %v1433_v0 = vpop.f32.mrb[58].mxu1  ;;  %v1660_v2 = vpop.f32.mrb[66].mxu0 }
 0x23a   : > { %v3521_v33 = vpop.f32.mrb[59].mxu1  ;;  %v3569_v3 = vpop.f32.mrb[67].mxu0 }
 0x23f   : > { %v1438_v4 = vpop.f32.mrb[60].mxu1  ;;  %v1665_v1 = vpop.f32.mrb[68].mxu0 }
 0x240   : > { %v3524_v6 = vpop.f32.mrb[61].mxu1  ;;  %v3572_v58 = vpop.f32.mrb[69].mxu0 }
 0x241   : > { %v1441_v36 = vpop.f32.mrb[62].mxu1  ;;  %v1668_v7 = vpop.f32.mrb[70].mxu0 }
 0x242   : > { %v3525_v12 = vpop.f32.mrb[63].mxu1  ;;  %v3573_v8 = vpop.f32.mrb[71].mxu0 }
 0x247   : > { %v1446_v9 = vpop.f32.mrb[64].mxu1  ;;  %v1673_v5 = vpop.f32.mrb[72].mxu0 }
 0x248   : > { %v3528_v11 = vpop.f32.mrb[65].mxu1  ;;  %v3576_v63 = vpop.f32.mrb[73].mxu0 }
 0x249   : > { %v1449_v13 = vpop.f32.mrb[66].mxu1  ;;  %v1676_v18 = vpop.f32.mrb[74].mxu0 }
 0x24a   : > { %v3529_v14 = vpop.f32.mrb[67].mxu1  ;;  %v3577_v15 = vpop.f32.mrb[75].mxu0 }
 0x24f   : > { %v1524_v45 = vpop.f32.mrb[68].mxu1  ;;  %v1681_v16 = vpop.f32.mrb[76].mxu0 }
 0x250   : > { %v1525_v17 = vadd.f32 %v1524_v45, %v1414_v54  ;;  %v3540_v42 = vpop.f32.mrb[69].mxu1  ;;  %v3580_v19 = vpop.f32.mrb[77].mxu0 }
 0x251   : > { %v1527_v20 = vpop.f32.mrb[70].mxu1  ;;  %v1684_v22 = vpop.f32.mrb[78].mxu0 }
 0x252   : > { %v1528_v43 = vadd.f32 %v1527_v20, %v1417_v56  ;;  %v3541_v25 = vpop.f32.mrb[71].mxu1  ;;  %v3581_v27 = vpop.f32.mrb[79].mxu0  ;;  %v1695_v29 = vadd.f32 %v1657_v61, %v1525_v17 }
 0x254   : > { %v1696_v30 = vadd.f32 %v1660_v2, %v1528_v43 }
 0x257   : > { %v1532_v31 = vpop.f32.mrb[72].mxu1  ;;  %v1689_v24 = vpop.f32.mrb[80].mxu0 }
 0x258   : > { %v1533_v39 = vadd.f32 %v1532_v31, %v1422_v38  ;;  %v3544_v32 = vpop.f32.mrb[73].mxu1  ;;  %v3584_v34 = vpop.f32.mrb[81].mxu0 }
 0x259   : > { %v1535_v35 = vpop.f32.mrb[74].mxu1  ;;  %v1692_v37 = vpop.f32.mrb[82].mxu0 }
 0x25a   : > { %v1536_v40 = vadd.f32 %v1535_v35, %v1425_v26  ;;  %v3545_v41 = vpop.f32.mrb[75].mxu1  ;;  %v3585_v44 = vpop.f32.mrb[83].mxu0  ;;  %v1697_v10 = vadd.f32 %v1665_v1, %v1533_v39 }
 0x25c   : > { %v1698_v48 = vadd.f32 %v1668_v7, %v1536_v40 }
 0x25f   : > { %v1540_v23 = vpop.f32.mrb[76].mxu1  ;;  %v2035_v47 = vpop.f32.mrb[84].mxu0 }
 0x260   : > { %v1541_v49 = vadd.f32 %v1540_v23, %v1430_v28  ;;  %v3548_v53 = vpop.f32.mrb[77].mxu1  ;;  %v3624_v50 = vpop.f32.mrb[85].mxu0 }
 0x261   : > { %v1543_v51 = vpop.f32.mrb[78].mxu1  ;;  %v2038_v21 = vpop.f32.mrb[86].mxu0 }
 0x262   : > { %v1544_v52 = vadd.f32 %v1543_v51, %v1433_v0  ;;  %v3549_v54 = vpop.f32.mrb[79].mxu1  ;;  %v3625_v55 = vpop.f32.mrb[87].mxu0  ;;  %v1699_v56 = vadd.f32 %v1673_v5, %v1541_v49 }
 0x264   : > { %v1700_v57 = vadd.f32 %v1676_v18, %v1544_v52 }
 0x267   : > { %v1548_v38 = vpop.f32.mrb[80].mxu1  ;;  %v2043_v59 = vpop.f32.mrb[88].mxu0 }
 0x268   : > { %v1549_v60 = vadd.f32 %v1548_v38, %v1438_v4  ;;  %v3552_v26 = vpop.f32.mrb[81].mxu1  ;;  %v3628_v61 = vpop.f32.mrb[89].mxu0 }
 0x269   : > { %v1551_v46 = vpop.f32.mrb[82].mxu1  ;;  %v2046_v62 = vpop.f32.mrb[90].mxu0 }
 0x26a   : > { %v1552_v2 = vadd.f32 %v1551_v46, %v1441_v36  ;;  %v3553_v33 = vpop.f32.mrb[83].mxu1  ;;  %v3629_v3 = vpop.f32.mrb[91].mxu0  ;;  %v1701_v28 = vadd.f32 %v1681_v16, %v1549_v60 }
 0x26c   : > { %v1702_v1 = vadd.f32 %v1684_v22, %v1552_v2 }
 0x26f   : > { %v1556_v6 = vpop.f32.mrb[84].mxu1  ;;  %v2051_v58 = vpop.f32.mrb[92].mxu0 }
 0x270   : > { %v1557_v7 = vadd.f32 %v1556_v6, %v1446_v9  ;;  %v3556_v0 = vpop.f32.mrb[85].mxu1  ;;  %v3632_v12 = vpop.f32.mrb[93].mxu0 }
 0x271   : > { %v1559_v8 = vpop.f32.mrb[86].mxu1  ;;  %v2054_v5 = vpop.f32.mrb[94].mxu0 }
 0x272   : > { %v3557_v11 = vpop.f32.mrb[87].mxu1  ;;  %v3633_v63 = vpop.f32.mrb[95].mxu0  ;;  %v1703_v13 = vadd.f32 %v1689_v24, %v1557_v7 }
 0x277   : > { %v1827_v4 = vpop.f32.mrb[88].mxu1  ;;  %v2059_v18 = vpop.f32.mrb[96].mxu0 }
 0x278   : > { %v1865_v14 = vadd.f32 %v1827_v4, %v1695_v29  ;;  %v3596_v15 = vpop.f32.mrb[89].mxu1  ;;  %v3636_v45 = vpop.f32.mrb[97].mxu0 }
 0x279   : > { %v1830_v36 = vpop.f32.mrb[90].mxu1  ;;  %v2062_v17 = vpop.f32.mrb[98].mxu0 }
 0x27a   : > { %v1866_v42 = vadd.f32 %v1830_v36, %v1696_v30  ;;  %v3597_v16 = vpop.f32.mrb[91].mxu1  ;;  %v3637_v19 = vpop.f32.mrb[99].mxu0  ;;  %v2073_v20 = vadd.f32 %v2035_v47, %v1865_v14 }
 0x27c   : > { %v2074_v22 = vadd.f32 %v2038_v21, %v1866_v42 }
 0x27f   : > { %v1835_v9 = vpop.f32.mrb[92].mxu1  ;;  %v2067_v43 = vpop.f32.mrb[100].mxu0 }
 0x280   : > { %v1867_v25 = vadd.f32 %v1835_v9, %v1697_v10  ;;  %v3600_v27 = vpop.f32.mrb[93].mxu1  ;;  %v3640_v31 = vpop.f32.mrb[101].mxu0 }
 0x281   : > { %v1838_v39 = vpop.f32.mrb[94].mxu1  ;;  %v2070_v32 = vpop.f32.mrb[102].mxu0 }
 0x282   : > { %v1868_v24 = vadd.f32 %v1838_v39, %v1698_v48  ;;  %v3601_v34 = vpop.f32.mrb[95].mxu1  ;;  %v3641_v35 = vpop.f32.mrb[103].mxu0  ;;  %v2075_v29 = vadd.f32 %v2043_v59, %v1867_v25 }
 0x284   : > { %v2076_v37 = vadd.f32 %v2046_v62, %v1868_v24 }
 0x287   : > { %v1843_v40 = vpop.f32.mrb[96].mxu1  ;;  %v2351_v41 = vpop.f32.mrb[104].mxu0 }
 0x288   : > { %v1869_v44 = vadd.f32 %v1843_v40, %v1699_v56  ;;  %v3604_v30 = vpop.f32.mrb[97].mxu1  ;;  %v3680_v23 = vpop.f32.mrb[105].mxu0 }
 0x289   : > { %v1846_v49 = vpop.f32.mrb[98].mxu1  ;;  %v2354_v47 = vpop.f32.mrb[106].mxu0 }
 0x28a   : > { %v1870_v53 = vadd.f32 %v1846_v49, %v1700_v57  ;;  %v3605_v50 = vpop.f32.mrb[99].mxu1  ;;  %v3681_v51 = vpop.f32.mrb[107].mxu0  ;;  %v2077_v10 = vadd.f32 %v2051_v58, %v1869_v44 }
 0x28c   : > { %v2078_v21 = vadd.f32 %v2054_v5, %v1870_v53 }
 0x28f   : > { %v1851_v52 = vpop.f32.mrb[100].mxu1  ;;  %v2359_v54 = vpop.f32.mrb[108].mxu0 }
 0x290   : > { %v1871_v55 = vadd.f32 %v1851_v52, %v1701_v28  ;;  %v3608_v48 = vpop.f32.mrb[101].mxu1  ;;  %v3684_v38 = vpop.f32.mrb[109].mxu0 }
 0x291   : > { %v1854_v60 = vpop.f32.mrb[102].mxu1  ;;  %v2362_v59 = vpop.f32.mrb[110].mxu0 }
 0x292   : > { %v1872_v26 = vadd.f32 %v1854_v60, %v1702_v1  ;;  %v3609_v61 = vpop.f32.mrb[103].mxu1  ;;  %v3685_v46 = vpop.f32.mrb[111].mxu0  ;;  %v2079_v56 = vadd.f32 %v2059_v18, %v1871_v55 }
 0x294   : > { %v2080_v62 = vadd.f32 %v2062_v17, %v1872_v26 }
 0x297   : > { %v1859_v2 = vpop.f32.mrb[104].mxu1  ;;  %v2367_v33 = vpop.f32.mrb[112].mxu0 }
 0x298   : > { %v1873_v3 = vadd.f32 %v1859_v2, %v1703_v13  ;;  %v3612_v57 = vpop.f32.mrb[105].mxu1  ;;  %v3688_v6 = vpop.f32.mrb[113].mxu0 }
 0x299   : > { %v1862_v7 = vpop.f32.mrb[106].mxu1  ;;  %v2370_v58 = vpop.f32.mrb[114].mxu0 }
 0x29a   : > { %v3613_v0 = vpop.f32.mrb[107].mxu1  ;;  %v3689_v12 = vpop.f32.mrb[115].mxu0  ;;  %v2081_v8 = vadd.f32 %v2067_v43, %v1873_v3 }
 0x29f   : > { %v2178_v28 = vpop.f32.mrb[108].mxu1  ;;  %v2375_v5 = vpop.f32.mrb[116].mxu0 }
 0x2a0   : > { %v2216_v11 = vadd.f32 %v2178_v28, %v2073_v20  ;;  %v3652_v63 = vpop.f32.mrb[109].mxu1  ;;  %v3692_v4 = vpop.f32.mrb[117].mxu0  ;;  %v4681_v28 = vld [vmem:[%s4735_s4] ss:$0 sm:$0xff] }
 0x2a1   : > { %v2181_v1 = vpop.f32.mrb[110].mxu1  ;;  %v2378_v14 = vpop.f32.mrb[118].mxu0 }
 0x2a2   : > { %v2217_v15 = vadd.f32 %v2181_v1, %v2074_v22  ;;  %v3653_v18 = vpop.f32.mrb[111].mxu1  ;;  %v3693_v45 = vpop.f32.mrb[119].mxu0  ;;  %v2389_v36 = vadd.f32 %v2351_v41, %v2216_v11 }
 0x2a4   : > { %v2390_v17 = vadd.f32 %v2354_v47, %v2217_v15 }
 0x2a7   : > { %v2186_v13 = vpop.f32.mrb[112].mxu1  ;;  %v2383_v42 = vpop.f32.mrb[120].mxu0 }
 0x2a8   : > { %v2218_v16 = vadd.f32 %v2186_v13, %v2075_v29  ;;  %v3656_v19 = vpop.f32.mrb[113].mxu1  ;;  %v3696_v9 = vpop.f32.mrb[121].mxu0 }
 0x2a9   : > { %v2189_v25 = vpop.f32.mrb[114].mxu1  ;;  %v2386_v27 = vpop.f32.mrb[122].mxu0 }
 0x2aa   : > { %v2219_v43 = vadd.f32 %v2189_v25, %v2076_v37  ;;  %v3657_v31 = vpop.f32.mrb[115].mxu1  ;;  %v3697_v39 = vpop.f32.mrb[123].mxu0  ;;  %v2391_v20 = vadd.f32 %v2359_v54, %v2218_v16 }
 0x2ac   : > { %v4664_v32 = vadd.f32 %v2362_v59, %v2219_v43 }
 0x2af   : > { %v2194_v24 = vpop.f32.mrb[116].mxu1  ;;  %v2672_v34 = vpop.f32.mrb[124].mxu0 }
 0x2b0   : > { %v2220_v22 = vadd.f32 %v2194_v24, %v2077_v10  ;;  %v3660_v35 = vpop.f32.mrb[117].mxu1  ;;  %v3736_v40 = vpop.f32.mrb[125].mxu0 }
 0x2b1   : > { %v2197_v41 = vpop.f32.mrb[118].mxu1  ;;  %v2675_v44 = vpop.f32.mrb[126].mxu0 }
 0x2b2   : > { %v2221_v30 = vadd.f32 %v2197_v41, %v2078_v21  ;;  %v3661_v23 = vpop.f32.mrb[119].mxu1  ;;  %v3737_v29 = vpop.f32.mrb[127].mxu0  ;;  %v4666_v49 = vadd.f32 %v2367_v33, %v2220_v22 }
 0x2b4   : > { %v4668_v47 = vadd.f32 %v2370_v58, %v2221_v30 }
 0x2b7   : > { %v2202_v37 = vpop.f32.mrb[120].mxu1  ;;  %v2680_v53 = vpop.f32.mrb[128].mxu0 }
 0x2b8   : > { %v2222_v50 = vadd.f32 %v2202_v37, %v2079_v56  ;;  %v3664_v51 = vpop.f32.mrb[121].mxu1  ;;  %v3740_v52 = vpop.f32.mrb[129].mxu0 }
 0x2b9   : > { %v2205_v54 = vpop.f32.mrb[122].mxu1  ;;  %v2683_v55 = vpop.f32.mrb[130].mxu0 }
 0x2ba   : > { %v2223_v48 = vadd.f32 %v2205_v54, %v2080_v62  ;;  %v3665_v10 = vpop.f32.mrb[123].mxu1  ;;  %v3741_v38 = vpop.f32.mrb[131].mxu0  ;;  %v4670_v60 = vadd.f32 %v2375_v5, %v2222_v50 }
 0x2bc   : > { %v4672_v59 = vadd.f32 %v2378_v14, %v2223_v48 }
 0x2bf   : > { %v2210_v21 = vpop.f32.mrb[124].mxu1  ;;  %v2688_v26 = vpop.f32.mrb[132].mxu0 }
 0x2c0   : > { %v2224_v61 = vadd.f32 %v2210_v21, %v2081_v8  ;;  %v3668_v46 = vpop.f32.mrb[125].mxu1  ;;  %v3744_v2 = vpop.f32.mrb[133].mxu0 }
 0x2c1   : > { %v2213_v33 = vpop.f32.mrb[126].mxu1  ;;  %v2691_v3 = vpop.f32.mrb[134].mxu0 }
 0x2c2   : > { %v3669_v56 = vpop.f32.mrb[127].mxu1  ;;  %v3745_v57 = vpop.f32.mrb[135].mxu0  ;;  %v4674_v6 = vadd.f32 %v2383_v42, %v2224_v61 }
 0x2c7   : > { %v2529_v7 = vpop.f32.mrb[128].mxu1  ;;  %v4676_v62 = vpop.f32.mrb[136].mxu0 }
 0x2c8   : > { %v2567_v58 = vadd.f32 %v2529_v7, %v2389_v36  ;;  %v3708_v0 = vpop.f32.mrb[129].mxu1  ;;  %v3748_v12 = vpop.f32.mrb[137].mxu0 }
 0x2c9   : > { %v2532_v8 = vpop.f32.mrb[130].mxu1  ;;  %v4683_v5 = vpop.f32.mrb[138].mxu0 }
 0x2ca   : > { %v2710_v11 = vadd.f32 %v2672_v34, %v2567_v58  ;;  %v2568_v63 = vadd.f32 %v2532_v8, %v2390_v17  ;;  %v3709_v4 = vpop.f32.mrb[131].mxu1  ;;  %v3749_v1 = vpop.f32.mrb[139].mxu0 }
 0x2cc   : > { %v2726_v14 = vadd.f32 %v4681_v28, %v2710_v11  ;;  %v2711_v15 = vadd.f32 %v2675_v44, %v2568_v63 }
 0x2ce   : > { %vm2735_vm0 = vcmp.ge.f32.partialorder %v2726_v14, 0.0  ;;  %v2744_v18 = vmul.f32 0.01, %v2726_v14  ;;  %v2727_v45 = vadd.f32 %v4681_v28, %v2711_v15 }
 0x2cf   : > { %v2537_v36 = vpop.f32.mrb[132].mxu1  ;;  %v4688_v13 = vpop.f32.mrb[140].mxu0 }
 0x2d0   : > { %v2753_v17 = vsel %vm2735_vm0, %v2726_v14, %v2744_v18  ;;  %vm2736_vm3 = vcmp.ge.f32.partialorder %v2727_v45, 0.0  ;;  %v2745_v42 = vmul.f32 0.01, %v2727_v45  ;;  %v2569_v16 = vadd.f32 %v2537_v36, %v2391_v20  ;;  %v3712_v19 = vpop.f32.mrb[133].mxu1  ;;  %v3752_v9 = vpop.f32.mrb[141].mxu0 }
 0x2d1   : > { %v3176_v25 = vpack.c.bf16 %v2753_v17, %v2753_v17  ;;  %v2540_v27 = vpop.f32.mrb[134].mxu1  ;;  %v2707_v43 = vpop.f32.mrb[142].mxu0 }
 0x2d2   : > { %v2754_v31 = vsel %vm2736_vm3, %v2727_v45, %v2745_v42  ;;  %v2712_v39 = vadd.f32 %v2680_v53, %v2569_v16  ;;  %v2570_v24 = vadd.f32 %v2540_v27, %v4664_v32  ;;  %v3713_v34 = vpop.f32.mrb[135].mxu1  ;;  %v3753_v22 = vpop.f32.mrb[143].mxu0 }
 0x2d3   : > { %2799 = vst.msk [vmem:[%s4693_s30] sm:$0xf] %vm1236_vm5, %v3176_v25  ;;  %v3177_v35 = vpack.c.bf16 %v2754_v31, %v2754_v31 }
 0x2d4   : > { %v2728_v40 = vadd.f32 %v4681_v28, %v2712_v39  ;;  %v2713_v41 = vadd.f32 %v2683_v55, %v2570_v24 }
 0x2d5   : > { %2800 = vst.msk [vmem:[%s4693_s30 + $0x4] sm:$0xf] %vm1236_vm5, %v3177_v35 }
 0x2d6   : > { %vm2737_vm8 = vcmp.ge.f32.partialorder %v2728_v40, 0.0  ;;  %v2746_v20 = vmul.f32 0.01, %v2728_v40  ;;  %v2729_v44 = vadd.f32 %v4681_v28, %v2713_v41 }
 0x2d7   : > { %v2545_v30 = vpop.f32.mrb[136].mxu1 }
 0x2d8   : > { %v2755_v23 = vsel %vm2737_vm8, %v2728_v40, %v2746_v20  ;;  %vm2738_vm9 = vcmp.ge.f32.partialorder %v2729_v44, 0.0  ;;  %v2747_v32 = vmul.f32 0.01, %v2729_v44  ;;  %v2571_v29 = vadd.f32 %v2545_v30, %v4666_v49  ;;  %v3716_v37 = vpop.f32.mrb[137].mxu1 }
 0x2d9   : > { %v3178_v53 = vpack.c.bf16 %v2755_v23, %v2755_v23  ;;  %v2548_v50 = vpop.f32.mrb[138].mxu1 }
 0x2da   : > { %v2756_v51 = vsel %vm2738_vm9, %v2729_v44, %v2747_v32  ;;  %v2714_v52 = vadd.f32 %v2688_v26, %v2571_v29  ;;  %v2572_v54 = vadd.f32 %v2548_v50, %v4668_v47  ;;  %v3717_v55 = vpop.f32.mrb[139].mxu1 }
 0x2db   : > { %2801 = vst.msk [vmem:[%s4693_s30 + $0x8] sm:$0xf] %vm1236_vm5, %v3178_v53  ;;  %v3179_v48 = vpack.c.bf16 %v2756_v51, %v2756_v51 }
 0x2dc   : > { %v2730_v10 = vadd.f32 %v4681_v28, %v2714_v52  ;;  %v2715_v38 = vadd.f32 %v2691_v3, %v2572_v54 }
 0x2dd   : > { %2802 = vst.msk [vmem:[%s4693_s30 + $0xc] sm:$0xf] %vm1236_vm5, %v3179_v48 }
 0x2de   : > { %vm2739_vm10 = vcmp.ge.f32.partialorder %v2730_v10, 0.0  ;;  %v2748_v21 = vmul.f32 0.01, %v2730_v10  ;;  %v2731_v49 = vadd.f32 %v4681_v28, %v2715_v38 }
 0x2df   : > { %v2553_v61 = vpop.f32.mrb[140].mxu1 }
 0x2e0   : > { %v2757_v46 = vsel %vm2739_vm10, %v2730_v10, %v2748_v21  ;;  %vm2740_vm11 = vcmp.ge.f32.partialorder %v2731_v49, 0.0  ;;  %v2749_v26 = vmul.f32 0.01, %v2731_v49  ;;  %v2573_v47 = vadd.f32 %v2553_v61, %v4670_v60  ;;  %v3720_v2 = vpop.f32.mrb[141].mxu1 }
 0x2e1   : > { %v3180_v33 = vpack.c.bf16 %v2757_v46, %v2757_v46  ;;  %v2556_v56 = vpop.f32.mrb[142].mxu1 }
 0x2e2   : > { %v2758_v57 = vsel %vm2740_vm11, %v2731_v49, %v2749_v26  ;;  %v2716_v3 = vadd.f32 %v4676_v62, %v2573_v47  ;;  %v2574_v7 = vadd.f32 %v2556_v56, %v4672_v59  ;;  %v3721_v58 = vpop.f32.mrb[143].mxu1 }
 0x2e3   : > { %2803 = vst.msk [vmem:[%s4693_s30 + $0x10] sm:$0xf] %vm1236_vm5, %v3180_v33  ;;  %v3181_v0 = vpack.c.bf16 %v2758_v57, %v2758_v57 }
 0x2e4   : > { %v2732_v12 = vadd.f32 %v4681_v28, %v2716_v3  ;;  %v2717_v8 = vadd.f32 %v4683_v5, %v2574_v7 }
 0x2e5   : > { %2804 = vst.msk [vmem:[%s4693_s30 + $0x14] sm:$0xf] %vm1236_vm5, %v3181_v0 }
 0x2e6   : > { %vm2741_vm12 = vcmp.ge.f32.partialorder %v2732_v12, 0.0  ;;  %v2750_v60 = vmul.f32 0.01, %v2732_v12  ;;  %v2733_v11 = vadd.f32 %v4681_v28, %v2717_v8 }
 0x2e7   : > { %v2561_v63 = vpop.f32.mrb[144].mxu1 }
 0x2e8   : > { %v2759_v62 = vsel %vm2741_vm12, %v2732_v12, %v2750_v60  ;;  %vm2742_vm13 = vcmp.ge.f32.partialorder %v2733_v11, 0.0  ;;  %v2751_v59 = vmul.f32 0.01, %v2733_v11  ;;  %v2575_v4 = vadd.f32 %v2561_v63, %v4674_v6  ;;  %v3724_v1 = vpop.f32.mrb[145].mxu1 }
 0x2e9   : > { %v3182_v14 = vpack.c.bf16 %v2759_v62, %v2759_v62  ;;  %v2564_v15 = vpop.f32.mrb[146].mxu1 }
 0x2ea   : > { %v2760_v18 = vsel %vm2742_vm13, %v2733_v11, %v2751_v59  ;;  %v2718_v5 = vadd.f32 %v4688_v13, %v2575_v4  ;;  %v3725_v45 = vpop.f32.mrb[147].mxu1 }
 0x2eb   : > { %2805 = vst.msk [vmem:[%s4693_s30 + $0x18] sm:$0xf] %vm1236_vm5, %v3182_v14  ;;  %v3183_v36 = vpack.c.bf16 %v2760_v18, %v2760_v18 }
 0x2ec   : > { %v2734_v17 = vadd.f32 %v4681_v28, %v2718_v5 }
 0x2ed   : > { %2806 = vst.msk [vmem:[%s4693_s30 + $0x1c] sm:$0xf] %vm1236_vm5, %v3183_v36 }
 0x2ee   : > { %vm2743_vm14 = vcmp.ge.f32.partialorder %v2734_v17, 0.0  ;;  %v2752_v42 = vmul.f32 0.01, %v2734_v17 }
 0x2f0   : > { %v2761_v16 = vsel %vm2743_vm14, %v2734_v17, %v2752_v42 }
 0x2f1   : > { %v3184_v6 = vpack.c.bf16 %v2761_v16, %v2761_v16 }
 0x2f3   : > { %2808 = vst.msk [vmem:[%s4693_s30 + $0x20] sm:$0x7] %vm2807_vm15, %v3184_v6 }
 0x2f4 PF: > { %s15_s18 = sadd.s32 1, %s3888_s18  }
 0x2f5   : > { %p12_p4 = scmp.ge.s32.totalorder %s15_s18, 4  }
 0x2f7   :  { %14 = sbr.rel (!%p12_p4) target bundleno = 1 (0x1), region = 81 }

// kernel: rnd_forward.5
= control target key start
LH: loop header
LB: loop body
LE: loop exit
PB: predicated region body
PF: predicated region fallthrough
CT: control target
= control target key end

     0   :  { %v818_v36 = vlaneseq  ;;  %v10738_v37 = vmov 1966171168   ;;  %s14105_s0 = inlined_call_operand.vmem [shape: bf16[2,3136], index: 0, kind: input, shape index: {}]   ;;  %s14106_s1 = inlined_call_operand.vmem [shape: bf16[3136,512], index: 1, kind: input, shape index: {}]   ;;  %s14107_s2 = inlined_call_operand.vmem [shape: f32[1,512], index: 2, kind: input, shape index: {}]   ;;  %s14108_s3 = inlined_call_operand.vmem [shape: bf16[512,512], index: 3, kind: input, shape index: {}]   ;;  %s14109_s4 = inlined_call_operand.vmem [shape: f32[1,512], index: 4, kind: input, shape index: {}]   ;;  %s14110_s5 = inlined_call_operand.vmem [shape: bf16[512,512], index: 5, kind: input, shape index: {}]   ;;  %s14111_s6 = inlined_call_operand.vmem [shape: f32[1,512], index: 6, kind: input, shape index: {}]   ;;  %s14112_s7 = inlined_call_operand.hbm [shape: f32[2,512], index: 7, kind: output, shape index: {}]  }
   0x1   :  { %v9149_v0 = vld [vmem:[%s14106_s1 + $0x4] ss:$16 sps:$4 sm:$0xff]   ;;  %v9151_v1 = vld [vmem:[%s14106_s1 + $0xc] ss:$16 sps:$4 sm:$0xff]   ;;  %v9153_v2 = vld [vmem:[%s14106_s1] ss:$16 sps:$4 sm:$0xff]   ;;  %v844_v38 = vunpack.c.l.s4 %v10738_v37 }
   0x2   :  { %4951 = vmatprep.subr.bf16.mxu0 %v9149_v0  ;;  %v9154_v3 = vld [vmem:[%s14106_s1 + $0x8] ss:$16 sps:$4 sm:$0xff]   ;;  %5484 = vmatprep.subr.bf16.mxu1 %v9151_v1  ;;  %v9155_v4 = vld [vmem:[%s14106_s1 + $0x24] ss:$16 sps:$4 sm:$0xff]   ;;  %v9157_v5 = vld [vmem:[%s14106_s1 + $0x2c] ss:$16 sps:$4 sm:$0xff]  }
   0x3   :  { %4952 = vmatpush1.bf16.msra.mxu0 %v9153_v2  ;;  %5485 = vmatpush1.bf16.msra.mxu1 %v9154_v3  ;;  %v9159_v6 = vld [vmem:[%s14106_s1 + $0x20] ss:$16 sps:$4 sm:$0xff]   ;;  %v9160_v7 = vld [vmem:[%s14106_s1 + $0x28] ss:$16 sps:$4 sm:$0xff]   ;;  %v9161_v8 = vld [vmem:[%s14106_s1 + $0x44] ss:$16 sps:$4 sm:$0xff]   ;;  %v845_v43 = vunpack.c.0.s8 %v844_v38 }
   0x4   :  { %4953 = vmatprep.subr.bf16.mxu0 %v9155_v4  ;;  %5486 = vmatprep.subr.bf16.mxu1 %v9157_v5  ;;  %v9163_v9 = vld [vmem:[%s14106_s1 + $0x4c] ss:$16 sps:$4 sm:$0xff]   ;;  %v9165_v10 = vld [vmem:[%s14106_s1 + $0x40] ss:$16 sps:$4 sm:$0xff]   ;;  %v9166_v11 = vld [vmem:[%s14106_s1 + $0x48] ss:$16 sps:$4 sm:$0xff]  }
   0x5   :  { %v9167_v12 = vld [vmem:[%s14106_s1 + $0x64] ss:$16 sps:$4 sm:$0xff]   ;;  %v9169_v13 = vld [vmem:[%s14106_s1 + $0x6c] ss:$16 sps:$4 sm:$0xff]   ;;  %v9171_v14 = vld [vmem:[%s14106_s1 + $0x60] ss:$16 sps:$4 sm:$0xff]  }
   0x6   :  { %v9172_v15 = vld [vmem:[%s14106_s1 + $0x68] ss:$16 sps:$4 sm:$0xff]   ;;  %v9173_v16 = vld [vmem:[%s14106_s1 + $0x84] ss:$16 sps:$4 sm:$0xff]   ;;  %v9175_v17 = vld [vmem:[%s14106_s1 + $0x8c] ss:$16 sps:$4 sm:$0xff]  }
   0x7   :  { %4954 = vmatpush1.bf16.msra.mxu0 %v9159_v6  ;;  %5487 = vmatpush1.bf16.msra.mxu1 %v9160_v7  ;;  %v9177_v18 = vld [vmem:[%s14106_s1 + $0x80] ss:$16 sps:$4 sm:$0xff]   ;;  %v9178_v19 = vld [vmem:[%s14106_s1 + $0x88] ss:$16 sps:$4 sm:$0xff]   ;;  %v9179_v20 = vld [vmem:[%s14106_s1 + $0xa4] ss:$16 sps:$4 sm:$0xff]  }
   0x8   :  { %4955 = vmatprep.subr.bf16.mxu0 %v9161_v8  ;;  %5488 = vmatprep.subr.bf16.mxu1 %v9163_v9  ;;  %v9181_v21 = vld [vmem:[%s14106_s1 + $0xac] ss:$16 sps:$4 sm:$0xff]   ;;  %v9183_v22 = vld [vmem:[%s14106_s1 + $0xa0] ss:$16 sps:$4 sm:$0xff]   ;;  %v9184_v23 = vld [vmem:[%s14106_s1 + $0xa8] ss:$16 sps:$4 sm:$0xff]  }
   0x9   :  { %v9185_v24 = vld [vmem:[%s14106_s1 + $0xc4] ss:$16 sps:$4 sm:$0xff]   ;;  %v9187_v25 = vld [vmem:[%s14106_s1 + $0xcc] ss:$16 sps:$4 sm:$0xff]   ;;  %v9189_v26 = vld [vmem:[%s14106_s1 + $0xc0] ss:$16 sps:$4 sm:$0xff]  }
   0xa   :  { %v9190_v27 = vld [vmem:[%s14106_s1 + $0xc8] ss:$16 sps:$4 sm:$0xff]   ;;  %v9191_v28 = vld [vmem:[%s14106_s1 + $0xe4] ss:$16 sps:$4 sm:$0xff]   ;;  %v9193_v29 = vld [vmem:[%s14106_s1 + $0xec] ss:$16 sps:$4 sm:$0xff]  }
   0xb   :  { %4956 = vmatpush1.bf16.msra.mxu0 %v9165_v10  ;;  %5489 = vmatpush1.bf16.msra.mxu1 %v9166_v11  ;;  %v9195_v30 = vld [vmem:[%s14106_s1 + $0xe0] ss:$16 sps:$4 sm:$0xff]   ;;  %v9196_v31 = vld [vmem:[%s14106_s1 + $0xe8] ss:$16 sps:$4 sm:$0xff]   ;;  %v9197_v32 = vld [vmem:[%s14106_s1 + $0x104] ss:$16 sps:$4 sm:$0xff]  }
   0xc   :  { %4957 = vmatprep.subr.bf16.mxu0 %v9167_v12  ;;  %5490 = vmatprep.subr.bf16.mxu1 %v9169_v13  ;;  %v9199_v33 = vld [vmem:[%s14106_s1 + $0x10c] ss:$16 sps:$4 sm:$0xff]   ;;  %v9201_v34 = vld [vmem:[%s14106_s1 + $0x100] ss:$16 sps:$4 sm:$0xff]   ;;  %v9202_v35 = vld [vmem:[%s14106_s1 + $0x108] ss:$16 sps:$4 sm:$0xff]  }
   0xd   :  { %v9203_v39 = vld [vmem:[%s14106_s1 + $0x124] ss:$16 sps:$4 sm:$0xff]   ;;  %v9205_v40 = vld [vmem:[%s14106_s1 + $0x12c] ss:$16 sps:$4 sm:$0xff]   ;;  %v9207_v41 = vld [vmem:[%s14106_s1 + $0x120] ss:$16 sps:$4 sm:$0xff]  }
   0xe   :  { %v10899_v42 = vshrl.u32 %v818_v36, 7  ;;  %v9208_v44 = vld [vmem:[%s14106_s1 + $0x128] ss:$16 sps:$4 sm:$0xff]   ;;  %v9209_v45 = vld [vmem:[%s14106_s1 + $0x144] ss:$16 sps:$4 sm:$0xff]  }
   0xf   :  { %4958 = vmatpush1.bf16.msra.mxu0 %v9171_v14  ;;  %5491 = vmatpush1.bf16.msra.mxu1 %v9172_v15  ;;  %v9211_v46 = vld [vmem:[%s14106_s1 + $0x14c] ss:$16 sps:$4 sm:$0xff]   ;;  %v9213_v47 = vld [vmem:[%s14106_s1 + $0x140] ss:$16 sps:$4 sm:$0xff]   ;;  %v9214_v48 = vld [vmem:[%s14106_s1 + $0x148] ss:$16 sps:$4 sm:$0xff]  }
  0x10   :  { %4959 = vmatprep.subr.bf16.mxu0 %v9173_v16  ;;  %5492 = vmatprep.subr.bf16.mxu1 %v9175_v17  ;;  %v10917_v49 = vsub.s32 %v845_v43, %v10899_v42  ;;  %v9215_v50 = vld [vmem:[%s14106_s1 + $0x164] ss:$16 sps:$4 sm:$0xff]   ;;  %v9217_v51 = vld [vmem:[%s14106_s1 + $0x16c] ss:$16 sps:$4 sm:$0xff]   ;;  %v9219_v53 = vld [vmem:[%s14106_s1 + $0x160] ss:$16 sps:$4 sm:$0xff]  }
  0x11   :  { %v10928_v52 = vld [vmem:[%s14105_s0] sm:$0xff]  ;;  %v9220_v55 = vld [vmem:[%s14106_s1 + $0x168] ss:$16 sps:$4 sm:$0xff]   ;;  %v9223_v57 = vld [vmem:[%s14106_s1 + $0x18c] ss:$16 sps:$4 sm:$0xff]  }
  0x12   :  { %v849_v54 = vrot.slane %v10928_v52, %v10917_v49  ;;  %v9221_v56 = vld [vmem:[%s14106_s1 + $0x184] ss:$16 sps:$4 sm:$0xff]   ;;  %v9225_v59 = vld [vmem:[%s14106_s1 + $0x180] ss:$16 sps:$4 sm:$0xff]   ;;  %v9226_v61 = vld [vmem:[%s14106_s1 + $0x188] ss:$16 sps:$4 sm:$0xff]  }
  0x13   :  { %4960 = vmatpush1.bf16.msra.mxu0 %v9177_v18  ;;  %5493 = vmatpush1.bf16.msra.mxu1 %v9178_v19  ;;  %v9227_v62 = vld [vmem:[%s14106_s1 + $0x1a4] ss:$16 sps:$4 sm:$0xff]   ;;  %v9229_v63 = vld [vmem:[%s14106_s1 + $0x1ac] ss:$16 sps:$4 sm:$0xff]   ;;  %v9231_v0 = vld [vmem:[%s14106_s1 + $0x1a0] ss:$16 sps:$4 sm:$0xff]  }
  0x14   :  { %4961 = vmatprep.subr.bf16.mxu0 %v9179_v20  ;;  %5494 = vmatprep.subr.bf16.mxu1 %v9181_v21  ;;  %v857_v58 = vcombine.high %v849_v54, %v849_v54  ;;  %v9232_v1 = vld [vmem:[%s14106_s1 + $0x1a8] ss:$16 sps:$4 sm:$0xff]   ;;  %v9233_v2 = vld [vmem:[%s14106_s1 + $0x1c4] ss:$16 sps:$4 sm:$0xff]   ;;  %v9235_v3 = vld [vmem:[%s14106_s1 + $0x1cc] ss:$16 sps:$4 sm:$0xff]   ;;  %v10997_v13 = vrot.slane %v849_v54, %v10917_v49 }
  0x15   :  { %v9237_v4 = vld [vmem:[%s14106_s1 + $0x1c0] ss:$16 sps:$4 sm:$0xff]   ;;  %v9238_v5 = vld [vmem:[%s14106_s1 + $0x1c8] ss:$16 sps:$4 sm:$0xff]   ;;  %v9239_v6 = vld [vmem:[%s14106_s1 + $0x1e4] ss:$16 sps:$4 sm:$0xff]  }
  0x16   :  { %v879_v60 = vrot.slane %v857_v58, %v10917_v49  ;;  %v9241_v7 = vld [vmem:[%s14106_s1 + $0x1ec] ss:$16 sps:$4 sm:$0xff]   ;;  %v9243_v8 = vld [vmem:[%s14106_s1 + $0x1e0] ss:$16 sps:$4 sm:$0xff]   ;;  %v9244_v9 = vld [vmem:[%s14106_s1 + $0x1e8] ss:$16 sps:$4 sm:$0xff]  }
  0x17   :  { %4962 = vmatpush1.bf16.msra.mxu0 %v9183_v22  ;;  %5495 = vmatpush1.bf16.msra.mxu1 %v9184_v23  ;;  %v9247_v10 = vld [vmem:[%s14106_s1 + $0x204] ss:$16 sps:$4 sm:$0xff]   ;;  %v9250_v11 = vld [vmem:[%s14106_s1 + $0x20c] ss:$16 sps:$4 sm:$0xff]   ;;  %v9245_v12 = vld [vmem:[%s14106_s1 + $0x200] ss:$16 sps:$4 sm:$0xff]  }
  0x18   :  { %4963 = vmatprep.subr.bf16.mxu0 %v9185_v24  ;;  %5496 = vmatprep.subr.bf16.mxu1 %v9187_v25  ;;  %v9248_v14 = vld [vmem:[%s14106_s1 + $0x208] ss:$16 sps:$4 sm:$0xff]   ;;  %v9253_v15 = vld [vmem:[%s14106_s1 + $0x224] ss:$16 sps:$4 sm:$0xff]   ;;  %v9256_v16 = vld [vmem:[%s14106_s1 + $0x22c] ss:$16 sps:$4 sm:$0xff]   ;;  %v889_v17 = vcombine.high %v879_v60, %v879_v60 }
  0x19   :  { %4983 = vmatprep.mubr.bf16.mxu0 %v879_v60  ;;  %5516 = vmatprep.mubr.bf16.mxu1 %v879_v60  ;;  %v9251_v18 = vld [vmem:[%s14106_s1 + $0x220] ss:$16 sps:$4 sm:$0xff]   ;;  %v9254_v19 = vld [vmem:[%s14106_s1 + $0x228] ss:$16 sps:$4 sm:$0xff]   ;;  %v9259_v20 = vld [vmem:[%s14106_s1 + $0x244] ss:$16 sps:$4 sm:$0xff]  }
  0x1a   :  { %v9262_v21 = vld [vmem:[%s14106_s1 + $0x24c] ss:$16 sps:$4 sm:$0xff]   ;;  %v9257_v22 = vld [vmem:[%s14106_s1 + $0x240] ss:$16 sps:$4 sm:$0xff]   ;;  %v9260_v23 = vld [vmem:[%s14106_s1 + $0x248] ss:$16 sps:$4 sm:$0xff]  }
  0x1b   :  { %4964 = vmatpush1.bf16.msra.mxu0 %v9189_v26  ;;  %5497 = vmatpush1.bf16.msra.mxu1 %v9190_v27  ;;  %v9265_v24 = vld [vmem:[%s14106_s1 + $0x264] ss:$16 sps:$4 sm:$0xff]   ;;  %v9268_v25 = vld [vmem:[%s14106_s1 + $0x26c] ss:$16 sps:$4 sm:$0xff]   ;;  %v9263_v26 = vld [vmem:[%s14106_s1 + $0x260] ss:$16 sps:$4 sm:$0xff]  }
  0x1c   :  { %4965 = vmatprep.subr.bf16.mxu0 %v9191_v28  ;;  %5498 = vmatprep.subr.bf16.mxu1 %v9193_v29  ;;  %v9266_v27 = vld [vmem:[%s14106_s1 + $0x268] ss:$16 sps:$4 sm:$0xff]   ;;  %v9271_v28 = vld [vmem:[%s14106_s1 + $0x284] ss:$16 sps:$4 sm:$0xff]   ;;  %v9274_v29 = vld [vmem:[%s14106_s1 + $0x28c] ss:$16 sps:$4 sm:$0xff]  }
  0x1d   :  { %v9283_v36 = vld [vmem:[%s14106_s1 + $0x2c4] ss:$16 sps:$4 sm:$0xff]   ;;  %v9286_v37 = vld [vmem:[%s14106_s1 + $0x2cc] ss:$16 sps:$4 sm:$0xff]   ;;  %v9281_v38 = vld [vmem:[%s14106_s1 + $0x2c0] ss:$16 sps:$4 sm:$0xff]  }
  0x1e   :  { %v9287_v43 = vld [vmem:[%s14106_s1 + $0x2e0] ss:$16 sps:$4 sm:$0xff]   ;;  %v9302_v54 = vld [vmem:[%s14106_s1 + $0x328] ss:$16 sps:$4 sm:$0xff]   ;;  %v9316_v60 = vld [vmem:[%s14106_s1 + $0x36c] ss:$16 sps:$4 sm:$0xff]  }
  0x1f   :  { %4966 = vmatpush1.bf16.msra.mxu0 %v9195_v30  ;;  %5499 = vmatpush1.bf16.msra.mxu1 %v9196_v31  ;;  %v9269_v30 = vld [vmem:[%s14106_s1 + $0x280] ss:$16 sps:$4 sm:$0xff]   ;;  %v9272_v31 = vld [vmem:[%s14106_s1 + $0x288] ss:$16 sps:$4 sm:$0xff]  }
  0x20   :  { %4967 = vmatprep.subr.bf16.mxu0 %v9197_v32  ;;  %5500 = vmatprep.subr.bf16.mxu1 %v9199_v33  ;;  %v9277_v32 = vld [vmem:[%s14106_s1 + $0x2a4] ss:$16 sps:$4 sm:$0xff]   ;;  %v9280_v33 = vld [vmem:[%s14106_s1 + $0x2ac] ss:$16 sps:$4 sm:$0xff]   ;;  %v9308_v58 = vld [vmem:[%s14106_s1 + $0x348] ss:$16 sps:$4 sm:$0xff]  }
  0x23   :  { %4968 = vmatpush1.bf16.msra.mxu0 %v9201_v34  ;;  %5501 = vmatpush1.bf16.msra.mxu1 %v9202_v35  ;;  %v9275_v34 = vld [vmem:[%s14106_s1 + $0x2a0] ss:$16 sps:$4 sm:$0xff]   ;;  %v9278_v35 = vld [vmem:[%s14106_s1 + $0x2a8] ss:$16 sps:$4 sm:$0xff]  }
  0x24   :  { %4969 = vmatprep.subr.bf16.mxu0 %v9203_v39  ;;  %5502 = vmatprep.subr.bf16.mxu1 %v9205_v40  ;;  %v9284_v39 = vld [vmem:[%s14106_s1 + $0x2c8] ss:$16 sps:$4 sm:$0xff]   ;;  %v9289_v40 = vld [vmem:[%s14106_s1 + $0x2e4] ss:$16 sps:$4 sm:$0xff]  }
  0x27   :  { %4970 = vmatpush1.bf16.msra.mxu0 %v9207_v41  ;;  %5503 = vmatpush1.bf16.msra.mxu1 %v9208_v44  ;;  %v9292_v41 = vld [vmem:[%s14106_s1 + $0x2ec] ss:$16 sps:$4 sm:$0xff]   ;;  %v9290_v44 = vld [vmem:[%s14106_s1 + $0x2e8] ss:$16 sps:$4 sm:$0xff]  }
  0x28   :  { %4971 = vmatprep.subr.bf16.mxu0 %v9209_v45  ;;  %5504 = vmatprep.subr.bf16.mxu1 %v9211_v46  ;;  %v9295_v45 = vld [vmem:[%s14106_s1 + $0x304] ss:$16 sps:$4 sm:$0xff]   ;;  %v9298_v46 = vld [vmem:[%s14106_s1 + $0x30c] ss:$16 sps:$4 sm:$0xff]  }
  0x2b   :  { %4972 = vmatpush1.bf16.msra.mxu0 %v9213_v47  ;;  %5505 = vmatpush1.bf16.msra.mxu1 %v9214_v48  ;;  %v9293_v47 = vld [vmem:[%s14106_s1 + $0x300] ss:$16 sps:$4 sm:$0xff]   ;;  %v9296_v48 = vld [vmem:[%s14106_s1 + $0x308] ss:$16 sps:$4 sm:$0xff]  }
  0x2c   :  { %4973 = vmatprep.subr.bf16.mxu0 %v9215_v50  ;;  %5506 = vmatprep.subr.bf16.mxu1 %v9217_v51  ;;  %v9301_v50 = vld [vmem:[%s14106_s1 + $0x324] ss:$16 sps:$4 sm:$0xff]   ;;  %v9304_v51 = vld [vmem:[%s14106_s1 + $0x32c] ss:$16 sps:$4 sm:$0xff]  }
  0x2f   :  { %4974 = vmatpush1.bf16.msra.mxu0 %v9219_v53  ;;  %5507 = vmatpush1.bf16.msra.mxu1 %v9220_v55  ;;  %v9299_v53 = vld [vmem:[%s14106_s1 + $0x320] ss:$16 sps:$4 sm:$0xff]   ;;  %v9307_v55 = vld [vmem:[%s14106_s1 + $0x344] ss:$16 sps:$4 sm:$0xff]  }
  0x30   :  { %4975 = vmatprep.subr.bf16.mxu0 %v9221_v56  ;;  %5508 = vmatprep.subr.bf16.mxu1 %v9223_v57  ;;  %v9310_v56 = vld [vmem:[%s14106_s1 + $0x34c] ss:$16 sps:$4 sm:$0xff]   ;;  %v9305_v57 = vld [vmem:[%s14106_s1 + $0x340] ss:$16 sps:$4 sm:$0xff]  }
  0x33   :  { %4976 = vmatpush1.bf16.msra.mxu0 %v9225_v59  ;;  %5509 = vmatpush1.bf16.msra.mxu1 %v9226_v61  ;;  %v9313_v59 = vld [vmem:[%s14106_s1 + $0x364] ss:$16 sps:$4 sm:$0xff]   ;;  %v9311_v61 = vld [vmem:[%s14106_s1 + $0x360] ss:$16 sps:$4 sm:$0xff]  }
  0x34   :  { %4977 = vmatprep.subr.bf16.mxu0 %v9227_v62  ;;  %5510 = vmatprep.subr.bf16.mxu1 %v9229_v63  ;;  %v9314_v62 = vld [vmem:[%s14106_s1 + $0x368] ss:$16 sps:$4 sm:$0xff]   ;;  %v9319_v63 = vld [vmem:[%s14106_s1 + $0x384] ss:$16 sps:$4 sm:$0xff]  }
  0x37   :  { %4978 = vmatpush1.bf16.msra.mxu0 %v9231_v0  ;;  %5511 = vmatpush1.bf16.msra.mxu1 %v9232_v1  ;;  %v9322_v0 = vld [vmem:[%s14106_s1 + $0x38c] ss:$16 sps:$4 sm:$0xff]   ;;  %v9317_v1 = vld [vmem:[%s14106_s1 + $0x380] ss:$16 sps:$4 sm:$0xff]  }
  0x38   :  { %4979 = vmatprep.subr.bf16.mxu0 %v9233_v2  ;;  %5512 = vmatprep.subr.bf16.mxu1 %v9235_v3  ;;  %v9320_v2 = vld [vmem:[%s14106_s1 + $0x388] ss:$16 sps:$4 sm:$0xff]   ;;  %v9325_v3 = vld [vmem:[%s14106_s1 + $0x3a4] ss:$16 sps:$4 sm:$0xff]  }
  0x3b   :  { %4980 = vmatpush1.bf16.msra.mxu0 %v9237_v4  ;;  %5513 = vmatpush1.bf16.msra.mxu1 %v9238_v5  ;;  %v9328_v4 = vld [vmem:[%s14106_s1 + $0x3ac] ss:$16 sps:$4 sm:$0xff]   ;;  %v9323_v5 = vld [vmem:[%s14106_s1 + $0x3a0] ss:$16 sps:$4 sm:$0xff]  }
  0x3c   :  { %4981 = vmatprep.subr.bf16.mxu0 %v9239_v6  ;;  %5514 = vmatprep.subr.bf16.mxu1 %v9241_v7  ;;  %v9326_v6 = vld [vmem:[%s14106_s1 + $0x3a8] ss:$16 sps:$4 sm:$0xff]   ;;  %v9331_v7 = vld [vmem:[%s14106_s1 + $0x3c4] ss:$16 sps:$4 sm:$0xff]  }
  0x3f   :  { %4982 = vmatpush1.bf16.msra.mxu0 %v9243_v8  ;;  %5515 = vmatpush1.bf16.msra.mxu1 %v9244_v9  ;;  %v9334_v8 = vld [vmem:[%s14106_s1 + $0x3cc] ss:$16 sps:$4 sm:$0xff]   ;;  %v842_v9 = vcombine.high %v10928_v52, %v10928_v52 }
  0x40   :  { %4992 = vmatprep.subr.bf16.mxu0 %v9247_v10  ;;  %5525 = vmatprep.subr.bf16.mxu1 %v9250_v11  ;;  %v9329_v10 = vld [vmem:[%s14106_s1 + $0x3c0] ss:$16 sps:$4 sm:$0xff]   ;;  %v9332_v11 = vld [vmem:[%s14106_s1 + $0x3c8] ss:$16 sps:$4 sm:$0xff]   ;;  %v9340_v52 = vld [vmem:[%s14106_s1 + $0x3ec] ss:$16 sps:$4 sm:$0xff]  }
  0x42   :  { %4984 = vmatmul.mubr.bf16.vlgmr.msra.gmra.mrb[0].mxu0 %v10997_v13  ;;  %5517 = vmatmul.mubr.bf16.vlgmr.msra.gmra.mrb[0].mxu1 %v10997_v13 }
  0x43   :  { %4993 = vmatpush1.bf16.msra.mxu0 %v9245_v12  ;;  %5526 = vmatpush1.bf16.msra.mxu1 %v9248_v14  ;;  %v9337_v12 = vld [vmem:[%s14106_s1 + $0x3e4] ss:$16 sps:$4 sm:$0xff]   ;;  %v11181_v14 = vrot.slane %v842_v9, %v10917_v49  ;;  %v9416_v9 = vld [vmem:[%s14106_s1 + $0x588] ss:$16 sps:$4 sm:$0xff]  }
  0x44   :  { %4994 = vmatprep.subr.bf16.mxu0 %v9253_v15  ;;  %5527 = vmatprep.subr.bf16.mxu1 %v9256_v16  ;;  %v9335_v15 = vld [vmem:[%s14106_s1 + $0x3e0] ss:$16 sps:$4 sm:$0xff]   ;;  %v9338_v16 = vld [vmem:[%s14106_s1 + $0x3e8] ss:$16 sps:$4 sm:$0xff]  }
  0x45   :  { %5024 = vmatprep.mubr.bf16.mxu0 %v889_v17  ;;  %5557 = vmatprep.mubr.bf16.mxu1 %v889_v17  ;;  %v9343_v17 = vld [vmem:[%s14106_s1 + $0x404] ss:$16 sps:$4 sm:$0xff]  }
  0x47   :  { %4995 = vmatpush1.bf16.msra.mxu0 %v9251_v18  ;;  %5528 = vmatpush1.bf16.msra.mxu1 %v9254_v19  ;;  %v9346_v18 = vld [vmem:[%s14106_s1 + $0x40c] ss:$16 sps:$4 sm:$0xff]   ;;  %v858_v19 = vcombine.high %v11181_v14, %v11181_v14 }
  0x48   :  { %4996 = vmatprep.subr.bf16.mxu0 %v9259_v20  ;;  %5529 = vmatprep.subr.bf16.mxu1 %v9262_v21  ;;  %v9341_v20 = vld [vmem:[%s14106_s1 + $0x400] ss:$16 sps:$4 sm:$0xff]   ;;  %v887_v21 = vcombine.high %v10997_v13, %v10997_v13 }
  0x49   :  { %v9347_v13 = vld [vmem:[%s14106_s1 + $0x420] ss:$16 sps:$4 sm:$0xff]  }
  0x4b   :  { %4997 = vmatpush1.bf16.msra.mxu0 %v9257_v22  ;;  %5530 = vmatpush1.bf16.msra.mxu1 %v9260_v23  ;;  %v9344_v22 = vld [vmem:[%s14106_s1 + $0x408] ss:$16 sps:$4 sm:$0xff]   ;;  %v9349_v23 = vld [vmem:[%s14106_s1 + $0x424] ss:$16 sps:$4 sm:$0xff]  }
  0x4c   :  { %4998 = vmatprep.subr.bf16.mxu0 %v9265_v24  ;;  %5531 = vmatprep.subr.bf16.mxu1 %v9268_v25  ;;  %v9352_v24 = vld [vmem:[%s14106_s1 + $0x42c] ss:$16 sps:$4 sm:$0xff]   ;;  %v11212_v25 = vrot.slane %v858_v19, %v10917_v49  ;;  %v9433_v19 = vld [vmem:[%s14106_s1 + $0x5e4] ss:$16 sps:$4 sm:$0xff]  }
  0x4f   :  { %4999 = vmatpush1.bf16.msra.mxu0 %v9263_v26  ;;  %5532 = vmatpush1.bf16.msra.mxu1 %v9266_v27  ;;  %v9350_v26 = vld [vmem:[%s14106_s1 + $0x428] ss:$16 sps:$4 sm:$0xff]   ;;  %v9355_v27 = vld [vmem:[%s14106_s1 + $0x444] ss:$16 sps:$4 sm:$0xff]  }
  0x50   :  { %5000 = vmatprep.subr.bf16.mxu0 %v9271_v28  ;;  %5533 = vmatprep.subr.bf16.mxu1 %v9274_v29  ;;  %v9358_v28 = vld [vmem:[%s14106_s1 + $0x44c] ss:$16 sps:$4 sm:$0xff]   ;;  %v9353_v29 = vld [vmem:[%s14106_s1 + $0x440] ss:$16 sps:$4 sm:$0xff]  }
  0x53   :  { %5001 = vmatpush1.bf16.msra.mxu0 %v9269_v30  ;;  %5534 = vmatpush1.bf16.msra.mxu1 %v9272_v31  ;;  %v9356_v30 = vld [vmem:[%s14106_s1 + $0x448] ss:$16 sps:$4 sm:$0xff]   ;;  %v9361_v31 = vld [vmem:[%s14106_s1 + $0x464] ss:$16 sps:$4 sm:$0xff]  }
  0x54   :  { %5002 = vmatprep.subr.bf16.mxu0 %v9277_v32  ;;  %5535 = vmatprep.subr.bf16.mxu1 %v9280_v33  ;;  %v9364_v32 = vld [vmem:[%s14106_s1 + $0x46c] ss:$16 sps:$4 sm:$0xff]   ;;  %v9359_v33 = vld [vmem:[%s14106_s1 + $0x460] ss:$16 sps:$4 sm:$0xff]  }
  0x57   :  { %5003 = vmatpush1.bf16.msra.mxu0 %v9275_v34  ;;  %5536 = vmatpush1.bf16.msra.mxu1 %v9278_v35  ;;  %v9362_v34 = vld [vmem:[%s14106_s1 + $0x468] ss:$16 sps:$4 sm:$0xff]   ;;  %v9367_v35 = vld [vmem:[%s14106_s1 + $0x484] ss:$16 sps:$4 sm:$0xff]  }
  0x58   :  { %5004 = vmatprep.subr.bf16.mxu0 %v9283_v36  ;;  %5537 = vmatprep.subr.bf16.mxu1 %v9286_v37  ;;  %v9370_v36 = vld [vmem:[%s14106_s1 + $0x48c] ss:$16 sps:$4 sm:$0xff]   ;;  %v9365_v37 = vld [vmem:[%s14106_s1 + $0x480] ss:$16 sps:$4 sm:$0xff]  }
  0x5b   :  { %5005 = vmatpush1.bf16.msra.mxu0 %v9281_v38  ;;  %5538 = vmatpush1.bf16.msra.mxu1 %v9284_v39  ;;  %v9368_v38 = vld [vmem:[%s14106_s1 + $0x488] ss:$16 sps:$4 sm:$0xff]   ;;  %v9373_v39 = vld [vmem:[%s14106_s1 + $0x4a4] ss:$16 sps:$4 sm:$0xff]  }
  0x5c   :  { %5006 = vmatprep.subr.bf16.mxu0 %v9289_v40  ;;  %5539 = vmatprep.subr.bf16.mxu1 %v9292_v41  ;;  %v9376_v40 = vld [vmem:[%s14106_s1 + $0x4ac] ss:$16 sps:$4 sm:$0xff]   ;;  %v9371_v41 = vld [vmem:[%s14106_s1 + $0x4a0] ss:$16 sps:$4 sm:$0xff]  }
  0x5f   :  { %5007 = vmatpush1.bf16.msra.mxu0 %v9287_v43  ;;  %5540 = vmatpush1.bf16.msra.mxu1 %v9290_v44  ;;  %v9374_v43 = vld [vmem:[%s14106_s1 + $0x4a8] ss:$16 sps:$4 sm:$0xff]   ;;  %v9379_v44 = vld [vmem:[%s14106_s1 + $0x4c4] ss:$16 sps:$4 sm:$0xff]  }
  0x60   :  { %5008 = vmatprep.subr.bf16.mxu0 %v9295_v45  ;;  %5541 = vmatprep.subr.bf16.mxu1 %v9298_v46  ;;  %v9382_v45 = vld [vmem:[%s14106_s1 + $0x4cc] ss:$16 sps:$4 sm:$0xff]   ;;  %v9377_v46 = vld [vmem:[%s14106_s1 + $0x4c0] ss:$16 sps:$4 sm:$0xff]  }
  0x63   :  { %5009 = vmatpush1.bf16.msra.mxu0 %v9293_v47  ;;  %5542 = vmatpush1.bf16.msra.mxu1 %v9296_v48  ;;  %v9380_v47 = vld [vmem:[%s14106_s1 + $0x4c8] ss:$16 sps:$4 sm:$0xff]   ;;  %v9385_v48 = vld [vmem:[%s14106_s1 + $0x4e4] ss:$16 sps:$4 sm:$0xff]  }
  0x64   :  { %5010 = vmatprep.subr.bf16.mxu0 %v9301_v50  ;;  %5543 = vmatprep.subr.bf16.mxu1 %v9304_v51  ;;  %v9388_v50 = vld [vmem:[%s14106_s1 + $0x4ec] ss:$16 sps:$4 sm:$0xff]   ;;  %v9383_v51 = vld [vmem:[%s14106_s1 + $0x4e0] ss:$16 sps:$4 sm:$0xff]  }
  0x67   :  { %5011 = vmatpush1.bf16.msra.mxu0 %v9299_v53  ;;  %5544 = vmatpush1.bf16.msra.mxu1 %v9302_v54  ;;  %v9386_v53 = vld [vmem:[%s14106_s1 + $0x4e8] ss:$16 sps:$4 sm:$0xff]   ;;  %v9391_v54 = vld [vmem:[%s14106_s1 + $0x504] ss:$16 sps:$4 sm:$0xff]  }
  0x68   :  { %5012 = vmatprep.subr.bf16.mxu0 %v9307_v55  ;;  %5545 = vmatprep.subr.bf16.mxu1 %v9310_v56  ;;  %v9394_v55 = vld [vmem:[%s14106_s1 + $0x50c] ss:$16 sps:$4 sm:$0xff]   ;;  %v9389_v56 = vld [vmem:[%s14106_s1 + $0x500] ss:$16 sps:$4 sm:$0xff]  }
  0x6b   :  { %5013 = vmatpush1.bf16.msra.mxu0 %v9305_v57  ;;  %5546 = vmatpush1.bf16.msra.mxu1 %v9308_v58  ;;  %v9392_v57 = vld [vmem:[%s14106_s1 + $0x508] ss:$16 sps:$4 sm:$0xff]   ;;  %v9397_v58 = vld [vmem:[%s14106_s1 + $0x524] ss:$16 sps:$4 sm:$0xff]  }
  0x6c   :  { %5014 = vmatprep.subr.bf16.mxu0 %v9313_v59  ;;  %5547 = vmatprep.subr.bf16.mxu1 %v9316_v60  ;;  %v9400_v59 = vld [vmem:[%s14106_s1 + $0x52c] ss:$16 sps:$4 sm:$0xff]   ;;  %v9395_v60 = vld [vmem:[%s14106_s1 + $0x520] ss:$16 sps:$4 sm:$0xff]  }
  0x6f   :  { %5015 = vmatpush1.bf16.msra.mxu0 %v9311_v61  ;;  %5548 = vmatpush1.bf16.msra.mxu1 %v9314_v62  ;;  %v9398_v61 = vld [vmem:[%s14106_s1 + $0x528] ss:$16 sps:$4 sm:$0xff]   ;;  %v9403_v62 = vld [vmem:[%s14106_s1 + $0x544] ss:$16 sps:$4 sm:$0xff]  }
  0x70   :  { %5016 = vmatprep.subr.bf16.mxu0 %v9319_v63  ;;  %5549 = vmatprep.subr.bf16.mxu1 %v9322_v0  ;;  %v9406_v63 = vld [vmem:[%s14106_s1 + $0x54c] ss:$16 sps:$4 sm:$0xff]   ;;  %v9401_v0 = vld [vmem:[%s14106_s1 + $0x540] ss:$16 sps:$4 sm:$0xff]  }
  0x73   :  { %5017 = vmatpush1.bf16.msra.mxu0 %v9317_v1  ;;  %5550 = vmatpush1.bf16.msra.mxu1 %v9320_v2  ;;  %v9404_v1 = vld [vmem:[%s14106_s1 + $0x548] ss:$16 sps:$4 sm:$0xff]   ;;  %v9409_v2 = vld [vmem:[%s14106_s1 + $0x564] ss:$16 sps:$4 sm:$0xff]  }
  0x74   :  { %5018 = vmatprep.subr.bf16.mxu0 %v9325_v3  ;;  %5551 = vmatprep.subr.bf16.mxu1 %v9328_v4  ;;  %v9412_v3 = vld [vmem:[%s14106_s1 + $0x56c] ss:$16 sps:$4 sm:$0xff]   ;;  %v9407_v4 = vld [vmem:[%s14106_s1 + $0x560] ss:$16 sps:$4 sm:$0xff]  }
  0x77   :  { %5019 = vmatpush1.bf16.msra.mxu0 %v9323_v5  ;;  %5552 = vmatpush1.bf16.msra.mxu1 %v9326_v6  ;;  %v9410_v5 = vld [vmem:[%s14106_s1 + $0x568] ss:$16 sps:$4 sm:$0xff]   ;;  %v9415_v6 = vld [vmem:[%s14106_s1 + $0x584] ss:$16 sps:$4 sm:$0xff]  }
  0x78   :  { %5020 = vmatprep.subr.bf16.mxu0 %v9331_v7  ;;  %5553 = vmatprep.subr.bf16.mxu1 %v9334_v8  ;;  %v9418_v7 = vld [vmem:[%s14106_s1 + $0x58c] ss:$16 sps:$4 sm:$0xff]   ;;  %v9413_v8 = vld [vmem:[%s14106_s1 + $0x580] ss:$16 sps:$4 sm:$0xff]  }
  0x7b   :  { %5021 = vmatpush1.bf16.msra.mxu0 %v9329_v10  ;;  %5554 = vmatpush1.bf16.msra.mxu1 %v9332_v11  ;;  %v9421_v10 = vld [vmem:[%s14106_s1 + $0x5a4] ss:$16 sps:$4 sm:$0xff]   ;;  %v9424_v11 = vld [vmem:[%s14106_s1 + $0x5ac] ss:$16 sps:$4 sm:$0xff]  }
  0x7c   :  { %5022 = vmatprep.subr.bf16.mxu0 %v9337_v12  ;;  %5555 = vmatprep.subr.bf16.mxu1 %v9340_v52  ;;  %v9419_v12 = vld [vmem:[%s14106_s1 + $0x5a0] ss:$16 sps:$4 sm:$0xff]   ;;  %v9422_v52 = vld [vmem:[%s14106_s1 + $0x5a8] ss:$16 sps:$4 sm:$0xff]  }
  0x7f   :  { %5023 = vmatpush1.bf16.msra.mxu0 %v9335_v15  ;;  %5556 = vmatpush1.bf16.msra.mxu1 %v9338_v16  ;;  %v9427_v15 = vld [vmem:[%s14106_s1 + $0x5c4] ss:$16 sps:$4 sm:$0xff]   ;;  %v9430_v16 = vld [vmem:[%s14106_s1 + $0x5cc] ss:$16 sps:$4 sm:$0xff]  }
  0x80   :  { %5033 = vmatprep.subr.bf16.mxu0 %v9343_v17  ;;  %5566 = vmatprep.subr.bf16.mxu1 %v9346_v18  ;;  %v9425_v17 = vld [vmem:[%s14106_s1 + $0x5c0] ss:$16 sps:$4 sm:$0xff]   ;;  %v9428_v18 = vld [vmem:[%s14106_s1 + $0x5c8] ss:$16 sps:$4 sm:$0xff]  }
  0x82   :  { %5025 = vmatmul.mubr.bf16.vlgmr.msra.gmra.mrb[0].mxu0 %v887_v21  ;;  %5558 = vmatmul.mubr.bf16.vlgmr.msra.gmra.mrb[0].mxu1 %v887_v21  ;;  %v9431_v21 = vld [vmem:[%s14106_s1 + $0x5e0] ss:$16 sps:$4 sm:$0xff]  }
  0x83   :  { %5034 = vmatpush1.bf16.msra.mxu0 %v9341_v20  ;;  %5567 = vmatpush1.bf16.msra.mxu1 %v9344_v22  ;;  %v9436_v20 = vld [vmem:[%s14106_s1 + $0x5ec] ss:$16 sps:$4 sm:$0xff]   ;;  %v9434_v22 = vld [vmem:[%s14106_s1 + $0x5e8] ss:$16 sps:$4 sm:$0xff]  }
  0x84   :  { %5035 = vmatprep.subr.bf16.mxu0 %v9349_v23  ;;  %5568 = vmatprep.subr.bf16.mxu1 %v9352_v24  ;;  %v9440_v23 = vld [vmem:[%s14106_s1 + $0x604] ss:$16 sps:$4 sm:$0xff]   ;;  %v9443_v24 = vld [vmem:[%s14106_s1 + $0x60c] ss:$16 sps:$4 sm:$0xff]  }
  0x85   :  { %5065 = vmatprep.mubr.bf16.mxu0 %v11212_v25  ;;  %5598 = vmatprep.mubr.bf16.mxu1 %v11212_v25 }
  0x87   :  { %5036 = vmatpush1.bf16.msra.mxu0 %v9347_v13  ;;  %5569 = vmatpush1.bf16.msra.mxu1 %v9350_v26  ;;  %v9438_v13 = vld [vmem:[%s14106_s1 + $0x600] ss:$16 sps:$4 sm:$0xff]   ;;  %v11401_v26 = vrot.slane %v11181_v14, %v10917_v49  ;;  %v890_v14 = vcombine.high %v11212_v25, %v11212_v25  ;;  %v9452_v25 = vld [vmem:[%s14106_s1 + $0x644] ss:$16 sps:$4 sm:$0xff]  }
  0x88   :  { %5037 = vmatprep.subr.bf16.mxu0 %v9355_v27  ;;  %5570 = vmatprep.subr.bf16.mxu1 %v9358_v28  ;;  %v9441_v27 = vld [vmem:[%s14106_s1 + $0x608] ss:$16 sps:$4 sm:$0xff]   ;;  %v9446_v28 = vld [vmem:[%s14106_s1 + $0x624] ss:$16 sps:$4 sm:$0xff]  }
  0x8b   :  { %5038 = vmatpush1.bf16.msra.mxu0 %v9353_v29  ;;  %5571 = vmatpush1.bf16.msra.mxu1 %v9356_v30  ;;  %v9449_v29 = vld [vmem:[%s14106_s1 + $0x62c] ss:$16 sps:$4 sm:$0xff]   ;;  %v9444_v30 = vld [vmem:[%s14106_s1 + $0x620] ss:$16 sps:$4 sm:$0xff]  }
  0x8c   :  { %5039 = vmatprep.subr.bf16.mxu0 %v9361_v31  ;;  %5572 = vmatprep.subr.bf16.mxu1 %v9364_v32  ;;  %v9447_v31 = vld [vmem:[%s14106_s1 + $0x628] ss:$16 sps:$4 sm:$0xff]   ;;  %v9455_v32 = vld [vmem:[%s14106_s1 + $0x64c] ss:$16 sps:$4 sm:$0xff]  }
  0x8f   :  { %5040 = vmatpush1.bf16.msra.mxu0 %v9359_v33  ;;  %5573 = vmatpush1.bf16.msra.mxu1 %v9362_v34  ;;  %v9450_v33 = vld [vmem:[%s14106_s1 + $0x640] ss:$16 sps:$4 sm:$0xff]   ;;  %v9453_v34 = vld [vmem:[%s14106_s1 + $0x648] ss:$16 sps:$4 sm:$0xff]  }
  0x90   :  { %5041 = vmatprep.subr.bf16.mxu0 %v9367_v35  ;;  %5574 = vmatprep.subr.bf16.mxu1 %v9370_v36  ;;  %v9458_v35 = vld [vmem:[%s14106_s1 + $0x664] ss:$16 sps:$4 sm:$0xff]   ;;  %v9461_v36 = vld [vmem:[%s14106_s1 + $0x66c] ss:$16 sps:$4 sm:$0xff]  }
  0x93   :  { %5042 = vmatpush1.bf16.msra.mxu0 %v9365_v37  ;;  %5575 = vmatpush1.bf16.msra.mxu1 %v9368_v38  ;;  %v9456_v37 = vld [vmem:[%s14106_s1 + $0x660] ss:$16 sps:$4 sm:$0xff]   ;;  %v9459_v38 = vld [vmem:[%s14106_s1 + $0x668] ss:$16 sps:$4 sm:$0xff]  }
  0x94   :  { %5043 = vmatprep.subr.bf16.mxu0 %v9373_v39  ;;  %5576 = vmatprep.subr.bf16.mxu1 %v9376_v40  ;;  %v9464_v39 = vld [vmem:[%s14106_s1 + $0x684] ss:$16 sps:$4 sm:$0xff]   ;;  %v9467_v40 = vld [vmem:[%s14106_s1 + $0x68c] ss:$16 sps:$4 sm:$0xff]  }
  0x97   :  { %5044 = vmatpush1.bf16.msra.mxu0 %v9371_v41  ;;  %5577 = vmatpush1.bf16.msra.mxu1 %v9374_v43  ;;  %v9462_v41 = vld [vmem:[%s14106_s1 + $0x680] ss:$16 sps:$4 sm:$0xff]   ;;  %v9465_v43 = vld [vmem:[%s14106_s1 + $0x688] ss:$16 sps:$4 sm:$0xff]  }
  0x98   :  { %5045 = vmatprep.subr.bf16.mxu0 %v9379_v44  ;;  %5578 = vmatprep.subr.bf16.mxu1 %v9382_v45  ;;  %v9470_v44 = vld [vmem:[%s14106_s1 + $0x6a4] ss:$16 sps:$4 sm:$0xff]   ;;  %v9473_v45 = vld [vmem:[%s14106_s1 + $0x6ac] ss:$16 sps:$4 sm:$0xff]  }
  0x9b   :  { %5046 = vmatpush1.bf16.msra.mxu0 %v9377_v46  ;;  %5579 = vmatpush1.bf16.msra.mxu1 %v9380_v47  ;;  %v9468_v46 = vld [vmem:[%s14106_s1 + $0x6a0] ss:$16 sps:$4 sm:$0xff]   ;;  %v9471_v47 = vld [vmem:[%s14106_s1 + $0x6a8] ss:$16 sps:$4 sm:$0xff]  }
  0x9c   :  { %5047 = vmatprep.subr.bf16.mxu0 %v9385_v48  ;;  %5580 = vmatprep.subr.bf16.mxu1 %v9388_v50  ;;  %v9476_v48 = vld [vmem:[%s14106_s1 + $0x6c4] ss:$16 sps:$4 sm:$0xff]   ;;  %v9479_v50 = vld [vmem:[%s14106_s1 + $0x6cc] ss:$16 sps:$4 sm:$0xff]  }
  0x9f   :  { %5048 = vmatpush1.bf16.msra.mxu0 %v9383_v51  ;;  %5581 = vmatpush1.bf16.msra.mxu1 %v9386_v53  ;;  %v9474_v51 = vld [vmem:[%s14106_s1 + $0x6c0] ss:$16 sps:$4 sm:$0xff]   ;;  %v9477_v53 = vld [vmem:[%s14106_s1 + $0x6c8] ss:$16 sps:$4 sm:$0xff]  }
  0xa0   :  { %5049 = vmatprep.subr.bf16.mxu0 %v9391_v54  ;;  %5582 = vmatprep.subr.bf16.mxu1 %v9394_v55  ;;  %v9482_v54 = vld [vmem:[%s14106_s1 + $0x6e4] ss:$16 sps:$4 sm:$0xff]   ;;  %v9485_v55 = vld [vmem:[%s14106_s1 + $0x6ec] ss:$16 sps:$4 sm:$0xff]  }
  0xa3   :  { %5050 = vmatpush1.bf16.msra.mxu0 %v9389_v56  ;;  %5583 = vmatpush1.bf16.msra.mxu1 %v9392_v57  ;;  %v9480_v56 = vld [vmem:[%s14106_s1 + $0x6e0] ss:$16 sps:$4 sm:$0xff]   ;;  %v9483_v57 = vld [vmem:[%s14106_s1 + $0x6e8] ss:$16 sps:$4 sm:$0xff]  }
  0xa4   :  { %5051 = vmatprep.subr.bf16.mxu0 %v9397_v58  ;;  %5584 = vmatprep.subr.bf16.mxu1 %v9400_v59  ;;  %v9488_v58 = vld [vmem:[%s14106_s1 + $0x704] ss:$16 sps:$4 sm:$0xff]   ;;  %v9491_v59 = vld [vmem:[%s14106_s1 + $0x70c] ss:$16 sps:$4 sm:$0xff]  }
  0xa7   :  { %5052 = vmatpush1.bf16.msra.mxu0 %v9395_v60  ;;  %5585 = vmatpush1.bf16.msra.mxu1 %v9398_v61  ;;  %v9486_v60 = vld [vmem:[%s14106_s1 + $0x700] ss:$16 sps:$4 sm:$0xff]   ;;  %v9489_v61 = vld [vmem:[%s14106_s1 + $0x708] ss:$16 sps:$4 sm:$0xff]  }
  0xa8   :  { %5053 = vmatprep.subr.bf16.mxu0 %v9403_v62  ;;  %5586 = vmatprep.subr.bf16.mxu1 %v9406_v63  ;;  %v9494_v62 = vld [vmem:[%s14106_s1 + $0x724] ss:$16 sps:$4 sm:$0xff]   ;;  %v9497_v63 = vld [vmem:[%s14106_s1 + $0x72c] ss:$16 sps:$4 sm:$0xff]  }
  0xab   :  { %5054 = vmatpush1.bf16.msra.mxu0 %v9401_v0  ;;  %5587 = vmatpush1.bf16.msra.mxu1 %v9404_v1  ;;  %v9492_v0 = vld [vmem:[%s14106_s1 + $0x720] ss:$16 sps:$4 sm:$0xff]   ;;  %v9495_v1 = vld [vmem:[%s14106_s1 + $0x728] ss:$16 sps:$4 sm:$0xff]  }
  0xac   :  { %5055 = vmatprep.subr.bf16.mxu0 %v9409_v2  ;;  %5588 = vmatprep.subr.bf16.mxu1 %v9412_v3  ;;  %v9500_v2 = vld [vmem:[%s14106_s1 + $0x744] ss:$16 sps:$4 sm:$0xff]   ;;  %v9503_v3 = vld [vmem:[%s14106_s1 + $0x74c] ss:$16 sps:$4 sm:$0xff]  }
  0xaf   :  { %5056 = vmatpush1.bf16.msra.mxu0 %v9407_v4  ;;  %5589 = vmatpush1.bf16.msra.mxu1 %v9410_v5  ;;  %v9498_v4 = vld [vmem:[%s14106_s1 + $0x740] ss:$16 sps:$4 sm:$0xff]   ;;  %v9501_v5 = vld [vmem:[%s14106_s1 + $0x748] ss:$16 sps:$4 sm:$0xff]  }
  0xb0   :  { %5057 = vmatprep.subr.bf16.mxu0 %v9415_v6  ;;  %5590 = vmatprep.subr.bf16.mxu1 %v9418_v7  ;;  %v9506_v6 = vld [vmem:[%s14106_s1 + $0x764] ss:$16 sps:$4 sm:$0xff]   ;;  %v9509_v7 = vld [vmem:[%s14106_s1 + $0x76c] ss:$16 sps:$4 sm:$0xff]  }
  0xb3   :  { %5058 = vmatpush1.bf16.msra.mxu0 %v9413_v8  ;;  %5591 = vmatpush1.bf16.msra.mxu1 %v9416_v9  ;;  %v9504_v8 = vld [vmem:[%s14106_s1 + $0x760] ss:$16 sps:$4 sm:$0xff]   ;;  %v9507_v9 = vld [vmem:[%s14106_s1 + $0x768] ss:$16 sps:$4 sm:$0xff]  }
  0xb4   :  { %5059 = vmatprep.subr.bf16.mxu0 %v9421_v10  ;;  %5592 = vmatprep.subr.bf16.mxu1 %v9424_v11  ;;  %v9512_v10 = vld [vmem:[%s14106_s1 + $0x784] ss:$16 sps:$4 sm:$0xff]   ;;  %v9515_v11 = vld [vmem:[%s14106_s1 + $0x78c] ss:$16 sps:$4 sm:$0xff]  }
  0xb7   :  { %5060 = vmatpush1.bf16.msra.mxu0 %v9419_v12  ;;  %5593 = vmatpush1.bf16.msra.mxu1 %v9422_v52  ;;  %v9510_v12 = vld [vmem:[%s14106_s1 + $0x780] ss:$16 sps:$4 sm:$0xff]   ;;  %v9513_v52 = vld [vmem:[%s14106_s1 + $0x788] ss:$16 sps:$4 sm:$0xff]  }
  0xb8   :  { %5061 = vmatprep.subr.bf16.mxu0 %v9427_v15  ;;  %5594 = vmatprep.subr.bf16.mxu1 %v9430_v16  ;;  %v9518_v15 = vld [vmem:[%s14106_s1 + $0x7a4] ss:$16 sps:$4 sm:$0xff]   ;;  %v9521_v16 = vld [vmem:[%s14106_s1 + $0x7ac] ss:$16 sps:$4 sm:$0xff]  }
  0xbb   :  { %5062 = vmatpush1.bf16.msra.mxu0 %v9425_v17  ;;  %5595 = vmatpush1.bf16.msra.mxu1 %v9428_v18  ;;  %v9516_v17 = vld [vmem:[%s14106_s1 + $0x7a0] ss:$16 sps:$4 sm:$0xff]   ;;  %v9519_v18 = vld [vmem:[%s14106_s1 + $0x7a8] ss:$16 sps:$4 sm:$0xff]  }
  0xbc   :  { %5063 = vmatprep.subr.bf16.mxu0 %v9433_v19  ;;  %5596 = vmatprep.subr.bf16.mxu1 %v9436_v20  ;;  %v9524_v19 = vld [vmem:[%s14106_s1 + $0x7c4] ss:$16 sps:$4 sm:$0xff]   ;;  %v9527_v20 = vld [vmem:[%s14106_s1 + $0x7cc] ss:$16 sps:$4 sm:$0xff]  }
  0xbf   :  { %5064 = vmatpush1.bf16.msra.mxu0 %v9431_v21  ;;  %5597 = vmatpush1.bf16.msra.mxu1 %v9434_v22  ;;  %v11575_v21 = vld.sshfl [vmem:[%s14105_s0 + $0x8] sm:$0xff pattern:$0x75316420]  ;;  %v9522_v22 = vld [vmem:[%s14106_s1 + $0x7c0] ss:$16 sps:$4 sm:$0xff]  }
  0xc0   :  { %5074 = vmatprep.subr.bf16.mxu0 %v9440_v23  ;;  %5607 = vmatprep.subr.bf16.mxu1 %v9443_v24  ;;  %v9525_v23 = vld [vmem:[%s14106_s1 + $0x7c8] ss:$16 sps:$4 sm:$0xff]   ;;  %v9530_v24 = vld [vmem:[%s14106_s1 + $0x7e4] ss:$16 sps:$4 sm:$0xff]  }
  0xc2   :  { %5066 = vmatmul.mubr.bf16.vlgmr.msra.gmra.mrb[0].mxu0 %v11401_v26  ;;  %5599 = vmatmul.mubr.bf16.vlgmr.msra.gmra.mrb[0].mxu1 %v11401_v26 }
  0xc3   :  { %5075 = vmatpush1.bf16.msra.mxu0 %v9438_v13  ;;  %5608 = vmatpush1.bf16.msra.mxu1 %v9441_v27  ;;  %v9533_v13 = vld [vmem:[%s14106_s1 + $0x7ec] ss:$16 sps:$4 sm:$0xff]   ;;  %v9528_v27 = vld [vmem:[%s14106_s1 + $0x7e0] ss:$16 sps:$4 sm:$0xff]  }
  0xc4   :  { %5076 = vmatprep.subr.bf16.mxu0 %v9446_v28  ;;  %5609 = vmatprep.subr.bf16.mxu1 %v9449_v29  ;;  %v9531_v28 = vld [vmem:[%s14106_s1 + $0x7e8] ss:$16 sps:$4 sm:$0xff]   ;;  %v9536_v29 = vld [vmem:[%s14106_s1 + $0x804] ss:$16 sps:$4 sm:$0xff]  }
  0xc5   :  { %5106 = vmatprep.mubr.bf16.mxu0 %v890_v14  ;;  %5639 = vmatprep.mubr.bf16.mxu1 %v890_v14  ;;  %v9539_v14 = vld [vmem:[%s14106_s1 + $0x80c] ss:$16 sps:$4 sm:$0xff]  }
  0xc7   :  { %5077 = vmatpush1.bf16.msra.mxu0 %v9444_v30  ;;  %5610 = vmatpush1.bf16.msra.mxu1 %v9447_v31  ;;  %v906_v30 = vcombine.high %v11575_v21, %v11575_v21  ;;  %v888_v31 = vcombine.high %v11401_v26, %v11401_v26  ;;  %v9545_v26 = vld [vmem:[%s14106_s1 + $0x82c] ss:$16 sps:$4 sm:$0xff]  }
  0xc8   :  { %5078 = vmatprep.subr.bf16.mxu0 %v9452_v25  ;;  %5611 = vmatprep.subr.bf16.mxu1 %v9455_v32  ;;  %v9534_v25 = vld [vmem:[%s14106_s1 + $0x800] ss:$16 sps:$4 sm:$0xff]   ;;  %v9537_v32 = vld [vmem:[%s14106_s1 + $0x808] ss:$16 sps:$4 sm:$0xff]  }
  0xcb   :  { %5079 = vmatpush1.bf16.msra.mxu0 %v9450_v33  ;;  %5612 = vmatpush1.bf16.msra.mxu1 %v9453_v34  ;;  %v9542_v33 = vld [vmem:[%s14106_s1 + $0x824] ss:$16 sps:$4 sm:$0xff]   ;;  %v11618_v34 = vrot.slane %v906_v30, %v10917_v49 }
  0xcc   :  { %5080 = vmatprep.subr.bf16.mxu0 %v9458_v35  ;;  %5613 = vmatprep.subr.bf16.mxu1 %v9461_v36  ;;  %v9540_v35 = vld [vmem:[%s14106_s1 + $0x820] ss:$16 sps:$4 sm:$0xff]   ;;  %v9543_v36 = vld [vmem:[%s14106_s1 + $0x828] ss:$16 sps:$4 sm:$0xff]   ;;  %v9626_v30 = vld [vmem:[%s14106_s1 + $0x9e4] ss:$16 sps:$4 sm:$0xff]  }
  0xcf   :  { %5081 = vmatpush1.bf16.msra.mxu0 %v9456_v37  ;;  %5614 = vmatpush1.bf16.msra.mxu1 %v9459_v38  ;;  %v9548_v37 = vld [vmem:[%s14106_s1 + $0x844] ss:$16 sps:$4 sm:$0xff]   ;;  %v9551_v38 = vld [vmem:[%s14106_s1 + $0x84c] ss:$16 sps:$4 sm:$0xff]  }
  0xd0   :  { %5082 = vmatprep.subr.bf16.mxu0 %v9464_v39  ;;  %5615 = vmatprep.subr.bf16.mxu1 %v9467_v40  ;;  %v9546_v39 = vld [vmem:[%s14106_s1 + $0x840] ss:$16 sps:$4 sm:$0xff]   ;;  %v9549_v40 = vld [vmem:[%s14106_s1 + $0x848] ss:$16 sps:$4 sm:$0xff]  }
  0xd3   :  { %5083 = vmatpush1.bf16.msra.mxu0 %v9462_v41  ;;  %5616 = vmatpush1.bf16.msra.mxu1 %v9465_v43  ;;  %v9554_v41 = vld [vmem:[%s14106_s1 + $0x864] ss:$16 sps:$4 sm:$0xff]   ;;  %v9557_v43 = vld [vmem:[%s14106_s1 + $0x86c] ss:$16 sps:$4 sm:$0xff]  }
  0xd4   :  { %5084 = vmatprep.subr.bf16.mxu0 %v9470_v44  ;;  %5617 = vmatprep.subr.bf16.mxu1 %v9473_v45  ;;  %v9552_v44 = vld [vmem:[%s14106_s1 + $0x860] ss:$16 sps:$4 sm:$0xff]   ;;  %v9555_v45 = vld [vmem:[%s14106_s1 + $0x868] ss:$16 sps:$4 sm:$0xff]  }
  0xd7   :  { %5085 = vmatpush1.bf16.msra.mxu0 %v9468_v46  ;;  %5618 = vmatpush1.bf16.msra.mxu1 %v9471_v47  ;;  %v9560_v46 = vld [vmem:[%s14106_s1 + $0x884] ss:$16 sps:$4 sm:$0xff]   ;;  %v9563_v47 = vld [vmem:[%s14106_s1 + $0x88c] ss:$16 sps:$4 sm:$0xff]  }
  0xd8   :  { %5086 = vmatprep.subr.bf16.mxu0 %v9476_v48  ;;  %5619 = vmatprep.subr.bf16.mxu1 %v9479_v50  ;;  %v9558_v48 = vld [vmem:[%s14106_s1 + $0x880] ss:$16 sps:$4 sm:$0xff]   ;;  %v9561_v50 = vld [vmem:[%s14106_s1 + $0x888] ss:$16 sps:$4 sm:$0xff]  }
  0xdb   :  { %5087 = vmatpush1.bf16.msra.mxu0 %v9474_v51  ;;  %5620 = vmatpush1.bf16.msra.mxu1 %v9477_v53  ;;  %v9566_v51 = vld [vmem:[%s14106_s1 + $0x8a4] ss:$16 sps:$4 sm:$0xff]   ;;  %v9569_v53 = vld [vmem:[%s14106_s1 + $0x8ac] ss:$16 sps:$4 sm:$0xff]  }
  0xdc   :  { %5088 = vmatprep.subr.bf16.mxu0 %v9482_v54  ;;  %5621 = vmatprep.subr.bf16.mxu1 %v9485_v55  ;;  %v9564_v54 = vld [vmem:[%s14106_s1 + $0x8a0] ss:$16 sps:$4 sm:$0xff]   ;;  %v9567_v55 = vld [vmem:[%s14106_s1 + $0x8a8] ss:$16 sps:$4 sm:$0xff]  }
  0xdf   :  { %5089 = vmatpush1.bf16.msra.mxu0 %v9480_v56  ;;  %5622 = vmatpush1.bf16.msra.mxu1 %v9483_v57  ;;  %v9572_v56 = vld [vmem:[%s14106_s1 + $0x8c4] ss:$16 sps:$4 sm:$0xff]   ;;  %v9575_v57 = vld [vmem:[%s14106_s1 + $0x8cc] ss:$16 sps:$4 sm:$0xff]  }
  0xe0   :  { %5090 = vmatprep.subr.bf16.mxu0 %v9488_v58  ;;  %5623 = vmatprep.subr.bf16.mxu1 %v9491_v59  ;;  %v9570_v58 = vld [vmem:[%s14106_s1 + $0x8c0] ss:$16 sps:$4 sm:$0xff]   ;;  %v9573_v59 = vld [vmem:[%s14106_s1 + $0x8c8] ss:$16 sps:$4 sm:$0xff]  }
  0xe3   :  { %5091 = vmatpush1.bf16.msra.mxu0 %v9486_v60  ;;  %5624 = vmatpush1.bf16.msra.mxu1 %v9489_v61  ;;  %v9578_v60 = vld [vmem:[%s14106_s1 + $0x8e4] ss:$16 sps:$4 sm:$0xff]   ;;  %v9581_v61 = vld [vmem:[%s14106_s1 + $0x8ec] ss:$16 sps:$4 sm:$0xff]  }
  0xe4   :  { %5092 = vmatprep.subr.bf16.mxu0 %v9494_v62  ;;  %5625 = vmatprep.subr.bf16.mxu1 %v9497_v63  ;;  %v9576_v62 = vld [vmem:[%s14106_s1 + $0x8e0] ss:$16 sps:$4 sm:$0xff]   ;;  %v9579_v63 = vld [vmem:[%s14106_s1 + $0x8e8] ss:$16 sps:$4 sm:$0xff]  }
  0xe7   :  { %5093 = vmatpush1.bf16.msra.mxu0 %v9492_v0  ;;  %5626 = vmatpush1.bf16.msra.mxu1 %v9495_v1  ;;  %v9584_v0 = vld [vmem:[%s14106_s1 + $0x904] ss:$16 sps:$4 sm:$0xff]   ;;  %v9587_v1 = vld [vmem:[%s14106_s1 + $0x90c] ss:$16 sps:$4 sm:$0xff]  }
  0xe8   :  { %5094 = vmatprep.subr.bf16.mxu0 %v9500_v2  ;;  %5627 = vmatprep.subr.bf16.mxu1 %v9503_v3  ;;  %v9582_v2 = vld [vmem:[%s14106_s1 + $0x900] ss:$16 sps:$4 sm:$0xff]   ;;  %v9585_v3 = vld [vmem:[%s14106_s1 + $0x908] ss:$16 sps:$4 sm:$0xff]  }
  0xeb   :  { %5095 = vmatpush1.bf16.msra.mxu0 %v9498_v4  ;;  %5628 = vmatpush1.bf16.msra.mxu1 %v9501_v5  ;;  %v9590_v4 = vld [vmem:[%s14106_s1 + $0x924] ss:$16 sps:$4 sm:$0xff]   ;;  %v9593_v5 = vld [vmem:[%s14106_s1 + $0x92c] ss:$16 sps:$4 sm:$0xff]  }
  0xec   :  { %5096 = vmatprep.subr.bf16.mxu0 %v9506_v6  ;;  %5629 = vmatprep.subr.bf16.mxu1 %v9509_v7  ;;  %v9588_v6 = vld [vmem:[%s14106_s1 + $0x920] ss:$16 sps:$4 sm:$0xff]   ;;  %v9591_v7 = vld [vmem:[%s14106_s1 + $0x928] ss:$16 sps:$4 sm:$0xff]  }
  0xef   :  { %5097 = vmatpush1.bf16.msra.mxu0 %v9504_v8  ;;  %5630 = vmatpush1.bf16.msra.mxu1 %v9507_v9  ;;  %v9596_v8 = vld [vmem:[%s14106_s1 + $0x944] ss:$16 sps:$4 sm:$0xff]   ;;  %v9599_v9 = vld [vmem:[%s14106_s1 + $0x94c] ss:$16 sps:$4 sm:$0xff]  }
  0xf0   :  { %5098 = vmatprep.subr.bf16.mxu0 %v9512_v10  ;;  %5631 = vmatprep.subr.bf16.mxu1 %v9515_v11  ;;  %v9594_v10 = vld [vmem:[%s14106_s1 + $0x940] ss:$16 sps:$4 sm:$0xff]   ;;  %v9597_v11 = vld [vmem:[%s14106_s1 + $0x948] ss:$16 sps:$4 sm:$0xff]  }
  0xf3   :  { %5099 = vmatpush1.bf16.msra.mxu0 %v9510_v12  ;;  %5632 = vmatpush1.bf16.msra.mxu1 %v9513_v52  ;;  %v9602_v12 = vld [vmem:[%s14106_s1 + $0x964] ss:$16 sps:$4 sm:$0xff]   ;;  %v9605_v52 = vld [vmem:[%s14106_s1 + $0x96c] ss:$16 sps:$4 sm:$0xff]  }
  0xf4   :  { %5100 = vmatprep.subr.bf16.mxu0 %v9518_v15  ;;  %5633 = vmatprep.subr.bf16.mxu1 %v9521_v16  ;;  %v9600_v15 = vld [vmem:[%s14106_s1 + $0x960] ss:$16 sps:$4 sm:$0xff]   ;;  %v9603_v16 = vld [vmem:[%s14106_s1 + $0x968] ss:$16 sps:$4 sm:$0xff]  }
  0xf7   :  { %5101 = vmatpush1.bf16.msra.mxu0 %v9516_v17  ;;  %5634 = vmatpush1.bf16.msra.mxu1 %v9519_v18  ;;  %v9608_v17 = vld [vmem:[%s14106_s1 + $0x984] ss:$16 sps:$4 sm:$0xff]   ;;  %v9611_v18 = vld [vmem:[%s14106_s1 + $0x98c] ss:$16 sps:$4 sm:$0xff]  }
  0xf8   :  { %5102 = vmatprep.subr.bf16.mxu0 %v9524_v19  ;;  %5635 = vmatprep.subr.bf16.mxu1 %v9527_v20  ;;  %v9606_v19 = vld [vmem:[%s14106_s1 + $0x980] ss:$16 sps:$4 sm:$0xff]   ;;  %v9609_v20 = vld [vmem:[%s14106_s1 + $0x988] ss:$16 sps:$4 sm:$0xff]  }
  0xfb   :  { %5103 = vmatpush1.bf16.msra.mxu0 %v9522_v22  ;;  %5636 = vmatpush1.bf16.msra.mxu1 %v9525_v23  ;;  %v9614_v22 = vld [vmem:[%s14106_s1 + $0x9a4] ss:$16 sps:$4 sm:$0xff]   ;;  %v9617_v23 = vld [vmem:[%s14106_s1 + $0x9ac] ss:$16 sps:$4 sm:$0xff]  }
  0xfc   :  { %5104 = vmatprep.subr.bf16.mxu0 %v9530_v24  ;;  %5637 = vmatprep.subr.bf16.mxu1 %v9533_v13  ;;  %v9612_v24 = vld [vmem:[%s14106_s1 + $0x9a0] ss:$16 sps:$4 sm:$0xff]   ;;  %v9615_v13 = vld [vmem:[%s14106_s1 + $0x9a8] ss:$16 sps:$4 sm:$0xff]  }
  0xff   :  { %5105 = vmatpush1.bf16.msra.mxu0 %v9528_v27  ;;  %5638 = vmatpush1.bf16.msra.mxu1 %v9531_v28  ;;  %v9620_v27 = vld [vmem:[%s14106_s1 + $0x9c4] ss:$16 sps:$4 sm:$0xff]   ;;  %v9623_v28 = vld [vmem:[%s14106_s1 + $0x9cc] ss:$16 sps:$4 sm:$0xff]  }
 0x100   :  { %5115 = vmatprep.subr.bf16.mxu0 %v9536_v29  ;;  %5648 = vmatprep.subr.bf16.mxu1 %v9539_v14  ;;  %v9618_v29 = vld [vmem:[%s14106_s1 + $0x9c0] ss:$16 sps:$4 sm:$0xff]   ;;  %v9621_v14 = vld [vmem:[%s14106_s1 + $0x9c8] ss:$16 sps:$4 sm:$0xff]  }
 0x102   :  { %5107 = vmatmul.mubr.bf16.vlgmr.msra.gmra.mrb[0].mxu0 %v888_v31  ;;  %5640 = vmatmul.mubr.bf16.vlgmr.msra.gmra.mrb[0].mxu1 %v888_v31  ;;  %v9629_v31 = vld [vmem:[%s14106_s1 + $0x9ec] ss:$16 sps:$4 sm:$0xff]  }
 0x103   :  { %5116 = vmatpush1.bf16.msra.mxu0 %v9534_v25  ;;  %5649 = vmatpush1.bf16.msra.mxu1 %v9537_v32  ;;  %v9624_v25 = vld [vmem:[%s14106_s1 + $0x9e0] ss:$16 sps:$4 sm:$0xff]   ;;  %v9627_v32 = vld [vmem:[%s14106_s1 + $0x9e8] ss:$16 sps:$4 sm:$0xff]  }
 0x104   :  { %5117 = vmatprep.subr.bf16.mxu0 %v9542_v33  ;;  %5650 = vmatprep.subr.bf16.mxu1 %v9545_v26  ;;  %v9632_v33 = vld [vmem:[%s14106_s1 + $0xa04] ss:$16 sps:$4 sm:$0xff]   ;;  %v9635_v26 = vld [vmem:[%s14106_s1 + $0xa0c] ss:$16 sps:$4 sm:$0xff]  }
 0x105   :  { %5147 = vmatprep.mubr.bf16.mxu0 %v11618_v34  ;;  %5680 = vmatprep.mubr.bf16.mxu1 %v11618_v34 }
 0x107   :  { %5118 = vmatpush1.bf16.msra.mxu0 %v9540_v35  ;;  %5651 = vmatpush1.bf16.msra.mxu1 %v9543_v36  ;;  %v11804_v35 = vrot.slane %v11575_v21, %v10917_v49  ;;  %v9630_v36 = vld [vmem:[%s14106_s1 + $0xa00] ss:$16 sps:$4 sm:$0xff]   ;;  %v9641_v21 = vld [vmem:[%s14106_s1 + $0xa2c] ss:$16 sps:$4 sm:$0xff]  }
 0x108   :  { %5119 = vmatprep.subr.bf16.mxu0 %v9548_v37  ;;  %5652 = vmatprep.subr.bf16.mxu1 %v9551_v38  ;;  %v9633_v37 = vld [vmem:[%s14106_s1 + $0xa08] ss:$16 sps:$4 sm:$0xff]   ;;  %v9638_v38 = vld [vmem:[%s14106_s1 + $0xa24] ss:$16 sps:$4 sm:$0xff]  }
 0x10b   :  { %5120 = vmatpush1.bf16.msra.mxu0 %v9546_v39  ;;  %5653 = vmatpush1.bf16.msra.mxu1 %v9549_v40  ;;  %v938_v39 = vcombine.high %v11618_v34, %v11618_v34  ;;  %v9636_v40 = vld [vmem:[%s14106_s1 + $0xa20] ss:$16 sps:$4 sm:$0xff]   ;;  %v9644_v34 = vld [vmem:[%s14106_s1 + $0xa44] ss:$16 sps:$4 sm:$0xff]  }
 0x10c   :  { %5121 = vmatprep.subr.bf16.mxu0 %v9554_v41  ;;  %5654 = vmatprep.subr.bf16.mxu1 %v9557_v43  ;;  %v9639_v41 = vld [vmem:[%s14106_s1 + $0xa28] ss:$16 sps:$4 sm:$0xff]   ;;  %v9647_v43 = vld [vmem:[%s14106_s1 + $0xa4c] ss:$16 sps:$4 sm:$0xff]  }
 0x10f   :  { %5122 = vmatpush1.bf16.msra.mxu0 %v9552_v44  ;;  %5655 = vmatpush1.bf16.msra.mxu1 %v9555_v45  ;;  %v9642_v44 = vld [vmem:[%s14106_s1 + $0xa40] ss:$16 sps:$4 sm:$0xff]   ;;  %v9645_v45 = vld [vmem:[%s14106_s1 + $0xa48] ss:$16 sps:$4 sm:$0xff]  }
 0x110   :  { %5123 = vmatprep.subr.bf16.mxu0 %v9560_v46  ;;  %5656 = vmatprep.subr.bf16.mxu1 %v9563_v47  ;;  %v9650_v46 = vld [vmem:[%s14106_s1 + $0xa64] ss:$16 sps:$4 sm:$0xff]   ;;  %v9653_v47 = vld [vmem:[%s14106_s1 + $0xa6c] ss:$16 sps:$4 sm:$0xff]  }
 0x113   :  { %5124 = vmatpush1.bf16.msra.mxu0 %v9558_v48  ;;  %5657 = vmatpush1.bf16.msra.mxu1 %v9561_v50  ;;  %v9648_v48 = vld [vmem:[%s14106_s1 + $0xa60] ss:$16 sps:$4 sm:$0xff]   ;;  %v9651_v50 = vld [vmem:[%s14106_s1 + $0xa68] ss:$16 sps:$4 sm:$0xff]  }
 0x114   :  { %5125 = vmatprep.subr.bf16.mxu0 %v9566_v51  ;;  %5658 = vmatprep.subr.bf16.mxu1 %v9569_v53  ;;  %v9656_v51 = vld [vmem:[%s14106_s1 + $0xa84] ss:$16 sps:$4 sm:$0xff]   ;;  %v9659_v53 = vld [vmem:[%s14106_s1 + $0xa8c] ss:$16 sps:$4 sm:$0xff]  }
 0x117   :  { %5126 = vmatpush1.bf16.msra.mxu0 %v9564_v54  ;;  %5659 = vmatpush1.bf16.msra.mxu1 %v9567_v55  ;;  %v9654_v54 = vld [vmem:[%s14106_s1 + $0xa80] ss:$16 sps:$4 sm:$0xff]   ;;  %v9657_v55 = vld [vmem:[%s14106_s1 + $0xa88] ss:$16 sps:$4 sm:$0xff]  }
 0x118   :  { %5127 = vmatprep.subr.bf16.mxu0 %v9572_v56  ;;  %5660 = vmatprep.subr.bf16.mxu1 %v9575_v57  ;;  %v9662_v56 = vld [vmem:[%s14106_s1 + $0xaa4] ss:$16 sps:$4 sm:$0xff]   ;;  %v9665_v57 = vld [vmem:[%s14106_s1 + $0xaac] ss:$16 sps:$4 sm:$0xff]  }
 0x11b   :  { %5128 = vmatpush1.bf16.msra.mxu0 %v9570_v58  ;;  %5661 = vmatpush1.bf16.msra.mxu1 %v9573_v59  ;;  %v9660_v58 = vld [vmem:[%s14106_s1 + $0xaa0] ss:$16 sps:$4 sm:$0xff]   ;;  %v9663_v59 = vld [vmem:[%s14106_s1 + $0xaa8] ss:$16 sps:$4 sm:$0xff]  }
 0x11c   :  { %5129 = vmatprep.subr.bf16.mxu0 %v9578_v60  ;;  %5662 = vmatprep.subr.bf16.mxu1 %v9581_v61  ;;  %v9668_v60 = vld [vmem:[%s14106_s1 + $0xac4] ss:$16 sps:$4 sm:$0xff]   ;;  %v9671_v61 = vld [vmem:[%s14106_s1 + $0xacc] ss:$16 sps:$4 sm:$0xff]  }
 0x11f   :  { %5130 = vmatpush1.bf16.msra.mxu0 %v9576_v62  ;;  %5663 = vmatpush1.bf16.msra.mxu1 %v9579_v63  ;;  %v9666_v62 = vld [vmem:[%s14106_s1 + $0xac0] ss:$16 sps:$4 sm:$0xff]   ;;  %v9669_v63 = vld [vmem:[%s14106_s1 + $0xac8] ss:$16 sps:$4 sm:$0xff]  }
 0x120   :  { %5131 = vmatprep.subr.bf16.mxu0 %v9584_v0  ;;  %5664 = vmatprep.subr.bf16.mxu1 %v9587_v1  ;;  %v9674_v0 = vld [vmem:[%s14106_s1 + $0xae4] ss:$16 sps:$4 sm:$0xff]   ;;  %v9677_v1 = vld [vmem:[%s14106_s1 + $0xaec] ss:$16 sps:$4 sm:$0xff]  }
 0x123   :  { %5132 = vmatpush1.bf16.msra.mxu0 %v9582_v2  ;;  %5665 = vmatpush1.bf16.msra.mxu1 %v9585_v3  ;;  %v9672_v2 = vld [vmem:[%s14106_s1 + $0xae0] ss:$16 sps:$4 sm:$0xff]   ;;  %v9675_v3 = vld [vmem:[%s14106_s1 + $0xae8] ss:$16 sps:$4 sm:$0xff]  }
 0x124   :  { %5133 = vmatprep.subr.bf16.mxu0 %v9590_v4  ;;  %5666 = vmatprep.subr.bf16.mxu1 %v9593_v5  ;;  %v9680_v4 = vld [vmem:[%s14106_s1 + $0xb04] ss:$16 sps:$4 sm:$0xff]   ;;  %v9683_v5 = vld [vmem:[%s14106_s1 + $0xb0c] ss:$16 sps:$4 sm:$0xff]  }
 0x127   :  { %5134 = vmatpush1.bf16.msra.mxu0 %v9588_v6  ;;  %5667 = vmatpush1.bf16.msra.mxu1 %v9591_v7  ;;  %v9678_v6 = vld [vmem:[%s14106_s1 + $0xb00] ss:$16 sps:$4 sm:$0xff]   ;;  %v9681_v7 = vld [vmem:[%s14106_s1 + $0xb08] ss:$16 sps:$4 sm:$0xff]  }
 0x128   :  { %5135 = vmatprep.subr.bf16.mxu0 %v9596_v8  ;;  %5668 = vmatprep.subr.bf16.mxu1 %v9599_v9  ;;  %v9686_v8 = vld [vmem:[%s14106_s1 + $0xb24] ss:$16 sps:$4 sm:$0xff]   ;;  %v9689_v9 = vld [vmem:[%s14106_s1 + $0xb2c] ss:$16 sps:$4 sm:$0xff]  }
 0x12b   :  { %5136 = vmatpush1.bf16.msra.mxu0 %v9594_v10  ;;  %5669 = vmatpush1.bf16.msra.mxu1 %v9597_v11  ;;  %v9684_v10 = vld [vmem:[%s14106_s1 + $0xb20] ss:$16 sps:$4 sm:$0xff]   ;;  %v9687_v11 = vld [vmem:[%s14106_s1 + $0xb28] ss:$16 sps:$4 sm:$0xff]  }
 0x12c   :  { %5137 = vmatprep.subr.bf16.mxu0 %v9602_v12  ;;  %5670 = vmatprep.subr.bf16.mxu1 %v9605_v52  ;;  %v9692_v12 = vld [vmem:[%s14106_s1 + $0xb44] ss:$16 sps:$4 sm:$0xff]   ;;  %v9695_v52 = vld [vmem:[%s14106_s1 + $0xb4c] ss:$16 sps:$4 sm:$0xff]  }
 0x12f   :  { %5138 = vmatpush1.bf16.msra.mxu0 %v9600_v15  ;;  %5671 = vmatpush1.bf16.msra.mxu1 %v9603_v16  ;;  %v9690_v15 = vld [vmem:[%s14106_s1 + $0xb40] ss:$16 sps:$4 sm:$0xff]   ;;  %v9693_v16 = vld [vmem:[%s14106_s1 + $0xb48] ss:$16 sps:$4 sm:$0xff]  }
 0x130   :  { %5139 = vmatprep.subr.bf16.mxu0 %v9608_v17  ;;  %5672 = vmatprep.subr.bf16.mxu1 %v9611_v18  ;;  %v9698_v17 = vld [vmem:[%s14106_s1 + $0xb64] ss:$16 sps:$4 sm:$0xff]   ;;  %v9701_v18 = vld [vmem:[%s14106_s1 + $0xb6c] ss:$16 sps:$4 sm:$0xff]  }
 0x133   :  { %5140 = vmatpush1.bf16.msra.mxu0 %v9606_v19  ;;  %5673 = vmatpush1.bf16.msra.mxu1 %v9609_v20  ;;  %v9696_v19 = vld [vmem:[%s14106_s1 + $0xb60] ss:$16 sps:$4 sm:$0xff]   ;;  %v9699_v20 = vld [vmem:[%s14106_s1 + $0xb68] ss:$16 sps:$4 sm:$0xff]  }
 0x134   :  { %5141 = vmatprep.subr.bf16.mxu0 %v9614_v22  ;;  %5674 = vmatprep.subr.bf16.mxu1 %v9617_v23  ;;  %v9704_v22 = vld [vmem:[%s14106_s1 + $0xb84] ss:$16 sps:$4 sm:$0xff]   ;;  %v9707_v23 = vld [vmem:[%s14106_s1 + $0xb8c] ss:$16 sps:$4 sm:$0xff]  }
 0x137   :  { %5142 = vmatpush1.bf16.msra.mxu0 %v9612_v24  ;;  %5675 = vmatpush1.bf16.msra.mxu1 %v9615_v13  ;;  %v9702_v24 = vld [vmem:[%s14106_s1 + $0xb80] ss:$16 sps:$4 sm:$0xff]   ;;  %v9705_v13 = vld [vmem:[%s14106_s1 + $0xb88] ss:$16 sps:$4 sm:$0xff]  }
 0x138   :  { %5143 = vmatprep.subr.bf16.mxu0 %v9620_v27  ;;  %5676 = vmatprep.subr.bf16.mxu1 %v9623_v28  ;;  %v9710_v27 = vld [vmem:[%s14106_s1 + $0xba4] ss:$16 sps:$4 sm:$0xff]   ;;  %v9713_v28 = vld [vmem:[%s14106_s1 + $0xbac] ss:$16 sps:$4 sm:$0xff]  }
 0x13b   :  { %5144 = vmatpush1.bf16.msra.mxu0 %v9618_v29  ;;  %5677 = vmatpush1.bf16.msra.mxu1 %v9621_v14  ;;  %v9708_v29 = vld [vmem:[%s14106_s1 + $0xba0] ss:$16 sps:$4 sm:$0xff]   ;;  %v9711_v14 = vld [vmem:[%s14106_s1 + $0xba8] ss:$16 sps:$4 sm:$0xff]  }
 0x13c   :  { %5145 = vmatprep.subr.bf16.mxu0 %v9626_v30  ;;  %5678 = vmatprep.subr.bf16.mxu1 %v9629_v31  ;;  %v9716_v30 = vld [vmem:[%s14106_s1 + $0xbc4] ss:$16 sps:$4 sm:$0xff]   ;;  %v9719_v31 = vld [vmem:[%s14106_s1 + $0xbcc] ss:$16 sps:$4 sm:$0xff]  }
 0x13f   :  { %5146 = vmatpush1.bf16.msra.mxu0 %v9624_v25  ;;  %5679 = vmatpush1.bf16.msra.mxu1 %v9627_v32  ;;  %v10712_v25 = vld [vmem:[%s14105_s0 + $0x8] sm:$0xff] }
 0x140   :  { %5156 = vmatprep.subr.bf16.mxu0 %v9632_v33  ;;  %5689 = vmatprep.subr.bf16.mxu1 %v9635_v26  ;;  %v891_v32 = vcombine.high %v10712_v25, %v10712_v25  ;;  %v9714_v33 = vld [vmem:[%s14106_s1 + $0xbc0] ss:$16 sps:$4 sm:$0xff]   ;;  %v9717_v26 = vld [vmem:[%s14106_s1 + $0xbc8] ss:$16 sps:$4 sm:$0xff]  }
 0x141   :  { %v9798_v25 = vld [vmem:[%s14106_s1 + $0xd80] ss:$16 sps:$4 sm:$0xff]  }
 0x142   :  { %5148 = vmatmul.mubr.bf16.vlgmr.msra.gmra.mrb[0].mxu0 %v11804_v35  ;;  %5681 = vmatmul.mubr.bf16.vlgmr.msra.gmra.mrb[0].mxu1 %v11804_v35 }
 0x143   :  { %5157 = vmatpush1.bf16.msra.mxu0 %v9630_v36  ;;  %5690 = vmatpush1.bf16.msra.mxu1 %v9633_v37  ;;  %v9722_v36 = vld [vmem:[%s14106_s1 + $0xbe4] ss:$16 sps:$4 sm:$0xff]   ;;  %v9725_v37 = vld [vmem:[%s14106_s1 + $0xbec] ss:$16 sps:$4 sm:$0xff]  }
 0x144   :  { %5158 = vmatprep.subr.bf16.mxu0 %v9638_v38  ;;  %5691 = vmatprep.subr.bf16.mxu1 %v9641_v21  ;;  %v11994_v38 = vrot.slane %v891_v32, %v10917_v49  ;;  %v9720_v21 = vld [vmem:[%s14106_s1 + $0xbe0] ss:$16 sps:$4 sm:$0xff]   ;;  %v9801_v32 = vld [vmem:[%s14106_s1 + $0xd88] ss:$16 sps:$4 sm:$0xff]  }
 0x145   :  { %5188 = vmatprep.mubr.bf16.mxu0 %v938_v39  ;;  %5721 = vmatprep.mubr.bf16.mxu1 %v938_v39  ;;  %v9723_v39 = vld [vmem:[%s14106_s1 + $0xbe8] ss:$16 sps:$4 sm:$0xff]  }
 0x147   :  { %5159 = vmatpush1.bf16.msra.mxu0 %v9636_v40  ;;  %5692 = vmatpush1.bf16.msra.mxu1 %v9639_v41  ;;  %v9728_v40 = vld [vmem:[%s14106_s1 + $0xc04] ss:$16 sps:$4 sm:$0xff]   ;;  %v9731_v41 = vld [vmem:[%s14106_s1 + $0xc0c] ss:$16 sps:$4 sm:$0xff]  }
 0x148   :  { %5160 = vmatprep.subr.bf16.mxu0 %v9644_v34  ;;  %5693 = vmatprep.subr.bf16.mxu1 %v9647_v43  ;;  %v907_v34 = vcombine.high %v11994_v38, %v11994_v38  ;;  %v936_v43 = vcombine.high %v11804_v35, %v11804_v35  ;;  %v9737_v35 = vld [vmem:[%s14106_s1 + $0xc2c] ss:$16 sps:$4 sm:$0xff]  }
 0x14b   :  { %5161 = vmatpush1.bf16.msra.mxu0 %v9642_v44  ;;  %5694 = vmatpush1.bf16.msra.mxu1 %v9645_v45  ;;  %v9726_v44 = vld [vmem:[%s14106_s1 + $0xc00] ss:$16 sps:$4 sm:$0xff]   ;;  %v9729_v45 = vld [vmem:[%s14106_s1 + $0xc08] ss:$16 sps:$4 sm:$0xff]  }
 0x14c   :  { %5162 = vmatprep.subr.bf16.mxu0 %v9650_v46  ;;  %5695 = vmatprep.subr.bf16.mxu1 %v9653_v47  ;;  %v9734_v46 = vld [vmem:[%s14106_s1 + $0xc24] ss:$16 sps:$4 sm:$0xff]   ;;  %v12025_v47 = vrot.slane %v907_v34, %v10917_v49 }
 0x14d   :  { %v9818_v34 = vld [vmem:[%s14106_s1 + $0xde4] ss:$16 sps:$4 sm:$0xff]  }
 0x14f   :  { %5163 = vmatpush1.bf16.msra.mxu0 %v9648_v48  ;;  %5696 = vmatpush1.bf16.msra.mxu1 %v9651_v50  ;;  %v9732_v48 = vld [vmem:[%s14106_s1 + $0xc20] ss:$16 sps:$4 sm:$0xff]   ;;  %v9735_v50 = vld [vmem:[%s14106_s1 + $0xc28] ss:$16 sps:$4 sm:$0xff]  }
 0x150   :  { %5164 = vmatprep.subr.bf16.mxu0 %v9656_v51  ;;  %5697 = vmatprep.subr.bf16.mxu1 %v9659_v53  ;;  %v9740_v51 = vld [vmem:[%s14106_s1 + $0xc44] ss:$16 sps:$4 sm:$0xff]   ;;  %v9743_v53 = vld [vmem:[%s14106_s1 + $0xc4c] ss:$16 sps:$4 sm:$0xff]  }
 0x153   :  { %5165 = vmatpush1.bf16.msra.mxu0 %v9654_v54  ;;  %5698 = vmatpush1.bf16.msra.mxu1 %v9657_v55  ;;  %v9738_v54 = vld [vmem:[%s14106_s1 + $0xc40] ss:$16 sps:$4 sm:$0xff]   ;;  %v9741_v55 = vld [vmem:[%s14106_s1 + $0xc48] ss:$16 sps:$4 sm:$0xff]  }
 0x154   :  { %5166 = vmatprep.subr.bf16.mxu0 %v9662_v56  ;;  %5699 = vmatprep.subr.bf16.mxu1 %v9665_v57  ;;  %v9746_v56 = vld [vmem:[%s14106_s1 + $0xc64] ss:$16 sps:$4 sm:$0xff]   ;;  %v9749_v57 = vld [vmem:[%s14106_s1 + $0xc6c] ss:$16 sps:$4 sm:$0xff]  }
 0x157   :  { %5167 = vmatpush1.bf16.msra.mxu0 %v9660_v58  ;;  %5700 = vmatpush1.bf16.msra.mxu1 %v9663_v59  ;;  %v9744_v58 = vld [vmem:[%s14106_s1 + $0xc60] ss:$16 sps:$4 sm:$0xff]   ;;  %v9747_v59 = vld [vmem:[%s14106_s1 + $0xc68] ss:$16 sps:$4 sm:$0xff]  }
 0x158   :  { %5168 = vmatprep.subr.bf16.mxu0 %v9668_v60  ;;  %5701 = vmatprep.subr.bf16.mxu1 %v9671_v61  ;;  %v9752_v60 = vld [vmem:[%s14106_s1 + $0xc84] ss:$16 sps:$4 sm:$0xff]   ;;  %v9755_v61 = vld [vmem:[%s14106_s1 + $0xc8c] ss:$16 sps:$4 sm:$0xff]  }
 0x15b   :  { %5169 = vmatpush1.bf16.msra.mxu0 %v9666_v62  ;;  %5702 = vmatpush1.bf16.msra.mxu1 %v9669_v63  ;;  %v9750_v62 = vld [vmem:[%s14106_s1 + $0xc80] ss:$16 sps:$4 sm:$0xff]   ;;  %v9753_v63 = vld [vmem:[%s14106_s1 + $0xc88] ss:$16 sps:$4 sm:$0xff]  }
 0x15c   :  { %5170 = vmatprep.subr.bf16.mxu0 %v9674_v0  ;;  %5703 = vmatprep.subr.bf16.mxu1 %v9677_v1  ;;  %v9758_v0 = vld [vmem:[%s14106_s1 + $0xca4] ss:$16 sps:$4 sm:$0xff]   ;;  %v9761_v1 = vld [vmem:[%s14106_s1 + $0xcac] ss:$16 sps:$4 sm:$0xff]  }
 0x15f   :  { %5171 = vmatpush1.bf16.msra.mxu0 %v9672_v2  ;;  %5704 = vmatpush1.bf16.msra.mxu1 %v9675_v3  ;;  %v9756_v2 = vld [vmem:[%s14106_s1 + $0xca0] ss:$16 sps:$4 sm:$0xff]   ;;  %v9759_v3 = vld [vmem:[%s14106_s1 + $0xca8] ss:$16 sps:$4 sm:$0xff]  }
 0x160   :  { %5172 = vmatprep.subr.bf16.mxu0 %v9680_v4  ;;  %5705 = vmatprep.subr.bf16.mxu1 %v9683_v5  ;;  %v9764_v4 = vld [vmem:[%s14106_s1 + $0xcc4] ss:$16 sps:$4 sm:$0xff]   ;;  %v9767_v5 = vld [vmem:[%s14106_s1 + $0xccc] ss:$16 sps:$4 sm:$0xff]  }
 0x163   :  { %5173 = vmatpush1.bf16.msra.mxu0 %v9678_v6  ;;  %5706 = vmatpush1.bf16.msra.mxu1 %v9681_v7  ;;  %v9762_v6 = vld [vmem:[%s14106_s1 + $0xcc0] ss:$16 sps:$4 sm:$0xff]   ;;  %v9765_v7 = vld [vmem:[%s14106_s1 + $0xcc8] ss:$16 sps:$4 sm:$0xff]  }
 0x164   :  { %5174 = vmatprep.subr.bf16.mxu0 %v9686_v8  ;;  %5707 = vmatprep.subr.bf16.mxu1 %v9689_v9  ;;  %v9770_v8 = vld [vmem:[%s14106_s1 + $0xce4] ss:$16 sps:$4 sm:$0xff]   ;;  %v9773_v9 = vld [vmem:[%s14106_s1 + $0xcec] ss:$16 sps:$4 sm:$0xff]  }
 0x167   :  { %5175 = vmatpush1.bf16.msra.mxu0 %v9684_v10  ;;  %5708 = vmatpush1.bf16.msra.mxu1 %v9687_v11  ;;  %v9768_v10 = vld [vmem:[%s14106_s1 + $0xce0] ss:$16 sps:$4 sm:$0xff]   ;;  %v9771_v11 = vld [vmem:[%s14106_s1 + $0xce8] ss:$16 sps:$4 sm:$0xff]  }
 0x168   :  { %5176 = vmatprep.subr.bf16.mxu0 %v9692_v12  ;;  %5709 = vmatprep.subr.bf16.mxu1 %v9695_v52  ;;  %v9776_v12 = vld [vmem:[%s14106_s1 + $0xd04] ss:$16 sps:$4 sm:$0xff]   ;;  %v9779_v52 = vld [vmem:[%s14106_s1 + $0xd0c] ss:$16 sps:$4 sm:$0xff]  }
 0x16b   :  { %5177 = vmatpush1.bf16.msra.mxu0 %v9690_v15  ;;  %5710 = vmatpush1.bf16.msra.mxu1 %v9693_v16  ;;  %v9774_v15 = vld [vmem:[%s14106_s1 + $0xd00] ss:$16 sps:$4 sm:$0xff]   ;;  %v9777_v16 = vld [vmem:[%s14106_s1 + $0xd08] ss:$16 sps:$4 sm:$0xff]  }
 0x16c   :  { %5178 = vmatprep.subr.bf16.mxu0 %v9698_v17  ;;  %5711 = vmatprep.subr.bf16.mxu1 %v9701_v18  ;;  %v9782_v17 = vld [vmem:[%s14106_s1 + $0xd24] ss:$16 sps:$4 sm:$0xff]   ;;  %v9785_v18 = vld [vmem:[%s14106_s1 + $0xd2c] ss:$16 sps:$4 sm:$0xff]  }
 0x16f   :  { %5179 = vmatpush1.bf16.msra.mxu0 %v9696_v19  ;;  %5712 = vmatpush1.bf16.msra.mxu1 %v9699_v20  ;;  %v9780_v19 = vld [vmem:[%s14106_s1 + $0xd20] ss:$16 sps:$4 sm:$0xff]   ;;  %v9783_v20 = vld [vmem:[%s14106_s1 + $0xd28] ss:$16 sps:$4 sm:$0xff]  }
 0x170   :  { %5180 = vmatprep.subr.bf16.mxu0 %v9704_v22  ;;  %5713 = vmatprep.subr.bf16.mxu1 %v9707_v23  ;;  %v9788_v22 = vld [vmem:[%s14106_s1 + $0xd44] ss:$16 sps:$4 sm:$0xff]   ;;  %v9791_v23 = vld [vmem:[%s14106_s1 + $0xd4c] ss:$16 sps:$4 sm:$0xff]  }
 0x173   :  { %5181 = vmatpush1.bf16.msra.mxu0 %v9702_v24  ;;  %5714 = vmatpush1.bf16.msra.mxu1 %v9705_v13  ;;  %v9786_v24 = vld [vmem:[%s14106_s1 + $0xd40] ss:$16 sps:$4 sm:$0xff]   ;;  %v9789_v13 = vld [vmem:[%s14106_s1 + $0xd48] ss:$16 sps:$4 sm:$0xff]  }
 0x174   :  { %5182 = vmatprep.subr.bf16.mxu0 %v9710_v27  ;;  %5715 = vmatprep.subr.bf16.mxu1 %v9713_v28  ;;  %v9794_v27 = vld [vmem:[%s14106_s1 + $0xd64] ss:$16 sps:$4 sm:$0xff]   ;;  %v9797_v28 = vld [vmem:[%s14106_s1 + $0xd6c] ss:$16 sps:$4 sm:$0xff]  }
 0x177   :  { %5183 = vmatpush1.bf16.msra.mxu0 %v9708_v29  ;;  %5716 = vmatpush1.bf16.msra.mxu1 %v9711_v14  ;;  %v9792_v29 = vld [vmem:[%s14106_s1 + $0xd60] ss:$16 sps:$4 sm:$0xff]   ;;  %v9795_v14 = vld [vmem:[%s14106_s1 + $0xd68] ss:$16 sps:$4 sm:$0xff]  }
 0x178   :  { %5184 = vmatprep.subr.bf16.mxu0 %v9716_v30  ;;  %5717 = vmatprep.subr.bf16.mxu1 %v9719_v31  ;;  %v9800_v30 = vld [vmem:[%s14106_s1 + $0xd84] ss:$16 sps:$4 sm:$0xff]   ;;  %v9803_v31 = vld [vmem:[%s14106_s1 + $0xd8c] ss:$16 sps:$4 sm:$0xff]  }
 0x17b   :  { %5185 = vmatpush1.bf16.msra.mxu0 %v9714_v33  ;;  %5718 = vmatpush1.bf16.msra.mxu1 %v9717_v26  ;;  %v9806_v33 = vld [vmem:[%s14106_s1 + $0xda4] ss:$16 sps:$4 sm:$0xff]   ;;  %v9809_v26 = vld [vmem:[%s14106_s1 + $0xdac] ss:$16 sps:$4 sm:$0xff]  }
 0x17c   :  { %5186 = vmatprep.subr.bf16.mxu0 %v9722_v36  ;;  %5719 = vmatprep.subr.bf16.mxu1 %v9725_v37  ;;  %v9804_v36 = vld [vmem:[%s14106_s1 + $0xda0] ss:$16 sps:$4 sm:$0xff]   ;;  %v9807_v37 = vld [vmem:[%s14106_s1 + $0xda8] ss:$16 sps:$4 sm:$0xff]  }
 0x17f   :  { %5187 = vmatpush1.bf16.msra.mxu0 %v9720_v21  ;;  %5720 = vmatpush1.bf16.msra.mxu1 %v9723_v39  ;;  %v9812_v21 = vld [vmem:[%s14106_s1 + $0xdc4] ss:$16 sps:$4 sm:$0xff]   ;;  %v9815_v39 = vld [vmem:[%s14106_s1 + $0xdcc] ss:$16 sps:$4 sm:$0xff]  }
 0x180   :  { %5197 = vmatprep.subr.bf16.mxu0 %v9728_v40  ;;  %5730 = vmatprep.subr.bf16.mxu1 %v9731_v41  ;;  %v9810_v40 = vld [vmem:[%s14106_s1 + $0xdc0] ss:$16 sps:$4 sm:$0xff]   ;;  %v9813_v41 = vld [vmem:[%s14106_s1 + $0xdc8] ss:$16 sps:$4 sm:$0xff]  }
 0x182   :  { %5189 = vmatmul.mubr.bf16.vlgmr.msra.gmra.mrb[0].mxu0 %v936_v43  ;;  %5722 = vmatmul.mubr.bf16.vlgmr.msra.gmra.mrb[0].mxu1 %v936_v43  ;;  %v9821_v43 = vld [vmem:[%s14106_s1 + $0xdec] ss:$16 sps:$4 sm:$0xff]  }
 0x183   :  { %5198 = vmatpush1.bf16.msra.mxu0 %v9726_v44  ;;  %5731 = vmatpush1.bf16.msra.mxu1 %v9729_v45  ;;  %v9816_v44 = vld [vmem:[%s14106_s1 + $0xde0] ss:$16 sps:$4 sm:$0xff]   ;;  %v9819_v45 = vld [vmem:[%s14106_s1 + $0xde8] ss:$16 sps:$4 sm:$0xff]  }
 0x184   :  { %5199 = vmatprep.subr.bf16.mxu0 %v9734_v46  ;;  %5732 = vmatprep.subr.bf16.mxu1 %v9737_v35  ;;  %v9825_v46 = vld [vmem:[%s14106_s1 + $0xe04] ss:$16 sps:$4 sm:$0xff]   ;;  %v9828_v35 = vld [vmem:[%s14106_s1 + $0xe0c] ss:$16 sps:$4 sm:$0xff]  }
 0x185   :  { %5229 = vmatprep.mubr.bf16.mxu0 %v12025_v47  ;;  %5762 = vmatprep.mubr.bf16.mxu1 %v12025_v47 }
 0x187   :  { %5200 = vmatpush1.bf16.msra.mxu0 %v9732_v48  ;;  %5733 = vmatpush1.bf16.msra.mxu1 %v9735_v50  ;;  %v12211_v48 = vrot.slane %v11994_v38, %v10917_v49  ;;  %v9823_v50 = vld [vmem:[%s14106_s1 + $0xe00] ss:$16 sps:$4 sm:$0xff]   ;;  %v9834_v38 = vld [vmem:[%s14106_s1 + $0xe2c] ss:$16 sps:$4 sm:$0xff]  }
 0x188   :  { %5201 = vmatprep.subr.bf16.mxu0 %v9740_v51  ;;  %5734 = vmatprep.subr.bf16.mxu1 %v9743_v53  ;;  %v9826_v51 = vld [vmem:[%s14106_s1 + $0xe08] ss:$16 sps:$4 sm:$0xff]   ;;  %v9831_v53 = vld [vmem:[%s14106_s1 + $0xe24] ss:$16 sps:$4 sm:$0xff]  }
 0x18b   :  { %5202 = vmatpush1.bf16.msra.mxu0 %v9738_v54  ;;  %5735 = vmatpush1.bf16.msra.mxu1 %v9741_v55  ;;  %v939_v54 = vcombine.high %v12025_v47, %v12025_v47  ;;  %v9829_v55 = vld [vmem:[%s14106_s1 + $0xe20] ss:$16 sps:$4 sm:$0xff]   ;;  %v9837_v47 = vld [vmem:[%s14106_s1 + $0xe44] ss:$16 sps:$4 sm:$0xff]  }
 0x18c   :  { %5203 = vmatprep.subr.bf16.mxu0 %v9746_v56  ;;  %5736 = vmatprep.subr.bf16.mxu1 %v9749_v57  ;;  %v9832_v56 = vld [vmem:[%s14106_s1 + $0xe28] ss:$16 sps:$4 sm:$0xff]   ;;  %v9840_v57 = vld [vmem:[%s14106_s1 + $0xe4c] ss:$16 sps:$4 sm:$0xff]  }
 0x18f   :  { %5204 = vmatpush1.bf16.msra.mxu0 %v9744_v58  ;;  %5737 = vmatpush1.bf16.msra.mxu1 %v9747_v59  ;;  %v9835_v58 = vld [vmem:[%s14106_s1 + $0xe40] ss:$16 sps:$4 sm:$0xff]   ;;  %v9838_v59 = vld [vmem:[%s14106_s1 + $0xe48] ss:$16 sps:$4 sm:$0xff]  }
 0x190   :  { %5205 = vmatprep.subr.bf16.mxu0 %v9752_v60  ;;  %5738 = vmatprep.subr.bf16.mxu1 %v9755_v61  ;;  %v9843_v60 = vld [vmem:[%s14106_s1 + $0xe64] ss:$16 sps:$4 sm:$0xff]   ;;  %v9846_v61 = vld [vmem:[%s14106_s1 + $0xe6c] ss:$16 sps:$4 sm:$0xff]  }
 0x193   :  { %5206 = vmatpush1.bf16.msra.mxu0 %v9750_v62  ;;  %5739 = vmatpush1.bf16.msra.mxu1 %v9753_v63  ;;  %v9841_v62 = vld [vmem:[%s14106_s1 + $0xe60] ss:$16 sps:$4 sm:$0xff]   ;;  %v9844_v63 = vld [vmem:[%s14106_s1 + $0xe68] ss:$16 sps:$4 sm:$0xff]  }
 0x194   :  { %5207 = vmatprep.subr.bf16.mxu0 %v9758_v0  ;;  %5740 = vmatprep.subr.bf16.mxu1 %v9761_v1  ;;  %v9849_v0 = vld [vmem:[%s14106_s1 + $0xe84] ss:$16 sps:$4 sm:$0xff]   ;;  %v9852_v1 = vld [vmem:[%s14106_s1 + $0xe8c] ss:$16 sps:$4 sm:$0xff]  }
 0x197   :  { %5208 = vmatpush1.bf16.msra.mxu0 %v9756_v2  ;;  %5741 = vmatpush1.bf16.msra.mxu1 %v9759_v3  ;;  %v9847_v2 = vld [vmem:[%s14106_s1 + $0xe80] ss:$16 sps:$4 sm:$0xff]   ;;  %v9850_v3 = vld [vmem:[%s14106_s1 + $0xe88] ss:$16 sps:$4 sm:$0xff]  }
 0x198   :  { %5209 = vmatprep.subr.bf16.mxu0 %v9764_v4  ;;  %5742 = vmatprep.subr.bf16.mxu1 %v9767_v5  ;;  %v9855_v4 = vld [vmem:[%s14106_s1 + $0xea4] ss:$16 sps:$4 sm:$0xff]   ;;  %v9858_v5 = vld [vmem:[%s14106_s1 + $0xeac] ss:$16 sps:$4 sm:$0xff]  }
 0x19b   :  { %5210 = vmatpush1.bf16.msra.mxu0 %v9762_v6  ;;  %5743 = vmatpush1.bf16.msra.mxu1 %v9765_v7  ;;  %v9853_v6 = vld [vmem:[%s14106_s1 + $0xea0] ss:$16 sps:$4 sm:$0xff]   ;;  %v9856_v7 = vld [vmem:[%s14106_s1 + $0xea8] ss:$16 sps:$4 sm:$0xff]  }
 0x19c   :  { %5211 = vmatprep.subr.bf16.mxu0 %v9770_v8  ;;  %5744 = vmatprep.subr.bf16.mxu1 %v9773_v9  ;;  %v9861_v8 = vld [vmem:[%s14106_s1 + $0xec4] ss:$16 sps:$4 sm:$0xff]   ;;  %v9864_v9 = vld [vmem:[%s14106_s1 + $0xecc] ss:$16 sps:$4 sm:$0xff]  }
 0x19f   :  { %5212 = vmatpush1.bf16.msra.mxu0 %v9768_v10  ;;  %5745 = vmatpush1.bf16.msra.mxu1 %v9771_v11  ;;  %v9859_v10 = vld [vmem:[%s14106_s1 + $0xec0] ss:$16 sps:$4 sm:$0xff]   ;;  %v9862_v11 = vld [vmem:[%s14106_s1 + $0xec8] ss:$16 sps:$4 sm:$0xff]  }
 0x1a0   :  { %5213 = vmatprep.subr.bf16.mxu0 %v9776_v12  ;;  %5746 = vmatprep.subr.bf16.mxu1 %v9779_v52  ;;  %v9867_v12 = vld [vmem:[%s14106_s1 + $0xee4] ss:$16 sps:$4 sm:$0xff]   ;;  %v9870_v52 = vld [vmem:[%s14106_s1 + $0xeec] ss:$16 sps:$4 sm:$0xff]  }
 0x1a3   :  { %5214 = vmatpush1.bf16.msra.mxu0 %v9774_v15  ;;  %5747 = vmatpush1.bf16.msra.mxu1 %v9777_v16  ;;  %v9865_v15 = vld [vmem:[%s14106_s1 + $0xee0] ss:$16 sps:$4 sm:$0xff]   ;;  %v9868_v16 = vld [vmem:[%s14106_s1 + $0xee8] ss:$16 sps:$4 sm:$0xff]  }
 0x1a4   :  { %5215 = vmatprep.subr.bf16.mxu0 %v9782_v17  ;;  %5748 = vmatprep.subr.bf16.mxu1 %v9785_v18  ;;  %v9873_v17 = vld [vmem:[%s14106_s1 + $0xf04] ss:$16 sps:$4 sm:$0xff]   ;;  %v9876_v18 = vld [vmem:[%s14106_s1 + $0xf0c] ss:$16 sps:$4 sm:$0xff]  }
 0x1a7   :  { %5216 = vmatpush1.bf16.msra.mxu0 %v9780_v19  ;;  %5749 = vmatpush1.bf16.msra.mxu1 %v9783_v20  ;;  %v9871_v19 = vld [vmem:[%s14106_s1 + $0xf00] ss:$16 sps:$4 sm:$0xff]   ;;  %v9874_v20 = vld [vmem:[%s14106_s1 + $0xf08] ss:$16 sps:$4 sm:$0xff]  }
 0x1a8   :  { %5217 = vmatprep.subr.bf16.mxu0 %v9788_v22  ;;  %5750 = vmatprep.subr.bf16.mxu1 %v9791_v23  ;;  %v9879_v22 = vld [vmem:[%s14106_s1 + $0xf24] ss:$16 sps:$4 sm:$0xff]   ;;  %v9882_v23 = vld [vmem:[%s14106_s1 + $0xf2c] ss:$16 sps:$4 sm:$0xff]  }
 0x1ab   :  { %5218 = vmatpush1.bf16.msra.mxu0 %v9786_v24  ;;  %5751 = vmatpush1.bf16.msra.mxu1 %v9789_v13  ;;  %v9877_v24 = vld [vmem:[%s14106_s1 + $0xf20] ss:$16 sps:$4 sm:$0xff]   ;;  %v9880_v13 = vld [vmem:[%s14106_s1 + $0xf28] ss:$16 sps:$4 sm:$0xff]  }
 0x1ac   :  { %5219 = vmatprep.subr.bf16.mxu0 %v9794_v27  ;;  %5752 = vmatprep.subr.bf16.mxu1 %v9797_v28  ;;  %v9885_v27 = vld [vmem:[%s14106_s1 + $0xf44] ss:$16 sps:$4 sm:$0xff]   ;;  %v9888_v28 = vld [vmem:[%s14106_s1 + $0xf4c] ss:$16 sps:$4 sm:$0xff]  }
 0x1af   :  { %5220 = vmatpush1.bf16.msra.mxu0 %v9792_v29  ;;  %5753 = vmatpush1.bf16.msra.mxu1 %v9795_v14  ;;  %v9883_v29 = vld [vmem:[%s14106_s1 + $0xf40] ss:$16 sps:$4 sm:$0xff]   ;;  %v9886_v14 = vld [vmem:[%s14106_s1 + $0xf48] ss:$16 sps:$4 sm:$0xff]  }
 0x1b0   :  { %5221 = vmatprep.subr.bf16.mxu0 %v9800_v30  ;;  %5754 = vmatprep.subr.bf16.mxu1 %v9803_v31  ;;  %v9891_v30 = vld [vmem:[%s14106_s1 + $0xf64] ss:$16 sps:$4 sm:$0xff]   ;;  %v9894_v31 = vld [vmem:[%s14106_s1 + $0xf6c] ss:$16 sps:$4 sm:$0xff]  }
 0x1b3   :  { %5222 = vmatpush1.bf16.msra.mxu0 %v9798_v25  ;;  %5755 = vmatpush1.bf16.msra.mxu1 %v9801_v32  ;;  %v9889_v25 = vld [vmem:[%s14106_s1 + $0xf60] ss:$16 sps:$4 sm:$0xff]   ;;  %v9892_v32 = vld [vmem:[%s14106_s1 + $0xf68] ss:$16 sps:$4 sm:$0xff]  }
 0x1b4   :  { %5223 = vmatprep.subr.bf16.mxu0 %v9806_v33  ;;  %5756 = vmatprep.subr.bf16.mxu1 %v9809_v26  ;;  %v9897_v33 = vld [vmem:[%s14106_s1 + $0xf84] ss:$16 sps:$4 sm:$0xff]   ;;  %v9900_v26 = vld [vmem:[%s14106_s1 + $0xf8c] ss:$16 sps:$4 sm:$0xff]  }
 0x1b7   :  { %5224 = vmatpush1.bf16.msra.mxu0 %v9804_v36  ;;  %5757 = vmatpush1.bf16.msra.mxu1 %v9807_v37  ;;  %v9895_v36 = vld [vmem:[%s14106_s1 + $0xf80] ss:$16 sps:$4 sm:$0xff]   ;;  %v9898_v37 = vld [vmem:[%s14106_s1 + $0xf88] ss:$16 sps:$4 sm:$0xff]  }
 0x1b8   :  { %5225 = vmatprep.subr.bf16.mxu0 %v9812_v21  ;;  %5758 = vmatprep.subr.bf16.mxu1 %v9815_v39  ;;  %v9903_v21 = vld [vmem:[%s14106_s1 + $0xfa4] ss:$16 sps:$4 sm:$0xff]   ;;  %v9906_v39 = vld [vmem:[%s14106_s1 + $0xfac] ss:$16 sps:$4 sm:$0xff]  }
 0x1bb   :  { %5226 = vmatpush1.bf16.msra.mxu0 %v9810_v40  ;;  %5759 = vmatpush1.bf16.msra.mxu1 %v9813_v41  ;;  %v9901_v40 = vld [vmem:[%s14106_s1 + $0xfa0] ss:$16 sps:$4 sm:$0xff]   ;;  %v9904_v41 = vld [vmem:[%s14106_s1 + $0xfa8] ss:$16 sps:$4 sm:$0xff]  }
 0x1bc   :  { %5227 = vmatprep.subr.bf16.mxu0 %v9818_v34  ;;  %5760 = vmatprep.subr.bf16.mxu1 %v9821_v43  ;;  %v9909_v34 = vld [vmem:[%s14106_s1 + $0xfc4] ss:$16 sps:$4 sm:$0xff]   ;;  %v9912_v43 = vld [vmem:[%s14106_s1 + $0xfcc] ss:$16 sps:$4 sm:$0xff]  }
 0x1bf   :  { %5228 = vmatpush1.bf16.msra.mxu0 %v9816_v44  ;;  %5761 = vmatpush1.bf16.msra.mxu1 %v9819_v45  ;;  %v12388_v44 = vld [vmem:[%s14105_s0 + $0x10] sm:$0xff] }
 0x1c0   :  { %5238 = vmatprep.subr.bf16.mxu0 %v9825_v46  ;;  %5771 = vmatprep.subr.bf16.mxu1 %v9828_v35  ;;  %v9907_v45 = vld [vmem:[%s14106_s1 + $0xfc0] ss:$16 sps:$4 sm:$0xff]   ;;  %v9910_v46 = vld [vmem:[%s14106_s1 + $0xfc8] ss:$16 sps:$4 sm:$0xff]   ;;  %v9915_v35 = vld [vmem:[%s14106_s1 + $0xfe4] ss:$16 sps:$4 sm:$0xff]  }
 0x1c2   :  { %5230 = vmatmul.mubr.bf16.vlgmr.msra.gmra.mrb[0].mxu0 %v12211_v48  ;;  %5763 = vmatmul.mubr.bf16.vlgmr.msra.gmra.mrb[0].mxu1 %v12211_v48 }
 0x1c3   :  { %5239 = vmatpush1.bf16.msra.mxu0 %v9823_v50  ;;  %5772 = vmatpush1.bf16.msra.mxu1 %v9826_v51  ;;  %v9918_v50 = vld [vmem:[%s14106_s1 + $0xfec] ss:$16 sps:$4 sm:$0xff]   ;;  %v12404_v51 = vrot.slane %v12388_v44, %v10917_v49 }
 0x1c4   :  { %5240 = vmatprep.subr.bf16.mxu0 %v9831_v53  ;;  %5773 = vmatprep.subr.bf16.mxu1 %v9834_v38  ;;  %v9913_v53 = vld [vmem:[%s14106_s1 + $0xfe0] ss:$16 sps:$4 sm:$0xff]   ;;  %v9916_v38 = vld [vmem:[%s14106_s1 + $0xfe8] ss:$16 sps:$4 sm:$0xff]  }
 0x1c5   :  { %5270 = vmatprep.mubr.bf16.mxu0 %v939_v54  ;;  %5803 = vmatprep.mubr.bf16.mxu1 %v939_v54  ;;  %v9921_v54 = vld [vmem:[%s14106_s1 + $0x1004] ss:$16 sps:$4 sm:$0xff]  }
 0x1c7   :  { %5241 = vmatpush1.bf16.msra.mxu0 %v9829_v55  ;;  %5774 = vmatpush1.bf16.msra.mxu1 %v9832_v56  ;;  %v9924_v55 = vld [vmem:[%s14106_s1 + $0x100c] ss:$16 sps:$4 sm:$0xff]   ;;  %v955_v56 = vcombine.high %v12404_v51, %v12404_v51 }
 0x1c8   :  { %5242 = vmatprep.subr.bf16.mxu0 %v9837_v47  ;;  %5775 = vmatprep.subr.bf16.mxu1 %v9840_v57  ;;  %v937_v47 = vcombine.high %v12211_v48, %v12211_v48  ;;  %v9919_v57 = vld [vmem:[%s14106_s1 + $0x1000] ss:$16 sps:$4 sm:$0xff]   ;;  %v9930_v48 = vld [vmem:[%s14106_s1 + $0x102c] ss:$16 sps:$4 sm:$0xff]  }
 0x1cb   :  { %5243 = vmatpush1.bf16.msra.mxu0 %v9835_v58  ;;  %5776 = vmatpush1.bf16.msra.mxu1 %v9838_v59  ;;  %v9922_v58 = vld [vmem:[%s14106_s1 + $0x1008] ss:$16 sps:$4 sm:$0xff]   ;;  %v9927_v59 = vld [vmem:[%s14106_s1 + $0x1024] ss:$16 sps:$4 sm:$0xff]  }
 0x1cc   :  { %5244 = vmatprep.subr.bf16.mxu0 %v9843_v60  ;;  %5777 = vmatprep.subr.bf16.mxu1 %v9846_v61  ;;  %v12435_v60 = vrot.slane %v955_v56, %v10917_v49  ;;  %v9925_v61 = vld [vmem:[%s14106_s1 + $0x1020] ss:$16 sps:$4 sm:$0xff]   ;;  %v10006_v56 = vld [vmem:[%s14106_s1 + $0x11c8] ss:$16 sps:$4 sm:$0xff]  }
 0x1cf   :  { %5245 = vmatpush1.bf16.msra.mxu0 %v9841_v62  ;;  %5778 = vmatpush1.bf16.msra.mxu1 %v9844_v63  ;;  %v9928_v62 = vld [vmem:[%s14106_s1 + $0x1028] ss:$16 sps:$4 sm:$0xff]   ;;  %v9933_v63 = vld [vmem:[%s14106_s1 + $0x1044] ss:$16 sps:$4 sm:$0xff]  }
 0x1d0   :  { %5246 = vmatprep.subr.bf16.mxu0 %v9849_v0  ;;  %5779 = vmatprep.subr.bf16.mxu1 %v9852_v1  ;;  %v9936_v0 = vld [vmem:[%s14106_s1 + $0x104c] ss:$16 sps:$4 sm:$0xff]   ;;  %v9931_v1 = vld [vmem:[%s14106_s1 + $0x1040] ss:$16 sps:$4 sm:$0xff]  }
 0x1d3   :  { %5247 = vmatpush1.bf16.msra.mxu0 %v9847_v2  ;;  %5780 = vmatpush1.bf16.msra.mxu1 %v9850_v3  ;;  %v9934_v2 = vld [vmem:[%s14106_s1 + $0x1048] ss:$16 sps:$4 sm:$0xff]   ;;  %v9939_v3 = vld [vmem:[%s14106_s1 + $0x1064] ss:$16 sps:$4 sm:$0xff]  }
 0x1d4   :  { %5248 = vmatprep.subr.bf16.mxu0 %v9855_v4  ;;  %5781 = vmatprep.subr.bf16.mxu1 %v9858_v5  ;;  %v9942_v4 = vld [vmem:[%s14106_s1 + $0x106c] ss:$16 sps:$4 sm:$0xff]   ;;  %v9937_v5 = vld [vmem:[%s14106_s1 + $0x1060] ss:$16 sps:$4 sm:$0xff]  }
 0x1d7   :  { %5249 = vmatpush1.bf16.msra.mxu0 %v9853_v6  ;;  %5782 = vmatpush1.bf16.msra.mxu1 %v9856_v7  ;;  %v9940_v6 = vld [vmem:[%s14106_s1 + $0x1068] ss:$16 sps:$4 sm:$0xff]   ;;  %v9945_v7 = vld [vmem:[%s14106_s1 + $0x1084] ss:$16 sps:$4 sm:$0xff]  }
 0x1d8   :  { %5250 = vmatprep.subr.bf16.mxu0 %v9861_v8  ;;  %5783 = vmatprep.subr.bf16.mxu1 %v9864_v9  ;;  %v9948_v8 = vld [vmem:[%s14106_s1 + $0x108c] ss:$16 sps:$4 sm:$0xff]   ;;  %v9943_v9 = vld [vmem:[%s14106_s1 + $0x1080] ss:$16 sps:$4 sm:$0xff]  }
 0x1db   :  { %5251 = vmatpush1.bf16.msra.mxu0 %v9859_v10  ;;  %5784 = vmatpush1.bf16.msra.mxu1 %v9862_v11  ;;  %v9946_v10 = vld [vmem:[%s14106_s1 + $0x1088] ss:$16 sps:$4 sm:$0xff]   ;;  %v9951_v11 = vld [vmem:[%s14106_s1 + $0x10a4] ss:$16 sps:$4 sm:$0xff]  }
 0x1dc   :  { %5252 = vmatprep.subr.bf16.mxu0 %v9867_v12  ;;  %5785 = vmatprep.subr.bf16.mxu1 %v9870_v52  ;;  %v9954_v12 = vld [vmem:[%s14106_s1 + $0x10ac] ss:$16 sps:$4 sm:$0xff]   ;;  %v9949_v52 = vld [vmem:[%s14106_s1 + $0x10a0] ss:$16 sps:$4 sm:$0xff]  }
 0x1df   :  { %5253 = vmatpush1.bf16.msra.mxu0 %v9865_v15  ;;  %5786 = vmatpush1.bf16.msra.mxu1 %v9868_v16  ;;  %v9952_v15 = vld [vmem:[%s14106_s1 + $0x10a8] ss:$16 sps:$4 sm:$0xff]   ;;  %v9957_v16 = vld [vmem:[%s14106_s1 + $0x10c4] ss:$16 sps:$4 sm:$0xff]  }
 0x1e0   :  { %5254 = vmatprep.subr.bf16.mxu0 %v9873_v17  ;;  %5787 = vmatprep.subr.bf16.mxu1 %v9876_v18  ;;  %v9960_v17 = vld [vmem:[%s14106_s1 + $0x10cc] ss:$16 sps:$4 sm:$0xff]   ;;  %v9955_v18 = vld [vmem:[%s14106_s1 + $0x10c0] ss:$16 sps:$4 sm:$0xff]  }
 0x1e3   :  { %5255 = vmatpush1.bf16.msra.mxu0 %v9871_v19  ;;  %5788 = vmatpush1.bf16.msra.mxu1 %v9874_v20  ;;  %v9958_v19 = vld [vmem:[%s14106_s1 + $0x10c8] ss:$16 sps:$4 sm:$0xff]   ;;  %v9963_v20 = vld [vmem:[%s14106_s1 + $0x10e4] ss:$16 sps:$4 sm:$0xff]  }
 0x1e4   :  { %5256 = vmatprep.subr.bf16.mxu0 %v9879_v22  ;;  %5789 = vmatprep.subr.bf16.mxu1 %v9882_v23  ;;  %v9966_v22 = vld [vmem:[%s14106_s1 + $0x10ec] ss:$16 sps:$4 sm:$0xff]   ;;  %v9961_v23 = vld [vmem:[%s14106_s1 + $0x10e0] ss:$16 sps:$4 sm:$0xff]  }
 0x1e7   :  { %5257 = vmatpush1.bf16.msra.mxu0 %v9877_v24  ;;  %5790 = vmatpush1.bf16.msra.mxu1 %v9880_v13  ;;  %v9964_v24 = vld [vmem:[%s14106_s1 + $0x10e8] ss:$16 sps:$4 sm:$0xff]   ;;  %v9969_v13 = vld [vmem:[%s14106_s1 + $0x1104] ss:$16 sps:$4 sm:$0xff]  }
 0x1e8   :  { %5258 = vmatprep.subr.bf16.mxu0 %v9885_v27  ;;  %5791 = vmatprep.subr.bf16.mxu1 %v9888_v28  ;;  %v9972_v27 = vld [vmem:[%s14106_s1 + $0x110c] ss:$16 sps:$4 sm:$0xff]   ;;  %v9967_v28 = vld [vmem:[%s14106_s1 + $0x1100] ss:$16 sps:$4 sm:$0xff]  }
 0x1eb   :  { %5259 = vmatpush1.bf16.msra.mxu0 %v9883_v29  ;;  %5792 = vmatpush1.bf16.msra.mxu1 %v9886_v14  ;;  %v9970_v29 = vld [vmem:[%s14106_s1 + $0x1108] ss:$16 sps:$4 sm:$0xff]   ;;  %v9975_v14 = vld [vmem:[%s14106_s1 + $0x1124] ss:$16 sps:$4 sm:$0xff]  }
 0x1ec   :  { %5260 = vmatprep.subr.bf16.mxu0 %v9891_v30  ;;  %5793 = vmatprep.subr.bf16.mxu1 %v9894_v31  ;;  %v9978_v30 = vld [vmem:[%s14106_s1 + $0x112c] ss:$16 sps:$4 sm:$0xff]   ;;  %v9973_v31 = vld [vmem:[%s14106_s1 + $0x1120] ss:$16 sps:$4 sm:$0xff]  }
 0x1ef   :  { %5261 = vmatpush1.bf16.msra.mxu0 %v9889_v25  ;;  %5794 = vmatpush1.bf16.msra.mxu1 %v9892_v32  ;;  %v9976_v25 = vld [vmem:[%s14106_s1 + $0x1128] ss:$16 sps:$4 sm:$0xff]   ;;  %v9981_v32 = vld [vmem:[%s14106_s1 + $0x1144] ss:$16 sps:$4 sm:$0xff]  }
 0x1f0   :  { %5262 = vmatprep.subr.bf16.mxu0 %v9897_v33  ;;  %5795 = vmatprep.subr.bf16.mxu1 %v9900_v26  ;;  %v9984_v33 = vld [vmem:[%s14106_s1 + $0x114c] ss:$16 sps:$4 sm:$0xff]   ;;  %v9979_v26 = vld [vmem:[%s14106_s1 + $0x1140] ss:$16 sps:$4 sm:$0xff]  }
 0x1f3   :  { %5263 = vmatpush1.bf16.msra.mxu0 %v9895_v36  ;;  %5796 = vmatpush1.bf16.msra.mxu1 %v9898_v37  ;;  %v9982_v36 = vld [vmem:[%s14106_s1 + $0x1148] ss:$16 sps:$4 sm:$0xff]   ;;  %v9987_v37 = vld [vmem:[%s14106_s1 + $0x1164] ss:$16 sps:$4 sm:$0xff]  }
 0x1f4   :  { %5264 = vmatprep.subr.bf16.mxu0 %v9903_v21  ;;  %5797 = vmatprep.subr.bf16.mxu1 %v9906_v39  ;;  %v9990_v21 = vld [vmem:[%s14106_s1 + $0x116c] ss:$16 sps:$4 sm:$0xff]   ;;  %v9985_v39 = vld [vmem:[%s14106_s1 + $0x1160] ss:$16 sps:$4 sm:$0xff]  }
 0x1f7   :  { %5265 = vmatpush1.bf16.msra.mxu0 %v9901_v40  ;;  %5798 = vmatpush1.bf16.msra.mxu1 %v9904_v41  ;;  %v9988_v40 = vld [vmem:[%s14106_s1 + $0x1168] ss:$16 sps:$4 sm:$0xff]   ;;  %v9993_v41 = vld [vmem:[%s14106_s1 + $0x1184] ss:$16 sps:$4 sm:$0xff]  }
 0x1f8   :  { %5266 = vmatprep.subr.bf16.mxu0 %v9909_v34  ;;  %5799 = vmatprep.subr.bf16.mxu1 %v9912_v43  ;;  %v9996_v34 = vld [vmem:[%s14106_s1 + $0x118c] ss:$16 sps:$4 sm:$0xff]   ;;  %v9991_v43 = vld [vmem:[%s14106_s1 + $0x1180] ss:$16 sps:$4 sm:$0xff]  }
 0x1fb   :  { %5267 = vmatpush1.bf16.msra.mxu0 %v9907_v45  ;;  %5800 = vmatpush1.bf16.msra.mxu1 %v9910_v46  ;;  %v9994_v45 = vld [vmem:[%s14106_s1 + $0x1188] ss:$16 sps:$4 sm:$0xff]   ;;  %v9999_v46 = vld [vmem:[%s14106_s1 + $0x11a4] ss:$16 sps:$4 sm:$0xff]  }
 0x1fc   :  { %5268 = vmatprep.subr.bf16.mxu0 %v9915_v35  ;;  %5801 = vmatprep.subr.bf16.mxu1 %v9918_v50  ;;  %v10002_v35 = vld [vmem:[%s14106_s1 + $0x11ac] ss:$16 sps:$4 sm:$0xff]   ;;  %v9997_v50 = vld [vmem:[%s14106_s1 + $0x11a0] ss:$16 sps:$4 sm:$0xff]  }
 0x1ff   :  { %5269 = vmatpush1.bf16.msra.mxu0 %v9913_v53  ;;  %5802 = vmatpush1.bf16.msra.mxu1 %v9916_v38  ;;  %v10000_v53 = vld [vmem:[%s14106_s1 + $0x11a8] ss:$16 sps:$4 sm:$0xff]   ;;  %v10005_v38 = vld [vmem:[%s14106_s1 + $0x11c4] ss:$16 sps:$4 sm:$0xff]  }
 0x200   :  { %5279 = vmatprep.subr.bf16.mxu0 %v9921_v54  ;;  %5812 = vmatprep.subr.bf16.mxu1 %v9924_v55  ;;  %v10008_v54 = vld [vmem:[%s14106_s1 + $0x11cc] ss:$16 sps:$4 sm:$0xff]   ;;  %v10003_v55 = vld [vmem:[%s14106_s1 + $0x11c0] ss:$16 sps:$4 sm:$0xff]  }
 0x202   :  { %5271 = vmatmul.mubr.bf16.vlgmr.msra.gmra.mrb[0].mxu0 %v937_v47  ;;  %5804 = vmatmul.mubr.bf16.vlgmr.msra.gmra.mrb[0].mxu1 %v937_v47  ;;  %v10011_v47 = vld [vmem:[%s14106_s1 + $0x11e4] ss:$16 sps:$4 sm:$0xff]  }
 0x203   :  { %5280 = vmatpush1.bf16.msra.mxu0 %v9919_v57  ;;  %5813 = vmatpush1.bf16.msra.mxu1 %v9922_v58  ;;  %v10014_v57 = vld [vmem:[%s14106_s1 + $0x11ec] ss:$16 sps:$4 sm:$0xff]   ;;  %v10009_v58 = vld [vmem:[%s14106_s1 + $0x11e0] ss:$16 sps:$4 sm:$0xff]  }
 0x204   :  { %5281 = vmatprep.subr.bf16.mxu0 %v9927_v59  ;;  %5814 = vmatprep.subr.bf16.mxu1 %v9930_v48  ;;  %v10012_v59 = vld [vmem:[%s14106_s1 + $0x11e8] ss:$16 sps:$4 sm:$0xff]   ;;  %v10017_v48 = vld [vmem:[%s14106_s1 + $0x1204] ss:$16 sps:$4 sm:$0xff]  }
 0x205   :  { %5311 = vmatprep.mubr.bf16.mxu0 %v12435_v60  ;;  %5844 = vmatprep.mubr.bf16.mxu1 %v12435_v60 }
 0x207   :  { %5282 = vmatpush1.bf16.msra.mxu0 %v9925_v61  ;;  %5815 = vmatpush1.bf16.msra.mxu1 %v9928_v62  ;;  %v10020_v61 = vld [vmem:[%s14106_s1 + $0x120c] ss:$16 sps:$4 sm:$0xff]   ;;  %v12621_v62 = vrot.slane %v12404_v51, %v10917_v49 }
 0x208   :  { %5283 = vmatprep.subr.bf16.mxu0 %v9933_v63  ;;  %5816 = vmatprep.subr.bf16.mxu1 %v9936_v0  ;;  %v10015_v63 = vld [vmem:[%s14106_s1 + $0x1200] ss:$16 sps:$4 sm:$0xff]   ;;  %v10018_v0 = vld [vmem:[%s14106_s1 + $0x1208] ss:$16 sps:$4 sm:$0xff]   ;;  %v10026_v51 = vld [vmem:[%s14106_s1 + $0x122c] ss:$16 sps:$4 sm:$0xff]  }
 0x20b   :  { %5284 = vmatpush1.bf16.msra.mxu0 %v9931_v1  ;;  %5817 = vmatpush1.bf16.msra.mxu1 %v9934_v2  ;;  %v10023_v1 = vld [vmem:[%s14106_s1 + $0x1224] ss:$16 sps:$4 sm:$0xff]   ;;  %v987_v2 = vcombine.high %v12435_v60, %v12435_v60 }
 0x20c   :  { %5285 = vmatprep.subr.bf16.mxu0 %v9939_v3  ;;  %5818 = vmatprep.subr.bf16.mxu1 %v9942_v4  ;;  %v10021_v3 = vld [vmem:[%s14106_s1 + $0x1220] ss:$16 sps:$4 sm:$0xff]   ;;  %v10024_v4 = vld [vmem:[%s14106_s1 + $0x1228] ss:$16 sps:$4 sm:$0xff]   ;;  %v10029_v60 = vld [vmem:[%s14106_s1 + $0x1244] ss:$16 sps:$4 sm:$0xff]  }
 0x20f   :  { %5286 = vmatpush1.bf16.msra.mxu0 %v9937_v5  ;;  %5819 = vmatpush1.bf16.msra.mxu1 %v9940_v6  ;;  %v10032_v5 = vld [vmem:[%s14106_s1 + $0x124c] ss:$16 sps:$4 sm:$0xff]   ;;  %v10027_v6 = vld [vmem:[%s14106_s1 + $0x1240] ss:$16 sps:$4 sm:$0xff]  }
 0x210   :  { %5287 = vmatprep.subr.bf16.mxu0 %v9945_v7  ;;  %5820 = vmatprep.subr.bf16.mxu1 %v9948_v8  ;;  %v10030_v7 = vld [vmem:[%s14106_s1 + $0x1248] ss:$16 sps:$4 sm:$0xff]   ;;  %v10035_v8 = vld [vmem:[%s14106_s1 + $0x1264] ss:$16 sps:$4 sm:$0xff]  }
 0x213   :  { %5288 = vmatpush1.bf16.msra.mxu0 %v9943_v9  ;;  %5821 = vmatpush1.bf16.msra.mxu1 %v9946_v10  ;;  %v10038_v9 = vld [vmem:[%s14106_s1 + $0x126c] ss:$16 sps:$4 sm:$0xff]  }
 0x214   :  { %5289 = vmatprep.subr.bf16.mxu0 %v9951_v11  ;;  %5822 = vmatprep.subr.bf16.mxu1 %v9954_v12 }
 0x217   :  { %5290 = vmatpush1.bf16.msra.mxu0 %v9949_v52  ;;  %5823 = vmatpush1.bf16.msra.mxu1 %v9952_v15 }
 0x218   :  { %5291 = vmatprep.subr.bf16.mxu0 %v9957_v16  ;;  %5824 = vmatprep.subr.bf16.mxu1 %v9960_v17 }
 0x21b   :  { %5292 = vmatpush1.bf16.msra.mxu0 %v9955_v18  ;;  %5825 = vmatpush1.bf16.msra.mxu1 %v9958_v19 }
 0x21c   :  { %5293 = vmatprep.subr.bf16.mxu0 %v9963_v20  ;;  %5826 = vmatprep.subr.bf16.mxu1 %v9966_v22 }
 0x21f   :  { %5294 = vmatpush1.bf16.msra.mxu0 %v9961_v23  ;;  %5827 = vmatpush1.bf16.msra.mxu1 %v9964_v24 }
 0x220   :  { %5295 = vmatprep.subr.bf16.mxu0 %v9969_v13  ;;  %5828 = vmatprep.subr.bf16.mxu1 %v9972_v27 }
 0x223   :  { %5296 = vmatpush1.bf16.msra.mxu0 %v9967_v28  ;;  %5829 = vmatpush1.bf16.msra.mxu1 %v9970_v29 }
 0x224   :  { %5297 = vmatprep.subr.bf16.mxu0 %v9975_v14  ;;  %5830 = vmatprep.subr.bf16.mxu1 %v9978_v30 }
 0x227   :  { %5298 = vmatpush1.bf16.msra.mxu0 %v9973_v31  ;;  %5831 = vmatpush1.bf16.msra.mxu1 %v9976_v25 }
 0x228   :  { %5299 = vmatprep.subr.bf16.mxu0 %v9981_v32  ;;  %5832 = vmatprep.subr.bf16.mxu1 %v9984_v33 }
 0x22b   :  { %5300 = vmatpush1.bf16.msra.mxu0 %v9979_v26  ;;  %5833 = vmatpush1.bf16.msra.mxu1 %v9982_v36 }
 0x22c   :  { %5301 = vmatprep.subr.bf16.mxu0 %v9987_v37  ;;  %5834 = vmatprep.subr.bf16.mxu1 %v9990_v21 }
 0x22f   :  { %5302 = vmatpush1.bf16.msra.mxu0 %v9985_v39  ;;  %5835 = vmatpush1.bf16.msra.mxu1 %v9988_v40 }
 0x230   :  { %5303 = vmatprep.subr.bf16.mxu0 %v9993_v41  ;;  %5836 = vmatprep.subr.bf16.mxu1 %v9996_v34 }
 0x233   :  { %5304 = vmatpush1.bf16.msra.mxu0 %v9991_v43  ;;  %5837 = vmatpush1.bf16.msra.mxu1 %v9994_v45 }
 0x234   :  { %5305 = vmatprep.subr.bf16.mxu0 %v9999_v46  ;;  %5838 = vmatprep.subr.bf16.mxu1 %v10002_v35 }
 0x237   :  { %5306 = vmatpush1.bf16.msra.mxu0 %v9997_v50  ;;  %5839 = vmatpush1.bf16.msra.mxu1 %v10000_v53 }
 0x238   :  { %5307 = vmatprep.subr.bf16.mxu0 %v10005_v38  ;;  %5840 = vmatprep.subr.bf16.mxu1 %v10008_v54 }
 0x23b   :  { %5308 = vmatpush1.bf16.msra.mxu0 %v10003_v55  ;;  %5841 = vmatpush1.bf16.msra.mxu1 %v10006_v56 }
 0x23c   :  { %5309 = vmatprep.subr.bf16.mxu0 %v10011_v47  ;;  %5842 = vmatprep.subr.bf16.mxu1 %v10014_v57 }
 0x23f   :  { %5310 = vmatpush1.bf16.msra.mxu0 %v10009_v58  ;;  %5843 = vmatpush1.bf16.msra.mxu1 %v10012_v59 }
 0x240   :  { %5320 = vmatprep.subr.bf16.mxu0 %v10017_v48  ;;  %5853 = vmatprep.subr.bf16.mxu1 %v10020_v61 }
 0x242   :  { %5312 = vmatmul.mubr.bf16.vlgmr.msra.gmra.mrb[0].mxu0 %v12621_v62  ;;  %5845 = vmatmul.mubr.bf16.vlgmr.msra.gmra.mrb[0].mxu1 %v12621_v62 }
 0x243   :  { %5321 = vmatpush1.bf16.msra.mxu0 %v10015_v63  ;;  %5854 = vmatpush1.bf16.msra.mxu1 %v10018_v0 }
 0x244   :  { %5322 = vmatprep.subr.bf16.mxu0 %v10023_v1  ;;  %5855 = vmatprep.subr.bf16.mxu1 %v10026_v51 }
 0x245   :  { %5352 = vmatprep.mubr.bf16.mxu0 %v987_v2  ;;  %5885 = vmatprep.mubr.bf16.mxu1 %v987_v2 }
 0x247   :  { %5323 = vmatpush1.bf16.msra.mxu0 %v10021_v3  ;;  %5856 = vmatpush1.bf16.msra.mxu1 %v10024_v4 }
 0x248   :  { %5324 = vmatprep.subr.bf16.mxu0 %v10029_v60  ;;  %5857 = vmatprep.subr.bf16.mxu1 %v10032_v5 }
 0x249   :  { %12 = vsyncpa [#allocation3], 0  ;;  %v10033_v10 = vld [vmem:[%s14106_s1 + $0x1260] ss:$16 sps:$4 sm:$0xff]   ;;  %v10036_v11 = vld [vmem:[%s14106_s1 + $0x1268] ss:$16 sps:$4 sm:$0xff]   ;;  %v940_v59 = vcombine.high %v12388_v44, %v12388_v44  ;;  %v985_v60 = vcombine.high %v12621_v62, %v12621_v62 }
 0x24a   :  { %v10041_v12 = vld [vmem:[%s14106_s1 + $0x1284] ss:$16 sps:$4 sm:$0xff]   ;;  %v10044_v52 = vld [vmem:[%s14106_s1 + $0x128c] ss:$16 sps:$4 sm:$0xff]   ;;  %v10039_v15 = vld [vmem:[%s14106_s1 + $0x1280] ss:$16 sps:$4 sm:$0xff]  }
 0x24b   :  { %5325 = vmatpush1.bf16.msra.mxu0 %v10027_v6  ;;  %5858 = vmatpush1.bf16.msra.mxu1 %v10030_v7  ;;  %v10042_v16 = vld [vmem:[%s14106_s1 + $0x1288] ss:$16 sps:$4 sm:$0xff]   ;;  %v10047_v17 = vld [vmem:[%s14106_s1 + $0x12a4] ss:$16 sps:$4 sm:$0xff]   ;;  %v10050_v18 = vld [vmem:[%s14106_s1 + $0x12ac] ss:$16 sps:$4 sm:$0xff]   ;;  %v12810_v0 = vrot.slane %v940_v59, %v10917_v49 }
 0x24c   :  { %5326 = vmatprep.subr.bf16.mxu0 %v10035_v8  ;;  %5859 = vmatprep.subr.bf16.mxu1 %v10038_v9  ;;  %v10045_v19 = vld [vmem:[%s14106_s1 + $0x12a0] ss:$16 sps:$4 sm:$0xff]   ;;  %v10048_v20 = vld [vmem:[%s14106_s1 + $0x12a8] ss:$16 sps:$4 sm:$0xff]   ;;  %v10053_v22 = vld [vmem:[%s14106_s1 + $0x12c4] ss:$16 sps:$4 sm:$0xff]  }
 0x24d   :  { %v10056_v23 = vld [vmem:[%s14106_s1 + $0x12cc] ss:$16 sps:$4 sm:$0xff]   ;;  %v10051_v24 = vld [vmem:[%s14106_s1 + $0x12c0] ss:$16 sps:$4 sm:$0xff]   ;;  %v10054_v13 = vld [vmem:[%s14106_s1 + $0x12c8] ss:$16 sps:$4 sm:$0xff]   ;;  %v956_v4 = vcombine.high %v12810_v0, %v12810_v0 }
 0x24e   :  { %v10059_v27 = vld [vmem:[%s14106_s1 + $0x12e4] ss:$16 sps:$4 sm:$0xff]   ;;  %v10062_v28 = vld [vmem:[%s14106_s1 + $0x12ec] ss:$16 sps:$4 sm:$0xff]   ;;  %v10057_v29 = vld [vmem:[%s14106_s1 + $0x12e0] ss:$16 sps:$4 sm:$0xff]  }
 0x24f   :  { %5327 = vmatpush1.bf16.msra.mxu0 %v10033_v10  ;;  %5860 = vmatpush1.bf16.msra.mxu1 %v10036_v11  ;;  %v10060_v14 = vld [vmem:[%s14106_s1 + $0x12e8] ss:$16 sps:$4 sm:$0xff]   ;;  %v10065_v30 = vld [vmem:[%s14106_s1 + $0x1304] ss:$16 sps:$4 sm:$0xff]   ;;  %v10068_v31 = vld [vmem:[%s14106_s1 + $0x130c] ss:$16 sps:$4 sm:$0xff]   ;;  %v12841_v8 = vrot.slane %v956_v4, %v10917_v49 }
 0x250   :  { %5328 = vmatprep.subr.bf16.mxu0 %v10041_v12  ;;  %5861 = vmatprep.subr.bf16.mxu1 %v10044_v52  ;;  %v10063_v25 = vld [vmem:[%s14106_s1 + $0x1300] ss:$16 sps:$4 sm:$0xff]   ;;  %v10066_v32 = vld [vmem:[%s14106_s1 + $0x1308] ss:$16 sps:$4 sm:$0xff]   ;;  %v10071_v33 = vld [vmem:[%s14106_s1 + $0x1324] ss:$16 sps:$4 sm:$0xff]  }
 0x251   :  { %v10074_v26 = vld [vmem:[%s14106_s1 + $0x132c] ss:$16 sps:$4 sm:$0xff]   ;;  %v10069_v36 = vld [vmem:[%s14106_s1 + $0x1320] ss:$16 sps:$4 sm:$0xff]   ;;  %v10072_v37 = vld [vmem:[%s14106_s1 + $0x1328] ss:$16 sps:$4 sm:$0xff]  }
 0x252   :  { %v10077_v21 = vld [vmem:[%s14106_s1 + $0x1344] ss:$16 sps:$4 sm:$0xff]   ;;  %v10080_v39 = vld [vmem:[%s14106_s1 + $0x134c] ss:$16 sps:$4 sm:$0xff]   ;;  %v10075_v40 = vld [vmem:[%s14106_s1 + $0x1340] ss:$16 sps:$4 sm:$0xff]  }
 0x253   :  { %5329 = vmatpush1.bf16.msra.mxu0 %v10039_v15  ;;  %5862 = vmatpush1.bf16.msra.mxu1 %v10042_v16  ;;  %v10078_v41 = vld [vmem:[%s14106_s1 + $0x1348] ss:$16 sps:$4 sm:$0xff]   ;;  %v10083_v34 = vld [vmem:[%s14106_s1 + $0x1364] ss:$16 sps:$4 sm:$0xff]   ;;  %v10086_v43 = vld [vmem:[%s14106_s1 + $0x136c] ss:$16 sps:$4 sm:$0xff]  }
 0x254   :  { %5330 = vmatprep.subr.bf16.mxu0 %v10047_v17  ;;  %5863 = vmatprep.subr.bf16.mxu1 %v10050_v18  ;;  %v10081_v45 = vld [vmem:[%s14106_s1 + $0x1360] ss:$16 sps:$4 sm:$0xff]   ;;  %v10084_v46 = vld [vmem:[%s14106_s1 + $0x1368] ss:$16 sps:$4 sm:$0xff]   ;;  %v10089_v35 = vld [vmem:[%s14106_s1 + $0x1384] ss:$16 sps:$4 sm:$0xff]  }
 0x255   :  { %v10092_v50 = vld [vmem:[%s14106_s1 + $0x138c] ss:$16 sps:$4 sm:$0xff]   ;;  %v10087_v53 = vld [vmem:[%s14106_s1 + $0x1380] ss:$16 sps:$4 sm:$0xff]   ;;  %v10090_v38 = vld [vmem:[%s14106_s1 + $0x1388] ss:$16 sps:$4 sm:$0xff]  }
 0x256   :  { %v10095_v54 = vld [vmem:[%s14106_s1 + $0x13a4] ss:$16 sps:$4 sm:$0xff]   ;;  %v10098_v55 = vld [vmem:[%s14106_s1 + $0x13ac] ss:$16 sps:$4 sm:$0xff]   ;;  %v10093_v56 = vld [vmem:[%s14106_s1 + $0x13a0] ss:$16 sps:$4 sm:$0xff]  }
 0x257   :  { %5331 = vmatpush1.bf16.msra.mxu0 %v10045_v19  ;;  %5864 = vmatpush1.bf16.msra.mxu1 %v10048_v20  ;;  %v10096_v47 = vld [vmem:[%s14106_s1 + $0x13a8] ss:$16 sps:$4 sm:$0xff]   ;;  %v10101_v57 = vld [vmem:[%s14106_s1 + $0x13c4] ss:$16 sps:$4 sm:$0xff]   ;;  %v10104_v58 = vld [vmem:[%s14106_s1 + $0x13cc] ss:$16 sps:$4 sm:$0xff]  }
 0x258   :  { %5332 = vmatprep.subr.bf16.mxu0 %v10053_v22  ;;  %5865 = vmatprep.subr.bf16.mxu1 %v10056_v23  ;;  %v10099_v48 = vld [vmem:[%s14106_s1 + $0x13c0] ss:$16 sps:$4 sm:$0xff]   ;;  %v10102_v61 = vld [vmem:[%s14106_s1 + $0x13c8] ss:$16 sps:$4 sm:$0xff]   ;;  %v10107_v63 = vld [vmem:[%s14106_s1 + $0x13e4] ss:$16 sps:$4 sm:$0xff]  }
 0x259   :  { %v10110_v44 = vld [vmem:[%s14106_s1 + $0x13ec] ss:$16 sps:$4 sm:$0xff]   ;;  %v10105_v1 = vld [vmem:[%s14106_s1 + $0x13e0] ss:$16 sps:$4 sm:$0xff]   ;;  %v10108_v51 = vld [vmem:[%s14106_s1 + $0x13e8] ss:$16 sps:$4 sm:$0xff]  }
 0x25a   :  { %v10113_v2 = vld [vmem:[%s14106_s1 + $0x1404] ss:$16 sps:$4 sm:$0xff]   ;;  %v10116_v3 = vld [vmem:[%s14106_s1 + $0x140c] ss:$16 sps:$4 sm:$0xff]   ;;  %v10111_v5 = vld [vmem:[%s14106_s1 + $0x1400] ss:$16 sps:$4 sm:$0xff]  }
 0x25b   :  { %5333 = vmatpush1.bf16.msra.mxu0 %v10051_v24  ;;  %5866 = vmatpush1.bf16.msra.mxu1 %v10054_v13  ;;  %v10114_v6 = vld [vmem:[%s14106_s1 + $0x1408] ss:$16 sps:$4 sm:$0xff]   ;;  %v10119_v7 = vld [vmem:[%s14106_s1 + $0x1424] ss:$16 sps:$4 sm:$0xff]   ;;  %v10122_v62 = vld [vmem:[%s14106_s1 + $0x142c] ss:$16 sps:$4 sm:$0xff]  }
 0x25c   :  { %5334 = vmatprep.subr.bf16.mxu0 %v10059_v27  ;;  %5867 = vmatprep.subr.bf16.mxu1 %v10062_v28  ;;  %v10117_v9 = vld [vmem:[%s14106_s1 + $0x1420] ss:$16 sps:$4 sm:$0xff]   ;;  %v10120_v10 = vld [vmem:[%s14106_s1 + $0x1428] ss:$16 sps:$4 sm:$0xff]   ;;  %v10125_v11 = vld [vmem:[%s14106_s1 + $0x1444] ss:$16 sps:$4 sm:$0xff]  }
 0x25d   :  { %v10128_v12 = vld [vmem:[%s14106_s1 + $0x144c] ss:$16 sps:$4 sm:$0xff]   ;;  %v10123_v52 = vld [vmem:[%s14106_s1 + $0x1440] ss:$16 sps:$4 sm:$0xff]   ;;  %v10126_v15 = vld [vmem:[%s14106_s1 + $0x1448] ss:$16 sps:$4 sm:$0xff]  }
 0x25e   :  { %v10131_v16 = vld [vmem:[%s14106_s1 + $0x1464] ss:$16 sps:$4 sm:$0xff]   ;;  %v10134_v17 = vld [vmem:[%s14106_s1 + $0x146c] ss:$16 sps:$4 sm:$0xff]   ;;  %v10129_v18 = vld [vmem:[%s14106_s1 + $0x1460] ss:$16 sps:$4 sm:$0xff]  }
 0x25f   :  { %5335 = vmatpush1.bf16.msra.mxu0 %v10057_v29  ;;  %5868 = vmatpush1.bf16.msra.mxu1 %v10060_v14  ;;  %v10132_v19 = vld [vmem:[%s14106_s1 + $0x1468] ss:$16 sps:$4 sm:$0xff]   ;;  %v10137_v20 = vld [vmem:[%s14106_s1 + $0x1484] ss:$16 sps:$4 sm:$0xff]   ;;  %v10140_v22 = vld [vmem:[%s14106_s1 + $0x148c] ss:$16 sps:$4 sm:$0xff]  }
 0x260   :  { %5336 = vmatprep.subr.bf16.mxu0 %v10065_v30  ;;  %5869 = vmatprep.subr.bf16.mxu1 %v10068_v31  ;;  %v10135_v23 = vld [vmem:[%s14106_s1 + $0x1480] ss:$16 sps:$4 sm:$0xff]   ;;  %v10138_v24 = vld [vmem:[%s14106_s1 + $0x1488] ss:$16 sps:$4 sm:$0xff]   ;;  %v10143_v13 = vld [vmem:[%s14106_s1 + $0x14a4] ss:$16 sps:$4 sm:$0xff]  }
 0x261   :  { %v10146_v27 = vld [vmem:[%s14106_s1 + $0x14ac] ss:$16 sps:$4 sm:$0xff]   ;;  %v10141_v28 = vld [vmem:[%s14106_s1 + $0x14a0] ss:$16 sps:$4 sm:$0xff]   ;;  %v10144_v29 = vld [vmem:[%s14106_s1 + $0x14a8] ss:$16 sps:$4 sm:$0xff]  }
 0x262   :  { %v10149_v14 = vld [vmem:[%s14106_s1 + $0x14c4] ss:$16 sps:$4 sm:$0xff]   ;;  %v10152_v30 = vld [vmem:[%s14106_s1 + $0x14cc] ss:$16 sps:$4 sm:$0xff]   ;;  %v10147_v31 = vld [vmem:[%s14106_s1 + $0x14c0] ss:$16 sps:$4 sm:$0xff]  }
 0x263   :  { %5337 = vmatpush1.bf16.msra.mxu0 %v10063_v25  ;;  %5870 = vmatpush1.bf16.msra.mxu1 %v10066_v32  ;;  %v10150_v25 = vld [vmem:[%s14106_s1 + $0x14c8] ss:$16 sps:$4 sm:$0xff]   ;;  %v10155_v32 = vld [vmem:[%s14106_s1 + $0x14e4] ss:$16 sps:$4 sm:$0xff]   ;;  %vm4947_vm0 = vcmask 523264  }
 0x264   :  { %5338 = vmatprep.subr.bf16.mxu0 %v10071_v33  ;;  %5871 = vmatprep.subr.bf16.mxu1 %v10074_v26  ;;  %v10158_v33 = vld [vmem:[%s14106_s1 + $0x14ec] ss:$16 sps:$4 sm:$0xff]   ;;  %v10153_v26 = vld [vmem:[%s14106_s1 + $0x14e0] ss:$16 sps:$4 sm:$0xff]   ;;  %v10186_v59 = vld [vmem:[%s14106_s1 + $0x1588] ss:$16 sps:$4 sm:$0xff]  }
 0x265   :  { %v10203_v4 = vld [vmem:[%s14106_s1 + $0x15e4] ss:$16 sps:$4 sm:$0xff]  }
 0x267   :  { %5339 = vmatpush1.bf16.msra.mxu0 %v10069_v36  ;;  %5872 = vmatpush1.bf16.msra.mxu1 %v10072_v37  ;;  %v10156_v36 = vld [vmem:[%s14106_s1 + $0x14e8] ss:$16 sps:$4 sm:$0xff]   ;;  %v10161_v37 = vld [vmem:[%s14106_s1 + $0x1504] ss:$16 sps:$4 sm:$0xff]  }
 0x268   :  { %5340 = vmatprep.subr.bf16.mxu0 %v10077_v21  ;;  %5873 = vmatprep.subr.bf16.mxu1 %v10080_v39  ;;  %v10164_v21 = vld [vmem:[%s14106_s1 + $0x150c] ss:$16 sps:$4 sm:$0xff]   ;;  %v10159_v39 = vld [vmem:[%s14106_s1 + $0x1500] ss:$16 sps:$4 sm:$0xff]  }
 0x26b   :  { %5341 = vmatpush1.bf16.msra.mxu0 %v10075_v40  ;;  %5874 = vmatpush1.bf16.msra.mxu1 %v10078_v41  ;;  %v10162_v40 = vld [vmem:[%s14106_s1 + $0x1508] ss:$16 sps:$4 sm:$0xff]   ;;  %v10167_v41 = vld [vmem:[%s14106_s1 + $0x1524] ss:$16 sps:$4 sm:$0xff]  }
 0x26c   :  { %5342 = vmatprep.subr.bf16.mxu0 %v10083_v34  ;;  %5875 = vmatprep.subr.bf16.mxu1 %v10086_v43  ;;  %v10170_v34 = vld [vmem:[%s14106_s1 + $0x152c] ss:$16 sps:$4 sm:$0xff]   ;;  %v10165_v43 = vld [vmem:[%s14106_s1 + $0x1520] ss:$16 sps:$4 sm:$0xff]  }
 0x26f   :  { %5343 = vmatpush1.bf16.msra.mxu0 %v10081_v45  ;;  %5876 = vmatpush1.bf16.msra.mxu1 %v10084_v46  ;;  %v10168_v45 = vld [vmem:[%s14106_s1 + $0x1528] ss:$16 sps:$4 sm:$0xff]   ;;  %v10173_v46 = vld [vmem:[%s14106_s1 + $0x1544] ss:$16 sps:$4 sm:$0xff]  }
 0x270   :  { %5344 = vmatprep.subr.bf16.mxu0 %v10089_v35  ;;  %5877 = vmatprep.subr.bf16.mxu1 %v10092_v50  ;;  %v10176_v35 = vld [vmem:[%s14106_s1 + $0x154c] ss:$16 sps:$4 sm:$0xff]   ;;  %v10171_v50 = vld [vmem:[%s14106_s1 + $0x1540] ss:$16 sps:$4 sm:$0xff]  }
 0x273   :  { %5345 = vmatpush1.bf16.msra.mxu0 %v10087_v53  ;;  %5878 = vmatpush1.bf16.msra.mxu1 %v10090_v38  ;;  %v10174_v53 = vld [vmem:[%s14106_s1 + $0x1548] ss:$16 sps:$4 sm:$0xff]   ;;  %v10179_v38 = vld [vmem:[%s14106_s1 + $0x1564] ss:$16 sps:$4 sm:$0xff]  }
 0x274   :  { %5346 = vmatprep.subr.bf16.mxu0 %v10095_v54  ;;  %5879 = vmatprep.subr.bf16.mxu1 %v10098_v55  ;;  %v10182_v54 = vld [vmem:[%s14106_s1 + $0x156c] ss:$16 sps:$4 sm:$0xff]   ;;  %v10177_v55 = vld [vmem:[%s14106_s1 + $0x1560] ss:$16 sps:$4 sm:$0xff]  }
 0x277   :  { %5347 = vmatpush1.bf16.msra.mxu0 %v10093_v56  ;;  %5880 = vmatpush1.bf16.msra.mxu1 %v10096_v47  ;;  %v10180_v56 = vld [vmem:[%s14106_s1 + $0x1568] ss:$16 sps:$4 sm:$0xff]   ;;  %v10185_v47 = vld [vmem:[%s14106_s1 + $0x1584] ss:$16 sps:$4 sm:$0xff]  }
 0x278   :  { %5348 = vmatprep.subr.bf16.mxu0 %v10101_v57  ;;  %5881 = vmatprep.subr.bf16.mxu1 %v10104_v58  ;;  %v10188_v57 = vld [vmem:[%s14106_s1 + $0x158c] ss:$16 sps:$4 sm:$0xff]   ;;  %v10183_v58 = vld [vmem:[%s14106_s1 + $0x1580] ss:$16 sps:$4 sm:$0xff]  }
 0x27b   :  { %5349 = vmatpush1.bf16.msra.mxu0 %v10099_v48  ;;  %5882 = vmatpush1.bf16.msra.mxu1 %v10102_v61  ;;  %v10191_v48 = vld [vmem:[%s14106_s1 + $0x15a4] ss:$16 sps:$4 sm:$0xff]   ;;  %v10194_v61 = vld [vmem:[%s14106_s1 + $0x15ac] ss:$16 sps:$4 sm:$0xff]  }
 0x27c   :  { %5350 = vmatprep.subr.bf16.mxu0 %v10107_v63  ;;  %5883 = vmatprep.subr.bf16.mxu1 %v10110_v44  ;;  %v10189_v63 = vld [vmem:[%s14106_s1 + $0x15a0] ss:$16 sps:$4 sm:$0xff]   ;;  %v10192_v44 = vld [vmem:[%s14106_s1 + $0x15a8] ss:$16 sps:$4 sm:$0xff]  }
 0x27f   :  { %5351 = vmatpush1.bf16.msra.mxu0 %v10105_v1  ;;  %5884 = vmatpush1.bf16.msra.mxu1 %v10108_v51  ;;  %v10197_v1 = vld [vmem:[%s14106_s1 + $0x15c4] ss:$16 sps:$4 sm:$0xff]   ;;  %v10200_v51 = vld [vmem:[%s14106_s1 + $0x15cc] ss:$16 sps:$4 sm:$0xff]  }
 0x280   :  { %5361 = vmatprep.subr.bf16.mxu0 %v10113_v2  ;;  %5894 = vmatprep.subr.bf16.mxu1 %v10116_v3  ;;  %v10195_v2 = vld [vmem:[%s14106_s1 + $0x15c0] ss:$16 sps:$4 sm:$0xff]   ;;  %v10198_v3 = vld [vmem:[%s14106_s1 + $0x15c8] ss:$16 sps:$4 sm:$0xff]  }
 0x282   :  { %5353 = vmatmul.mubr.bf16.vlgmr.msra.gmra.mrb[0].mxu0 %v985_v60  ;;  %5886 = vmatmul.mubr.bf16.vlgmr.msra.gmra.mrb[0].mxu1 %v985_v60  ;;  %v10206_v60 = vld [vmem:[%s14106_s1 + $0x15ec] ss:$16 sps:$4 sm:$0xff]  }
 0x283   :  { %5362 = vmatpush1.bf16.msra.mxu0 %v10111_v5  ;;  %5895 = vmatpush1.bf16.msra.mxu1 %v10114_v6  ;;  %v10201_v5 = vld [vmem:[%s14106_s1 + $0x15e0] ss:$16 sps:$4 sm:$0xff]   ;;  %v10204_v6 = vld [vmem:[%s14106_s1 + $0x15e8] ss:$16 sps:$4 sm:$0xff]  }
 0x284   :  { %5363 = vmatprep.subr.bf16.mxu0 %v10119_v7  ;;  %5896 = vmatprep.subr.bf16.mxu1 %v10122_v62  ;;  %v10210_v7 = vld [vmem:[%s14106_s1 + $0x1604] ss:$16 sps:$4 sm:$0xff]   ;;  %v10213_v62 = vld [vmem:[%s14106_s1 + $0x160c] ss:$16 sps:$4 sm:$0xff]  }
 0x285   :  { %5393 = vmatprep.mubr.bf16.mxu0 %v12841_v8  ;;  %5926 = vmatprep.mubr.bf16.mxu1 %v12841_v8 }
 0x287   :  { %5364 = vmatpush1.bf16.msra.mxu0 %v10117_v9  ;;  %5897 = vmatpush1.bf16.msra.mxu1 %v10120_v10  ;;  %v13027_v9 = vrot.slane %v12810_v0, %v10917_v49  ;;  %v10208_v10 = vld [vmem:[%s14106_s1 + $0x1600] ss:$16 sps:$4 sm:$0xff]   ;;  %v10219_v0 = vld [vmem:[%s14106_s1 + $0x162c] ss:$16 sps:$4 sm:$0xff]  }
 0x288   :  { %5365 = vmatprep.subr.bf16.mxu0 %v10125_v11  ;;  %5898 = vmatprep.subr.bf16.mxu1 %v10128_v12  ;;  %v10211_v11 = vld [vmem:[%s14106_s1 + $0x1608] ss:$16 sps:$4 sm:$0xff]   ;;  %v10216_v12 = vld [vmem:[%s14106_s1 + $0x1624] ss:$16 sps:$4 sm:$0xff]  }
 0x28b   :  { %5366 = vmatpush1.bf16.msra.mxu0 %v10123_v52  ;;  %5899 = vmatpush1.bf16.msra.mxu1 %v10126_v15  ;;  %v988_v52 = vcombine.high %v12841_v8, %v12841_v8  ;;  %v10214_v15 = vld [vmem:[%s14106_s1 + $0x1620] ss:$16 sps:$4 sm:$0xff]   ;;  %v10222_v8 = vld [vmem:[%s14106_s1 + $0x1644] ss:$16 sps:$4 sm:$0xff]  }
 0x28c   :  { %5367 = vmatprep.subr.bf16.mxu0 %v10131_v16  ;;  %5900 = vmatprep.subr.bf16.mxu1 %v10134_v17  ;;  %v10217_v16 = vld [vmem:[%s14106_s1 + $0x1628] ss:$16 sps:$4 sm:$0xff]   ;;  %v10225_v17 = vld [vmem:[%s14106_s1 + $0x164c] ss:$16 sps:$4 sm:$0xff]  }
 0x28f   :  { %5368 = vmatpush1.bf16.msra.mxu0 %v10129_v18  ;;  %5901 = vmatpush1.bf16.msra.mxu1 %v10132_v19  ;;  %v10220_v18 = vld [vmem:[%s14106_s1 + $0x1640] ss:$16 sps:$4 sm:$0xff]   ;;  %v10223_v19 = vld [vmem:[%s14106_s1 + $0x1648] ss:$16 sps:$4 sm:$0xff]  }
 0x290   :  { %5369 = vmatprep.subr.bf16.mxu0 %v10137_v20  ;;  %5902 = vmatprep.subr.bf16.mxu1 %v10140_v22  ;;  %v10228_v20 = vld [vmem:[%s14106_s1 + $0x1664] ss:$16 sps:$4 sm:$0xff]   ;;  %v10231_v22 = vld [vmem:[%s14106_s1 + $0x166c] ss:$16 sps:$4 sm:$0xff]  }
 0x293   :  { %5370 = vmatpush1.bf16.msra.mxu0 %v10135_v23  ;;  %5903 = vmatpush1.bf16.msra.mxu1 %v10138_v24  ;;  %v10226_v23 = vld [vmem:[%s14106_s1 + $0x1660] ss:$16 sps:$4 sm:$0xff]   ;;  %v10229_v24 = vld [vmem:[%s14106_s1 + $0x1668] ss:$16 sps:$4 sm:$0xff]  }
 0x294   :  { %5371 = vmatprep.subr.bf16.mxu0 %v10143_v13  ;;  %5904 = vmatprep.subr.bf16.mxu1 %v10146_v27  ;;  %v10234_v13 = vld [vmem:[%s14106_s1 + $0x1684] ss:$16 sps:$4 sm:$0xff]   ;;  %v10237_v27 = vld [vmem:[%s14106_s1 + $0x168c] ss:$16 sps:$4 sm:$0xff]  }
 0x297   :  { %5372 = vmatpush1.bf16.msra.mxu0 %v10141_v28  ;;  %5905 = vmatpush1.bf16.msra.mxu1 %v10144_v29  ;;  %v10232_v28 = vld [vmem:[%s14106_s1 + $0x1680] ss:$16 sps:$4 sm:$0xff]   ;;  %v10235_v29 = vld [vmem:[%s14106_s1 + $0x1688] ss:$16 sps:$4 sm:$0xff]  }
 0x298   :  { %5373 = vmatprep.subr.bf16.mxu0 %v10149_v14  ;;  %5906 = vmatprep.subr.bf16.mxu1 %v10152_v30  ;;  %v10240_v14 = vld [vmem:[%s14106_s1 + $0x16a4] ss:$16 sps:$4 sm:$0xff]   ;;  %v10243_v30 = vld [vmem:[%s14106_s1 + $0x16ac] ss:$16 sps:$4 sm:$0xff]  }
 0x29b   :  { %5374 = vmatpush1.bf16.msra.mxu0 %v10147_v31  ;;  %5907 = vmatpush1.bf16.msra.mxu1 %v10150_v25  ;;  %v10238_v31 = vld [vmem:[%s14106_s1 + $0x16a0] ss:$16 sps:$4 sm:$0xff]   ;;  %v10241_v25 = vld [vmem:[%s14106_s1 + $0x16a8] ss:$16 sps:$4 sm:$0xff]  }
 0x29c   :  { %5375 = vmatprep.subr.bf16.mxu0 %v10155_v32  ;;  %5908 = vmatprep.subr.bf16.mxu1 %v10158_v33  ;;  %v10246_v32 = vld [vmem:[%s14106_s1 + $0x16c4] ss:$16 sps:$4 sm:$0xff]   ;;  %v10249_v33 = vld [vmem:[%s14106_s1 + $0x16cc] ss:$16 sps:$4 sm:$0xff]  }
 0x29f   :  { %5376 = vmatpush1.bf16.msra.mxu0 %v10153_v26  ;;  %5909 = vmatpush1.bf16.msra.mxu1 %v10156_v36  ;;  %v10244_v26 = vld [vmem:[%s14106_s1 + $0x16c0] ss:$16 sps:$4 sm:$0xff]   ;;  %v10247_v36 = vld [vmem:[%s14106_s1 + $0x16c8] ss:$16 sps:$4 sm:$0xff]  }
 0x2a0   :  { %5377 = vmatprep.subr.bf16.mxu0 %v10161_v37  ;;  %5910 = vmatprep.subr.bf16.mxu1 %v10164_v21  ;;  %v10252_v37 = vld [vmem:[%s14106_s1 + $0x16e4] ss:$16 sps:$4 sm:$0xff]   ;;  %v10255_v21 = vld [vmem:[%s14106_s1 + $0x16ec] ss:$16 sps:$4 sm:$0xff]  }
 0x2a3   :  { %5378 = vmatpush1.bf16.msra.mxu0 %v10159_v39  ;;  %5911 = vmatpush1.bf16.msra.mxu1 %v10162_v40  ;;  %v10250_v39 = vld [vmem:[%s14106_s1 + $0x16e0] ss:$16 sps:$4 sm:$0xff]   ;;  %v10253_v40 = vld [vmem:[%s14106_s1 + $0x16e8] ss:$16 sps:$4 sm:$0xff]  }
 0x2a4   :  { %5379 = vmatprep.subr.bf16.mxu0 %v10167_v41  ;;  %5912 = vmatprep.subr.bf16.mxu1 %v10170_v34  ;;  %v10258_v41 = vld [vmem:[%s14106_s1 + $0x1704] ss:$16 sps:$4 sm:$0xff]   ;;  %v10261_v34 = vld [vmem:[%s14106_s1 + $0x170c] ss:$16 sps:$4 sm:$0xff]  }
 0x2a7   :  { %5380 = vmatpush1.bf16.msra.mxu0 %v10165_v43  ;;  %5913 = vmatpush1.bf16.msra.mxu1 %v10168_v45  ;;  %v10256_v43 = vld [vmem:[%s14106_s1 + $0x1700] ss:$16 sps:$4 sm:$0xff]   ;;  %v10259_v45 = vld [vmem:[%s14106_s1 + $0x1708] ss:$16 sps:$4 sm:$0xff]  }
 0x2a8   :  { %5381 = vmatprep.subr.bf16.mxu0 %v10173_v46  ;;  %5914 = vmatprep.subr.bf16.mxu1 %v10176_v35  ;;  %v10264_v46 = vld [vmem:[%s14106_s1 + $0x1724] ss:$16 sps:$4 sm:$0xff]   ;;  %v10267_v35 = vld [vmem:[%s14106_s1 + $0x172c] ss:$16 sps:$4 sm:$0xff]  }
 0x2ab   :  { %5382 = vmatpush1.bf16.msra.mxu0 %v10171_v50  ;;  %5915 = vmatpush1.bf16.msra.mxu1 %v10174_v53  ;;  %v10262_v50 = vld [vmem:[%s14106_s1 + $0x1720] ss:$16 sps:$4 sm:$0xff]   ;;  %v10265_v53 = vld [vmem:[%s14106_s1 + $0x1728] ss:$16 sps:$4 sm:$0xff]  }
 0x2ac   :  { %5383 = vmatprep.subr.bf16.mxu0 %v10179_v38  ;;  %5916 = vmatprep.subr.bf16.mxu1 %v10182_v54  ;;  %v10270_v38 = vld [vmem:[%s14106_s1 + $0x1744] ss:$16 sps:$4 sm:$0xff]   ;;  %v10273_v54 = vld [vmem:[%s14106_s1 + $0x174c] ss:$16 sps:$4 sm:$0xff]  }
 0x2af   :  { %5384 = vmatpush1.bf16.msra.mxu0 %v10177_v55  ;;  %5917 = vmatpush1.bf16.msra.mxu1 %v10180_v56  ;;  %v10268_v55 = vld [vmem:[%s14106_s1 + $0x1740] ss:$16 sps:$4 sm:$0xff]   ;;  %v10271_v56 = vld [vmem:[%s14106_s1 + $0x1748] ss:$16 sps:$4 sm:$0xff]  }
 0x2b0   :  { %5385 = vmatprep.subr.bf16.mxu0 %v10185_v47  ;;  %5918 = vmatprep.subr.bf16.mxu1 %v10188_v57  ;;  %v10276_v47 = vld [vmem:[%s14106_s1 + $0x1764] ss:$16 sps:$4 sm:$0xff]   ;;  %v10279_v57 = vld [vmem:[%s14106_s1 + $0x176c] ss:$16 sps:$4 sm:$0xff]  }
 0x2b3   :  { %5386 = vmatpush1.bf16.msra.mxu0 %v10183_v58  ;;  %5919 = vmatpush1.bf16.msra.mxu1 %v10186_v59  ;;  %v10274_v58 = vld [vmem:[%s14106_s1 + $0x1760] ss:$16 sps:$4 sm:$0xff]   ;;  %v10277_v59 = vld [vmem:[%s14106_s1 + $0x1768] ss:$16 sps:$4 sm:$0xff]  }
 0x2b4   :  { %5387 = vmatprep.subr.bf16.mxu0 %v10191_v48  ;;  %5920 = vmatprep.subr.bf16.mxu1 %v10194_v61  ;;  %v10282_v48 = vld [vmem:[%s14106_s1 + $0x1784] ss:$16 sps:$4 sm:$0xff]   ;;  %v10285_v61 = vld [vmem:[%s14106_s1 + $0x178c] ss:$16 sps:$4 sm:$0xff]  }
 0x2b7   :  { %5388 = vmatpush1.bf16.msra.mxu0 %v10189_v63  ;;  %5921 = vmatpush1.bf16.msra.mxu1 %v10192_v44  ;;  %v10280_v63 = vld [vmem:[%s14106_s1 + $0x1780] ss:$16 sps:$4 sm:$0xff]   ;;  %v10283_v44 = vld [vmem:[%s14106_s1 + $0x1788] ss:$16 sps:$4 sm:$0xff]  }
 0x2b8   :  { %5389 = vmatprep.subr.bf16.mxu0 %v10197_v1  ;;  %5922 = vmatprep.subr.bf16.mxu1 %v10200_v51  ;;  %v10288_v1 = vld [vmem:[%s14106_s1 + $0x17a4] ss:$16 sps:$4 sm:$0xff]   ;;  %v10291_v51 = vld [vmem:[%s14106_s1 + $0x17ac] ss:$16 sps:$4 sm:$0xff]  }
 0x2bb   :  { %5390 = vmatpush1.bf16.msra.mxu0 %v10195_v2  ;;  %5923 = vmatpush1.bf16.msra.mxu1 %v10198_v3  ;;  %v10286_v2 = vld [vmem:[%s14106_s1 + $0x17a0] ss:$16 sps:$4 sm:$0xff]   ;;  %v10289_v3 = vld [vmem:[%s14106_s1 + $0x17a8] ss:$16 sps:$4 sm:$0xff]  }
 0x2bc   :  { %5391 = vmatprep.subr.bf16.mxu0 %v10203_v4  ;;  %5924 = vmatprep.subr.bf16.mxu1 %v10206_v60  ;;  %v10294_v4 = vld [vmem:[%s14106_s1 + $0x17c4] ss:$16 sps:$4 sm:$0xff]   ;;  %v10297_v60 = vld [vmem:[%s14106_s1 + $0x17cc] ss:$16 sps:$4 sm:$0xff]  }
 0x2bf   :  { %5392 = vmatpush1.bf16.msra.mxu0 %v10201_v5  ;;  %5925 = vmatpush1.bf16.msra.mxu1 %v10204_v6  ;;  %v10292_v5 = vld [vmem:[%s14106_s1 + $0x17c0] ss:$16 sps:$4 sm:$0xff]   ;;  %v10295_v6 = vld [vmem:[%s14106_s1 + $0x17c8] ss:$16 sps:$4 sm:$0xff]  }
 0x2c0   :  { %5402 = vmatprep.subr.bf16.mxu0 %v10210_v7  ;;  %5935 = vmatprep.subr.bf16.mxu1 %v10213_v62  ;;  %v10300_v7 = vld [vmem:[%s14106_s1 + $0x17e4] ss:$16 sps:$4 sm:$0xff]   ;;  %v10303_v62 = vld [vmem:[%s14106_s1 + $0x17ec] ss:$16 sps:$4 sm:$0xff]  }
 0x2c2   :  { %5394 = vmatmul.mubr.bf16.vlgmr.msra.gmra.mrb[0].mxu0 %v13027_v9  ;;  %5927 = vmatmul.mubr.bf16.vlgmr.msra.gmra.mrb[0].mxu1 %v13027_v9 }
 0x2c3   :  { %5403 = vmatpush1.bf16.msra.mxu0 %v10208_v10  ;;  %5936 = vmatpush1.bf16.msra.mxu1 %v10211_v11  ;;  %v10298_v10 = vld [vmem:[%s14106_s1 + $0x17e0] ss:$16 sps:$4 sm:$0xff]   ;;  %v10301_v11 = vld [vmem:[%s14106_s1 + $0x17e8] ss:$16 sps:$4 sm:$0xff]  }
 0x2c4   :  { %5404 = vmatprep.subr.bf16.mxu0 %v10216_v12  ;;  %5937 = vmatprep.subr.bf16.mxu1 %v10219_v0  ;;  %v10306_v12 = vld [vmem:[%s14106_s1 + $0x1804] ss:$16 sps:$4 sm:$0xff]   ;;  %v10309_v0 = vld [vmem:[%s14106_s1 + $0x180c] ss:$16 sps:$4 sm:$0xff]  }
 0x2c5   :  { %5434 = vmatprep.mubr.bf16.mxu0 %v988_v52  ;;  %5967 = vmatprep.mubr.bf16.mxu1 %v988_v52  ;;  %v986_v52 = vcombine.high %v13027_v9, %v13027_v9  ;;  %v10315_v9 = vld [vmem:[%s14106_s1 + $0x182c] ss:$16 sps:$4 sm:$0xff]  }
 0x2c7   :  { %5405 = vmatpush1.bf16.msra.mxu0 %v10214_v15  ;;  %5938 = vmatpush1.bf16.msra.mxu1 %v10217_v16  ;;  %v10304_v15 = vld [vmem:[%s14106_s1 + $0x1800] ss:$16 sps:$4 sm:$0xff]   ;;  %v10307_v16 = vld [vmem:[%s14106_s1 + $0x1808] ss:$16 sps:$4 sm:$0xff]  }
 0x2c8   :  { %5406 = vmatprep.subr.bf16.mxu0 %v10222_v8  ;;  %5939 = vmatprep.subr.bf16.mxu1 %v10225_v17  ;;  %v10312_v8 = vld [vmem:[%s14106_s1 + $0x1824] ss:$16 sps:$4 sm:$0xff]   ;;  %v10310_v17 = vld [vmem:[%s14106_s1 + $0x1820] ss:$16 sps:$4 sm:$0xff]  }
 0x2cb   :  { %5407 = vmatpush1.bf16.msra.mxu0 %v10220_v18  ;;  %5940 = vmatpush1.bf16.msra.mxu1 %v10223_v19  ;;  %v10313_v18 = vld [vmem:[%s14106_s1 + $0x1828] ss:$16 sps:$4 sm:$0xff]   ;;  %v10318_v19 = vld [vmem:[%s14106_s1 + $0x1844] ss:$16 sps:$4 sm:$0xff]  }
 0x2cc   :  { %5408 = vmatprep.subr.bf16.mxu0 %v10228_v20  ;;  %5941 = vmatprep.subr.bf16.mxu1 %v10231_v22  ;;  %v10321_v20 = vld [vmem:[%s14106_s1 + $0x184c] ss:$16 sps:$4 sm:$0xff]   ;;  %v10739_v22 = vmov 0  }
 0x2cf   :  { %5409 = vmatpush1.bf16.msra.mxu0 %v10226_v23  ;;  %5942 = vmatpush1.bf16.msra.mxu1 %v10229_v24  ;;  %v10316_v23 = vld [vmem:[%s14106_s1 + $0x1840] ss:$16 sps:$4 sm:$0xff]   ;;  %v10319_v24 = vld [vmem:[%s14106_s1 + $0x1848] ss:$16 sps:$4 sm:$0xff]  }
 0x2d0   :  { %5410 = vmatprep.subr.bf16.mxu0 %v10234_v13  ;;  %5943 = vmatprep.subr.bf16.mxu1 %v10237_v27  ;;  %v10324_v13 = vld [vmem:[%s14106_s1 + $0x1864] ss:$16 sps:$4 sm:$0xff]   ;;  %v10327_v27 = vld [vmem:[%s14106_s1 + $0x186c] ss:$16 sps:$4 sm:$0xff]  }
 0x2d3   :  { %5411 = vmatpush1.bf16.msra.mxu0 %v10232_v28  ;;  %5944 = vmatpush1.bf16.msra.mxu1 %v10235_v29  ;;  %v10322_v28 = vld [vmem:[%s14106_s1 + $0x1860] ss:$16 sps:$4 sm:$0xff]   ;;  %v10325_v29 = vld [vmem:[%s14106_s1 + $0x1868] ss:$16 sps:$4 sm:$0xff]  }
 0x2d4   :  { %5412 = vmatprep.subr.bf16.mxu0 %v10240_v14  ;;  %5945 = vmatprep.subr.bf16.mxu1 %v10243_v30  ;;  %v7978_v14 = vld.sshfl [vmem:[%s14105_s0 + $0x18] sm:$0x1 pattern:$0x75316420]  ;;  %v10330_v30 = vld [vmem:[%s14108_s3 + $0x4] ss:$16 sps:$4 sm:$0xff]  }
 0x2d7   :  { %5413 = vmatpush1.bf16.msra.mxu0 %v10238_v31  ;;  %5946 = vmatpush1.bf16.msra.mxu1 %v10241_v25  ;;  %v10333_v31 = vld [vmem:[%s14108_s3 + $0xc] ss:$16 sps:$4 sm:$0xff]   ;;  %v1002_v25 = vrot.slane %v7978_v14, %v10917_v49 }
 0x2d8   :  { %5414 = vmatprep.subr.bf16.mxu0 %v10246_v32  ;;  %5947 = vmatprep.subr.bf16.mxu1 %v10249_v33  ;;  %v10328_v32 = vld [vmem:[%s14108_s3] ss:$16 sps:$4 sm:$0xff]   ;;  %v10331_v33 = vld [vmem:[%s14108_s3 + $0x8] ss:$16 sps:$4 sm:$0xff]   ;;  %v10339_v49 = vld [vmem:[%s14108_s3 + $0x2c] ss:$16 sps:$4 sm:$0xff]  }
 0x2d9   :  { %v10423_v14 = vld [vmem:[%s14108_s3 + $0x1ec] ss:$16 sps:$4 sm:$0xff]  }
 0x2db   :  { %5415 = vmatpush1.bf16.msra.mxu0 %v10244_v26  ;;  %5948 = vmatpush1.bf16.msra.mxu1 %v10247_v36  ;;  %v10336_v26 = vld [vmem:[%s14108_s3 + $0x24] ss:$16 sps:$4 sm:$0xff]   ;;  %v10334_v36 = vld [vmem:[%s14108_s3 + $0x20] ss:$16 sps:$4 sm:$0xff]  }
 0x2dc   :  { %5416 = vmatprep.subr.bf16.mxu0 %v10252_v37  ;;  %5949 = vmatprep.subr.bf16.mxu1 %v10255_v21  ;;  %v10337_v37 = vld [vmem:[%s14108_s3 + $0x28] ss:$16 sps:$4 sm:$0xff]   ;;  %v10342_v21 = vld [vmem:[%s14108_s3 + $0x44] ss:$16 sps:$4 sm:$0xff]  }
 0x2df   :  { %5417 = vmatpush1.bf16.msra.mxu0 %v10250_v39  ;;  %5950 = vmatpush1.bf16.msra.mxu1 %v10253_v40  ;;  %v10345_v39 = vld [vmem:[%s14108_s3 + $0x4c] ss:$16 sps:$4 sm:$0xff]   ;;  %v10340_v40 = vld [vmem:[%s14108_s3 + $0x40] ss:$16 sps:$4 sm:$0xff]  }
 0x2e0   :  { %5418 = vmatprep.subr.bf16.mxu0 %v10258_v41  ;;  %5951 = vmatprep.subr.bf16.mxu1 %v10261_v34  ;;  %v10343_v41 = vld [vmem:[%s14108_s3 + $0x48] ss:$16 sps:$4 sm:$0xff]   ;;  %v10348_v34 = vld [vmem:[%s14108_s3 + $0x64] ss:$16 sps:$4 sm:$0xff]  }
 0x2e3   :  { %5419 = vmatpush1.bf16.msra.mxu0 %v10256_v43  ;;  %5952 = vmatpush1.bf16.msra.mxu1 %v10259_v45  ;;  %v10351_v43 = vld [vmem:[%s14108_s3 + $0x6c] ss:$16 sps:$4 sm:$0xff]   ;;  %v10346_v45 = vld [vmem:[%s14108_s3 + $0x60] ss:$16 sps:$4 sm:$0xff]  }
 0x2e4   :  { %5420 = vmatprep.subr.bf16.mxu0 %v10264_v46  ;;  %5953 = vmatprep.subr.bf16.mxu1 %v10267_v35  ;;  %v10349_v46 = vld [vmem:[%s14108_s3 + $0x68] ss:$16 sps:$4 sm:$0xff]   ;;  %v10354_v35 = vld [vmem:[%s14108_s3 + $0x84] ss:$16 sps:$4 sm:$0xff]  }
 0x2e7   :  { %5421 = vmatpush1.bf16.msra.mxu0 %v10262_v50  ;;  %5954 = vmatpush1.bf16.msra.mxu1 %v10265_v53  ;;  %v10357_v50 = vld [vmem:[%s14108_s3 + $0x8c] ss:$16 sps:$4 sm:$0xff]   ;;  %v10352_v53 = vld [vmem:[%s14108_s3 + $0x80] ss:$16 sps:$4 sm:$0xff]  }
 0x2e8   :  { %5422 = vmatprep.subr.bf16.mxu0 %v10270_v38  ;;  %5955 = vmatprep.subr.bf16.mxu1 %v10273_v54  ;;  %v10355_v38 = vld [vmem:[%s14108_s3 + $0x88] ss:$16 sps:$4 sm:$0xff]   ;;  %v10360_v54 = vld [vmem:[%s14108_s3 + $0xa4] ss:$16 sps:$4 sm:$0xff]  }
 0x2eb   :  { %5423 = vmatpush1.bf16.msra.mxu0 %v10268_v55  ;;  %5956 = vmatpush1.bf16.msra.mxu1 %v10271_v56  ;;  %v10363_v55 = vld [vmem:[%s14108_s3 + $0xac] ss:$16 sps:$4 sm:$0xff]   ;;  %v10358_v56 = vld [vmem:[%s14108_s3 + $0xa0] ss:$16 sps:$4 sm:$0xff]  }
 0x2ec   :  { %5424 = vmatprep.subr.bf16.mxu0 %v10276_v47  ;;  %5957 = vmatprep.subr.bf16.mxu1 %v10279_v57  ;;  %v10361_v47 = vld [vmem:[%s14108_s3 + $0xa8] ss:$16 sps:$4 sm:$0xff]   ;;  %v10366_v57 = vld [vmem:[%s14108_s3 + $0xc4] ss:$16 sps:$4 sm:$0xff]  }
 0x2ef   :  { %5425 = vmatpush1.bf16.msra.mxu0 %v10274_v58  ;;  %5958 = vmatpush1.bf16.msra.mxu1 %v10277_v59  ;;  %v10369_v58 = vld [vmem:[%s14108_s3 + $0xcc] ss:$16 sps:$4 sm:$0xff]   ;;  %v10364_v59 = vld [vmem:[%s14108_s3 + $0xc0] ss:$16 sps:$4 sm:$0xff]  }
 0x2f0   :  { %5426 = vmatprep.subr.bf16.mxu0 %v10282_v48  ;;  %5959 = vmatprep.subr.bf16.mxu1 %v10285_v61  ;;  %v10367_v48 = vld [vmem:[%s14108_s3 + $0xc8] ss:$16 sps:$4 sm:$0xff]   ;;  %v10372_v61 = vld [vmem:[%s14108_s3 + $0xe4] ss:$16 sps:$4 sm:$0xff]  }
 0x2f3   :  { %5427 = vmatpush1.bf16.msra.mxu0 %v10280_v63  ;;  %5960 = vmatpush1.bf16.msra.mxu1 %v10283_v44  ;;  %v10375_v63 = vld [vmem:[%s14108_s3 + $0xec] ss:$16 sps:$4 sm:$0xff]   ;;  %v10370_v44 = vld [vmem:[%s14108_s3 + $0xe0] ss:$16 sps:$4 sm:$0xff]  }
 0x2f4   :  { %5428 = vmatprep.subr.bf16.mxu0 %v10288_v1  ;;  %5961 = vmatprep.subr.bf16.mxu1 %v10291_v51  ;;  %v10373_v1 = vld [vmem:[%s14108_s3 + $0xe8] ss:$16 sps:$4 sm:$0xff]   ;;  %v10378_v51 = vld [vmem:[%s14108_s3 + $0x104] ss:$16 sps:$4 sm:$0xff]  }
 0x2f7   :  { %5429 = vmatpush1.bf16.msra.mxu0 %v10286_v2  ;;  %5962 = vmatpush1.bf16.msra.mxu1 %v10289_v3  ;;  %v10381_v2 = vld [vmem:[%s14108_s3 + $0x10c] ss:$16 sps:$4 sm:$0xff]   ;;  %v10376_v3 = vld [vmem:[%s14108_s3 + $0x100] ss:$16 sps:$4 sm:$0xff]  }
 0x2f8   :  { %5430 = vmatprep.subr.bf16.mxu0 %v10294_v4  ;;  %5963 = vmatprep.subr.bf16.mxu1 %v10297_v60  ;;  %v10379_v4 = vld [vmem:[%s14108_s3 + $0x108] ss:$16 sps:$4 sm:$0xff]   ;;  %v10384_v60 = vld [vmem:[%s14108_s3 + $0x124] ss:$16 sps:$4 sm:$0xff]  }
 0x2fb   :  { %5431 = vmatpush1.bf16.msra.mxu0 %v10292_v5  ;;  %5964 = vmatpush1.bf16.msra.mxu1 %v10295_v6  ;;  %v10387_v5 = vld [vmem:[%s14108_s3 + $0x12c] ss:$16 sps:$4 sm:$0xff]   ;;  %v10382_v6 = vld [vmem:[%s14108_s3 + $0x120] ss:$16 sps:$4 sm:$0xff]  }
 0x2fc   :  { %5432 = vmatprep.subr.bf16.mxu0 %v10300_v7  ;;  %5965 = vmatprep.subr.bf16.mxu1 %v10303_v62  ;;  %v10385_v7 = vld [vmem:[%s14108_s3 + $0x128] ss:$16 sps:$4 sm:$0xff]   ;;  %v10390_v62 = vld [vmem:[%s14108_s3 + $0x144] ss:$16 sps:$4 sm:$0xff]  }
 0x2ff   :  { %5433 = vmatpush1.bf16.msra.mxu0 %v10298_v10  ;;  %5966 = vmatpush1.bf16.msra.mxu1 %v10301_v11  ;;  %v10393_v10 = vld [vmem:[%s14108_s3 + $0x14c] ss:$16 sps:$4 sm:$0xff]   ;;  %v10388_v11 = vld [vmem:[%s14108_s3 + $0x140] ss:$16 sps:$4 sm:$0xff]  }
 0x300   :  { %5443 = vmatprep.subr.bf16.mxu0 %v10306_v12  ;;  %5976 = vmatprep.subr.bf16.mxu1 %v10309_v0  ;;  %v10391_v12 = vld [vmem:[%s14108_s3 + $0x148] ss:$16 sps:$4 sm:$0xff]   ;;  %v10396_v0 = vld [vmem:[%s14108_s3 + $0x164] ss:$16 sps:$4 sm:$0xff]  }
 0x302   :  { %5435 = vmatmul.mubr.bf16.vlgmr.msra.gmra.mrb[0].mxu0 %v986_v52  ;;  %5968 = vmatmul.mubr.bf16.vlgmr.msra.gmra.mrb[0].mxu1 %v986_v52  ;;  %v10399_v52 = vld [vmem:[%s14108_s3 + $0x16c] ss:$16 sps:$4 sm:$0xff]  }
 0x303   :  { %5444 = vmatpush1.bf16.msra.mxu0 %v10304_v15  ;;  %5977 = vmatpush1.bf16.msra.mxu1 %v10307_v16  ;;  %v10394_v15 = vld [vmem:[%s14108_s3 + $0x160] ss:$16 sps:$4 sm:$0xff]   ;;  %v10397_v16 = vld [vmem:[%s14108_s3 + $0x168] ss:$16 sps:$4 sm:$0xff]  }
 0x304   :  { %5445 = vmatprep.subr.bf16.mxu0 %v10312_v8  ;;  %5978 = vmatprep.subr.bf16.mxu1 %v10315_v9  ;;  %v10402_v8 = vld [vmem:[%s14108_s3 + $0x184] ss:$16 sps:$4 sm:$0xff]   ;;  %v10405_v9 = vld [vmem:[%s14108_s3 + $0x18c] ss:$16 sps:$4 sm:$0xff]  }
 0x305   :  { %5475 = vmatprep.mubr.bf16.mxu0 %v10739_v22  ;;  %6008 = vmatprep.mubr.bf16.mxu1 %v10739_v22  ;;  %v10406_v22 = vld [vmem:[%s14108_s3 + $0x1a0] ss:$16 sps:$4 sm:$0xff]  }
 0x307   :  { %5446 = vmatpush1.bf16.msra.mxu0 %v10310_v17  ;;  %5979 = vmatpush1.bf16.msra.mxu1 %v10313_v18  ;;  %v10400_v17 = vld [vmem:[%s14108_s3 + $0x180] ss:$16 sps:$4 sm:$0xff]   ;;  %v10403_v18 = vld [vmem:[%s14108_s3 + $0x188] ss:$16 sps:$4 sm:$0xff]  }
 0x308   :  { %5447 = vmatprep.subr.bf16.mxu0 %v10318_v19  ;;  %5980 = vmatprep.subr.bf16.mxu1 %v10321_v20  ;;  %v10408_v19 = vld [vmem:[%s14108_s3 + $0x1a4] ss:$16 sps:$4 sm:$0xff]   ;;  %v10411_v20 = vld [vmem:[%s14108_s3 + $0x1ac] ss:$16 sps:$4 sm:$0xff]  }
 0x30b   :  { %5448 = vmatpush1.bf16.msra.mxu0 %v10316_v23  ;;  %5981 = vmatpush1.bf16.msra.mxu1 %v10319_v24  ;;  %v10409_v23 = vld [vmem:[%s14108_s3 + $0x1a8] ss:$16 sps:$4 sm:$0xff]   ;;  %v10414_v24 = vld [vmem:[%s14108_s3 + $0x1c4] ss:$16 sps:$4 sm:$0xff]  }
 0x30c   :  { %5449 = vmatprep.subr.bf16.mxu0 %v10324_v13  ;;  %5982 = vmatprep.subr.bf16.mxu1 %v10327_v27  ;;  %v10417_v13 = vld [vmem:[%s14108_s3 + $0x1cc] ss:$16 sps:$4 sm:$0xff]   ;;  %v10412_v27 = vld [vmem:[%s14108_s3 + $0x1c0] ss:$16 sps:$4 sm:$0xff]  }
 0x30f   :  { %5450 = vmatpush1.bf16.msra.mxu0 %v10322_v28  ;;  %5983 = vmatpush1.bf16.msra.mxu1 %v10325_v29  ;;  %v10415_v28 = vld [vmem:[%s14108_s3 + $0x1c8] ss:$16 sps:$4 sm:$0xff]   ;;  %v10420_v29 = vld [vmem:[%s14108_s3 + $0x1e4] ss:$16 sps:$4 sm:$0xff]  }
 0x310   :  { %6815 = vmatprep.subr.bf16.mxu0 %v10330_v30  ;;  %6897 = vmatprep.subr.bf16.mxu1 %v10333_v31  ;;  %v10418_v30 = vld [vmem:[%s14108_s3 + $0x1e0] ss:$16 sps:$4 sm:$0xff]   ;;  %v10421_v31 = vld [vmem:[%s14108_s3 + $0x1e8] ss:$16 sps:$4 sm:$0xff]  }
 0x312   :  { %8763 = vmatmul.mubr.msk.bf16.vlgmr.msra.gmra.mrb[0].mxu0 %vm4947_vm0, %v1002_v25  ;;  %8764 = vmatmul.mubr.msk.bf16.vlgmr.msra.gmra.mrb[0].mxu1 %vm4947_vm0, %v1002_v25  ;;  %v10426_v25 = vld [vmem:[%s14108_s3 + $0x204] ss:$16 sps:$4 sm:$0xff]  }
 0x313   :  { %6816 = vmatpush1.bf16.msra.mxu0 %v10328_v32  ;;  %6898 = vmatpush1.bf16.msra.mxu1 %v10331_v33  ;;  %v10429_v32 = vld [vmem:[%s14108_s3 + $0x20c] ss:$16 sps:$4 sm:$0xff]   ;;  %v13472_v33 = vsub.s32 0, %v10899_v42 }
 0x314   :  { %6817 = vmatprep.subr.bf16.mxu0 %v10336_v26  ;;  %6899 = vmatprep.subr.bf16.mxu1 %v10339_v49  ;;  %v13477_v26 = vld [vmem:[%s14107_s2] sm:$0xf]  ;;  %v13480_v49 = vsub.s32 1, %v10899_v42 }
 0x317   :  { %6818 = vmatpush1.bf16.msra.mxu0 %v10334_v36  ;;  %6900 = vmatpush1.bf16.msra.mxu1 %v10337_v37  ;;  %v13483_v36 = vsub.s32 3, %v10899_v42  ;;  %v821_v37 = vrot.slane %v13477_v26, %v13472_v33 }
 0x318   :  { %6819 = vmatprep.subr.bf16.mxu0 %v10342_v21  ;;  %6901 = vmatprep.subr.bf16.mxu1 %v10345_v39  ;;  %v825_v21 = vrot.slane %v13477_v26, %v13480_v49 }
 0x319   :  { %v833_v39 = vrot.slane %v13477_v26, %v13483_v36 }
 0x31b   :  { %6820 = vmatpush1.bf16.msra.mxu0 %v10340_v40  ;;  %6902 = vmatpush1.bf16.msra.mxu1 %v10343_v41 }
 0x31c   :  { %6821 = vmatprep.subr.bf16.mxu0 %v10348_v34  ;;  %6903 = vmatprep.subr.bf16.mxu1 %v10351_v43 }
 0x31f   :  { %6822 = vmatpush1.bf16.msra.mxu0 %v10346_v45  ;;  %6904 = vmatpush1.bf16.msra.mxu1 %v10349_v46 }
 0x320   :  { %6823 = vmatprep.subr.bf16.mxu0 %v10354_v35  ;;  %6905 = vmatprep.subr.bf16.mxu1 %v10357_v50 }
 0x323   :  { %6824 = vmatpush1.bf16.msra.mxu0 %v10352_v53  ;;  %6906 = vmatpush1.bf16.msra.mxu1 %v10355_v38 }
 0x324   :  { %6825 = vmatprep.subr.bf16.mxu0 %v10360_v54  ;;  %6907 = vmatprep.subr.bf16.mxu1 %v10363_v55 }
 0x327   :  { %6826 = vmatpush1.bf16.msra.mxu0 %v10358_v56  ;;  %6908 = vmatpush1.bf16.msra.mxu1 %v10361_v47 }
 0x328   :  { %6827 = vmatprep.subr.bf16.mxu0 %v10366_v57  ;;  %6909 = vmatprep.subr.bf16.mxu1 %v10369_v58  ;;  %v10424_v58 = vld [vmem:[%s14108_s3 + $0x200] ss:$16 sps:$4 sm:$0xff]  }
 0x32b   :  { %6828 = vmatpush1.bf16.msra.mxu0 %v10364_v59  ;;  %6910 = vmatpush1.bf16.msra.mxu1 %v10367_v48  ;;  %v10427_v59 = vld [vmem:[%s14108_s3 + $0x208] ss:$16 sps:$4 sm:$0xff]  }
 0x32c   :  { %6829 = vmatprep.subr.bf16.mxu0 %v10372_v61  ;;  %6911 = vmatprep.subr.bf16.mxu1 %v10375_v63  ;;  %v10432_v61 = vld [vmem:[%s14108_s3 + $0x224] ss:$16 sps:$4 sm:$0xff]   ;;  %v10435_v63 = vld [vmem:[%s14108_s3 + $0x22c] ss:$16 sps:$4 sm:$0xff]  }
 0x32f   :  { %6830 = vmatpush1.bf16.msra.mxu0 %v10370_v44  ;;  %6912 = vmatpush1.bf16.msra.mxu1 %v10373_v1  ;;  %v10430_v1 = vld [vmem:[%s14108_s3 + $0x220] ss:$16 sps:$4 sm:$0xff]  }
 0x330   :  { %6831 = vmatprep.subr.bf16.mxu0 %v10378_v51  ;;  %6913 = vmatprep.subr.bf16.mxu1 %v10381_v2  ;;  %v10433_v51 = vld [vmem:[%s14108_s3 + $0x228] ss:$16 sps:$4 sm:$0xff]   ;;  %v10438_v2 = vld [vmem:[%s14108_s3 + $0x244] ss:$16 sps:$4 sm:$0xff]  }
 0x333   :  { %6832 = vmatpush1.bf16.msra.mxu0 %v10376_v3  ;;  %6914 = vmatpush1.bf16.msra.mxu1 %v10379_v4  ;;  %v10441_v3 = vld [vmem:[%s14108_s3 + $0x24c] ss:$16 sps:$4 sm:$0xff]   ;;  %v10436_v4 = vld [vmem:[%s14108_s3 + $0x240] ss:$16 sps:$4 sm:$0xff]  }
 0x334   :  { %6833 = vmatprep.subr.bf16.mxu0 %v10384_v60  ;;  %6915 = vmatprep.subr.bf16.mxu1 %v10387_v5  ;;  %v10439_v60 = vld [vmem:[%s14108_s3 + $0x248] ss:$16 sps:$4 sm:$0xff]   ;;  %v10444_v5 = vld [vmem:[%s14108_s3 + $0x264] ss:$16 sps:$4 sm:$0xff]  }
 0x337   :  { %6834 = vmatpush1.bf16.msra.mxu0 %v10382_v6  ;;  %6916 = vmatpush1.bf16.msra.mxu1 %v10385_v7  ;;  %v10447_v6 = vld [vmem:[%s14108_s3 + $0x26c] ss:$16 sps:$4 sm:$0xff]   ;;  %v10442_v7 = vld [vmem:[%s14108_s3 + $0x260] ss:$16 sps:$4 sm:$0xff]  }
 0x338   :  { %6835 = vmatprep.subr.bf16.mxu0 %v10390_v62  ;;  %6917 = vmatprep.subr.bf16.mxu1 %v10393_v10  ;;  %v10445_v62 = vld [vmem:[%s14108_s3 + $0x268] ss:$16 sps:$4 sm:$0xff]   ;;  %v10450_v10 = vld [vmem:[%s14108_s3 + $0x284] ss:$16 sps:$4 sm:$0xff]  }
 0x33b   :  { %6836 = vmatpush1.bf16.msra.mxu0 %v10388_v11  ;;  %6918 = vmatpush1.bf16.msra.mxu1 %v10391_v12  ;;  %v10453_v11 = vld [vmem:[%s14108_s3 + $0x28c] ss:$16 sps:$4 sm:$0xff]   ;;  %v10448_v12 = vld [vmem:[%s14108_s3 + $0x280] ss:$16 sps:$4 sm:$0xff]  }
 0x33c   :  { %6837 = vmatprep.subr.bf16.mxu0 %v10396_v0  ;;  %6919 = vmatprep.subr.bf16.mxu1 %v10399_v52  ;;  %v10451_v0 = vld [vmem:[%s14108_s3 + $0x288] ss:$16 sps:$4 sm:$0xff]   ;;  %v10456_v52 = vld [vmem:[%s14108_s3 + $0x2a4] ss:$16 sps:$4 sm:$0xff]  }
 0x33f   :  { %6838 = vmatpush1.bf16.msra.mxu0 %v10394_v15  ;;  %6920 = vmatpush1.bf16.msra.mxu1 %v10397_v16  ;;  %v10459_v15 = vld [vmem:[%s14108_s3 + $0x2ac] ss:$16 sps:$4 sm:$0xff]   ;;  %v10454_v16 = vld [vmem:[%s14108_s3 + $0x2a0] ss:$16 sps:$4 sm:$0xff]  }
 0x340   :  { %6839 = vmatprep.subr.bf16.mxu0 %v10402_v8  ;;  %6921 = vmatprep.subr.bf16.mxu1 %v10405_v9  ;;  %v10457_v8 = vld [vmem:[%s14108_s3 + $0x2a8] ss:$16 sps:$4 sm:$0xff]   ;;  %v10462_v9 = vld [vmem:[%s14108_s3 + $0x2c4] ss:$16 sps:$4 sm:$0xff]  }
 0x343   :  { %6840 = vmatpush1.bf16.msra.mxu0 %v10400_v17  ;;  %6922 = vmatpush1.bf16.msra.mxu1 %v10403_v18  ;;  %v10465_v17 = vld [vmem:[%s14108_s3 + $0x2cc] ss:$16 sps:$4 sm:$0xff]   ;;  %v10460_v18 = vld [vmem:[%s14108_s3 + $0x2c0] ss:$16 sps:$4 sm:$0xff]  }
 0x344   :  { %6841 = vmatprep.subr.bf16.mxu0 %v10408_v19  ;;  %6923 = vmatprep.subr.bf16.mxu1 %v10411_v20  ;;  %v10463_v19 = vld [vmem:[%s14108_s3 + $0x2c8] ss:$16 sps:$4 sm:$0xff]   ;;  %v10468_v20 = vld [vmem:[%s14108_s3 + $0x2e4] ss:$16 sps:$4 sm:$0xff]  }
 0x347   :  { %6842 = vmatpush1.bf16.msra.mxu0 %v10406_v22  ;;  %6924 = vmatpush1.bf16.msra.mxu1 %v10409_v23  ;;  %v10471_v22 = vld [vmem:[%s14108_s3 + $0x2ec] ss:$16 sps:$4 sm:$0xff]   ;;  %v10466_v23 = vld [vmem:[%s14108_s3 + $0x2e0] ss:$16 sps:$4 sm:$0xff]  }
 0x348   :  { %6843 = vmatprep.subr.bf16.mxu0 %v10414_v24  ;;  %6925 = vmatprep.subr.bf16.mxu1 %v10417_v13  ;;  %v10469_v24 = vld [vmem:[%s14108_s3 + $0x2e8] ss:$16 sps:$4 sm:$0xff]   ;;  %v10474_v13 = vld [vmem:[%s14108_s3 + $0x304] ss:$16 sps:$4 sm:$0xff]  }
 0x34b   :  { %6844 = vmatpush1.bf16.msra.mxu0 %v10412_v27  ;;  %6926 = vmatpush1.bf16.msra.mxu1 %v10415_v28  ;;  %v10477_v27 = vld [vmem:[%s14108_s3 + $0x30c] ss:$16 sps:$4 sm:$0xff]   ;;  %v10472_v28 = vld [vmem:[%s14108_s3 + $0x300] ss:$16 sps:$4 sm:$0xff]  }
 0x34c   :  { %6845 = vmatprep.subr.bf16.mxu0 %v10420_v29  ;;  %6927 = vmatprep.subr.bf16.mxu1 %v10423_v14  ;;  %v10475_v29 = vld [vmem:[%s14108_s3 + $0x308] ss:$16 sps:$4 sm:$0xff]   ;;  %v10480_v14 = vld [vmem:[%s14108_s3 + $0x324] ss:$16 sps:$4 sm:$0xff]  }
 0x34f   :  { %6846 = vmatpush1.bf16.msra.mxu0 %v10418_v30  ;;  %6928 = vmatpush1.bf16.msra.mxu1 %v10421_v31  ;;  %v10483_v30 = vld [vmem:[%s14108_s3 + $0x32c] ss:$16 sps:$4 sm:$0xff]   ;;  %v10478_v31 = vld [vmem:[%s14108_s3 + $0x320] ss:$16 sps:$4 sm:$0xff]  }
 0x350   :  { %6856 = vmatprep.subr.bf16.mxu0 %v10426_v25  ;;  %6938 = vmatprep.subr.bf16.mxu1 %v10429_v32  ;;  %v10481_v25 = vld [vmem:[%s14108_s3 + $0x328] ss:$16 sps:$4 sm:$0xff]   ;;  %v10486_v32 = vld [vmem:[%s14108_s3 + $0x344] ss:$16 sps:$4 sm:$0xff]  }
 0x3e5   :  { %v5477_v40 = vpop.f32.mrb[0].mxu0  ;;  %v13491_v41 = vpop.f32.mrb[0].mxu1 }
 0x3e6   :  { %v9021_v34 = vadd.f32 %v5477_v40, %v821_v37  ;;  %v5479_v43 = vpop.f32.mrb[1].mxu0  ;;  %v6012_v45 = vpop.f32.mrb[1].mxu1  ;;  %v10489_v37 = vld [vmem:[%s14108_s3 + $0x34c] ss:$16 sps:$4 sm:$0xff]   ;;  %v10492_v40 = vld [vmem:[%s14108_s3 + $0x364] ss:$16 sps:$4 sm:$0xff]  }
 0x3e7   :  { %v9022_v46 = vadd.f32 %v5479_v43, %v825_v21  ;;  %v9024_v35 = vadd.f32 %v6012_v45, %v833_v39  ;;  %v5481_v50 = vpop.f32.mrb[2].mxu0  ;;  %v6014_v53 = vpop.f32.mrb[2].mxu1  ;;  %v10484_v21 = vld [vmem:[%s14108_s3 + $0x340] ss:$16 sps:$4 sm:$0xff]   ;;  %v10487_v39 = vld [vmem:[%s14108_s3 + $0x348] ss:$16 sps:$4 sm:$0xff]  }
 0x3e8   :  { %v6017_v38 = vmax.f32 %v9021_v34, 0.0  ;;  %v5482_v54 = vpop.f32.mrb[3].mxu0  ;;  %v6015_v55 = vpop.f32.mrb[3].mxu1  ;;  %v10495_v34 = vld [vmem:[%s14108_s3 + $0x36c] ss:$16 sps:$4 sm:$0xff]  }
 0x3e9   :  { %v6018_v56 = vmax.f32 %v9022_v46, 0.0  ;;  %v6020_v47 = vmax.f32 %v9024_v35, 0.0  ;;  %v10490_v43 = vld [vmem:[%s14108_s3 + $0x360] ss:$16 sps:$4 sm:$0xff]   ;;  %v10493_v45 = vld [vmem:[%s14108_s3 + $0x368] ss:$16 sps:$4 sm:$0xff]  }
 0x3ea   :  { %v6021_v48 = vpack.c.bf16 %v6017_v38, %v6017_v38  ;;  %v10498_v46 = vld [vmem:[%s14108_s3 + $0x384] ss:$16 sps:$4 sm:$0xff]   ;;  %v10501_v35 = vld [vmem:[%s14108_s3 + $0x38c] ss:$16 sps:$4 sm:$0xff]   ;;  %v10496_v50 = vld [vmem:[%s14108_s3 + $0x380] ss:$16 sps:$4 sm:$0xff]  }
 0x3eb   :  { %v6022_v57 = vpack.c.bf16 %v6018_v56, %v6018_v56  ;;  %v6024_v44 = vpack.c.bf16 %v6020_v47, %v6020_v47  ;;  %v10499_v53 = vld [vmem:[%s14108_s3 + $0x388] ss:$16 sps:$4 sm:$0xff]   ;;  %v13644_v38 = vsub.s32 2, %v10899_v42  ;;  %v10504_v54 = vld [vmem:[%s14108_s3 + $0x3a4] ss:$16 sps:$4 sm:$0xff]  }
 0x3ec   :  { %v10507_v55 = vld [vmem:[%s14108_s3 + $0x3ac] ss:$16 sps:$4 sm:$0xff]   ;;  %v10502_v56 = vld [vmem:[%s14108_s3 + $0x3a0] ss:$16 sps:$4 sm:$0xff]   ;;  %v10505_v47 = vld [vmem:[%s14108_s3 + $0x3a8] ss:$16 sps:$4 sm:$0xff]  }
 0x3ed   :  { %6847 = vmatprep.mubr.bf16.mxu0 %v6022_v57  ;;  %6929 = vmatprep.mubr.bf16.mxu1 %v6022_v57  ;;  %v829_v57 = vrot.slane %v13477_v26, %v13644_v38  ;;  %v10511_v26 = vld [vmem:[%s14108_s3 + $0x3c8] ss:$16 sps:$4 sm:$0xff]  }
 0x3ee   :  { %6848 = vmatmul.mubr.bf16.vlgmr.msra.gmra.mrb[4].mxu0 %v6021_v48  ;;  %6930 = vmatmul.mubr.bf16.vlgmr.msra.gmra.mrb[4].mxu1 %v6021_v48  ;;  %v10508_v48 = vld [vmem:[%s14108_s3 + $0x3c0] ss:$16 sps:$4 sm:$0xff]  }
 0x3ef   :  { %6857 = vmatpush1.bf16.msra.mxu0 %v10424_v58  ;;  %6939 = vmatpush1.bf16.msra.mxu1 %v10427_v59  ;;  %v10510_v58 = vld [vmem:[%s14108_s3 + $0x3c4] ss:$16 sps:$4 sm:$0xff]   ;;  %v10513_v59 = vld [vmem:[%s14108_s3 + $0x3cc] ss:$16 sps:$4 sm:$0xff]  }
 0x3f0   :  { %6888 = vmatprep.mubr.bf16.mxu0 %v6024_v44  ;;  %6970 = vmatprep.mubr.bf16.mxu1 %v6024_v44  ;;  %v10519_v44 = vld [vmem:[%s14108_s3 + $0x3ec] ss:$16 sps:$4 sm:$0xff]  }
 0x3f1   :  { %6858 = vmatprep.subr.bf16.mxu0 %v10432_v61  ;;  %6940 = vmatprep.subr.bf16.mxu1 %v10435_v63  ;;  %v9023_v61 = vadd.f32 %v13491_v41, %v829_v57  ;;  %v10516_v63 = vld [vmem:[%s14108_s3 + $0x3e4] ss:$16 sps:$4 sm:$0xff]   ;;  %v10517_v41 = vld [vmem:[%s14108_s3 + $0x3e8] ss:$16 sps:$4 sm:$0xff]  }
 0x3f2   :  { %v10589_v57 = vld [vmem:[%s14110_s5 + $0x168] ss:$16 sps:$4 sm:$0xff]  }
 0x3f3   :  { %6859 = vmatpush1.bf16.msra.mxu0 %v10430_v1  ;;  %6941 = vmatpush1.bf16.msra.mxu1 %v10433_v51  ;;  %v10514_v1 = vld [vmem:[%s14108_s3 + $0x3e0] ss:$16 sps:$4 sm:$0xff]   ;;  %v6019_v51 = vmax.f32 %v9023_v61, 0.0  ;;  %v10600_v61 = vld [vmem:[%s14110_s5 + $0x1a4] ss:$16 sps:$4 sm:$0xff]  }
 0x3f4   :  { %6860 = vmatprep.subr.bf16.mxu0 %v10438_v2  ;;  %6942 = vmatprep.subr.bf16.mxu1 %v10441_v3  ;;  %v10522_v2 = vld [vmem:[%s14110_s5 + $0x4] ss:$16 sps:$4 sm:$0xff]   ;;  %v10525_v3 = vld [vmem:[%s14110_s5 + $0xc] ss:$16 sps:$4 sm:$0xff]  }
 0x3f7   :  { %6861 = vmatpush1.bf16.msra.mxu0 %v10436_v4  ;;  %6943 = vmatpush1.bf16.msra.mxu1 %v10439_v60  ;;  %v10520_v4 = vld [vmem:[%s14110_s5] ss:$16 sps:$4 sm:$0xff]   ;;  %v10523_v60 = vld [vmem:[%s14110_s5 + $0x8] ss:$16 sps:$4 sm:$0xff]  }
 0x3f8   :  { %6862 = vmatprep.subr.bf16.mxu0 %v10444_v5  ;;  %6944 = vmatprep.subr.bf16.mxu1 %v10447_v6  ;;  %v6023_v5 = vpack.c.bf16 %v6019_v51, %v6019_v51  ;;  %v10528_v6 = vld [vmem:[%s14110_s5 + $0x24] ss:$16 sps:$4 sm:$0xff]   ;;  %v10609_v51 = vld [vmem:[%s14110_s5 + $0x1cc] ss:$16 sps:$4 sm:$0xff]  }
 0x3fb   :  { %6863 = vmatpush1.bf16.msra.mxu0 %v10442_v7  ;;  %6945 = vmatpush1.bf16.msra.mxu1 %v10445_v62  ;;  %v10531_v7 = vld [vmem:[%s14110_s5 + $0x2c] ss:$16 sps:$4 sm:$0xff]   ;;  %v10526_v62 = vld [vmem:[%s14110_s5 + $0x20] ss:$16 sps:$4 sm:$0xff]  }
 0x3fc   :  { %6864 = vmatprep.subr.bf16.mxu0 %v10450_v10  ;;  %6946 = vmatprep.subr.bf16.mxu1 %v10453_v11  ;;  %v10529_v10 = vld [vmem:[%s14110_s5 + $0x28] ss:$16 sps:$4 sm:$0xff]   ;;  %v10534_v11 = vld [vmem:[%s14110_s5 + $0x44] ss:$16 sps:$4 sm:$0xff]  }
 0x3ff   :  { %6865 = vmatpush1.bf16.msra.mxu0 %v10448_v12  ;;  %6947 = vmatpush1.bf16.msra.mxu1 %v10451_v0  ;;  %v10537_v12 = vld [vmem:[%s14110_s5 + $0x4c] ss:$16 sps:$4 sm:$0xff]   ;;  %v10532_v0 = vld [vmem:[%s14110_s5 + $0x40] ss:$16 sps:$4 sm:$0xff]  }
 0x400   :  { %6866 = vmatprep.subr.bf16.mxu0 %v10456_v52  ;;  %6948 = vmatprep.subr.bf16.mxu1 %v10459_v15  ;;  %v10535_v52 = vld [vmem:[%s14110_s5 + $0x48] ss:$16 sps:$4 sm:$0xff]   ;;  %v10540_v15 = vld [vmem:[%s14110_s5 + $0x64] ss:$16 sps:$4 sm:$0xff]  }
 0x403   :  { %6867 = vmatpush1.bf16.msra.mxu0 %v10454_v16  ;;  %6949 = vmatpush1.bf16.msra.mxu1 %v10457_v8  ;;  %v10543_v16 = vld [vmem:[%s14110_s5 + $0x6c] ss:$16 sps:$4 sm:$0xff]   ;;  %v10538_v8 = vld [vmem:[%s14110_s5 + $0x60] ss:$16 sps:$4 sm:$0xff]  }
 0x404   :  { %6868 = vmatprep.subr.bf16.mxu0 %v10462_v9  ;;  %6950 = vmatprep.subr.bf16.mxu1 %v10465_v17  ;;  %v10541_v9 = vld [vmem:[%s14110_s5 + $0x68] ss:$16 sps:$4 sm:$0xff]   ;;  %v10546_v17 = vld [vmem:[%s14110_s5 + $0x84] ss:$16 sps:$4 sm:$0xff]  }
 0x407   :  { %6869 = vmatpush1.bf16.msra.mxu0 %v10460_v18  ;;  %6951 = vmatpush1.bf16.msra.mxu1 %v10463_v19  ;;  %v10549_v18 = vld [vmem:[%s14110_s5 + $0x8c] ss:$16 sps:$4 sm:$0xff]   ;;  %v10544_v19 = vld [vmem:[%s14110_s5 + $0x80] ss:$16 sps:$4 sm:$0xff]  }
 0x408   :  { %6870 = vmatprep.subr.bf16.mxu0 %v10468_v20  ;;  %6952 = vmatprep.subr.bf16.mxu1 %v10471_v22  ;;  %v10547_v20 = vld [vmem:[%s14110_s5 + $0x88] ss:$16 sps:$4 sm:$0xff]   ;;  %v10552_v22 = vld [vmem:[%s14110_s5 + $0xa4] ss:$16 sps:$4 sm:$0xff]  }
 0x40b   :  { %6871 = vmatpush1.bf16.msra.mxu0 %v10466_v23  ;;  %6953 = vmatpush1.bf16.msra.mxu1 %v10469_v24  ;;  %v10555_v23 = vld [vmem:[%s14110_s5 + $0xac] ss:$16 sps:$4 sm:$0xff]   ;;  %v10550_v24 = vld [vmem:[%s14110_s5 + $0xa0] ss:$16 sps:$4 sm:$0xff]  }
 0x40c   :  { %6872 = vmatprep.subr.bf16.mxu0 %v10474_v13  ;;  %6954 = vmatprep.subr.bf16.mxu1 %v10477_v27  ;;  %v10553_v13 = vld [vmem:[%s14110_s5 + $0xa8] ss:$16 sps:$4 sm:$0xff]   ;;  %v10558_v27 = vld [vmem:[%s14110_s5 + $0xc4] ss:$16 sps:$4 sm:$0xff]  }
 0x40f   :  { %6873 = vmatpush1.bf16.msra.mxu0 %v10472_v28  ;;  %6955 = vmatpush1.bf16.msra.mxu1 %v10475_v29  ;;  %v10561_v28 = vld [vmem:[%s14110_s5 + $0xcc] ss:$16 sps:$4 sm:$0xff]   ;;  %v10556_v29 = vld [vmem:[%s14110_s5 + $0xc0] ss:$16 sps:$4 sm:$0xff]  }
 0x410   :  { %6874 = vmatprep.subr.bf16.mxu0 %v10480_v14  ;;  %6956 = vmatprep.subr.bf16.mxu1 %v10483_v30  ;;  %v10559_v14 = vld [vmem:[%s14110_s5 + $0xc8] ss:$16 sps:$4 sm:$0xff]   ;;  %v10564_v30 = vld [vmem:[%s14110_s5 + $0xe4] ss:$16 sps:$4 sm:$0xff]  }
 0x413   :  { %6875 = vmatpush1.bf16.msra.mxu0 %v10478_v31  ;;  %6957 = vmatpush1.bf16.msra.mxu1 %v10481_v25  ;;  %v10567_v31 = vld [vmem:[%s14110_s5 + $0xec] ss:$16 sps:$4 sm:$0xff]   ;;  %v10562_v25 = vld [vmem:[%s14110_s5 + $0xe0] ss:$16 sps:$4 sm:$0xff]  }
 0x414   :  { %6876 = vmatprep.subr.bf16.mxu0 %v10486_v32  ;;  %6958 = vmatprep.subr.bf16.mxu1 %v10489_v37  ;;  %v10565_v32 = vld [vmem:[%s14110_s5 + $0xe8] ss:$16 sps:$4 sm:$0xff]   ;;  %v10570_v37 = vld [vmem:[%s14110_s5 + $0x104] ss:$16 sps:$4 sm:$0xff]  }
 0x417   :  { %6877 = vmatpush1.bf16.msra.mxu0 %v10484_v21  ;;  %6959 = vmatpush1.bf16.msra.mxu1 %v10487_v39  ;;  %v10573_v21 = vld [vmem:[%s14110_s5 + $0x10c] ss:$16 sps:$4 sm:$0xff]   ;;  %v10568_v39 = vld [vmem:[%s14110_s5 + $0x100] ss:$16 sps:$4 sm:$0xff]  }
 0x418   :  { %6878 = vmatprep.subr.bf16.mxu0 %v10492_v40  ;;  %6960 = vmatprep.subr.bf16.mxu1 %v10495_v34  ;;  %v10571_v40 = vld [vmem:[%s14110_s5 + $0x108] ss:$16 sps:$4 sm:$0xff]   ;;  %v10576_v34 = vld [vmem:[%s14110_s5 + $0x124] ss:$16 sps:$4 sm:$0xff]  }
 0x41b   :  { %6879 = vmatpush1.bf16.msra.mxu0 %v10490_v43  ;;  %6961 = vmatpush1.bf16.msra.mxu1 %v10493_v45  ;;  %v10579_v43 = vld [vmem:[%s14110_s5 + $0x12c] ss:$16 sps:$4 sm:$0xff]   ;;  %v10574_v45 = vld [vmem:[%s14110_s5 + $0x120] ss:$16 sps:$4 sm:$0xff]  }
 0x41c   :  { %6880 = vmatprep.subr.bf16.mxu0 %v10498_v46  ;;  %6962 = vmatprep.subr.bf16.mxu1 %v10501_v35  ;;  %v10577_v46 = vld [vmem:[%s14110_s5 + $0x128] ss:$16 sps:$4 sm:$0xff]   ;;  %v10582_v35 = vld [vmem:[%s14110_s5 + $0x144] ss:$16 sps:$4 sm:$0xff]  }
 0x41f   :  { %6881 = vmatpush1.bf16.msra.mxu0 %v10496_v50  ;;  %6963 = vmatpush1.bf16.msra.mxu1 %v10499_v53  ;;  %v10585_v50 = vld [vmem:[%s14110_s5 + $0x14c] ss:$16 sps:$4 sm:$0xff]   ;;  %v10580_v53 = vld [vmem:[%s14110_s5 + $0x140] ss:$16 sps:$4 sm:$0xff]  }
 0x420   :  { %6882 = vmatprep.subr.bf16.mxu0 %v10504_v54  ;;  %6964 = vmatprep.subr.bf16.mxu1 %v10507_v55  ;;  %v10583_v54 = vld [vmem:[%s14110_s5 + $0x148] ss:$16 sps:$4 sm:$0xff]   ;;  %v10588_v55 = vld [vmem:[%s14110_s5 + $0x164] ss:$16 sps:$4 sm:$0xff]  }
 0x423   :  { %6883 = vmatpush1.bf16.msra.mxu0 %v10502_v56  ;;  %6965 = vmatpush1.bf16.msra.mxu1 %v10505_v47  ;;  %v10591_v56 = vld [vmem:[%s14110_s5 + $0x16c] ss:$16 sps:$4 sm:$0xff]   ;;  %v10586_v47 = vld [vmem:[%s14110_s5 + $0x160] ss:$16 sps:$4 sm:$0xff]  }
 0x424   :  { %6884 = vmatprep.subr.bf16.mxu0 %v10510_v58  ;;  %6966 = vmatprep.subr.bf16.mxu1 %v10513_v59  ;;  %v10594_v58 = vld [vmem:[%s14110_s5 + $0x184] ss:$16 sps:$4 sm:$0xff]   ;;  %v10597_v59 = vld [vmem:[%s14110_s5 + $0x18c] ss:$16 sps:$4 sm:$0xff]  }
 0x427   :  { %6885 = vmatpush1.bf16.msra.mxu0 %v10508_v48  ;;  %6967 = vmatpush1.bf16.msra.mxu1 %v10511_v26  ;;  %v10592_v48 = vld [vmem:[%s14110_s5 + $0x180] ss:$16 sps:$4 sm:$0xff]   ;;  %v10595_v26 = vld [vmem:[%s14110_s5 + $0x188] ss:$16 sps:$4 sm:$0xff]  }
 0x428   :  { %6886 = vmatprep.subr.bf16.mxu0 %v10516_v63  ;;  %6968 = vmatprep.subr.bf16.mxu1 %v10519_v44  ;;  %v10603_v63 = vld [vmem:[%s14110_s5 + $0x1ac] ss:$16 sps:$4 sm:$0xff]   ;;  %v10598_v44 = vld [vmem:[%s14110_s5 + $0x1a0] ss:$16 sps:$4 sm:$0xff]  }
 0x42b   :  { %6887 = vmatpush1.bf16.msra.mxu0 %v10514_v1  ;;  %6969 = vmatpush1.bf16.msra.mxu1 %v10517_v41  ;;  %v10601_v1 = vld [vmem:[%s14110_s5 + $0x1a8] ss:$16 sps:$4 sm:$0xff]   ;;  %v10606_v41 = vld [vmem:[%s14110_s5 + $0x1c4] ss:$16 sps:$4 sm:$0xff]  }
 0x42c   :  { %7777 = vmatprep.subr.bf16.mxu0 %v10522_v2  ;;  %7859 = vmatprep.subr.bf16.mxu1 %v10525_v3  ;;  %v10604_v2 = vld [vmem:[%s14110_s5 + $0x1c0] ss:$16 sps:$4 sm:$0xff]   ;;  %v10607_v3 = vld [vmem:[%s14110_s5 + $0x1c8] ss:$16 sps:$4 sm:$0xff]  }
 0x42e   :  { %6889 = vmatmul.mubr.bf16.vlgmr.msra.gmra.mrb[4].mxu0 %v6023_v5  ;;  %6971 = vmatmul.mubr.bf16.vlgmr.msra.gmra.mrb[4].mxu1 %v6023_v5  ;;  %v10610_v5 = vld [vmem:[%s14110_s5 + $0x1e0] ss:$16 sps:$4 sm:$0xff]  }
 0x42f   :  { %7778 = vmatpush1.bf16.msra.mxu0 %v10520_v4  ;;  %7860 = vmatpush1.bf16.msra.mxu1 %v10523_v60  ;;  %v10612_v4 = vld [vmem:[%s14110_s5 + $0x1e4] ss:$16 sps:$4 sm:$0xff]   ;;  %v10615_v60 = vld [vmem:[%s14110_s5 + $0x1ec] ss:$16 sps:$4 sm:$0xff]  }
 0x430   :  { %7779 = vmatprep.subr.bf16.mxu0 %v10528_v6  ;;  %7861 = vmatprep.subr.bf16.mxu1 %v10531_v7  ;;  %v10613_v6 = vld [vmem:[%s14110_s5 + $0x1e8] ss:$16 sps:$4 sm:$0xff]   ;;  %v10618_v7 = vld [vmem:[%s14110_s5 + $0x204] ss:$16 sps:$4 sm:$0xff]  }
 0x433   :  { %7780 = vmatpush1.bf16.msra.mxu0 %v10526_v62  ;;  %7862 = vmatpush1.bf16.msra.mxu1 %v10529_v10  ;;  %v10621_v62 = vld [vmem:[%s14110_s5 + $0x20c] ss:$16 sps:$4 sm:$0xff]   ;;  %v13886_v10 = vld [vmem:[%s14109_s4] sm:$0xf] }
 0x434   :  { %7781 = vmatprep.subr.bf16.mxu0 %v10534_v11  ;;  %7863 = vmatprep.subr.bf16.mxu1 %v10537_v12  ;;  %v6158_v11 = vrot.slane %v13886_v10, %v13472_v33  ;;  %v6162_v12 = vrot.slane %v13886_v10, %v13480_v49 }
 0x437   :  { %7782 = vmatpush1.bf16.msra.mxu0 %v10532_v0  ;;  %7864 = vmatpush1.bf16.msra.mxu1 %v10535_v52  ;;  %v6170_v0 = vrot.slane %v13886_v10, %v13483_v36 }
 0x438   :  { %7783 = vmatprep.subr.bf16.mxu0 %v10540_v15  ;;  %7865 = vmatprep.subr.bf16.mxu1 %v10543_v16 }
 0x43b   :  { %7784 = vmatpush1.bf16.msra.mxu0 %v10538_v8  ;;  %7866 = vmatpush1.bf16.msra.mxu1 %v10541_v9 }
 0x43c   :  { %7785 = vmatprep.subr.bf16.mxu0 %v10546_v17  ;;  %7867 = vmatprep.subr.bf16.mxu1 %v10549_v18 }
 0x43f   :  { %7786 = vmatpush1.bf16.msra.mxu0 %v10544_v19  ;;  %7868 = vmatpush1.bf16.msra.mxu1 %v10547_v20 }
 0x440   :  { %7787 = vmatprep.subr.bf16.mxu0 %v10552_v22  ;;  %7869 = vmatprep.subr.bf16.mxu1 %v10555_v23 }
 0x443   :  { %7788 = vmatpush1.bf16.msra.mxu0 %v10550_v24  ;;  %7870 = vmatpush1.bf16.msra.mxu1 %v10553_v13 }
 0x444   :  { %7789 = vmatprep.subr.bf16.mxu0 %v10558_v27  ;;  %7871 = vmatprep.subr.bf16.mxu1 %v10561_v28 }
 0x447   :  { %7790 = vmatpush1.bf16.msra.mxu0 %v10556_v29  ;;  %7872 = vmatpush1.bf16.msra.mxu1 %v10559_v14  ;;  %v10616_v29 = vld [vmem:[%s14110_s5 + $0x200] ss:$16 sps:$4 sm:$0xff]   ;;  %v10619_v14 = vld [vmem:[%s14110_s5 + $0x208] ss:$16 sps:$4 sm:$0xff]  }
 0x448   :  { %7791 = vmatprep.subr.bf16.mxu0 %v10564_v30  ;;  %7873 = vmatprep.subr.bf16.mxu1 %v10567_v31  ;;  %v10624_v31 = vld [vmem:[%s14110_s5 + $0x224] ss:$16 sps:$4 sm:$0xff]  }
 0x44b   :  { %7792 = vmatpush1.bf16.msra.mxu0 %v10562_v25  ;;  %7874 = vmatpush1.bf16.msra.mxu1 %v10565_v32  ;;  %v10627_v25 = vld [vmem:[%s14110_s5 + $0x22c] ss:$16 sps:$4 sm:$0xff]  }
 0x44c   :  { %7793 = vmatprep.subr.bf16.mxu0 %v10570_v37  ;;  %7875 = vmatprep.subr.bf16.mxu1 %v10573_v21  ;;  %v10622_v37 = vld [vmem:[%s14110_s5 + $0x220] ss:$16 sps:$4 sm:$0xff]   ;;  %v10625_v21 = vld [vmem:[%s14110_s5 + $0x228] ss:$16 sps:$4 sm:$0xff]  }
 0x44f   :  { %7794 = vmatpush1.bf16.msra.mxu0 %v10568_v39  ;;  %7876 = vmatpush1.bf16.msra.mxu1 %v10571_v40  ;;  %v10630_v39 = vld [vmem:[%s14110_s5 + $0x244] ss:$16 sps:$4 sm:$0xff]   ;;  %v10633_v40 = vld [vmem:[%s14110_s5 + $0x24c] ss:$16 sps:$4 sm:$0xff]  }
 0x450   :  { %7795 = vmatprep.subr.bf16.mxu0 %v10576_v34  ;;  %7877 = vmatprep.subr.bf16.mxu1 %v10579_v43  ;;  %v10628_v34 = vld [vmem:[%s14110_s5 + $0x240] ss:$16 sps:$4 sm:$0xff]   ;;  %v10631_v43 = vld [vmem:[%s14110_s5 + $0x248] ss:$16 sps:$4 sm:$0xff]  }
 0x453   :  { %7796 = vmatpush1.bf16.msra.mxu0 %v10574_v45  ;;  %7878 = vmatpush1.bf16.msra.mxu1 %v10577_v46  ;;  %v10636_v45 = vld [vmem:[%s14110_s5 + $0x264] ss:$16 sps:$4 sm:$0xff]   ;;  %v10639_v46 = vld [vmem:[%s14110_s5 + $0x26c] ss:$16 sps:$4 sm:$0xff]  }
 0x454   :  { %7797 = vmatprep.subr.bf16.mxu0 %v10582_v35  ;;  %7879 = vmatprep.subr.bf16.mxu1 %v10585_v50  ;;  %v10634_v35 = vld [vmem:[%s14110_s5 + $0x260] ss:$16 sps:$4 sm:$0xff]   ;;  %v10637_v50 = vld [vmem:[%s14110_s5 + $0x268] ss:$16 sps:$4 sm:$0xff]  }
 0x457   :  { %7798 = vmatpush1.bf16.msra.mxu0 %v10580_v53  ;;  %7880 = vmatpush1.bf16.msra.mxu1 %v10583_v54  ;;  %v10642_v53 = vld [vmem:[%s14110_s5 + $0x284] ss:$16 sps:$4 sm:$0xff]   ;;  %v10645_v54 = vld [vmem:[%s14110_s5 + $0x28c] ss:$16 sps:$4 sm:$0xff]  }
 0x458   :  { %7799 = vmatprep.subr.bf16.mxu0 %v10588_v55  ;;  %7881 = vmatprep.subr.bf16.mxu1 %v10591_v56  ;;  %v10640_v55 = vld [vmem:[%s14110_s5 + $0x280] ss:$16 sps:$4 sm:$0xff]   ;;  %v10643_v56 = vld [vmem:[%s14110_s5 + $0x288] ss:$16 sps:$4 sm:$0xff]  }
 0x45b   :  { %7800 = vmatpush1.bf16.msra.mxu0 %v10586_v47  ;;  %7882 = vmatpush1.bf16.msra.mxu1 %v10589_v57  ;;  %v10648_v47 = vld [vmem:[%s14110_s5 + $0x2a4] ss:$16 sps:$4 sm:$0xff]   ;;  %v10651_v57 = vld [vmem:[%s14110_s5 + $0x2ac] ss:$16 sps:$4 sm:$0xff]  }
 0x45c   :  { %7801 = vmatprep.subr.bf16.mxu0 %v10594_v58  ;;  %7883 = vmatprep.subr.bf16.mxu1 %v10597_v59  ;;  %v10646_v58 = vld [vmem:[%s14110_s5 + $0x2a0] ss:$16 sps:$4 sm:$0xff]   ;;  %v10649_v59 = vld [vmem:[%s14110_s5 + $0x2a8] ss:$16 sps:$4 sm:$0xff]  }
 0x45f   :  { %7802 = vmatpush1.bf16.msra.mxu0 %v10592_v48  ;;  %7884 = vmatpush1.bf16.msra.mxu1 %v10595_v26  ;;  %v10654_v48 = vld [vmem:[%s14110_s5 + $0x2c4] ss:$16 sps:$4 sm:$0xff]   ;;  %v10657_v26 = vld [vmem:[%s14110_s5 + $0x2cc] ss:$16 sps:$4 sm:$0xff]  }
 0x460   :  { %7803 = vmatprep.subr.bf16.mxu0 %v10600_v61  ;;  %7885 = vmatprep.subr.bf16.mxu1 %v10603_v63  ;;  %v10652_v61 = vld [vmem:[%s14110_s5 + $0x2c0] ss:$16 sps:$4 sm:$0xff]   ;;  %v10655_v63 = vld [vmem:[%s14110_s5 + $0x2c8] ss:$16 sps:$4 sm:$0xff]  }
 0x463   :  { %7804 = vmatpush1.bf16.msra.mxu0 %v10598_v44  ;;  %7886 = vmatpush1.bf16.msra.mxu1 %v10601_v1  ;;  %v10660_v44 = vld [vmem:[%s14110_s5 + $0x2e4] ss:$16 sps:$4 sm:$0xff]   ;;  %v10663_v1 = vld [vmem:[%s14110_s5 + $0x2ec] ss:$16 sps:$4 sm:$0xff]  }
 0x464   :  { %7805 = vmatprep.subr.bf16.mxu0 %v10606_v41  ;;  %7887 = vmatprep.subr.bf16.mxu1 %v10609_v51  ;;  %v10658_v41 = vld [vmem:[%s14110_s5 + $0x2e0] ss:$16 sps:$4 sm:$0xff]   ;;  %v10661_v51 = vld [vmem:[%s14110_s5 + $0x2e8] ss:$16 sps:$4 sm:$0xff]  }
 0x467   :  { %7806 = vmatpush1.bf16.msra.mxu0 %v10604_v2  ;;  %7888 = vmatpush1.bf16.msra.mxu1 %v10607_v3  ;;  %v10666_v2 = vld [vmem:[%s14110_s5 + $0x304] ss:$16 sps:$4 sm:$0xff]   ;;  %v10669_v3 = vld [vmem:[%s14110_s5 + $0x30c] ss:$16 sps:$4 sm:$0xff]  }
 0x468   :  { %7807 = vmatprep.subr.bf16.mxu0 %v10612_v4  ;;  %7889 = vmatprep.subr.bf16.mxu1 %v10615_v60  ;;  %v10664_v4 = vld [vmem:[%s14110_s5 + $0x300] ss:$16 sps:$4 sm:$0xff]   ;;  %v10667_v60 = vld [vmem:[%s14110_s5 + $0x308] ss:$16 sps:$4 sm:$0xff]  }
 0x46b   :  { %7808 = vmatpush1.bf16.msra.mxu0 %v10610_v5  ;;  %7890 = vmatpush1.bf16.msra.mxu1 %v10613_v6  ;;  %v10672_v5 = vld [vmem:[%s14110_s5 + $0x324] ss:$16 sps:$4 sm:$0xff]   ;;  %v10675_v6 = vld [vmem:[%s14110_s5 + $0x32c] ss:$16 sps:$4 sm:$0xff]  }
 0x46c   :  { %7818 = vmatprep.subr.bf16.mxu0 %v10618_v7  ;;  %7900 = vmatprep.subr.bf16.mxu1 %v10621_v62  ;;  %v10670_v7 = vld [vmem:[%s14110_s5 + $0x320] ss:$16 sps:$4 sm:$0xff]   ;;  %v10673_v62 = vld [vmem:[%s14110_s5 + $0x328] ss:$16 sps:$4 sm:$0xff]  }
 0x501   :  { %v6890_v52 = vpop.f32.mrb[4].mxu0  ;;  %v13894_v15 = vpop.f32.mrb[4].mxu1 }
 0x502   :  { %v9025_v16 = vadd.f32 %v6890_v52, %v6158_v11  ;;  %v6892_v8 = vpop.f32.mrb[5].mxu0  ;;  %v6974_v9 = vpop.f32.mrb[5].mxu1  ;;  %v10678_v11 = vld [vmem:[%s14110_s5 + $0x344] ss:$16 sps:$4 sm:$0xff]   ;;  %v10679_v52 = vld [vmem:[%s14110_s5 + $0x348] ss:$16 sps:$4 sm:$0xff]  }
 0x503   :  { %v9026_v17 = vadd.f32 %v6892_v8, %v6162_v12  ;;  %v9028_v18 = vadd.f32 %v6974_v9, %v6170_v0  ;;  %v6894_v19 = vpop.f32.mrb[6].mxu0  ;;  %v6976_v20 = vpop.f32.mrb[6].mxu1  ;;  %v10681_v12 = vld [vmem:[%s14110_s5 + $0x34c] ss:$16 sps:$4 sm:$0xff]   ;;  %v10676_v0 = vld [vmem:[%s14110_s5 + $0x340] ss:$16 sps:$4 sm:$0xff]  }
 0x504   :  { %v6979_v22 = vmax.f32 %v9025_v16, 0.0  ;;  %v6895_v23 = vpop.f32.mrb[7].mxu0  ;;  %v6977_v24 = vpop.f32.mrb[7].mxu1  ;;  %v10684_v16 = vld [vmem:[%s14110_s5 + $0x364] ss:$16 sps:$4 sm:$0xff]  }
 0x505   :  { %v6980_v13 = vmax.f32 %v9026_v17, 0.0  ;;  %v6982_v27 = vmax.f32 %v9028_v18, 0.0  ;;  %v10687_v8 = vld [vmem:[%s14110_s5 + $0x36c] ss:$16 sps:$4 sm:$0xff]   ;;  %v10682_v9 = vld [vmem:[%s14110_s5 + $0x360] ss:$16 sps:$4 sm:$0xff]  }
 0x506   :  { %v6983_v30 = vpack.c.bf16 %v6979_v22, %v6979_v22  ;;  %v10685_v17 = vld [vmem:[%s14110_s5 + $0x368] ss:$16 sps:$4 sm:$0xff]   ;;  %v10690_v18 = vld [vmem:[%s14110_s5 + $0x384] ss:$16 sps:$4 sm:$0xff]   ;;  %v10693_v19 = vld [vmem:[%s14110_s5 + $0x38c] ss:$16 sps:$4 sm:$0xff]  }
 0x507   :  { %v6984_v28 = vpack.c.bf16 %v6980_v13, %v6980_v13  ;;  %v6986_v32 = vpack.c.bf16 %v6982_v27, %v6982_v27  ;;  %v10688_v20 = vld [vmem:[%s14110_s5 + $0x380] ss:$16 sps:$4 sm:$0xff]   ;;  %v10691_v22 = vld [vmem:[%s14110_s5 + $0x388] ss:$16 sps:$4 sm:$0xff]   ;;  %v10696_v23 = vld [vmem:[%s14110_s5 + $0x3a4] ss:$16 sps:$4 sm:$0xff]  }
 0x508   :  { %v10699_v24 = vld [vmem:[%s14110_s5 + $0x3ac] ss:$16 sps:$4 sm:$0xff]   ;;  %v10694_v13 = vld [vmem:[%s14110_s5 + $0x3a0] ss:$16 sps:$4 sm:$0xff]   ;;  %v10697_v27 = vld [vmem:[%s14110_s5 + $0x3a8] ss:$16 sps:$4 sm:$0xff]  }
 0x509   :  { %7809 = vmatprep.mubr.bf16.mxu0 %v6984_v28  ;;  %7891 = vmatprep.mubr.bf16.mxu1 %v6984_v28  ;;  %v6166_v28 = vrot.slane %v13886_v10, %v13644_v38  ;;  %v10703_v10 = vld [vmem:[%s14110_s5 + $0x3c8] ss:$16 sps:$4 sm:$0xff]  }
 0x50a   :  { %7810 = vmatmul.mubr.bf16.vlgmr.msra.gmra.mrb[8].mxu0 %v6983_v30  ;;  %7892 = vmatmul.mubr.bf16.vlgmr.msra.gmra.mrb[8].mxu1 %v6983_v30  ;;  %v10700_v30 = vld [vmem:[%s14110_s5 + $0x3c0] ss:$16 sps:$4 sm:$0xff]  }
 0x50b   :  { %7819 = vmatpush1.bf16.msra.mxu0 %v10616_v29  ;;  %7901 = vmatpush1.bf16.msra.mxu1 %v10619_v14  ;;  %v10702_v29 = vld [vmem:[%s14110_s5 + $0x3c4] ss:$16 sps:$4 sm:$0xff]   ;;  %v10705_v14 = vld [vmem:[%s14110_s5 + $0x3cc] ss:$16 sps:$4 sm:$0xff]  }
 0x50c   :  { %7850 = vmatprep.mubr.bf16.mxu0 %v6986_v32  ;;  %7932 = vmatprep.mubr.bf16.mxu1 %v6986_v32  ;;  %v10711_v32 = vld [vmem:[%s14110_s5 + $0x3ec] ss:$16 sps:$4 sm:$0xff]  }
 0x50d   :  { %7820 = vmatprep.subr.bf16.mxu0 %v10624_v31  ;;  %7902 = vmatprep.subr.bf16.mxu1 %v10627_v25  ;;  %v9027_v31 = vadd.f32 %v13894_v15, %v6166_v28  ;;  %v10708_v25 = vld [vmem:[%s14110_s5 + $0x3e4] ss:$16 sps:$4 sm:$0xff]   ;;  %v10709_v15 = vld [vmem:[%s14110_s5 + $0x3e8] ss:$16 sps:$4 sm:$0xff]  }
 0x50f   :  { %7821 = vmatpush1.bf16.msra.mxu0 %v10622_v37  ;;  %7903 = vmatpush1.bf16.msra.mxu1 %v10625_v21  ;;  %v10706_v37 = vld [vmem:[%s14110_s5 + $0x3e0] ss:$16 sps:$4 sm:$0xff]   ;;  %v6981_v21 = vmax.f32 %v9027_v31, 0.0  ;;  %s10741_s5 = smov [#allocation2]  }
 0x510   :  { %7822 = vmatprep.subr.bf16.mxu0 %v10630_v39  ;;  %7904 = vmatprep.subr.bf16.mxu1 %v10633_v40  ;;  %v7115_v40 = vld [vmem:[%s14111_s6] sm:$0xf]  ;;  %s7970_s6 = sshll.u32 %s10741_s5, 4  ;;  %s7971_s6 = int_to_ptr.vmem [resolvable:$true] %s7970_s6 }
 0x511   :  { %v6985_v39 = vpack.c.bf16 %v6981_v21, %v6981_v21  ;;  %s10714_s26 = scalar_lea.vmem %s7971_s6, 128  ;;  %p10719_p1 = scmp.lt.s32.totalorder %s7971_s6, %s7971_s6 }
 0x512   :  { %p10715_p0 = scmp.ne.s32.totalorder %s7971_s6, %s10714_s26  ;;  %p10720_p2 = scmp.lt.s32.totalorder %s10714_s26, %s10714_s26 }
 0x513   :  { %7823 = vmatpush1.bf16.msra.mxu0 %v10628_v34  ;;  %7905 = vmatpush1.bf16.msra.mxu1 %v10631_v43  ;;  %v10740_v34 = vmov 1983009808  }
 0x514   :  { %7824 = vmatprep.subr.bf16.mxu0 %v10636_v45  ;;  %7906 = vmatprep.subr.bf16.mxu1 %v10639_v46  ;;  %v7948_v43 = vunpack.c.l.s4 %v10740_v34  ;;  %v7120_v45 = vrot.slane %v7115_v40, %v13472_v33  ;;  %v7128_v46 = vrot.slane %v7115_v40, %v13644_v38  ;;  %p10721_p3 = por %p10720_p2, %p10719_p1 }
 0x516   :  { %p10722_p4 = pnand %p10721_p3, %p10715_p0 }
 0x517   :  { %7825 = vmatpush1.bf16.msra.mxu0 %v10634_v35  ;;  %7907 = vmatpush1.bf16.msra.mxu1 %v10637_v50  ;;  %v7124_v35 = vrot.slane %v7115_v40, %v13480_v49  ;;  %v7132_v50 = vrot.slane %v7115_v40, %v13483_v36 }
 0x518   :  { %7826 = vmatprep.subr.bf16.mxu0 %v10642_v53  ;;  %7908 = vmatprep.subr.bf16.mxu1 %v10645_v54  ;;  %v7949_v53 = vunpack.c.0.s8 %v7948_v43 }
 0x51b   :  { %7827 = vmatpush1.bf16.msra.mxu0 %v10640_v55  ;;  %7909 = vmatpush1.bf16.msra.mxu1 %v10643_v56 }
 0x51c   :  { %7828 = vmatprep.subr.bf16.mxu0 %v10648_v47  ;;  %7910 = vmatprep.subr.bf16.mxu1 %v10651_v57 }
 0x51f   :  { %7829 = vmatpush1.bf16.msra.mxu0 %v10646_v58  ;;  %7911 = vmatpush1.bf16.msra.mxu1 %v10649_v59 }
 0x520   :  { %7830 = vmatprep.subr.bf16.mxu0 %v10654_v48  ;;  %7912 = vmatprep.subr.bf16.mxu1 %v10657_v26 }
 0x523   :  { %7831 = vmatpush1.bf16.msra.mxu0 %v10652_v61  ;;  %7913 = vmatpush1.bf16.msra.mxu1 %v10655_v63  ;;  %v7952_v63 = vsub.s32 %v7949_v53, %v10899_v42 }
 0x524   :  { %7832 = vmatprep.subr.bf16.mxu0 %v10660_v44  ;;  %7914 = vmatprep.subr.bf16.mxu1 %v10663_v1 }
 0x527   :  { %7833 = vmatpush1.bf16.msra.mxu0 %v10658_v41  ;;  %7915 = vmatpush1.bf16.msra.mxu1 %v10661_v51 }
 0x528   :  { %7834 = vmatprep.subr.bf16.mxu0 %v10666_v2  ;;  %7916 = vmatprep.subr.bf16.mxu1 %v10669_v3 }
 0x52b   :  { %7835 = vmatpush1.bf16.msra.mxu0 %v10664_v4  ;;  %7917 = vmatpush1.bf16.msra.mxu1 %v10667_v60 }
 0x52c   :  { %7836 = vmatprep.subr.bf16.mxu0 %v10672_v5  ;;  %7918 = vmatprep.subr.bf16.mxu1 %v10675_v6 }
 0x52f   :  { %7837 = vmatpush1.bf16.msra.mxu0 %v10670_v7  ;;  %7919 = vmatpush1.bf16.msra.mxu1 %v10673_v62 }
 0x530   :  { %7838 = vmatprep.subr.bf16.mxu0 %v10678_v11  ;;  %7920 = vmatprep.subr.bf16.mxu1 %v10681_v12 }
 0x533   :  { %7839 = vmatpush1.bf16.msra.mxu0 %v10676_v0  ;;  %7921 = vmatpush1.bf16.msra.mxu1 %v10679_v52 }
 0x534   :  { %7840 = vmatprep.subr.bf16.mxu0 %v10684_v16  ;;  %7922 = vmatprep.subr.bf16.mxu1 %v10687_v8 }
 0x537   :  { %7841 = vmatpush1.bf16.msra.mxu0 %v10682_v9  ;;  %7923 = vmatpush1.bf16.msra.mxu1 %v10685_v17 }
 0x538   :  { %7842 = vmatprep.subr.bf16.mxu0 %v10690_v18  ;;  %7924 = vmatprep.subr.bf16.mxu1 %v10693_v19 }
 0x53b   :  { %7843 = vmatpush1.bf16.msra.mxu0 %v10688_v20  ;;  %7925 = vmatpush1.bf16.msra.mxu1 %v10691_v22 }
 0x53c   :  { %7844 = vmatprep.subr.bf16.mxu0 %v10696_v23  ;;  %7926 = vmatprep.subr.bf16.mxu1 %v10699_v24 }
 0x53f   :  { %7845 = vmatpush1.bf16.msra.mxu0 %v10694_v13  ;;  %7927 = vmatpush1.bf16.msra.mxu1 %v10697_v27 }
 0x540   :  { %7846 = vmatprep.subr.bf16.mxu0 %v10702_v29  ;;  %7928 = vmatprep.subr.bf16.mxu1 %v10705_v14 }
 0x543   :  { %7847 = vmatpush1.bf16.msra.mxu0 %v10700_v30  ;;  %7929 = vmatpush1.bf16.msra.mxu1 %v10703_v10 }
 0x544   :  { %7848 = vmatprep.subr.bf16.mxu0 %v10708_v25  ;;  %7930 = vmatprep.subr.bf16.mxu1 %v10711_v32 }
 0x547   :  { %7849 = vmatpush1.bf16.msra.mxu0 %v10706_v37  ;;  %7931 = vmatpush1.bf16.msra.mxu1 %v10709_v15 }
 0x54a   :  { %7851 = vmatmul.mubr.bf16.vlgmr.msra.gmra.mrb[8].mxu0 %v6985_v39  ;;  %7933 = vmatmul.mubr.bf16.vlgmr.msra.gmra.mrb[8].mxu1 %v6985_v39 }
 0x61d   :  { %v7852_v54 = vpop.f32.mrb[8].mxu0  ;;  %v7934_v55 = vpop.f32.mrb[8].mxu1 }
 0x61e   :  { %v9029_v56 = vadd.f32 %v7852_v54, %v7120_v45  ;;  %v9031_v47 = vadd.f32 %v7934_v55, %v7128_v46  ;;  %v7854_v57 = vpop.f32.mrb[9].mxu0  ;;  %v7936_v58 = vpop.f32.mrb[9].mxu1 }
 0x61f   :  { %v9030_v59 = vadd.f32 %v7854_v57, %v7124_v35  ;;  %v9032_v48 = vadd.f32 %v7936_v58, %v7132_v50  ;;  %v7856_v26 = vpop.f32.mrb[10].mxu0  ;;  %v7938_v61 = vpop.f32.mrb[10].mxu1 }
 0x620   :  { %v7857_v33 = vpop.f32.mrb[11].mxu0  ;;  %v7939_v44 = vpop.f32.mrb[11].mxu1 }
 0x621   :  { %v7945_v38 = vcombine.low %v9029_v56, %v9030_v59  ;;  %v7946_v1 = vcombine.low %v9031_v47, %v9032_v48 }
 0x623   :  { %v7953_v49 = vrot.slane %v7945_v38, %v7952_v63  ;;  %v7960_v36 = vrot.slane %v7946_v1, %v7952_v63 }
 0x625   :  { %v7961_v41 = vcombine.low %v7953_v49, %v7960_v36 }
 0x627   :  { %7963 = vst [vmem:[#allocation2] sm:$0xff] %v7961_v41 }
 0x628   :  { %10725 = shalt.err (!%p10722_p4)
}
 0x629   :  { %s10726_s29 = scalar_lea.hbm %s14112_s7, 128 }
 0x62a   :  { %p10727_p5 = scmp.ne.s32.totalorder %s14112_s7, %s10726_s29  ;;  %p10730_p6 = scmp.lt.u32.totalorder %s10726_s29, %s14112_s7 }
 0x62c   :  { %p10732_p7 = pnand %p10730_p6, %p10727_p5 }
 0x62e   :  { %10735 = shalt.err (!%p10732_p7)
}
 0x62f   :  { %7973 = dma.vmem_to_hbm [thread:$0]  %s7971_s6, 128, %s14112_s7, [#allocation3]  }
 0x630   :  { %10736 = dma.done.wait [#allocation3], 128  }
 0x631   :  { %10737 = vsyncadd [#allocation3], 4294967168 }
 0x632   :  { %7977 = vsyncpa [#allocation3], 1 }

</bundles_post_ra>
